<compile_context>
chip_gen: v5e
topology: v5e:2x2
jax: 0.10.0
libtpu: 0.0.40
codegen_flags: <defaults>
</compile_context>

<pallas_src>
import functools

import numpy as np
import jax
import jax.numpy as jnp
from jax.experimental import pallas as pl
from jax.experimental.pallas import tpu as pltpu

PMAX = 7          # max zero-padding over all C->C convs in the module
SPA_K = 7         # SpatialAttention kernel size
SPA_P = 3         # SpatialAttention padding
N_BN = 14         # number of folded BatchNorm (scale, bias) pairs

# (name, KH, KW, ph, pw, dh, dw, bn_idx) for every conv whose weights live in
# the shared block-diagonal ("kron") slab.  The 3 branch-head 1x1 convs are
# fused into a separate (W*C, 3*W*C) weight.  'spa' (banded rows, not a
# multiple of 128) is kept LAST so every other weight slice starts at a
# 128-row-aligned offset.
CONV_DEFS = (
    ('b0',    1, 1, 0, 0, 1, 1, 0),
    ('br1_1', 1, 3, 0, 1, 1, 1, 2),
    ('br1_2', 3, 1, 1, 0, 1, 1, 3),
    ('br1_3', 3, 3, 3, 3, 3, 3, 4),
    ('br2_1', 1, 5, 0, 2, 1, 1, 6),
    ('br2_2', 5, 1, 2, 0, 1, 1, 7),
    ('br2_3', 3, 3, 5, 5, 5, 5, 8),
    ('br3_1', 1, 7, 0, 3, 1, 1, 10),
    ('br3_2', 7, 1, 3, 0, 1, 1, 11),
    ('br3_3', 3, 3, 7, 7, 7, 7, 12),
    ('cat_0', 3, 3, 1, 1, 1, 1, 13),
    ('cat_1', 3, 3, 1, 1, 1, 1, 13),
    ('cat_2', 3, 3, 1, 1, 1, 1, 13),
    ('cat_3', 3, 3, 1, 1, 1, 1, 13),
    ('spa',   7, 7, 3, 3, 1, 1, -1),
)


def _conv_meta(C, W):
    """Row offsets of every conv inside the shared weight slab."""
    metas, row = {}, 0
    for (name, kh, kw, ph, pw, dh, dw, bn) in CONV_DEFS:
        if name == 'spa':
            rows = SPA_K * 2 * (W + 2 * SPA_P)      # banded, kw+channel folded
        else:
            rows = kh * kw * W * C                  # per-tap kron blocks
        metas[name] = dict(KH=kh, KW=kw, ph=ph, pw=pw, dh=dh, dw=dw,
                           bn=bn, row0=row, rows=rows)
        row += rows
    return metas, row


# --------------------------------------------------------------------------
# Fused kernel: one grid step == one batch element, everything in VMEM.
# --------------------------------------------------------------------------
def _hagca1_kernel(x_ref, kron_ref, whead_ref, sc_ref, bi_ref, w1_ref, w2_ref,
                   o_ref, pad_scr, spa_scr, *, H, W, C, HALO_R, HALO_C, metas):
    WC = W * C
    PW = (W + 2 * HALO_C) * C            # lane extent of the conv halo scratch
    Wp = W + 2 * SPA_P                   # padded width of one spatial-attn plane
    x2 = x_ref[0]                        # (H, W*C) f32, lane-dense

    # ---- zero only the halo FRAME of the bf16 conv scratch; all four strip
    #      stores are lane/sublane aligned.  spa_scr is <2 KB -> zero whole. --
    zrow = jnp.zeros((HALO_R, PW), jnp.bfloat16)
    pad_scr[0:HALO_R, :] = zrow
    pad_scr[HALO_R + H:2 * HALO_R + H, :] = zrow
    zcol = jnp.zeros((H, HALO_C * C), jnp.bfloat16)
    pad_scr[HALO_R:HALO_R + H, 0:HALO_C * C] = zcol
    pad_scr[HALO_R:HALO_R + H, HALO_C * C + WC:PW] = zcol
    spa_scr[...] = jnp.zeros((H + 2 * SPA_P, 2 * Wp), jnp.bfloat16)

    # ---------------- SpatialAttention: one banded MXU matmul ----------------
    x3 = x2.reshape(H, W, C)
    avg = jnp.mean(x3, axis=-1)                          # (H, W)
    mx = jnp.max(x3, axis=-1)                            # (H, W)
    spa_scr[SPA_P:SPA_P + H, SPA_P:SPA_P + W] = avg.astype(jnp.bfloat16)
    spa_scr[SPA_P:SPA_P + H, Wp + SPA_P:Wp + SPA_P + W] = mx.astype(jnp.bfloat16)
    ms = metas['spa']
    spa_pat = jnp.concatenate(
        [spa_scr[kh:kh + H, :] for kh in range(SPA_K)], axis=1)   # (H, 7*2*Wp)
    att = jnp.dot(spa_pat, kron_ref[ms['row0']:ms['row0'] + ms['rows'], :],
                  preferred_element_type=jnp.float32)    # (H, W*C), repl. over C
    x_spa = x2 * jax.nn.sigmoid(att)

    # ---------------- shared conv helpers ----------------
    def tap_pieces(xin, mm):
        # one aligned bf16 interior write, then gather the KH*KW tap windows
        pad_scr[HALO_R:HALO_R + H, HALO_C * C:HALO_C * C + WC] = \
            xin.astype(jnp.bfloat16)
        ps = []
        for kh in range(mm['KH']):
            r = HALO_R - mm['ph'] + kh * mm['dh']
            for kw in range(mm['KW']):
                c0 = (HALO_C - mm['pw'] + kw * mm['dw']) * C
                ps.append(pad_scr[r:r + H, c0:c0 + WC])
        return ps

    def conv(xin, name):
        mm = metas[name]
        if mm['KH'] == 1 and mm['KW'] == 1:
            pat = xin.astype(jnp.bfloat16)
        else:
            pat = jnp.concatenate(tap_pieces(xin, mm), axis=1)
        wk = kron_ref[mm['row0']:mm['row0'] + mm['rows'], :]
        return jnp.dot(pat, wk, preferred_element_type=jnp.float32)

    def bn(y, b):
        return y * sc_ref[b:b + 1, :] + bi_ref[b:b + 1, :]

    # ---------------- branch0 + residual, ChannelAttention ----------------
    x_11_spa = bn(conv(x_spa, 'b0'), 0) + x_spa
    v3 = x_11_spa.reshape(H, W, C)
    avg_c = jnp.mean(jnp.mean(v3, axis=0), axis=0, keepdims=True)   # (1, C)
    max_c = jnp.max(jnp.max(v3, axis=0), axis=0, keepdims=True)     # (1, C)
    pooled = jnp.concatenate([avg_c, max_c], axis=0)                # (2, C)
    hfc = jnp.maximum(
        jnp.dot(pooled, w1_ref[...], preferred_element_type=jnp.float32), 0.0)
    fco = jnp.dot(hfc, w2_ref[...], preferred_element_type=jnp.float32)
    gate = jax.nn.sigmoid(fco[0:1, :] + fco[1:2, :])                # (1, C)
    gate_row = jnp.broadcast_to(gate.reshape(1, 1, C), (1, W, C)).reshape(1, WC)
    x0 = x_11_spa * gate_row                                        # (H, W*C)

    # -------- dilated branches; the 3 branch-head 1x1 convs in ONE matmul ---
    heads = jnp.dot(x2.astype(jnp.bfloat16), whead_ref[...],
                    preferred_element_type=jnp.float32)             # (H, 3*W*C)

    def branch(idx, tag, bnb):
        y = bn(heads[:, idx * WC:(idx + 1) * WC], bnb)
        y = bn(conv(y, tag + '_1'), bnb + 1)
        y = bn(conv(y, tag + '_2'), bnb + 2)
        y = bn(conv(y, tag + '_3'), bnb + 3)
        return y

    xb1 = branch(0, 'br1', 1)
    xb2 = branch(1, 'br2', 5)
    xb3 = branch(2, 'br3', 9)

    # ------- conv_cat: the 4 channel chunks K-stacked into ONE matmul -------
    cat_pieces = []
    for xin, name in ((x0, 'cat_0'), (xb1, 'cat_1'),
                      (xb2, 'cat_2'), (xb3, 'cat_3')):
        cat_pieces += tap_pieces(xin, metas[name])
    cat_pat = jnp.concatenate(cat_pieces, axis=1)                   # (H, 36*W*C)
    m0 = metas['cat_0']
    wk = kron_ref[m0['row0']:m0['row0'] + 4 * m0['rows'], :]
    x_cat = bn(jnp.dot(cat_pat, wk, preferred_element_type=jnp.float32), 13)

    o_ref[0] = jnp.maximum(x_cat + x0, 0.0).astype(o_ref.dtype)


# --------------------------------------------------------------------------
# Host-side weight prep (layout plumbing only) + pallas_call wrapper.
# --------------------------------------------------------------------------
def _kron_slab(w, W):
    """(KH,KW,Cin,Cout) -> (KH*KW*W*Cin, W*Cout) stacked block-diagonal taps
    so each tap acts on a lane-flattened (H, W*Cin) activation row."""
    KH, KW, _, _ = w.shape
    eye = jnp.eye(W, dtype=w.dtype)
    rows = [jnp.kron(eye, w[kh, kw]) for kh in range(KH) for kw in range(KW)]
    return jnp.concatenate(rows, axis=0)


def _spa_band_slab(w_spa, W, C):
    """SpatialAttention 7x7 (Cin=2, Cout=1) -> banded (7*2*(W+2P), W*C) weight.

    Row block kh maps the full-width window spa_scr[kh:kh+H, :] (avg plane then
    max plane, each W+2*SPA_P wide) to the W*C outputs; the kw taps are folded
    into the band and the single output channel is replicated across C lanes.
    """
    Wp = W + 2 * SPA_P
    sel = np.zeros((2 * Wp, W, SPA_K, 2), np.float32)
    for w in range(W):
        for kw in range(SPA_K):
            sel[w + kw, w, kw, 0] = 1.0           # avg plane
            sel[Wp + w + kw, w, kw, 1] = 1.0      # max plane
    band = jnp.einsum('jwkc,hkc->hjw', jnp.asarray(sel),
                      w_spa[:, :, :, 0])          # (7, 2*Wp, W)
    band = jnp.repeat(band, C, axis=2)            # replicate output over C
    return band.reshape(SPA_K * 2 * Wp, W * C)


def _conv_weight(p, name, C):
    if name == 'b0':
        return p['b0_w']
    if name.startswith('cat_'):
        t = int(name[-1])
        return p['cat_w'][:, :, t * C:(t + 1) * C, :]
    br, idx = name.split('_')
    return p[br]['w' + idx]


def hagca1_forward(x, p):
    """x: (N, H, W, C) float32 NHWC. Returns (N, H, W, C)."""
    N, H, W, C = x.shape
    WC = W * C
    metas, total_rows = _conv_meta(C, W)

    # Halo sizes: rows rounded up to the bf16 sublane tile (16) and columns to
    # a whole number of 128-lane groups (16 pixels at C=8), so every interior
    # scratch write is an aligned full-vreg store.
    HALO_R = ((PMAX + 15) // 16) * 16
    HALO_C = PMAX
    if 128 % C == 0:
        lane_pix = 128 // C
        HALO_C = ((PMAX + lane_pix - 1) // lane_pix) * lane_pix

    # Block-diagonal / banded bf16 weight slab for all slab convs (one array).
    blocks = []
    for d in CONV_DEFS:
        name = d[0]
        if name == 'spa':
            blocks.append(_spa_band_slab(p['spa_w'], W, C))
        else:
            blocks.append(_kron_slab(_conv_weight(p, name, C), W))
    slab = jnp.concatenate(blocks, axis=0).astype(jnp.bfloat16)
    pad_rows = (-slab.shape[0]) % 8
    if pad_rows:
        slab = jnp.concatenate(
            [slab, jnp.zeros((pad_rows, WC), slab.dtype)], axis=0)

    # Branch-head 1x1 convs fused along Cout: (W*C, 3*W*C).
    whead = jnp.concatenate(
        [_kron_slab(p[br]['w0'], W) for br in ('br1', 'br2', 'br3')],
        axis=1).astype(jnp.bfloat16)

    # Folded BN (scale, bias), lane-tiled to the (W*C) layout.
    sb = [(p['b0_s'], p['b0_b'])]
    for br in ('br1', 'br2', 'br3'):
        for i in range(4):
            sb.append((p[br]['s%d' % i], p[br]['b%d' % i]))
    sb.append((p['cat_s'], p['cat_b']))
    scal = jnp.stack([jnp.tile(s, W) for s, _ in sb])        # (14, W*C)
    bias = jnp.stack([jnp.tile(b, W) for _, b in sb])        # (14, W*C)

    x2 = x.reshape(N, H, WC)
    kernel = functools.partial(_hagca1_kernel, H=H, W=W, C=C,
                               HALO_R=HALO_R, HALO_C=HALO_C, metas=metas)

    out2 = pl.pallas_call(
        kernel,
        out_shape=jax.ShapeDtypeStruct((N, H, WC), x.dtype),
        grid=(N,),
        in_specs=[
            pl.BlockSpec((1, H, WC), lambda n: (n, 0, 0)),
            pl.BlockSpec(slab.shape, lambda n: (0, 0)),
            pl.BlockSpec((WC, 3 * WC), lambda n: (0, 0)),
            pl.BlockSpec((N_BN, WC), lambda n: (0, 0)),
            pl.BlockSpec((N_BN, WC), lambda n: (0, 0)),
            pl.BlockSpec((C, C), lambda n: (0, 0)),
            pl.BlockSpec((C, C), lambda n: (0, 0)),
        ],
        out_specs=pl.BlockSpec((1, H, WC), lambda n: (n, 0, 0)),
        scratch_shapes=[
            pltpu.VMEM((H + 2 * HALO_R, (W + 2 * HALO_C) * C), jnp.bfloat16),
            pltpu.VMEM((H + 2 * SPA_P, 2 * (W + 2 * SPA_P)), jnp.bfloat16),
        ],
        compiler_params=pltpu.CompilerParams(
            dimension_semantics=("parallel",),
            vmem_limit_bytes=32 * 1024 * 1024),
    )(x2, slab, whead, scal, bias, p['cha_w1'], p['cha_w2'])
    return out2.reshape(N, H, W, C)


# --------------------------------------------------------------------------
# Deterministic parameter init (synthetic)
# --------------------------------------------------------------------------
def init_conv(key, kh, kw, cin, cout):
    fan_in = kh * kw * cin
    w = jax.random.normal(key, (kh, kw, cin, cout), jnp.float32)
    return w / jnp.sqrt(float(fan_in))


def init_bn(key, c):
    k1, k2, k3, k4 = jax.random.split(key, 4)
    gamma = 1.0 + 0.1 * jax.random.normal(k1, (c,), jnp.float32)
    beta = 0.1 * jax.random.normal(k2, (c,), jnp.float32)
    mean = 0.1 * jax.random.normal(k3, (c,), jnp.float32)
    var = 0.5 + jnp.abs(jax.random.normal(k4, (c,), jnp.float32))
    eps = 1e-5
    scale = gamma / jnp.sqrt(var + eps)
    biasv = beta - mean * scale
    return scale, biasv


def init_params(key, cin, cout):
    keys = jax.random.split(key, 32)
    ki = iter(keys)
    p = {}
    p['spa_w'] = init_conv(next(ki), 7, 7, 2, 1)
    p['b0_w'] = init_conv(next(ki), 1, 1, cin, cout)
    p['b0_s'], p['b0_b'] = init_bn(next(ki), cout)
    p['cha_w1'] = init_conv(next(ki), 1, 1, cout, cout)[0, 0]   # (C, C)
    p['cha_w2'] = init_conv(next(ki), 1, 1, cout, cout)[0, 0]   # (C, C)
    for name, k in (('br1', 3), ('br2', 5), ('br3', 7)):
        b = {}
        b['w0'] = init_conv(next(ki), 1, 1, cin, cout)
        b['s0'], b['b0'] = init_bn(next(ki), cout)
        b['w1'] = init_conv(next(ki), 1, k, cout, cout)
        b['s1'], b['b1'] = init_bn(next(ki), cout)
        b['w2'] = init_conv(next(ki), k, 1, cout, cout)
        b['s2'], b['b2'] = init_bn(next(ki), cout)
        b['w3'] = init_conv(next(ki), 3, 3, cout, cout)
        b['s3'], b['b3'] = init_bn(next(ki), cout)
        p[name] = b
    p['cat_w'] = init_conv(next(ki), 3, 3, 4 * cout, cout)
    p['cat_s'], p['cat_b'] = init_bn(next(ki), cout)
    return p


# --------------------------------------------------------------------------
# Pure-JAX reference (f32, Precision.HIGHEST) for correctness check
# --------------------------------------------------------------------------
HIGHEST = jax.lax.Precision.HIGHEST


def ref_conv_bn(x, w, s, b, pad, dil):
    y = jax.lax.conv_general_dilated(
        x, w, (1, 1), ((pad[0], pad[0]), (pad[1], pad[1])),
        rhs_dilation=dil, dimension_numbers=('NHWC', 'HWIO', 'NHWC'),
        precision=HIGHEST)
    return y * s[None, None, None, :] + b[None, None, None, :]


def ref_forward(x, p):
    avg = jnp.mean(x, axis=-1, keepdims=True)
    mx = jnp.max(x, axis=-1, keepdims=True)
    stats = jnp.concatenate([avg, mx], axis=-1)
    att = ref_conv_bn(stats, p['spa_w'], jnp.ones((1,), jnp.float32),
                      jnp.zeros((1,), jnp.float32), (3, 3), (1, 1))
    x_spa = x * jax.nn.sigmoid(att)

    x_11 = ref_conv_bn(x_spa, p['b0_w'], p['b0_s'], p['b0_b'], (0, 0), (1, 1))
    x_11_spa = x_11 + x_spa

    avg_c = jnp.mean(x_11_spa, axis=(1, 2))
    max_c = jnp.max(x_11_spa, axis=(1, 2))

    def fc(v):
        h = jnp.maximum(v @ p['cha_w1'], 0.0)
        return h @ p['cha_w2']

    catt = jax.nn.sigmoid(fc(avg_c) + fc(max_c))
    x0 = x_11_spa * catt[:, None, None, :]

    def ref_branch(xin, pb, k, d):
        pad = (k - 1) // 2
        y = ref_conv_bn(xin, pb['w0'], pb['s0'], pb['b0'], (0, 0), (1, 1))
        y = ref_conv_bn(y, pb['w1'], pb['s1'], pb['b1'], (0, pad), (1, 1))
        y = ref_conv_bn(y, pb['w2'], pb['s2'], pb['b2'], (pad, 0), (1, 1))
        y = ref_conv_bn(y, pb['w3'], pb['s3'], pb['b3'], (d, d), (d, d))
        return y

    x1 = ref_branch(x, p['br1'], 3, 3)
    x2 = ref_branch(x, p['br2'], 5, 5)
    x3 = ref_branch(x, p['br3'], 7, 7)

    xcat = jnp.concatenate([x0, x1, x2, x3], axis=-1)
    x_cat = ref_conv_bn(xcat, p['cat_w'], p['cat_s'], p['cat_b'], (1, 1), (1, 1))
    return jnp.maximum(x_cat + x0, 0.0)


if __name__ == "__main__":
    key = jax.random.PRNGKey(0)
    kx, kp = jax.random.split(key)
    # HAGCA_1's forward only type-checks when in_channel == out_channel
    # (x_11 + x_spa and the ChannelAttention fc widths require it).
    N, C, H, W = 2, 8, 16, 16
    x_nchw = jax.random.normal(kx, (N, C, H, W), jnp.float32)   # PyTorch NCHW
    x = jnp.transpose(x_nchw, (0, 2, 3, 1))                     # -> NHWC
    params = init_params(kp, C, C)

    out = jax.jit(hagca1_forward)(x, params)
    out = jax.block_until_ready(out)

    ref = ref_forward(x, params)
    assert out.shape == (N, H, W, C), out.shape
    diff = jnp.abs(out - ref)
    max_err = float(jnp.max(diff))
    rel_l2 = float(jnp.linalg.norm(out - ref) / (jnp.linalg.norm(ref) + 1e-12))
    # Kernel matmuls use bf16 multiplicands with f32 accumulation (default MXU
    # path, per perf guidance); the reference is f32 Precision.HIGHEST, so the
    # tolerance is sized for bf16 rounding through ~5 chained conv layers.
    assert max_err < 2e-1, f"max abs err {max_err}"
    assert rel_l2 < 2e-2, f"relative L2 err {rel_l2}"
    print("KERNEL_OK")
</pallas_src>

<mosaic_0001>
module attributes {stable_mosaic.version = 11 : i64} {
  func.func @_hagca1_kernel(%arg0: i32, %arg1: memref<1x16x128xf32, #tpu.memory_space<vmem>>, %arg2: memref<12344x128xbf16, #tpu.memory_space<vmem>>, %arg3: memref<128x384xbf16, #tpu.memory_space<vmem>>, %arg4: memref<14x128xf32, #tpu.memory_space<vmem>>, %arg5: memref<14x128xf32, #tpu.memory_space<vmem>>, %arg6: memref<8x8xf32, #tpu.memory_space<vmem>>, %arg7: memref<8x8xf32, #tpu.memory_space<vmem>>, %arg8: memref<1x16x128xf32, #tpu.memory_space<vmem>>, %arg9: memref<48x384xbf16, #tpu.memory_space<vmem>>, %arg10: memref<22x44xbf16, #tpu.memory_space<vmem>>) attributes {dimension_semantics = [#tpu.dimension_semantics<parallel>], iteration_bounds = array<i64: 2>, scalar_prefetch = 0 : i64, scratch_operands = 2 : i64, tpu.core_type = #tpu.core_type<tc>, window_params = [{transform_indices = @transform_0, window_bounds = array<i64: 1, 16, 128>}, {pipeline_mode = #tpu.pipeline_mode<synchronous>, transform_indices = @transform_1, window_bounds = array<i64: 12344, 128>}, {pipeline_mode = #tpu.pipeline_mode<synchronous>, transform_indices = @transform_2, window_bounds = array<i64: 128, 384>}, {pipeline_mode = #tpu.pipeline_mode<synchronous>, transform_indices = @transform_3, window_bounds = array<i64: 14, 128>}, {pipeline_mode = #tpu.pipeline_mode<synchronous>, transform_indices = @transform_4, window_bounds = array<i64: 14, 128>}, {pipeline_mode = #tpu.pipeline_mode<synchronous>, transform_indices = @transform_5, window_bounds = array<i64: 8, 8>}, {pipeline_mode = #tpu.pipeline_mode<synchronous>, transform_indices = @transform_6, window_bounds = array<i64: 8, 8>}, {transform_indices = @transform_7, window_bounds = array<i64: 1, 16, 128>}]} {
    %c0 = arith.constant 0 : index
    %c0_0 = arith.constant 0 : index
    %c0_1 = arith.constant 0 : index
    %0 = vector.load %arg1[%c0, %c0_0, %c0_1] : memref<1x16x128xf32, #tpu.memory_space<vmem>>, vector<1x16x128xf32>
    %1 = vector.shape_cast %0 : vector<1x16x128xf32> to vector<16x128xf32>
    %cst = arith.constant 0.000000e+00 : bf16
    %2 = vector.broadcast %cst : bf16 to vector<16x384xbf16>
    %c0_2 = arith.constant 0 : index
    %c0_3 = arith.constant 0 : index
    %3 = vector.load %arg9[%c0_2, %c0_3] : memref<48x384xbf16, #tpu.memory_space<vmem>>, vector<16x384xbf16>
    tpu.vector_store %arg9[%c0_2, %c0_3], %2 {strides = array<i32>} : memref<48x384xbf16, #tpu.memory_space<vmem>>, vector<16x384xbf16>,
    %c32 = arith.constant 32 : index
    %c0_4 = arith.constant 0 : index
    %4 = vector.load %arg9[%c32, %c0_4] : memref<48x384xbf16, #tpu.memory_space<vmem>>, vector<16x384xbf16>
    tpu.vector_store %arg9[%c32, %c0_4], %2 {strides = array<i32>} : memref<48x384xbf16, #tpu.memory_space<vmem>>, vector<16x384xbf16>,
    %cst_5 = arith.constant 0.000000e+00 : bf16
    %5 = vector.broadcast %cst_5 : bf16 to vector<16x128xbf16>
    %c16 = arith.constant 16 : index
    %c0_6 = arith.constant 0 : index
    %6 = vector.load %arg9[%c16, %c0_6] : memref<48x384xbf16, #tpu.memory_space<vmem>>, vector<16x128xbf16>
    tpu.vector_store %arg9[%c16, %c0_6], %5 {strides = array<i32>} : memref<48x384xbf16, #tpu.memory_space<vmem>>, vector<16x128xbf16>,
    %c16_7 = arith.constant 16 : index
    %c256 = arith.constant 256 : index
    %7 = vector.load %arg9[%c16_7, %c256] : memref<48x384xbf16, #tpu.memory_space<vmem>>, vector<16x128xbf16>
    tpu.vector_store %arg9[%c16_7, %c256], %5 {strides = array<i32>} : memref<48x384xbf16, #tpu.memory_space<vmem>>, vector<16x128xbf16>,
    %cst_8 = arith.constant 0.000000e+00 : bf16
    %8 = vector.broadcast %cst_8 : bf16 to vector<22x44xbf16>
    %c0_9 = arith.constant 0 : index
    %c0_10 = arith.constant 0 : index
    %9 = vector.load %arg10[%c0_9, %c0_10] : memref<22x44xbf16, #tpu.memory_space<vmem>>, vector<22x44xbf16>
    tpu.vector_store %arg10[%c0_9, %c0_10], %8 {strides = array<i32>} : memref<22x44xbf16, #tpu.memory_space<vmem>>, vector<22x44xbf16>,
    %10 = vector.shape_cast %1 : vector<16x128xf32> to vector<16x16x8xf32>
    %cst_11 = arith.constant dense<0.000000e+00> : vector<16x16xf32>
    %11 = vector.multi_reduction <add>, %10, %cst_11 [2] : vector<16x16x8xf32> to vector<16x16xf32>
    %cst_12 = arith.constant 8.000000e+00 : f32
    %12 = vector.broadcast %cst_12 : f32 to vector<16x16xf32>
    %13 = arith.divf %11, %12 : vector<16x16xf32>
    %cst_13 = arith.constant dense<0xFF800000> : vector<16x16xf32>
    %14 = vector.multi_reduction <maximumf>, %10, %cst_13 [2] : vector<16x16x8xf32> to vector<16x16xf32>
    %15 = arith.truncf %13 : vector<16x16xf32> to vector<16x16xbf16>
    %c3 = arith.constant 3 : index
    %c3_14 = arith.constant 3 : index
    %16 = vector.load %arg10[%c3, %c3_14] : memref<22x44xbf16, #tpu.memory_space<vmem>>, vector<16x16xbf16>
    tpu.vector_store %arg10[%c3, %c3_14], %15 {strides = array<i32>} : memref<22x44xbf16, #tpu.memory_space<vmem>>, vector<16x16xbf16>,
    %17 = arith.truncf %14 : vector<16x16xf32> to vector<16x16xbf16>
    %c3_15 = arith.constant 3 : index
    %c25 = arith.constant 25 : index
    %18 = vector.load %arg10[%c3_15, %c25] : memref<22x44xbf16, #tpu.memory_space<vmem>>, vector<16x16xbf16>
    tpu.vector_store %arg10[%c3_15, %c25], %17 {strides = array<i32>} : memref<22x44xbf16, #tpu.memory_space<vmem>>, vector<16x16xbf16>,
    %c0_16 = arith.constant 0 : index
    %c0_17 = arith.constant 0 : index
    %19 = vector.load %arg10[%c0_16, %c0_17] : memref<22x44xbf16, #tpu.memory_space<vmem>>, vector<16x44xbf16>
    %c1 = arith.constant 1 : index
    %c0_18 = arith.constant 0 : index
    %20 = vector.load %arg10[%c1, %c0_18] : memref<22x44xbf16, #tpu.memory_space<vmem>>, vector<16x44xbf16>
    %c2 = arith.constant 2 : index
    %c0_19 = arith.constant 0 : index
    %21 = vector.load %arg10[%c2, %c0_19] : memref<22x44xbf16, #tpu.memory_space<vmem>>, vector<16x44xbf16>
    %c3_20 = arith.constant 3 : index
    %c0_21 = arith.constant 0 : index
    %22 = vector.load %arg10[%c3_20, %c0_21] : memref<22x44xbf16, #tpu.memory_space<vmem>>, vector<16x44xbf16>
    %c4 = arith.constant 4 : index
    %c0_22 = arith.constant 0 : index
    %23 = vector.load %arg10[%c4, %c0_22] : memref<22x44xbf16, #tpu.memory_space<vmem>>, vector<16x44xbf16>
    %c5 = arith.constant 5 : index
    %c0_23 = arith.constant 0 : index
    %24 = vector.load %arg10[%c5, %c0_23] : memref<22x44xbf16, #tpu.memory_space<vmem>>, vector<16x44xbf16>
    %c6 = arith.constant 6 : index
    %c0_24 = arith.constant 0 : index
    %25 = vector.load %arg10[%c6, %c0_24] : memref<22x44xbf16, #tpu.memory_space<vmem>>, vector<16x44xbf16>
    %26 = tpu.concatenate %19, %20, %21, %22, %23, %24, %25 in 1 : vector<16x44xbf16>, vector<16x44xbf16>, vector<16x44xbf16>, vector<16x44xbf16>, vector<16x44xbf16>, vector<16x44xbf16>, vector<16x44xbf16> -> vector<16x308xbf16>
    %c12032 = arith.constant 12032 : index
    %c0_25 = arith.constant 0 : index
    %27 = vector.load %arg2[%c12032, %c0_25] : memref<12344x128xbf16, #tpu.memory_space<vmem>>, vector<308x128xbf16>
    %cst_26 = arith.constant dense<0.000000e+00> : vector<16x128xf32>
    %28 = tpu.matmul %26, %27, %cst_26 {dimension_numbers = #tpu.dot_dimension_numbers<[1], [0], [0], [1], [0, 0, 1, 1], [], []>} : vector<16x308xbf16>, vector<308x128xbf16>, vector<16x128xf32> -> vector<16x128xf32>
    %29 = arith.negf %28 : vector<16x128xf32>
    %30 = math.exp %29 : vector<16x128xf32>
    %cst_27 = arith.constant 1.000000e+00 : f32
    %31 = vector.broadcast %cst_27 : f32 to vector<16x128xf32>
    %32 = arith.addf %31, %30 : vector<16x128xf32>
    %33 = arith.divf %31, %32 : vector<16x128xf32>
    %34 = arith.mulf %1, %33 : vector<16x128xf32>
    %35 = arith.truncf %34 : vector<16x128xf32> to vector<16x128xbf16>
    %c0_28 = arith.constant 0 : index
    %c0_29 = arith.constant 0 : index
    %36 = vector.load %arg2[%c0_28, %c0_29] : memref<12344x128xbf16, #tpu.memory_space<vmem>>, vector<128x128xbf16>
    %cst_30 = arith.constant dense<0.000000e+00> : vector<16x128xf32>
    %37 = tpu.matmul %35, %36, %cst_30 {dimension_numbers = #tpu.dot_dimension_numbers<[1], [0], [0], [1], [0, 0, 1, 1], [], []>} : vector<16x128xbf16>, vector<128x128xbf16>, vector<16x128xf32> -> vector<16x128xf32>
    %c0_31 = arith.constant 0 : index
    %c0_32 = arith.constant 0 : index
    %38 = vector.load %arg4[%c0_31, %c0_32] : memref<14x128xf32, #tpu.memory_space<vmem>>, vector<1x128xf32>
    %39 = vector.broadcast %38 : vector<1x128xf32> to vector<16x128xf32>
    %40 = arith.mulf %37, %39 : vector<16x128xf32>
    %c0_33 = arith.constant 0 : index
    %c0_34 = arith.constant 0 : index
    %41 = vector.load %arg5[%c0_33, %c0_34] : memref<14x128xf32, #tpu.memory_space<vmem>>, vector<1x128xf32>
    %42 = vector.broadcast %41 : vector<1x128xf32> to vector<16x128xf32>
    %43 = arith.addf %40, %42 : vector<16x128xf32>
    %44 = arith.addf %43, %34 : vector<16x128xf32>
    %45 = vector.shape_cast %44 : vector<16x128xf32> to vector<16x16x8xf32>
    %cst_35 = arith.constant dense<0.000000e+00> : vector<16x8xf32>
    %46 = vector.multi_reduction <add>, %45, %cst_35 [0] : vector<16x16x8xf32> to vector<16x8xf32>
    %cst_36 = arith.constant 1.600000e+01 : f32
    %47 = vector.broadcast %cst_36 : f32 to vector<16x8xf32>
    %48 = arith.divf %46, %47 : vector<16x8xf32>
    %cst_37 = arith.constant dense<0.000000e+00> : vector<8xf32>
    %49 = vector.multi_reduction <add>, %48, %cst_37 [0] : vector<16x8xf32> to vector<8xf32>
    %50 = vector.shape_cast %49 : vector<8xf32> to vector<1x8xf32>
    %cst_38 = arith.constant 1.600000e+01 : f32
    %51 = vector.broadcast %cst_38 : f32 to vector<1x8xf32>
    %52 = arith.divf %50, %51 : vector<1x8xf32>
    %cst_39 = arith.constant dense<0xFF800000> : vector<16x8xf32>
    %53 = vector.multi_reduction <maximumf>, %45, %cst_39 [0] : vector<16x16x8xf32> to vector<16x8xf32>
    %cst_40 = arith.constant dense<0xFF800000> : vector<8xf32>
    %54 = vector.multi_reduction <maximumf>, %53, %cst_40 [0] : vector<16x8xf32> to vector<8xf32>
    %55 = vector.shape_cast %54 : vector<8xf32> to vector<1x8xf32>
    %56 = tpu.concatenate %52, %55 in 0 : vector<1x8xf32>, vector<1x8xf32> -> vector<2x8xf32>
    %c0_41 = arith.constant 0 : index
    %c0_42 = arith.constant 0 : index
    %57 = vector.load %arg6[%c0_41, %c0_42] : memref<8x8xf32, #tpu.memory_space<vmem>>, vector<8x8xf32>
    %cst_43 = arith.constant dense<0.000000e+00> : vector<2x8xf32>
    %58 = tpu.matmul %56, %57, %cst_43 {dimension_numbers = #tpu.dot_dimension_numbers<[1], [0], [0], [1], [0, 0, 1, 1], [], []>} : vector<2x8xf32>, vector<8x8xf32>, vector<2x8xf32> -> vector<2x8xf32>
    %cst_44 = arith.constant 0.000000e+00 : f32
    %59 = vector.broadcast %cst_44 : f32 to vector<2x8xf32>
    %60 = arith.maximumf %58, %59 : vector<2x8xf32>
    %c0_45 = arith.constant 0 : index
    %c0_46 = arith.constant 0 : index
    %61 = vector.load %arg7[%c0_45, %c0_46] : memref<8x8xf32, #tpu.memory_space<vmem>>, vector<8x8xf32>
    %cst_47 = arith.constant dense<0.000000e+00> : vector<2x8xf32>
    %62 = tpu.matmul %60, %61, %cst_47 {dimension_numbers = #tpu.dot_dimension_numbers<[1], [0], [0], [1], [0, 0, 1, 1], [], []>} : vector<2x8xf32>, vector<8x8xf32>, vector<2x8xf32> -> vector<2x8xf32>
    %63 = vector.extract_strided_slice %62 {offsets = [0, 0], sizes = [1, 8], strides = [1, 1]} : vector<2x8xf32> to vector<1x8xf32>
    %64 = vector.extract_strided_slice %62 {offsets = [1, 0], sizes = [1, 8], strides = [1, 1]} : vector<2x8xf32> to vector<1x8xf32>
    %65 = arith.addf %63, %64 : vector<1x8xf32>
    %66 = arith.negf %65 : vector<1x8xf32>
    %67 = math.exp %66 : vector<1x8xf32>
    %cst_48 = arith.constant 1.000000e+00 : f32
    %68 = vector.broadcast %cst_48 : f32 to vector<1x8xf32>
    %69 = arith.addf %68, %67 : vector<1x8xf32>
    %70 = arith.divf %68, %69 : vector<1x8xf32>
    %71 = vector.shape_cast %70 : vector<1x8xf32> to vector<1x1x8xf32>
    %72 = vector.shape_cast %71 : vector<1x1x8xf32> to vector<1x1x8xf32>
    %73 = vector.broadcast %72 : vector<1x1x8xf32> to vector<1x16x8xf32>
    %74 = vector.shape_cast %73 : vector<1x16x8xf32> to vector<1x128xf32>
    %75 = vector.broadcast %74 : vector<1x128xf32> to vector<16x128xf32>
    %76 = arith.mulf %44, %75 : vector<16x128xf32>
    %77 = arith.truncf %1 : vector<16x128xf32> to vector<16x128xbf16>
    %c0_49 = arith.constant 0 : index
    %c0_50 = arith.constant 0 : index
    %78 = vector.load %arg3[%c0_49, %c0_50] : memref<128x384xbf16, #tpu.memory_space<vmem>>, vector<128x384xbf16>
    %cst_51 = arith.constant dense<0.000000e+00> : vector<16x384xf32>
    %79 = tpu.matmul %77, %78, %cst_51 {dimension_numbers = #tpu.dot_dimension_numbers<[1], [0], [0], [1], [0, 0, 1, 1], [], []>} : vector<16x128xbf16>, vector<128x384xbf16>, vector<16x384xf32> -> vector<16x384xf32>
    %80 = vector.extract_strided_slice %79 {offsets = [0, 0], sizes = [16, 128], strides = [1, 1]} : vector<16x384xf32> to vector<16x128xf32>
    %c1_52 = arith.constant 1 : index
    %c0_53 = arith.constant 0 : index
    %81 = vector.load %arg4[%c1_52, %c0_53] : memref<14x128xf32, #tpu.memory_space<vmem>>, vector<1x128xf32>
    %82 = vector.broadcast %81 : vector<1x128xf32> to vector<16x128xf32>
    %83 = arith.mulf %80, %82 : vector<16x128xf32>
    %c1_54 = arith.constant 1 : index
    %c0_55 = arith.constant 0 : index
    %84 = vector.load %arg5[%c1_54, %c0_55] : memref<14x128xf32, #tpu.memory_space<vmem>>, vector<1x128xf32>
    %85 = vector.broadcast %84 : vector<1x128xf32> to vector<16x128xf32>
    %86 = arith.addf %83, %85 : vector<16x128xf32>
    %87 = arith.truncf %86 : vector<16x128xf32> to vector<16x128xbf16>
    %c16_56 = arith.constant 16 : index
    %c128 = arith.constant 128 : index
    %88 = vector.load %arg9[%c16_56, %c128] : memref<48x384xbf16, #tpu.memory_space<vmem>>, vector<16x128xbf16>
    tpu.vector_store %arg9[%c16_56, %c128], %87 {strides = array<i32>} : memref<48x384xbf16, #tpu.memory_space<vmem>>, vector<16x128xbf16>,
    %c16_57 = arith.constant 16 : index
    %c120 = arith.constant 120 : index
    %89 = vector.load %arg9[%c16_57, %c120] : memref<48x384xbf16, #tpu.memory_space<vmem>>, vector<16x128xbf16>
    %c16_58 = arith.constant 16 : index
    %c128_59 = arith.constant 128 : index
    %90 = vector.load %arg9[%c16_58, %c128_59] : memref<48x384xbf16, #tpu.memory_space<vmem>>, vector<16x128xbf16>
    %c16_60 = arith.constant 16 : index
    %c136 = arith.constant 136 : index
    %91 = vector.load %arg9[%c16_60, %c136] : memref<48x384xbf16, #tpu.memory_space<vmem>>, vector<16x128xbf16>
    %92 = tpu.concatenate %89, %90, %91 in 1 : vector<16x128xbf16>, vector<16x128xbf16>, vector<16x128xbf16> -> vector<16x384xbf16>
    %c128_61 = arith.constant 128 : index
    %c0_62 = arith.constant 0 : index
    %93 = vector.load %arg2[%c128_61, %c0_62] : memref<12344x128xbf16, #tpu.memory_space<vmem>>, vector<384x128xbf16>
    %cst_63 = arith.constant dense<0.000000e+00> : vector<16x128xf32>
    %94 = tpu.matmul %92, %93, %cst_63 {dimension_numbers = #tpu.dot_dimension_numbers<[1], [0], [0], [1], [0, 0, 1, 1], [], []>} : vector<16x384xbf16>, vector<384x128xbf16>, vector<16x128xf32> -> vector<16x128xf32>
    %c2_64 = arith.constant 2 : index
    %c0_65 = arith.constant 0 : index
    %95 = vector.load %arg4[%c2_64, %c0_65] : memref<14x128xf32, #tpu.memory_space<vmem>>, vector<1x128xf32>
    %96 = vector.broadcast %95 : vector<1x128xf32> to vector<16x128xf32>
    %97 = arith.mulf %94, %96 : vector<16x128xf32>
    %c2_66 = arith.constant 2 : index
    %c0_67 = arith.constant 0 : index
    %98 = vector.load %arg5[%c2_66, %c0_67] : memref<14x128xf32, #tpu.memory_space<vmem>>, vector<1x128xf32>
    %99 = vector.broadcast %98 : vector<1x128xf32> to vector<16x128xf32>
    %100 = arith.addf %97, %99 : vector<16x128xf32>
    %101 = arith.truncf %100 : vector<16x128xf32> to vector<16x128xbf16>
    %c16_68 = arith.constant 16 : index
    %c128_69 = arith.constant 128 : index
    %102 = vector.load %arg9[%c16_68, %c128_69] : memref<48x384xbf16, #tpu.memory_space<vmem>>, vector<16x128xbf16>
    tpu.vector_store %arg9[%c16_68, %c128_69], %101 {strides = array<i32>} : memref<48x384xbf16, #tpu.memory_space<vmem>>, vector<16x128xbf16>,
    %c15 = arith.constant 15 : index
    %c128_70 = arith.constant 128 : index
    %103 = vector.load %arg9[%c15, %c128_70] : memref<48x384xbf16, #tpu.memory_space<vmem>>, vector<16x128xbf16>
    %c16_71 = arith.constant 16 : index
    %c128_72 = arith.constant 128 : index
    %104 = vector.load %arg9[%c16_71, %c128_72] : memref<48x384xbf16, #tpu.memory_space<vmem>>, vector<16x128xbf16>
    %c17 = arith.constant 17 : index
    %c128_73 = arith.constant 128 : index
    %105 = vector.load %arg9[%c17, %c128_73] : memref<48x384xbf16, #tpu.memory_space<vmem>>, vector<16x128xbf16>
    %106 = tpu.concatenate %103, %104, %105 in 1 : vector<16x128xbf16>, vector<16x128xbf16>, vector<16x128xbf16> -> vector<16x384xbf16>
    %c512 = arith.constant 512 : index
    %c0_74 = arith.constant 0 : index
    %107 = vector.load %arg2[%c512, %c0_74] : memref<12344x128xbf16, #tpu.memory_space<vmem>>, vector<384x128xbf16>
    %cst_75 = arith.constant dense<0.000000e+00> : vector<16x128xf32>
    %108 = tpu.matmul %106, %107, %cst_75 {dimension_numbers = #tpu.dot_dimension_numbers<[1], [0], [0], [1], [0, 0, 1, 1], [], []>} : vector<16x384xbf16>, vector<384x128xbf16>, vector<16x128xf32> -> vector<16x128xf32>
    %c3_76 = arith.constant 3 : index
    %c0_77 = arith.constant 0 : index
    %109 = vector.load %arg4[%c3_76, %c0_77] : memref<14x128xf32, #tpu.memory_space<vmem>>, vector<1x128xf32>
    %110 = vector.broadcast %109 : vector<1x128xf32> to vector<16x128xf32>
    %111 = arith.mulf %108, %110 : vector<16x128xf32>
    %c3_78 = arith.constant 3 : index
    %c0_79 = arith.constant 0 : index
    %112 = vector.load %arg5[%c3_78, %c0_79] : memref<14x128xf32, #tpu.memory_space<vmem>>, vector<1x128xf32>
    %113 = vector.broadcast %112 : vector<1x128xf32> to vector<16x128xf32>
    %114 = arith.addf %111, %113 : vector<16x128xf32>
    %115 = arith.truncf %114 : vector<16x128xf32> to vector<16x128xbf16>
    %c16_80 = arith.constant 16 : index
    %c128_81 = arith.constant 128 : index
    %116 = vector.load %arg9[%c16_80, %c128_81] : memref<48x384xbf16, #tpu.memory_space<vmem>>, vector<16x128xbf16>
    tpu.vector_store %arg9[%c16_80, %c128_81], %115 {strides = array<i32>} : memref<48x384xbf16, #tpu.memory_space<vmem>>, vector<16x128xbf16>,
    %c13 = arith.constant 13 : index
    %c104 = arith.constant 104 : index
    %117 = vector.load %arg9[%c13, %c104] : memref<48x384xbf16, #tpu.memory_space<vmem>>, vector<16x128xbf16>
    %c13_82 = arith.constant 13 : index
    %c128_83 = arith.constant 128 : index
    %118 = vector.load %arg9[%c13_82, %c128_83] : memref<48x384xbf16, #tpu.memory_space<vmem>>, vector<16x128xbf16>
    %c13_84 = arith.constant 13 : index
    %c152 = arith.constant 152 : index
    %119 = vector.load %arg9[%c13_84, %c152] : memref<48x384xbf16, #tpu.memory_space<vmem>>, vector<16x128xbf16>
    %c16_85 = arith.constant 16 : index
    %c104_86 = arith.constant 104 : index
    %120 = vector.load %arg9[%c16_85, %c104_86] : memref<48x384xbf16, #tpu.memory_space<vmem>>, vector<16x128xbf16>
    %c16_87 = arith.constant 16 : index
    %c128_88 = arith.constant 128 : index
    %121 = vector.load %arg9[%c16_87, %c128_88] : memref<48x384xbf16, #tpu.memory_space<vmem>>, vector<16x128xbf16>
    %c16_89 = arith.constant 16 : index
    %c152_90 = arith.constant 152 : index
    %122 = vector.load %arg9[%c16_89, %c152_90] : memref<48x384xbf16, #tpu.memory_space<vmem>>, vector<16x128xbf16>
    %c19 = arith.constant 19 : index
    %c104_91 = arith.constant 104 : index
    %123 = vector.load %arg9[%c19, %c104_91] : memref<48x384xbf16, #tpu.memory_space<vmem>>, vector<16x128xbf16>
    %c19_92 = arith.constant 19 : index
    %c128_93 = arith.constant 128 : index
    %124 = vector.load %arg9[%c19_92, %c128_93] : memref<48x384xbf16, #tpu.memory_space<vmem>>, vector<16x128xbf16>
    %c19_94 = arith.constant 19 : index
    %c152_95 = arith.constant 152 : index
    %125 = vector.load %arg9[%c19_94, %c152_95] : memref<48x384xbf16, #tpu.memory_space<vmem>>, vector<16x128xbf16>
    %126 = tpu.concatenate %117, %118, %119, %120, %121, %122, %123, %124, %125 in 1 : vector<16x128xbf16>, vector<16x128xbf16>, vector<16x128xbf16>, vector<16x128xbf16>, vector<16x128xbf16>, vector<16x128xbf16>, vector<16x128xbf16>, vector<16x128xbf16>, vector<16x128xbf16> -> vector<16x1152xbf16>
    %c896 = arith.constant 896 : index
    %c0_96 = arith.constant 0 : index
    %127 = vector.load %arg2[%c896, %c0_96] : memref<12344x128xbf16, #tpu.memory_space<vmem>>, vector<1152x128xbf16>
    %cst_97 = arith.constant dense<0.000000e+00> : vector<16x128xf32>
    %128 = tpu.matmul %126, %127, %cst_97 {dimension_numbers = #tpu.dot_dimension_numbers<[1], [0], [0], [1], [0, 0, 1, 1], [], []>} : vector<16x1152xbf16>, vector<1152x128xbf16>, vector<16x128xf32> -> vector<16x128xf32>
    %c4_98 = arith.constant 4 : index
    %c0_99 = arith.constant 0 : index
    %129 = vector.load %arg4[%c4_98, %c0_99] : memref<14x128xf32, #tpu.memory_space<vmem>>, vector<1x128xf32>
    %130 = vector.broadcast %129 : vector<1x128xf32> to vector<16x128xf32>
    %131 = arith.mulf %128, %130 : vector<16x128xf32>
    %c4_100 = arith.constant 4 : index
    %c0_101 = arith.constant 0 : index
    %132 = vector.load %arg5[%c4_100, %c0_101] : memref<14x128xf32, #tpu.memory_space<vmem>>, vector<1x128xf32>
    %133 = vector.broadcast %132 : vector<1x128xf32> to vector<16x128xf32>
    %134 = arith.addf %131, %133 : vector<16x128xf32>
    %135 = vector.extract_strided_slice %79 {offsets = [0, 128], sizes = [16, 128], strides = [1, 1]} : vector<16x384xf32> to vector<16x128xf32>
    %c5_102 = arith.constant 5 : index
    %c0_103 = arith.constant 0 : index
    %136 = vector.load %arg4[%c5_102, %c0_103] : memref<14x128xf32, #tpu.memory_space<vmem>>, vector<1x128xf32>
    %137 = vector.broadcast %136 : vector<1x128xf32> to vector<16x128xf32>
    %138 = arith.mulf %135, %137 : vector<16x128xf32>
    %c5_104 = arith.constant 5 : index
    %c0_105 = arith.constant 0 : index
    %139 = vector.load %arg5[%c5_104, %c0_105] : memref<14x128xf32, #tpu.memory_space<vmem>>, vector<1x128xf32>
    %140 = vector.broadcast %139 : vector<1x128xf32> to vector<16x128xf32>
    %141 = arith.addf %138, %140 : vector<16x128xf32>
    %142 = arith.truncf %141 : vector<16x128xf32> to vector<16x128xbf16>
    %c16_106 = arith.constant 16 : index
    %c128_107 = arith.constant 128 : index
    %143 = vector.load %arg9[%c16_106, %c128_107] : memref<48x384xbf16, #tpu.memory_space<vmem>>, vector<16x128xbf16>
    tpu.vector_store %arg9[%c16_106, %c128_107], %142 {strides = array<i32>} : memref<48x384xbf16, #tpu.memory_space<vmem>>, vector<16x128xbf16>,
    %c16_108 = arith.constant 16 : index
    %c112 = arith.constant 112 : index
    %144 = vector.load %arg9[%c16_108, %c112] : memref<48x384xbf16, #tpu.memory_space<vmem>>, vector<16x128xbf16>
    %c16_109 = arith.constant 16 : index
    %c120_110 = arith.constant 120 : index
    %145 = vector.load %arg9[%c16_109, %c120_110] : memref<48x384xbf16, #tpu.memory_space<vmem>>, vector<16x128xbf16>
    %c16_111 = arith.constant 16 : index
    %c128_112 = arith.constant 128 : index
    %146 = vector.load %arg9[%c16_111, %c128_112] : memref<48x384xbf16, #tpu.memory_space<vmem>>, vector<16x128xbf16>
    %c16_113 = arith.constant 16 : index
    %c136_114 = arith.constant 136 : index
    %147 = vector.load %arg9[%c16_113, %c136_114] : memref<48x384xbf16, #tpu.memory_space<vmem>>, vector<16x128xbf16>
    %c16_115 = arith.constant 16 : index
    %c144 = arith.constant 144 : index
    %148 = vector.load %arg9[%c16_115, %c144] : memref<48x384xbf16, #tpu.memory_space<vmem>>, vector<16x128xbf16>
    %149 = tpu.concatenate %144, %145, %146, %147, %148 in 1 : vector<16x128xbf16>, vector<16x128xbf16>, vector<16x128xbf16>, vector<16x128xbf16>, vector<16x128xbf16> -> vector<16x640xbf16>
    %c2048 = arith.constant 2048 : index
    %c0_116 = arith.constant 0 : index
    %150 = vector.load %arg2[%c2048, %c0_116] : memref<12344x128xbf16, #tpu.memory_space<vmem>>, vector<640x128xbf16>
    %cst_117 = arith.constant dense<0.000000e+00> : vector<16x128xf32>
    %151 = tpu.matmul %149, %150, %cst_117 {dimension_numbers = #tpu.dot_dimension_numbers<[1], [0], [0], [1], [0, 0, 1, 1], [], []>} : vector<16x640xbf16>, vector<640x128xbf16>, vector<16x128xf32> -> vector<16x128xf32>
    %c6_118 = arith.constant 6 : index
    %c0_119 = arith.constant 0 : index
    %152 = vector.load %arg4[%c6_118, %c0_119] : memref<14x128xf32, #tpu.memory_space<vmem>>, vector<1x128xf32>
    %153 = vector.broadcast %152 : vector<1x128xf32> to vector<16x128xf32>
    %154 = arith.mulf %151, %153 : vector<16x128xf32>
    %c6_120 = arith.constant 6 : index
    %c0_121 = arith.constant 0 : index
    %155 = vector.load %arg5[%c6_120, %c0_121] : memref<14x128xf32, #tpu.memory_space<vmem>>, vector<1x128xf32>
    %156 = vector.broadcast %155 : vector<1x128xf32> to vector<16x128xf32>
    %157 = arith.addf %154, %156 : vector<16x128xf32>
    %158 = arith.truncf %157 : vector<16x128xf32> to vector<16x128xbf16>
    %c16_122 = arith.constant 16 : index
    %c128_123 = arith.constant 128 : index
    %159 = vector.load %arg9[%c16_122, %c128_123] : memref<48x384xbf16, #tpu.memory_space<vmem>>, vector<16x128xbf16>
    tpu.vector_store %arg9[%c16_122, %c128_123], %158 {strides = array<i32>} : memref<48x384xbf16, #tpu.memory_space<vmem>>, vector<16x128xbf16>,
    %c14 = arith.constant 14 : index
    %c128_124 = arith.constant 128 : index
    %160 = vector.load %arg9[%c14, %c128_124] : memref<48x384xbf16, #tpu.memory_space<vmem>>, vector<16x128xbf16>
    %c15_125 = arith.constant 15 : index
    %c128_126 = arith.constant 128 : index
    %161 = vector.load %arg9[%c15_125, %c128_126] : memref<48x384xbf16, #tpu.memory_space<vmem>>, vector<16x128xbf16>
    %c16_127 = arith.constant 16 : index
    %c128_128 = arith.constant 128 : index
    %162 = vector.load %arg9[%c16_127, %c128_128] : memref<48x384xbf16, #tpu.memory_space<vmem>>, vector<16x128xbf16>
    %c17_129 = arith.constant 17 : index
    %c128_130 = arith.constant 128 : index
    %163 = vector.load %arg9[%c17_129, %c128_130] : memref<48x384xbf16, #tpu.memory_space<vmem>>, vector<16x128xbf16>
    %c18 = arith.constant 18 : index
    %c128_131 = arith.constant 128 : index
    %164 = vector.load %arg9[%c18, %c128_131] : memref<48x384xbf16, #tpu.memory_space<vmem>>, vector<16x128xbf16>
    %165 = tpu.concatenate %160, %161, %162, %163, %164 in 1 : vector<16x128xbf16>, vector<16x128xbf16>, vector<16x128xbf16>, vector<16x128xbf16>, vector<16x128xbf16> -> vector<16x640xbf16>
    %c2688 = arith.constant 2688 : index
    %c0_132 = arith.constant 0 : index
    %166 = vector.load %arg2[%c2688, %c0_132] : memref<12344x128xbf16, #tpu.memory_space<vmem>>, vector<640x128xbf16>
    %cst_133 = arith.constant dense<0.000000e+00> : vector<16x128xf32>
    %167 = tpu.matmul %165, %166, %cst_133 {dimension_numbers = #tpu.dot_dimension_numbers<[1], [0], [0], [1], [0, 0, 1, 1], [], []>} : vector<16x640xbf16>, vector<640x128xbf16>, vector<16x128xf32> -> vector<16x128xf32>
    %c7 = arith.constant 7 : index
    %c0_134 = arith.constant 0 : index
    %168 = vector.load %arg4[%c7, %c0_134] : memref<14x128xf32, #tpu.memory_space<vmem>>, vector<1x128xf32>
    %169 = vector.broadcast %168 : vector<1x128xf32> to vector<16x128xf32>
    %170 = arith.mulf %167, %169 : vector<16x128xf32>
    %c7_135 = arith.constant 7 : index
    %c0_136 = arith.constant 0 : index
    %171 = vector.load %arg5[%c7_135, %c0_136] : memref<14x128xf32, #tpu.memory_space<vmem>>, vector<1x128xf32>
    %172 = vector.broadcast %171 : vector<1x128xf32> to vector<16x128xf32>
    %173 = arith.addf %170, %172 : vector<16x128xf32>
    %174 = arith.truncf %173 : vector<16x128xf32> to vector<16x128xbf16>
    %c16_137 = arith.constant 16 : index
    %c128_138 = arith.constant 128 : index
    %175 = vector.load %arg9[%c16_137, %c128_138] : memref<48x384xbf16, #tpu.memory_space<vmem>>, vector<16x128xbf16>
    tpu.vector_store %arg9[%c16_137, %c128_138], %174 {strides = array<i32>} : memref<48x384xbf16, #tpu.memory_space<vmem>>, vector<16x128xbf16>,
    %c11 = arith.constant 11 : index
    %c88 = arith.constant 88 : index
    %176 = vector.load %arg9[%c11, %c88] : memref<48x384xbf16, #tpu.memory_space<vmem>>, vector<16x128xbf16>
    %c11_139 = arith.constant 11 : index
    %c128_140 = arith.constant 128 : index
    %177 = vector.load %arg9[%c11_139, %c128_140] : memref<48x384xbf16, #tpu.memory_space<vmem>>, vector<16x128xbf16>
    %c11_141 = arith.constant 11 : index
    %c168 = arith.constant 168 : index
    %178 = vector.load %arg9[%c11_141, %c168] : memref<48x384xbf16, #tpu.memory_space<vmem>>, vector<16x128xbf16>
    %c16_142 = arith.constant 16 : index
    %c88_143 = arith.constant 88 : index
    %179 = vector.load %arg9[%c16_142, %c88_143] : memref<48x384xbf16, #tpu.memory_space<vmem>>, vector<16x128xbf16>
    %c16_144 = arith.constant 16 : index
    %c128_145 = arith.constant 128 : index
    %180 = vector.load %arg9[%c16_144, %c128_145] : memref<48x384xbf16, #tpu.memory_space<vmem>>, vector<16x128xbf16>
    %c16_146 = arith.constant 16 : index
    %c168_147 = arith.constant 168 : index
    %181 = vector.load %arg9[%c16_146, %c168_147] : memref<48x384xbf16, #tpu.memory_space<vmem>>, vector<16x128xbf16>
    %c21 = arith.constant 21 : index
    %c88_148 = arith.constant 88 : index
    %182 = vector.load %arg9[%c21, %c88_148] : memref<48x384xbf16, #tpu.memory_space<vmem>>, vector<16x128xbf16>
    %c21_149 = arith.constant 21 : index
    %c128_150 = arith.constant 128 : index
    %183 = vector.load %arg9[%c21_149, %c128_150] : memref<48x384xbf16, #tpu.memory_space<vmem>>, vector<16x128xbf16>
    %c21_151 = arith.constant 21 : index
    %c168_152 = arith.constant 168 : index
    %184 = vector.load %arg9[%c21_151, %c168_152] : memref<48x384xbf16, #tpu.memory_space<vmem>>, vector<16x128xbf16>
    %185 = tpu.concatenate %176, %177, %178, %179, %180, %181, %182, %183, %184 in 1 : vector<16x128xbf16>, vector<16x128xbf16>, vector<16x128xbf16>, vector<16x128xbf16>, vector<16x128xbf16>, vector<16x128xbf16>, vector<16x128xbf16>, vector<16x128xbf16>, vector<16x128xbf16> -> vector<16x1152xbf16>
    %c3328 = arith.constant 3328 : index
    %c0_153 = arith.constant 0 : index
    %186 = vector.load %arg2[%c3328, %c0_153] : memref<12344x128xbf16, #tpu.memory_space<vmem>>, vector<1152x128xbf16>
    %cst_154 = arith.constant dense<0.000000e+00> : vector<16x128xf32>
    %187 = tpu.matmul %185, %186, %cst_154 {dimension_numbers = #tpu.dot_dimension_numbers<[1], [0], [0], [1], [0, 0, 1, 1], [], []>} : vector<16x1152xbf16>, vector<1152x128xbf16>, vector<16x128xf32> -> vector<16x128xf32>
    %c8 = arith.constant 8 : index
    %c0_155 = arith.constant 0 : index
    %188 = vector.load %arg4[%c8, %c0_155] : memref<14x128xf32, #tpu.memory_space<vmem>>, vector<1x128xf32>
    %189 = vector.broadcast %188 : vector<1x128xf32> to vector<16x128xf32>
    %190 = arith.mulf %187, %189 : vector<16x128xf32>
    %c8_156 = arith.constant 8 : index
    %c0_157 = arith.constant 0 : index
    %191 = vector.load %arg5[%c8_156, %c0_157] : memref<14x128xf32, #tpu.memory_space<vmem>>, vector<1x128xf32>
    %192 = vector.broadcast %191 : vector<1x128xf32> to vector<16x128xf32>
    %193 = arith.addf %190, %192 : vector<16x128xf32>
    %194 = vector.extract_strided_slice %79 {offsets = [0, 256], sizes = [16, 128], strides = [1, 1]} : vector<16x384xf32> to vector<16x128xf32>
    %c9 = arith.constant 9 : index
    %c0_158 = arith.constant 0 : index
    %195 = vector.load %arg4[%c9, %c0_158] : memref<14x128xf32, #tpu.memory_space<vmem>>, vector<1x128xf32>
    %196 = vector.broadcast %195 : vector<1x128xf32> to vector<16x128xf32>
    %197 = arith.mulf %194, %196 : vector<16x128xf32>
    %c9_159 = arith.constant 9 : index
    %c0_160 = arith.constant 0 : index
    %198 = vector.load %arg5[%c9_159, %c0_160] : memref<14x128xf32, #tpu.memory_space<vmem>>, vector<1x128xf32>
    %199 = vector.broadcast %198 : vector<1x128xf32> to vector<16x128xf32>
    %200 = arith.addf %197, %199 : vector<16x128xf32>
    %201 = arith.truncf %200 : vector<16x128xf32> to vector<16x128xbf16>
    %c16_161 = arith.constant 16 : index
    %c128_162 = arith.constant 128 : index
    %202 = vector.load %arg9[%c16_161, %c128_162] : memref<48x384xbf16, #tpu.memory_space<vmem>>, vector<16x128xbf16>
    tpu.vector_store %arg9[%c16_161, %c128_162], %201 {strides = array<i32>} : memref<48x384xbf16, #tpu.memory_space<vmem>>, vector<16x128xbf16>,
    %c16_163 = arith.constant 16 : index
    %c104_164 = arith.constant 104 : index
    %203 = vector.load %arg9[%c16_163, %c104_164] : memref<48x384xbf16, #tpu.memory_space<vmem>>, vector<16x128xbf16>
    %c16_165 = arith.constant 16 : index
    %c112_166 = arith.constant 112 : index
    %204 = vector.load %arg9[%c16_165, %c112_166] : memref<48x384xbf16, #tpu.memory_space<vmem>>, vector<16x128xbf16>
    %c16_167 = arith.constant 16 : index
    %c120_168 = arith.constant 120 : index
    %205 = vector.load %arg9[%c16_167, %c120_168] : memref<48x384xbf16, #tpu.memory_space<vmem>>, vector<16x128xbf16>
    %c16_169 = arith.constant 16 : index
    %c128_170 = arith.constant 128 : index
    %206 = vector.load %arg9[%c16_169, %c128_170] : memref<48x384xbf16, #tpu.memory_space<vmem>>, vector<16x128xbf16>
    %c16_171 = arith.constant 16 : index
    %c136_172 = arith.constant 136 : index
    %207 = vector.load %arg9[%c16_171, %c136_172] : memref<48x384xbf16, #tpu.memory_space<vmem>>, vector<16x128xbf16>
    %c16_173 = arith.constant 16 : index
    %c144_174 = arith.constant 144 : index
    %208 = vector.load %arg9[%c16_173, %c144_174] : memref<48x384xbf16, #tpu.memory_space<vmem>>, vector<16x128xbf16>
    %c16_175 = arith.constant 16 : index
    %c152_176 = arith.constant 152 : index
    %209 = vector.load %arg9[%c16_175, %c152_176] : memref<48x384xbf16, #tpu.memory_space<vmem>>, vector<16x128xbf16>
    %210 = tpu.concatenate %203, %204, %205, %206, %207, %208, %209 in 1 : vector<16x128xbf16>, vector<16x128xbf16>, vector<16x128xbf16>, vector<16x128xbf16>, vector<16x128xbf16>, vector<16x128xbf16>, vector<16x128xbf16> -> vector<16x896xbf16>
    %c4480 = arith.constant 4480 : index
    %c0_177 = arith.constant 0 : index
    %211 = vector.load %arg2[%c4480, %c0_177] : memref<12344x128xbf16, #tpu.memory_space<vmem>>, vector<896x128xbf16>
    %cst_178 = arith.constant dense<0.000000e+00> : vector<16x128xf32>
    %212 = tpu.matmul %210, %211, %cst_178 {dimension_numbers = #tpu.dot_dimension_numbers<[1], [0], [0], [1], [0, 0, 1, 1], [], []>} : vector<16x896xbf16>, vector<896x128xbf16>, vector<16x128xf32> -> vector<16x128xf32>
    %c10 = arith.constant 10 : index
    %c0_179 = arith.constant 0 : index
    %213 = vector.load %arg4[%c10, %c0_179] : memref<14x128xf32, #tpu.memory_space<vmem>>, vector<1x128xf32>
    %214 = vector.broadcast %213 : vector<1x128xf32> to vector<16x128xf32>
    %215 = arith.mulf %212, %214 : vector<16x128xf32>
    %c10_180 = arith.constant 10 : index
    %c0_181 = arith.constant 0 : index
    %216 = vector.load %arg5[%c10_180, %c0_181] : memref<14x128xf32, #tpu.memory_space<vmem>>, vector<1x128xf32>
    %217 = vector.broadcast %216 : vector<1x128xf32> to vector<16x128xf32>
    %218 = arith.addf %215, %217 : vector<16x128xf32>
    %219 = arith.truncf %218 : vector<16x128xf32> to vector<16x128xbf16>
    %c16_182 = arith.constant 16 : index
    %c128_183 = arith.constant 128 : index
    %220 = vector.load %arg9[%c16_182, %c128_183] : memref<48x384xbf16, #tpu.memory_space<vmem>>, vector<16x128xbf16>
    tpu.vector_store %arg9[%c16_182, %c128_183], %219 {strides = array<i32>} : memref<48x384xbf16, #tpu.memory_space<vmem>>, vector<16x128xbf16>,
    %c13_184 = arith.constant 13 : index
    %c128_185 = arith.constant 128 : index
    %221 = vector.load %arg9[%c13_184, %c128_185] : memref<48x384xbf16, #tpu.memory_space<vmem>>, vector<16x128xbf16>
    %c14_186 = arith.constant 14 : index
    %c128_187 = arith.constant 128 : index
    %222 = vector.load %arg9[%c14_186, %c128_187] : memref<48x384xbf16, #tpu.memory_space<vmem>>, vector<16x128xbf16>
    %c15_188 = arith.constant 15 : index
    %c128_189 = arith.constant 128 : index
    %223 = vector.load %arg9[%c15_188, %c128_189] : memref<48x384xbf16, #tpu.memory_space<vmem>>, vector<16x128xbf16>
    %c16_190 = arith.constant 16 : index
    %c128_191 = arith.constant 128 : index
    %224 = vector.load %arg9[%c16_190, %c128_191] : memref<48x384xbf16, #tpu.memory_space<vmem>>, vector<16x128xbf16>
    %c17_192 = arith.constant 17 : index
    %c128_193 = arith.constant 128 : index
    %225 = vector.load %arg9[%c17_192, %c128_193] : memref<48x384xbf16, #tpu.memory_space<vmem>>, vector<16x128xbf16>
    %c18_194 = arith.constant 18 : index
    %c128_195 = arith.constant 128 : index
    %226 = vector.load %arg9[%c18_194, %c128_195] : memref<48x384xbf16, #tpu.memory_space<vmem>>, vector<16x128xbf16>
    %c19_196 = arith.constant 19 : index
    %c128_197 = arith.constant 128 : index
    %227 = vector.load %arg9[%c19_196, %c128_197] : memref<48x384xbf16, #tpu.memory_space<vmem>>, vector<16x128xbf16>
    %228 = tpu.concatenate %221, %222, %223, %224, %225, %226, %227 in 1 : vector<16x128xbf16>, vector<16x128xbf16>, vector<16x128xbf16>, vector<16x128xbf16>, vector<16x128xbf16>, vector<16x128xbf16>, vector<16x128xbf16> -> vector<16x896xbf16>
    %c5376 = arith.constant 5376 : index
    %c0_198 = arith.constant 0 : index
    %229 = vector.load %arg2[%c5376, %c0_198] : memref<12344x128xbf16, #tpu.memory_space<vmem>>, vector<896x128xbf16>
    %cst_199 = arith.constant dense<0.000000e+00> : vector<16x128xf32>
    %230 = tpu.matmul %228, %229, %cst_199 {dimension_numbers = #tpu.dot_dimension_numbers<[1], [0], [0], [1], [0, 0, 1, 1], [], []>} : vector<16x896xbf16>, vector<896x128xbf16>, vector<16x128xf32> -> vector<16x128xf32>
    %c11_200 = arith.constant 11 : index
    %c0_201 = arith.constant 0 : index
    %231 = vector.load %arg4[%c11_200, %c0_201] : memref<14x128xf32, #tpu.memory_space<vmem>>, vector<1x128xf32>
    %232 = vector.broadcast %231 : vector<1x128xf32> to vector<16x128xf32>
    %233 = arith.mulf %230, %232 : vector<16x128xf32>
    %c11_202 = arith.constant 11 : index
    %c0_203 = arith.constant 0 : index
    %234 = vector.load %arg5[%c11_202, %c0_203] : memref<14x128xf32, #tpu.memory_space<vmem>>, vector<1x128xf32>
    %235 = vector.broadcast %234 : vector<1x128xf32> to vector<16x128xf32>
    %236 = arith.addf %233, %235 : vector<16x128xf32>
    %237 = arith.truncf %236 : vector<16x128xf32> to vector<16x128xbf16>
    %c16_204 = arith.constant 16 : index
    %c128_205 = arith.constant 128 : index
    %238 = vector.load %arg9[%c16_204, %c128_205] : memref<48x384xbf16, #tpu.memory_space<vmem>>, vector<16x128xbf16>
    tpu.vector_store %arg9[%c16_204, %c128_205], %237 {strides = array<i32>} : memref<48x384xbf16, #tpu.memory_space<vmem>>, vector<16x128xbf16>,
    %c9_206 = arith.constant 9 : index
    %c72 = arith.constant 72 : index
    %239 = vector.load %arg9[%c9_206, %c72] : memref<48x384xbf16, #tpu.memory_space<vmem>>, vector<16x128xbf16>
    %c9_207 = arith.constant 9 : index
    %c128_208 = arith.constant 128 : index
    %240 = vector.load %arg9[%c9_207, %c128_208] : memref<48x384xbf16, #tpu.memory_space<vmem>>, vector<16x128xbf16>
    %c9_209 = arith.constant 9 : index
    %c184 = arith.constant 184 : index
    %241 = vector.load %arg9[%c9_209, %c184] : memref<48x384xbf16, #tpu.memory_space<vmem>>, vector<16x128xbf16>
    %c16_210 = arith.constant 16 : index
    %c72_211 = arith.constant 72 : index
    %242 = vector.load %arg9[%c16_210, %c72_211] : memref<48x384xbf16, #tpu.memory_space<vmem>>, vector<16x128xbf16>
    %c16_212 = arith.constant 16 : index
    %c128_213 = arith.constant 128 : index
    %243 = vector.load %arg9[%c16_212, %c128_213] : memref<48x384xbf16, #tpu.memory_space<vmem>>, vector<16x128xbf16>
    %c16_214 = arith.constant 16 : index
    %c184_215 = arith.constant 184 : index
    %244 = vector.load %arg9[%c16_214, %c184_215] : memref<48x384xbf16, #tpu.memory_space<vmem>>, vector<16x128xbf16>
    %c23 = arith.constant 23 : index
    %c72_216 = arith.constant 72 : index
    %245 = vector.load %arg9[%c23, %c72_216] : memref<48x384xbf16, #tpu.memory_space<vmem>>, vector<16x128xbf16>
    %c23_217 = arith.constant 23 : index
    %c128_218 = arith.constant 128 : index
    %246 = vector.load %arg9[%c23_217, %c128_218] : memref<48x384xbf16, #tpu.memory_space<vmem>>, vector<16x128xbf16>
    %c23_219 = arith.constant 23 : index
    %c184_220 = arith.constant 184 : index
    %247 = vector.load %arg9[%c23_219, %c184_220] : memref<48x384xbf16, #tpu.memory_space<vmem>>, vector<16x128xbf16>
    %248 = tpu.concatenate %239, %240, %241, %242, %243, %244, %245, %246, %247 in 1 : vector<16x128xbf16>, vector<16x128xbf16>, vector<16x128xbf16>, vector<16x128xbf16>, vector<16x128xbf16>, vector<16x128xbf16>, vector<16x128xbf16>, vector<16x128xbf16>, vector<16x128xbf16> -> vector<16x1152xbf16>
    %c6272 = arith.constant 6272 : index
    %c0_221 = arith.constant 0 : index
    %249 = vector.load %arg2[%c6272, %c0_221] : memref<12344x128xbf16, #tpu.memory_space<vmem>>, vector<1152x128xbf16>
    %cst_222 = arith.constant dense<0.000000e+00> : vector<16x128xf32>
    %250 = tpu.matmul %248, %249, %cst_222 {dimension_numbers = #tpu.dot_dimension_numbers<[1], [0], [0], [1], [0, 0, 1, 1], [], []>} : vector<16x1152xbf16>, vector<1152x128xbf16>, vector<16x128xf32> -> vector<16x128xf32>
    %c12 = arith.constant 12 : index
    %c0_223 = arith.constant 0 : index
    %251 = vector.load %arg4[%c12, %c0_223] : memref<14x128xf32, #tpu.memory_space<vmem>>, vector<1x128xf32>
    %252 = vector.broadcast %251 : vector<1x128xf32> to vector<16x128xf32>
    %253 = arith.mulf %250, %252 : vector<16x128xf32>
    %c12_224 = arith.constant 12 : index
    %c0_225 = arith.constant 0 : index
    %254 = vector.load %arg5[%c12_224, %c0_225] : memref<14x128xf32, #tpu.memory_space<vmem>>, vector<1x128xf32>
    %255 = vector.broadcast %254 : vector<1x128xf32> to vector<16x128xf32>
    %256 = arith.addf %253, %255 : vector<16x128xf32>
    %257 = arith.truncf %76 : vector<16x128xf32> to vector<16x128xbf16>
    %c16_226 = arith.constant 16 : index
    %c128_227 = arith.constant 128 : index
    %258 = vector.load %arg9[%c16_226, %c128_227] : memref<48x384xbf16, #tpu.memory_space<vmem>>, vector<16x128xbf16>
    tpu.vector_store %arg9[%c16_226, %c128_227], %257 {strides = array<i32>} : memref<48x384xbf16, #tpu.memory_space<vmem>>, vector<16x128xbf16>,
    %c15_228 = arith.constant 15 : index
    %c120_229 = arith.constant 120 : index
    %259 = vector.load %arg9[%c15_228, %c120_229] : memref<48x384xbf16, #tpu.memory_space<vmem>>, vector<16x128xbf16>
    %c15_230 = arith.constant 15 : index
    %c128_231 = arith.constant 128 : index
    %260 = vector.load %arg9[%c15_230, %c128_231] : memref<48x384xbf16, #tpu.memory_space<vmem>>, vector<16x128xbf16>
    %c15_232 = arith.constant 15 : index
    %c136_233 = arith.constant 136 : index
    %261 = vector.load %arg9[%c15_232, %c136_233] : memref<48x384xbf16, #tpu.memory_space<vmem>>, vector<16x128xbf16>
    %c16_234 = arith.constant 16 : index
    %c120_235 = arith.constant 120 : index
    %262 = vector.load %arg9[%c16_234, %c120_235] : memref<48x384xbf16, #tpu.memory_space<vmem>>, vector<16x128xbf16>
    %c16_236 = arith.constant 16 : index
    %c128_237 = arith.constant 128 : index
    %263 = vector.load %arg9[%c16_236, %c128_237] : memref<48x384xbf16, #tpu.memory_space<vmem>>, vector<16x128xbf16>
    %c16_238 = arith.constant 16 : index
    %c136_239 = arith.constant 136 : index
    %264 = vector.load %arg9[%c16_238, %c136_239] : memref<48x384xbf16, #tpu.memory_space<vmem>>, vector<16x128xbf16>
    %c17_240 = arith.constant 17 : index
    %c120_241 = arith.constant 120 : index
    %265 = vector.load %arg9[%c17_240, %c120_241] : memref<48x384xbf16, #tpu.memory_space<vmem>>, vector<16x128xbf16>
    %c17_242 = arith.constant 17 : index
    %c128_243 = arith.constant 128 : index
    %266 = vector.load %arg9[%c17_242, %c128_243] : memref<48x384xbf16, #tpu.memory_space<vmem>>, vector<16x128xbf16>
    %c17_244 = arith.constant 17 : index
    %c136_245 = arith.constant 136 : index
    %267 = vector.load %arg9[%c17_244, %c136_245] : memref<48x384xbf16, #tpu.memory_space<vmem>>, vector<16x128xbf16>
    %268 = arith.truncf %134 : vector<16x128xf32> to vector<16x128xbf16>
    %c16_246 = arith.constant 16 : index
    %c128_247 = arith.constant 128 : index
    %269 = vector.load %arg9[%c16_246, %c128_247] : memref<48x384xbf16, #tpu.memory_space<vmem>>, vector<16x128xbf16>
    tpu.vector_store %arg9[%c16_246, %c128_247], %268 {strides = array<i32>} : memref<48x384xbf16, #tpu.memory_space<vmem>>, vector<16x128xbf16>,
    %c15_248 = arith.constant 15 : index
    %c120_249 = arith.constant 120 : index
    %270 = vector.load %arg9[%c15_248, %c120_249] : memref<48x384xbf16, #tpu.memory_space<vmem>>, vector<16x128xbf16>
    %c15_250 = arith.constant 15 : index
    %c128_251 = arith.constant 128 : index
    %271 = vector.load %arg9[%c15_250, %c128_251] : memref<48x384xbf16, #tpu.memory_space<vmem>>, vector<16x128xbf16>
    %c15_252 = arith.constant 15 : index
    %c136_253 = arith.constant 136 : index
    %272 = vector.load %arg9[%c15_252, %c136_253] : memref<48x384xbf16, #tpu.memory_space<vmem>>, vector<16x128xbf16>
    %c16_254 = arith.constant 16 : index
    %c120_255 = arith.constant 120 : index
    %273 = vector.load %arg9[%c16_254, %c120_255] : memref<48x384xbf16, #tpu.memory_space<vmem>>, vector<16x128xbf16>
    %c16_256 = arith.constant 16 : index
    %c128_257 = arith.constant 128 : index
    %274 = vector.load %arg9[%c16_256, %c128_257] : memref<48x384xbf16, #tpu.memory_space<vmem>>, vector<16x128xbf16>
    %c16_258 = arith.constant 16 : index
    %c136_259 = arith.constant 136 : index
    %275 = vector.load %arg9[%c16_258, %c136_259] : memref<48x384xbf16, #tpu.memory_space<vmem>>, vector<16x128xbf16>
    %c17_260 = arith.constant 17 : index
    %c120_261 = arith.constant 120 : index
    %276 = vector.load %arg9[%c17_260, %c120_261] : memref<48x384xbf16, #tpu.memory_space<vmem>>, vector<16x128xbf16>
    %c17_262 = arith.constant 17 : index
    %c128_263 = arith.constant 128 : index
    %277 = vector.load %arg9[%c17_262, %c128_263] : memref<48x384xbf16, #tpu.memory_space<vmem>>, vector<16x128xbf16>
    %c17_264 = arith.constant 17 : index
    %c136_265 = arith.constant 136 : index
    %278 = vector.load %arg9[%c17_264, %c136_265] : memref<48x384xbf16, #tpu.memory_space<vmem>>, vector<16x128xbf16>
    %279 = arith.truncf %193 : vector<16x128xf32> to vector<16x128xbf16>
    %c16_266 = arith.constant 16 : index
    %c128_267 = arith.constant 128 : index
    %280 = vector.load %arg9[%c16_266, %c128_267] : memref<48x384xbf16, #tpu.memory_space<vmem>>, vector<16x128xbf16>
    tpu.vector_store %arg9[%c16_266, %c128_267], %279 {strides = array<i32>} : memref<48x384xbf16, #tpu.memory_space<vmem>>, vector<16x128xbf16>,
    %c15_268 = arith.constant 15 : index
    %c120_269 = arith.constant 120 : index
    %281 = vector.load %arg9[%c15_268, %c120_269] : memref<48x384xbf16, #tpu.memory_space<vmem>>, vector<16x128xbf16>
    %c15_270 = arith.constant 15 : index
    %c128_271 = arith.constant 128 : index
    %282 = vector.load %arg9[%c15_270, %c128_271] : memref<48x384xbf16, #tpu.memory_space<vmem>>, vector<16x128xbf16>
    %c15_272 = arith.constant 15 : index
    %c136_273 = arith.constant 136 : index
    %283 = vector.load %arg9[%c15_272, %c136_273] : memref<48x384xbf16, #tpu.memory_space<vmem>>, vector<16x128xbf16>
    %c16_274 = arith.constant 16 : index
    %c120_275 = arith.constant 120 : index
    %284 = vector.load %arg9[%c16_274, %c120_275] : memref<48x384xbf16, #tpu.memory_space<vmem>>, vector<16x128xbf16>
    %c16_276 = arith.constant 16 : index
    %c128_277 = arith.constant 128 : index
    %285 = vector.load %arg9[%c16_276, %c128_277] : memref<48x384xbf16, #tpu.memory_space<vmem>>, vector<16x128xbf16>
    %c16_278 = arith.constant 16 : index
    %c136_279 = arith.constant 136 : index
    %286 = vector.load %arg9[%c16_278, %c136_279] : memref<48x384xbf16, #tpu.memory_space<vmem>>, vector<16x128xbf16>
    %c17_280 = arith.constant 17 : index
    %c120_281 = arith.constant 120 : index
    %287 = vector.load %arg9[%c17_280, %c120_281] : memref<48x384xbf16, #tpu.memory_space<vmem>>, vector<16x128xbf16>
    %c17_282 = arith.constant 17 : index
    %c128_283 = arith.constant 128 : index
    %288 = vector.load %arg9[%c17_282, %c128_283] : memref<48x384xbf16, #tpu.memory_space<vmem>>, vector<16x128xbf16>
    %c17_284 = arith.constant 17 : index
    %c136_285 = arith.constant 136 : index
    %289 = vector.load %arg9[%c17_284, %c136_285] : memref<48x384xbf16, #tpu.memory_space<vmem>>, vector<16x128xbf16>
    %290 = arith.truncf %256 : vector<16x128xf32> to vector<16x128xbf16>
    %c16_286 = arith.constant 16 : index
    %c128_287 = arith.constant 128 : index
    %291 = vector.load %arg9[%c16_286, %c128_287] : memref<48x384xbf16, #tpu.memory_space<vmem>>, vector<16x128xbf16>
    tpu.vector_store %arg9[%c16_286, %c128_287], %290 {strides = array<i32>} : memref<48x384xbf16, #tpu.memory_space<vmem>>, vector<16x128xbf16>,
    %c15_288 = arith.constant 15 : index
    %c120_289 = arith.constant 120 : index
    %292 = vector.load %arg9[%c15_288, %c120_289] : memref<48x384xbf16, #tpu.memory_space<vmem>>, vector<16x128xbf16>
    %c15_290 = arith.constant 15 : index
    %c128_291 = arith.constant 128 : index
    %293 = vector.load %arg9[%c15_290, %c128_291] : memref<48x384xbf16, #tpu.memory_space<vmem>>, vector<16x128xbf16>
    %c15_292 = arith.constant 15 : index
    %c136_293 = arith.constant 136 : index
    %294 = vector.load %arg9[%c15_292, %c136_293] : memref<48x384xbf16, #tpu.memory_space<vmem>>, vector<16x128xbf16>
    %c16_294 = arith.constant 16 : index
    %c120_295 = arith.constant 120 : index
    %295 = vector.load %arg9[%c16_294, %c120_295] : memref<48x384xbf16, #tpu.memory_space<vmem>>, vector<16x128xbf16>
    %c16_296 = arith.constant 16 : index
    %c128_297 = arith.constant 128 : index
    %296 = vector.load %arg9[%c16_296, %c128_297] : memref<48x384xbf16, #tpu.memory_space<vmem>>, vector<16x128xbf16>
    %c16_298 = arith.constant 16 : index
    %c136_299 = arith.constant 136 : index
    %297 = vector.load %arg9[%c16_298, %c136_299] : memref<48x384xbf16, #tpu.memory_space<vmem>>, vector<16x128xbf16>
    %c17_300 = arith.constant 17 : index
    %c120_301 = arith.constant 120 : index
    %298 = vector.load %arg9[%c17_300, %c120_301] : memref<48x384xbf16, #tpu.memory_space<vmem>>, vector<16x128xbf16>
    %c17_302 = arith.constant 17 : index
    %c128_303 = arith.constant 128 : index
    %299 = vector.load %arg9[%c17_302, %c128_303] : memref<48x384xbf16, #tpu.memory_space<vmem>>, vector<16x128xbf16>
    %c17_304 = arith.constant 17 : index
    %c136_305 = arith.constant 136 : index
    %300 = vector.load %arg9[%c17_304, %c136_305] : memref<48x384xbf16, #tpu.memory_space<vmem>>, vector<16x128xbf16>
    %301 = tpu.concatenate %259, %260, %261, %262, %263, %264, %265, %266, %267, %270, %271, %272, %273, %274, %275, %276 in 1 : vector<16x128xbf16>, vector<16x128xbf16>, vector<16x128xbf16>, vector<16x128xbf16>, vector<16x128xbf16>, vector<16x128xbf16>, vector<16x128xbf16>, vector<16x128xbf16>, vector<16x128xbf16>, vector<16x128xbf16>, vector<16x128xbf16>, vector<16x128xbf16>, vector<16x128xbf16>, vector<16x128xbf16>, vector<16x128xbf16>, vector<16x128xbf16> -> vector<16x2048xbf16>
    %302 = tpu.concatenate %277, %278, %281, %282, %283, %284, %285, %286, %287, %288, %289, %292, %293, %294, %295, %296 in 1 : vector<16x128xbf16>, vector<16x128xbf16>, vector<16x128xbf16>, vector<16x128xbf16>, vector<16x128xbf16>, vector<16x128xbf16>, vector<16x128xbf16>, vector<16x128xbf16>, vector<16x128xbf16>, vector<16x128xbf16>, vector<16x128xbf16>, vector<16x128xbf16>, vector<16x128xbf16>, vector<16x128xbf16>, vector<16x128xbf16>, vector<16x128xbf16> -> vector<16x2048xbf16>
    %303 = tpu.concatenate %297, %298, %299, %300 in 1 : vector<16x128xbf16>, vector<16x128xbf16>, vector<16x128xbf16>, vector<16x128xbf16> -> vector<16x512xbf16>
    %304 = tpu.concatenate %301, %302, %303 in 1 : vector<16x2048xbf16>, vector<16x2048xbf16>, vector<16x512xbf16> -> vector<16x4608xbf16>
    %c7424 = arith.constant 7424 : index
    %c0_306 = arith.constant 0 : index
    %305 = vector.load %arg2[%c7424, %c0_306] : memref<12344x128xbf16, #tpu.memory_space<vmem>>, vector<4608x128xbf16>
    %cst_307 = arith.constant dense<0.000000e+00> : vector<16x128xf32>
    %306 = tpu.matmul %304, %305, %cst_307 {dimension_numbers = #tpu.dot_dimension_numbers<[1], [0], [0], [1], [0, 0, 1, 1], [], []>} : vector<16x4608xbf16>, vector<4608x128xbf16>, vector<16x128xf32> -> vector<16x128xf32>
    %c13_308 = arith.constant 13 : index
    %c0_309 = arith.constant 0 : index
    %307 = vector.load %arg4[%c13_308, %c0_309] : memref<14x128xf32, #tpu.memory_space<vmem>>, vector<1x128xf32>
    %308 = vector.broadcast %307 : vector<1x128xf32> to vector<16x128xf32>
    %309 = arith.mulf %306, %308 : vector<16x128xf32>
    %c13_310 = arith.constant 13 : index
    %c0_311 = arith.constant 0 : index
    %310 = vector.load %arg5[%c13_310, %c0_311] : memref<14x128xf32, #tpu.memory_space<vmem>>, vector<1x128xf32>
    %311 = vector.broadcast %310 : vector<1x128xf32> to vector<16x128xf32>
    %312 = arith.addf %309, %311 : vector<16x128xf32>
    %313 = arith.addf %312, %76 : vector<16x128xf32>
    %cst_312 = arith.constant 0.000000e+00 : f32
    %314 = vector.broadcast %cst_312 : f32 to vector<16x128xf32>
    %315 = arith.maximumf %313, %314 : vector<16x128xf32>
    %c0_313 = arith.constant 0 : index
    %c0_314 = arith.constant 0 : index
    %c0_315 = arith.constant 0 : index
    %316 = vector.load %arg8[%c0_313, %c0_314, %c0_315] : memref<1x16x128xf32, #tpu.memory_space<vmem>>, vector<1x16x128xf32>
    %317 = vector.shape_cast %316 : vector<1x16x128xf32> to vector<16x128xf32>
    %318 = vector.shape_cast %315 : vector<16x128xf32> to vector<1x16x128xf32>
    tpu.vector_store %arg8[%c0_313, %c0_314, %c0_315], %318 {strides = array<i32>} : memref<1x16x128xf32, #tpu.memory_space<vmem>>, vector<1x16x128xf32>,
    return
  }
  func.func @transform_0(%arg0: i32) -> (i32, i32, i32) {
    %c0_i32 = arith.constant 0 : i32
    %c0_i32_0 = arith.constant 0 : i32
    %c0_i32_1 = arith.constant 0 : i32
    return %arg0, %c0_i32, %c0_i32_0 : i32, i32, i32
  }
  func.func @transform_1(%arg0: i32) -> (i32, i32) {
    %c0_i32 = arith.constant 0 : i32
    %c0_i32_0 = arith.constant 0 : i32
    %c0_i32_1 = arith.constant 0 : i32
    return %c0_i32, %c0_i32_0 : i32, i32
  }
  func.func @transform_2(%arg0: i32) -> (i32, i32) {
    %c0_i32 = arith.constant 0 : i32
    %c0_i32_0 = arith.constant 0 : i32
    %c0_i32_1 = arith.constant 0 : i32
    return %c0_i32, %c0_i32_0 : i32, i32
  }
  func.func @transform_3(%arg0: i32) -> (i32, i32) {
    %c0_i32 = arith.constant 0 : i32
    %c0_i32_0 = arith.constant 0 : i32
    %c0_i32_1 = arith.constant 0 : i32
    return %c0_i32, %c0_i32_0 : i32, i32
  }
  func.func @transform_4(%arg0: i32) -> (i32, i32) {
    %c0_i32 = arith.constant 0 : i32
    %c0_i32_0 = arith.constant 0 : i32
    %c0_i32_1 = arith.constant 0 : i32
    return %c0_i32, %c0_i32_0 : i32, i32
  }
  func.func @transform_5(%arg0: i32) -> (i32, i32) {
    %c0_i32 = arith.constant 0 : i32
    %c0_i32_0 = arith.constant 0 : i32
    %c0_i32_1 = arith.constant 0 : i32
    return %c0_i32, %c0_i32_0 : i32, i32
  }
  func.func @transform_6(%arg0: i32) -> (i32, i32) {
    %c0_i32 = arith.constant 0 : i32
    %c0_i32_0 = arith.constant 0 : i32
    %c0_i32_1 = arith.constant 0 : i32
    return %c0_i32, %c0_i32_0 : i32, i32
  }
  func.func @transform_7(%arg0: i32) -> (i32, i32, i32) {
    %c0_i32 = arith.constant 0 : i32
    %c0_i32_0 = arith.constant 0 : i32
    %c0_i32_1 = arith.constant 0 : i32
    return %arg0, %c0_i32, %c0_i32_0 : i32, i32, i32
  }
}

</mosaic_0001>

<bundles_post_ra>
// kernel: tile.213
= control target key start
LH: loop header
LB: loop body
LE: loop exit
PB: predicated region body
PF: predicated region fallthrough
CT: control target
= control target key end

     0   :  { %2 = vsyncpa [#allocation1], 0  ;;  %s51_s8 = smov [#allocation0]   ;;  %s71_s0 = inlined_call_operand.hbm [shape: f32[8], index: 0, kind: input, shape index: {}]   ;;  %s72_s1 = inlined_call_operand.vmem [shape: f32[16,8], index: 1, kind: output, shape index: {}]  }
   0x1   :  { %s8_s0 = sshll.u32 %s71_s0, 4  ;;  %s10_s9 = sshll.u32 %s51_s8, 4  ;;  %s9_s0 = int_to_ptr.hbm [resolvable:$true] %s8_s0  ;;  %s11_s9 = int_to_ptr.vmem [resolvable:$true] %s10_s9 }
   0x2   :  { %13 = dma.hbm_to_vmem [thread:$0]  %s9_s0, 16, %s11_s9, [#allocation1]  }
   0x3   :  { %49 = dma.done.wait [#allocation1], 16  }
   0x4   :  { %50 = vsyncadd [#allocation1], 4294967280  ;;  %v18_v0 = vld [vmem:[#allocation0] ss:$0 sm:$0xff] }
   0x5   :  { %19 = vst [vmem:[%s72_s1] sm:$0xff] %v18_v0 }
   0x6   :  { %23 = vst [vmem:[%s72_s1 + $0x8] sm:$0xff] %v18_v0 }
   0x7   :  { %22 = vsyncpa [#allocation1], 1 }

// kernel: tile.266
= control target key start
LH: loop header
LB: loop body
LE: loop exit
PB: predicated region body
PF: predicated region fallthrough
CT: control target
= control target key end

     0   :  { %s131_s10 = smov 120   ;;  %s132_s11 = smov 104   ;;  %vm3_vm0 = vcmask 64512   ;;  %vm9_vm1 = vcmask 1048512   ;;  %vm15_vm2 = vcmask 982912   ;;  %vm21_vm3 = vcmask 917312   ;;  %s207_s0 = inlined_call_operand.vmem [shape: f32[16,8], index: 0, kind: input, shape index: {}]   ;;  %s208_s1 = inlined_call_operand.vmem [shape: f32[1,128], index: 1, kind: output, shape index: {}]  }
   0x1   :  { %v101_v0 = vld [vmem:[%s207_s0 + $0xf] sm:$0x1]   ;;  %v103_v1 = vld [vmem:[%s207_s0 + $0xd] sm:$0x1]   ;;  %v105_v2 = vld [vmem:[%s207_s0 + $0xb] sm:$0x1]  }
   0x2   :  { %7 = vrot.lane.b32.xlu0 %v101_v0, %s131_s10  ;;  %19 = vrot.lane.b32.xlu1 %v103_v1, %s132_s11  ;;  %s133_s14 = smov 88   ;;  %v102_v3 = vld [vmem:[%s207_s0 + $0xe] sm:$0x1]   ;;  %v104_v4 = vld [vmem:[%s207_s0 + $0xc] sm:$0x1]   ;;  %s134_s19 = smov 112  }
   0x3   :  { %31 = vrot.lane.b32.xlu2 %v105_v2, %s133_s14  ;;  %s135_s20 = smov 96   ;;  %v106_v5 = vld [vmem:[%s207_s0 + $0xa] sm:$0x1]   ;;  %s136_s23 = smov 80   ;;  %v107_v6 = vld [vmem:[%s207_s0 + $0x9] sm:$0x1]  }
   0x4   :  { %v108_v7 = vld [vmem:[%s207_s0 + $0x8] sm:$0x1]   ;;  %s137_s28 = smov 72   ;;  %s138_s29 = smov 64   ;;  %v109_v8 = vld [vmem:[%s207_s0 + $0x7] sm:$0x1]  }
   0x5   :  { %s139_s3 = smov 56   ;;  %v110_v9 = vld [vmem:[%s207_s0 + $0x6] sm:$0x1]   ;;  %v111_v10 = vld [vmem:[%s207_s0 + $0x5] sm:$0x1]   ;;  %s140_s8 = smov 48  }
   0x6   :  { %s141_s9 = smov 40   ;;  %v112_v11 = vld [vmem:[%s207_s0 + $0x4] sm:$0x1]   ;;  %s142_s12 = smov 32   ;;  %v113_v12 = vld [vmem:[%s207_s0 + $0x3] sm:$0x1]  }
   0x7   :  { %v114_v13 = vld [vmem:[%s207_s0 + $0x2] sm:$0x1]   ;;  %s143_s17 = smov 24   ;;  %s144_s18 = smov 16   ;;  %v115_v14 = vld [vmem:[%s207_s0 + $0x1] sm:$0x1]  }
   0x8   :  { %s145_s21 = smov 8   ;;  %v2_v15 = vld [vmem:[%s207_s0] sm:$0x1]   ;;  %vm27_vm4 = vcmask 851712   ;;  %vm33_vm5 = vcmask 786112   ;;  %vm39_vm6 = vcmask 720512  }
   0x9   :  { %4 = vst.msk [vmem:[#allocation0] sm:$0x1] %vm3_vm0, %v2_v15   ;;  %vm45_vm7 = vcmask 654912   ;;  %vm51_vm8 = vcmask 589312   ;;  %vm57_vm9 = vcmask 523712   ;;  %vm63_vm10 = vcmask 458112  }
   0xa   :  { %13 = vrot.lane.b32.xlu0 %v102_v3, %s134_s19  ;;  %25 = vrot.lane.b32.xlu1 %v104_v4, %s135_s20  ;;  %vm69_vm11 = vcmask 392512   ;;  %vm75_vm12 = vcmask 326912   ;;  %vm81_vm13 = vcmask 261312   ;;  %vm87_vm14 = vcmask 195712  }
   0xb   :  { %37 = vrot.lane.b32.xlu2 %v106_v5, %s136_s23  ;;  %vm93_vm15 = vcmask 130112  }
  0x12   :  { %43 = vrot.lane.b32.xlu0 %v107_v6, %s137_s28  ;;  %49 = vrot.lane.b32.xlu1 %v108_v7, %s138_s29 }
  0x13   :  { %55 = vrot.lane.b32.xlu2 %v109_v8, %s139_s3 }
  0x1a   :  { %61 = vrot.lane.b32.xlu0 %v110_v9, %s140_s8  ;;  %67 = vrot.lane.b32.xlu1 %v111_v10, %s141_s9 }
  0x1b   :  { %73 = vrot.lane.b32.xlu2 %v112_v11, %s142_s12 }
  0x22   :  { %79 = vrot.lane.b32.xlu0 %v113_v12, %s143_s17  ;;  %85 = vrot.lane.b32.xlu1 %v114_v13, %s144_s18 }
  0x23   :  { %91 = vrot.lane.b32.xlu2 %v115_v14, %s145_s21 }
  0x5d   :  { %v32_v16 = vpop.permute.xlu2 %31  }
  0x65   :  { %v38_v17 = vpop.permute.xlu2 %37  }
  0x6d   :  { %v56_v18 = vpop.permute.xlu2 %55  }
  0x74   :  { %v8_v19 = vpop.permute.xlu0 %7   ;;  %v20_v20 = vpop.permute.xlu1 %19  }
  0x75   :  { %10 = vst.msk [vmem:[#allocation0] sm:$0x1] %vm9_vm1, %v8_v19   ;;  %v74_v21 = vpop.permute.xlu2 %73  }
  0x7c   :  { %v14_v22 = vpop.permute.xlu0 %13   ;;  %v26_v23 = vpop.permute.xlu1 %25  }
  0x7d   :  { %16 = vst.msk [vmem:[#allocation0] sm:$0x1] %vm15_vm2, %v14_v22   ;;  %v92_v24 = vpop.permute.xlu2 %91  }
  0x7e   :  { %22 = vst.msk [vmem:[#allocation0] sm:$0x1] %vm21_vm3, %v20_v20  }
  0x7f   :  { %28 = vst.msk [vmem:[#allocation0] sm:$0x1] %vm27_vm4, %v26_v23  }
  0x80   :  { %34 = vst.msk [vmem:[#allocation0] sm:$0x1] %vm33_vm5, %v32_v16  }
  0x81   :  { %40 = vst.msk [vmem:[#allocation0] sm:$0x1] %vm39_vm6, %v38_v17  }
  0x84   :  { %v44_v25 = vpop.permute.xlu0 %43   ;;  %v50_v26 = vpop.permute.xlu1 %49  }
  0x85   :  { %46 = vst.msk [vmem:[#allocation0] sm:$0x1] %vm45_vm7, %v44_v25  }
  0x86   :  { %52 = vst.msk [vmem:[#allocation0] sm:$0x1] %vm51_vm8, %v50_v26  }
  0x87   :  { %58 = vst.msk [vmem:[#allocation0] sm:$0x1] %vm57_vm9, %v56_v18  }
  0x8c   :  { %v62_v27 = vpop.permute.xlu0 %61   ;;  %v68_v28 = vpop.permute.xlu1 %67  }
  0x8d   :  { %64 = vst.msk [vmem:[#allocation0] sm:$0x1] %vm63_vm10, %v62_v27  }
  0x8e   :  { %70 = vst.msk [vmem:[#allocation0] sm:$0x1] %vm69_vm11, %v68_v28  }
  0x8f   :  { %76 = vst.msk [vmem:[#allocation0] sm:$0x1] %vm75_vm12, %v74_v21  }
  0x94   :  { %v80_v29 = vpop.permute.xlu0 %79   ;;  %v86_v30 = vpop.permute.xlu1 %85  }
  0x95   :  { %82 = vst.msk [vmem:[#allocation0] sm:$0x1] %vm81_vm13, %v80_v29  }
  0x96   :  { %88 = vst.msk [vmem:[#allocation0] sm:$0x1] %vm87_vm14, %v86_v30  }
  0x97   :  { %94 = vst.msk [vmem:[#allocation0] sm:$0x1] %vm93_vm15, %v92_v24  }
  0x9e   :  { %v97_v31 = vld [vmem:[#allocation0] sm:$0x1] }
  0x9f   :  { %100 = vst [vmem:[%s208_s1] sm:$0x1] %v97_v31 }

// kernel: hagca1_forward.1
= control target key start
LH: loop header
LB: loop body
LE: loop exit
PB: predicated region body
PF: predicated region fallthrough
CT: control target
= control target key end

     0   :  { %s17521_s24 = smov 0   ;;  %s22744_s0 = inlined_call_operand.vmem [shape: f32[2,16,128], index: 0, kind: input, shape index: {}]   ;;  %s22745_s1 = inlined_call_operand.vmem [shape: bf16[12344,128], index: 1, kind: input, shape index: {}]   ;;  %s22746_s2 = inlined_call_operand.vmem [shape: bf16[128,384], index: 2, kind: input, shape index: {}]   ;;  %s22747_s3 = inlined_call_operand.vmem [shape: f32[14,128], index: 3, kind: input, shape index: {}]   ;;  %s22748_s4 = inlined_call_operand.vmem [shape: f32[14,128], index: 4, kind: input, shape index: {}]   ;;  %s22749_s5 = inlined_call_operand.vmem [shape: f32[8,8], index: 5, kind: input, shape index: {}]   ;;  %s22750_s6 = inlined_call_operand.vmem [shape: f32[8,8], index: 6, kind: input, shape index: {}]   ;;  %s22751_s7 = inlined_call_operand.vmem [shape: f32[2,16,128], index: 7, kind: output, shape index: {}]  }
   0x1 LB: > { %s13298_s25 = sadd.s32 4294967295, %s17456_s24   ;;  %p13302_p0 = scmp.ge.s32.totalorder %s17456_s24, 1  ;;  %s17456_s24 = sphi %s17521_s24, %s17_s24  }
   0x2   : > { %p237_p1 = scmp.lt.s32.totalorder %s17456_s24, 3 }
   0x4   : > { %p238_p2 = pnand %p13302_p0, %p237_p1 }
   0x5   : > { %p269_p3 = scmp.lt.s32.totalorder (!%p238_p2), %s13298_s25, 1  ;;  %s22774_s30 = smov (!%p238_p2), 80  }
   0x6   : > { %241 = sbr.rel (%p238_p2) target bundleno = 3540 (0xdd4), region = 48  ;;  %s22775_s8 = smov (!%p238_p2), 40  }
   0x7   : > { %s22772_s9 = smov (!%p238_p2), 104   ;;  %s22781_s10 = smov (!%p238_p2), 16  }
   0x8   : > { %s22777_s11 = smov (!%p238_p2), 8   ;;  %s22770_s12 = smov (!%p238_p2), 72  }
   0x9   : > { %s22766_s13 = smov (!%p238_p2), 112   ;;  %s17465_s14 = smov (!%p238_p2), 120  }
   0xa   : > { %s22768_s15 = smov (!%p238_p2), 56   ;;  %s22780_s16 = smov (!%p238_p2), 88  }
   0xb   : > { %s22868_s25 = smov (!%p269_p3, %s13298_s25), 1  ;;  %s22753_s17 = smov 96   ;;  %v17473_v14 = vmov 1983009808   ;;  %vm22783_vm0 = vcmask 1047556   ;;  %vm840_vm1 = vcmask 64512  }
   0xc   : > { %s22752_s26 = sshll.u32 %s22868_s25, 4  ;;  %s22757_s18 = smov 32   ;;  %v397_v15 = vunpack.c.l.s4 %v17473_v14  ;;  %v17474_v29 = vmov 1934713408   ;;  %vm294_vm2 = vcmask 355328   ;;  %vm297_vm4 = vcmask 354304  }
   0xd   : > { %s17537_s29 = scalar_lea.vmem %s22744_s0, %s22752_s26  ;;  %s22759_s19 = smov 48   ;;  %v445_v30 = vunpack.c.l.s4 %v17474_v29  ;;  %vm1174_vm5 = vcmask 154712   ;;  %vm1221_vm6 = vcmask 1044484   ;;  %vm1223_vm7 = vcmask 1045509  }
   0xe   : > { %v17540_v0 = vld [vmem:[%s17537_s29] sm:$0xff]  ;;  %v17555_v1 = vld [vmem:[%s17537_s29 + $0x8] sm:$0xff]  ;;  %s22755_s20 = smov 64   ;;  %s22761_s21 = smov 24   ;;  %v17630_v19 = vunpack.c.0.s8 %v397_v15  ;;  %vm1225_vm8 = vcmask 1046534   ;;  %vm1227_vm9 = vcmask 1047559  }
   0xf   : > { %331 = vrot.lane.b32.xlu2 %v17540_v0, %s22774_s30  ;;  %361 = vrot.lane.b32.xlu1 %v17540_v0, %s22775_s8  ;;  %v17651_v36 = vunpack.c.0.s8 %v445_v30  ;;  %v394_v46 = vrot.slane %v17540_v0, 4  ;;  %vm1247_vm10 = vcmask 150553   ;;  %vm1248_vm11 = vsmask.f32 7942  ;;  %s17477_s22 = smov 92   ;;  %s17478_s23 = smov 44  }
  0x10   : > { %313 = vrot.lane.b32.xlu0 %v17540_v0, %s22772_s9  ;;  %vm1249_vm12 = vmand %vm1247_vm10, %vm1248_vm11  ;;  %vm1229_vm13 = vcmask 1041409   ;;  %vm1231_vm14 = vcmask 1042434   ;;  %vm1255_vm15 = vcmask 148504   ;;  %vm1253_vm10 = vcmask 150552   ;;  %s17479_s27 = smov 4   ;;  %s22790_s26 = smov 48  }
  0x11   : > { %s22814_s28 = smov 88  }
  0x17   : > { %379 = vrot.lane.b32.xlu2 %v17540_v0, %s22781_s10  ;;  %385 = vrot.lane.b32.xlu1 %v17540_v0, %s22777_s11 }
  0x18   : > { %337 = vrot.lane.b32.xlu0 %v17540_v0, %s22770_s12 }
  0x1f   : > { %307 = vrot.lane.b32.xlu2 %v17540_v0, %s22766_s13  ;;  %303 = vrot.lane.b32.xlu1 %v17555_v1, %s17465_s14 }
  0x20   : > { %301 = vrot.lane.b32.xlu0 %v17540_v0, %s17465_s14 }
  0x27   : > { %349 = vrot.lane.b32.xlu2 %v17540_v0, %s22768_s15  ;;  %325 = vrot.lane.b32.xlu1 %v17540_v0, %s22780_s16 }
  0x28   : > { %321 = vrot.lane.b32.xlu0 %v17555_v1, %s22753_s17 }
  0x2f   : > { %369 = vrot.lane.b32.xlu2 %v17555_v1, %s22757_s18  ;;  %355 = vrot.lane.b32.xlu1 %v17540_v0, %s22759_s19 }
  0x30   : > { %351 = vrot.lane.b32.xlu0 %v17555_v1, %s22768_s15 }
  0x37   : > { %345 = vrot.lane.b32.xlu2 %v17555_v1, %s22755_s20  ;;  %319 = vrot.lane.b32.xlu1 %v17540_v0, %s22753_s17 }
  0x38   : > { %373 = vrot.lane.b32.xlu0 %v17540_v0, %s22761_s21 }
  0x3f   : > { %327 = vrot.lane.b32.xlu2 %v17555_v1, %s22780_s16  ;;  %315 = vrot.lane.b32.xlu1 %v17555_v1, %s22772_s9 }
  0x40   : > { %367 = vrot.lane.b32.xlu0 %v17540_v0, %s22757_s18  ;;  %s22815_s18 = smov 80  }
  0x47   : > { %363 = vrot.lane.b32.xlu2 %v17555_v1, %s22775_s8  ;;  %343 = vrot.lane.b32.xlu1 %v17540_v0, %s22755_s20  ;;  %s22809_s20 = smov 16  }
  0x48   : > { %333 = vrot.lane.b32.xlu0 %v17555_v1, %s22774_s30 }
  0x4f   : > { %381 = vrot.lane.b32.xlu1 %v17555_v1, %s22781_s10  ;;  %309 = vrot.lane.b32.xlu2 %v17555_v1, %s22766_s13 }
  0x50   : > { %375 = vrot.lane.b32.xlu0 %v17555_v1, %s22761_s21  ;;  %s22793_s21 = smov 96  }
  0x57   : > { %339 = vrot.lane.b32.xlu1 %v17555_v1, %s22770_s12  ;;  %387 = vrot.lane.b32.xlu2 %v17555_v1, %s22777_s11 }
  0x58   : > { %357 = vrot.lane.b32.xlu0 %v17555_v1, %s22759_s19 }
  0x69   : > { %v17605_v2 = vpop.permute.xlu2 %331 }
  0x6a   : > { %v416_v32 = vrot.slane %v17605_v2, 4 }
  0x71   : > { %v17607_v3 = vpop.permute.xlu2 %379 }
  0x72   : > { %v528_v53 = vrot.slane %v17607_v3, 4 }
  0x79   : > { %v17609_v5 = vpop.permute.xlu2 %307 }
  0x7a   : > { %v391_v20 = vrot.slane %v17609_v5, 4 }
  0x7c   : > { %v393_v25 = vsel %vm22783_vm0, %v391_v20, %v17540_v0 }
  0x7d   : > { %v399_v31 = vperm.slane %v393_v25, %v17630_v19 }
  0x7f   : > { %v442_v54 = vrot.slane %v399_v31, 4 }
  0x81   : > { %v362_v4 = vpop.permute.xlu1 %361  ;;  %v350_v9 = vpop.permute.xlu2 %349 }
  0x82   : > { %v17611_v6 = vpop.permute.xlu0 %313  ;;  %v516_v42 = vrot.slane %v362_v4, 4  ;;  %v518_v47 = vrot.slane %v350_v9, 4 }
  0x83   : > { %v404_v17 = vrot.slane %v17611_v6, 4 }
  0x84   : > { %v517_v55 = vsel %vm22783_vm0, %v516_v42, %v350_v9  ;;  %v519_v62 = vsel %vm22783_vm0, %v362_v4, %v518_v47  ;;  %v395_v9 = vsel %vm22783_vm0, %v17609_v5, %v394_v46  ;;  %v618_v42 = vrot.slane %v17555_v1, 4 }
  0x85   : > { %v523_v15 = vperm.slane %v517_v55, %v17630_v19  ;;  %v17700_v5 = vperm.slane %v519_v62, %v17630_v19  ;;  %v17710_v30 = vperm.slane %v395_v9, %v17630_v19 }
  0x89   : > { %v17613_v7 = vpop.permute.xlu1 %385  ;;  %v17621_v12 = vpop.permute.xlu2 %369 }
  0x8a   : > { %v17615_v8 = vpop.permute.xlu0 %337  ;;  %v540_v43 = vrot.slane %v17613_v7, 4 }
  0x8b   : > { %v428_v26 = vrot.slane %v17615_v8, 4 }
  0x91   : > { %v17617_v10 = vpop.permute.xlu1 %303  ;;  %v17633_v21 = vpop.permute.xlu2 %345 }
  0x92   : > { %v17619_v11 = vpop.permute.xlu0 %301  ;;  %v730_v46 = vrot.slane %v17633_v21, 4 }
  0x93   : > { %v405_v18 = vsel %vm22783_vm0, %v404_v17, %v17619_v11  ;;  %v406_v56 = vrot.slane %v17619_v11, 4 }
  0x94   : > { %v411_v22 = vperm.slane %v405_v18, %v17630_v19 }
  0x95   : > { %v407_v25 = vsel %vm22783_vm0, %v17611_v6, %v406_v56  ;;  %v564_v6 = vrot.slane %v17700_v5, 4 }
  0x96   : > { %v440_v27 = vrot.slane %v411_v22, 4  ;;  %v443_v20 = vsel %vm22783_vm0, %v411_v22, %v442_v54  ;;  %v17713_v22 = vperm.slane %v407_v25, %v17630_v19 }
  0x98   : > { %v441_v34 = vsel %vm22783_vm0, %v440_v27, %v399_v31  ;;  %v552_v31 = vrot.slane %v523_v15, 4 }
  0x99   : > { %v17623_v13 = vpop.permute.xlu1 %325  ;;  %v17653_v37 = vpop.permute.xlu2 %327  ;;  %v447_v41 = vperm.slane %v441_v34, %v17651_v36 }
  0x9a   : > { %v17625_v16 = vpop.permute.xlu0 %321  ;;  %v429_v28 = vsel %vm22783_vm0, %v428_v26, %v17623_v13 }
  0x9b   : > { %v435_v33 = vperm.slane %v429_v28, %v17630_v19  ;;  %v490_v51 = vrot.slane %v447_v41, 4  ;;  %v17706_v28 = vperm.slane %v443_v20, %v17651_v36  ;;  %v642_v54 = vrot.slane %v17625_v16, 4 }
  0x9d   : > { %v464_v44 = vrot.slane %v435_v33, 4 }
  0xa1   : > { %v17636_v23 = vpop.permute.xlu1 %355  ;;  %v17693_v17 = vpop.permute.xlu2 %363 }
  0xa2   : > { %v17638_v24 = vpop.permute.xlu0 %351 }
  0xa3   : > { %v742_v47 = vrot.slane %v17638_v24, 4 }
  0xa9   : > { %v17649_v35 = vpop.permute.xlu1 %319 }
  0xaa   : > { %v417_v38 = vsel %vm22783_vm0, %v416_v32, %v17649_v35  ;;  %v17657_v39 = vpop.permute.xlu0 %373  ;;  %v504_v32 = vrot.slane %v17636_v23, 4 }
  0xab   : > { %v423_v40 = vperm.slane %v417_v38, %v17630_v19  ;;  %v541_v48 = vsel %vm22783_vm0, %v540_v43, %v17657_v39 }
  0xac   : > { %v547_v57 = vperm.slane %v541_v48, %v17630_v19  ;;  %v418_v48 = vrot.slane %v17649_v35, 4 }
  0xad   : > { %v466_v45 = vrot.slane %v423_v40, 4  ;;  %v465_v49 = vsel %vm22783_vm0, %v464_v44, %v423_v40 }
  0xae   : > { %v471_v50 = vperm.slane %v465_v49, %v17651_v36  ;;  %v576_v26 = vrot.slane %v547_v57, 4 }
  0xaf   : > { %v467_v52 = vsel %vm22783_vm0, %v435_v33, %v466_v45  ;;  %v754_v33 = vrot.slane %v17621_v12, 4 }
  0xb0   : > { %v17675_v59 = vsel %vm22783_vm0, %v471_v50, %v490_v51  ;;  %v488_v60 = vrot.slane %v471_v50, 4  ;;  %v17678_v61 = vperm.slane %v467_v52, %v17651_v36  ;;  %v630_v50 = vrot.slane %v17617_v10, 4  ;;  %v17737_v51 = vpop.permute.xlu2 %309 }
  0xb1   : > { %v17672_v58 = vpop.permute.xlu1 %315  ;;  %v847_v0 = vsel %vm840_vm1, %v17675_v59, 0.0 }
  0xb2   : > { %v17681_v63 = vpop.permute.xlu0 %367  ;;  %848 = vadd.xlane.f32.xlu2 %v847_v0  ;;  %v17690_v14 = vsel %vm22783_vm0, %v488_v60, %v447_v41  ;;  %v492_v27 = vrot.slane %v17678_v61, 4  ;;  %v430_v41 = vrot.slane %v17623_v13, 4  ;;  %v452_v13 = vrot.slane %v17713_v22, 4 }
  0xb3   : > { %v529_v11 = vsel %vm22783_vm0, %v528_v53, %v17681_v63  ;;  %v841_v18 = vsel %vm840_vm1, %v17690_v14, 0.0  ;;  %v494_v53 = vrot.slane %v17706_v28, 4  ;;  %v631_v62 = vsel %vm22783_vm0, %v17672_v58, %v630_v50 }
  0xb4   : > { %v535_v4 = vperm.slane %v529_v11, %v17630_v19  ;;  %842 = vadd.xlane.f32.xlu0 %v841_v18  ;;  %v17722_v40 = vsel %vm22783_vm0, %v492_v27, %v17706_v28  ;;  %v431_v60 = vsel %vm22783_vm0, %v17615_v8, %v430_v41  ;;  %v743_v11 = vsel %vm22783_vm0, %v17693_v17, %v742_v47 }
  0xb5   : > { %v853_v52 = vsel %vm840_vm1, %v17722_v40, 0.0  ;;  %v619_v18 = vsel %vm22783_vm0, %v17737_v51, %v618_v42  ;;  %v17763_v27 = vperm.slane %v431_v60, %v17630_v19  ;;  %v542_v28 = vrot.slane %v17657_v39, 4 }
  0xb6   : > { %v577_v29 = vsel %vm22783_vm0, %v576_v26, %v535_v4  ;;  %v578_v34 = vrot.slane %v535_v4, 4  ;;  %v419_v4 = vsel %vm22783_vm0, %v17605_v2, %v418_v48  ;;  %v639_v2 = vperm.slane %v631_v62, %v17630_v19 }
  0xb7   : > { %v583_v45 = vperm.slane %v577_v29, %v17651_v36  ;;  %v17781_v39 = vperm.slane %v419_v4, %v17630_v19  ;;  %v17814_v4 = vsel %vm22783_vm0, %v17678_v61, %v494_v53 }
  0xb8   : > { %v579_v35 = vsel %vm22783_vm0, %v547_v57, %v578_v34 }
  0xb9   : > { %v17718_v38 = vpop.permute.xlu1 %343  ;;  %v600_v9 = vrot.slane %v583_v45, 4  ;;  %v587_v26 = vperm.slane %v579_v35, %v17651_v36 }
  0xba   : > { %v505_v43 = vsel %vm22783_vm0, %v504_v32, %v17718_v38  ;;  %v17728_v44 = vpop.permute.xlu0 %333  ;;  %v530_v32 = vrot.slane %v17681_v63, 4 }
  0xbb   : > { %v511_v49 = vperm.slane %v505_v43, %v17630_v19  ;;  %v627_v43 = vperm.slane %v619_v18, %v17630_v19  ;;  %v643_v63 = vsel %vm22783_vm0, %v17728_v44, %v642_v54 }
  0xbc   : > { %854 = vadd.xlane.f32.xlu0 %v853_v52  ;;  %v604_v52 = vrot.slane %v587_v26, 4  ;;  %v531_v60 = vsel %vm22783_vm0, %v17607_v3, %v530_v32  ;;  %v654_v3 = vrot.slane %v17653_v37, 4 }
  0xbd   : > { %v554_v55 = vrot.slane %v511_v49, 4  ;;  %v553_v56 = vsel %vm22783_vm0, %v552_v31, %v511_v49  ;;  %v17772_v31 = vperm.slane %v743_v11, %v17630_v19  ;;  %v17789_v49 = vpop.permute.xlu2 %387 }
  0xbe   : > { %v559_v0 = vperm.slane %v553_v56, %v17651_v36  ;;  %v676_v56 = vrot.slane %v639_v2, 4 }
  0xbf   : > { %v555_v57 = vsel %vm22783_vm0, %v523_v15, %v554_v55  ;;  %v543_v55 = vsel %vm22783_vm0, %v17613_v7, %v542_v28  ;;  %v476_v7 = vrot.slane %v17763_v27, 4 }
  0xc0   : > { %v17758_v20 = vsel %vm22783_vm0, %v600_v9, %v559_v0  ;;  %v602_v8 = vrot.slane %v559_v0, 4  ;;  %v563_v25 = vperm.slane %v555_v57, %v17651_v36  ;;  %v651_v9 = vperm.slane %v643_v63, %v17630_v19 }
  0xc1   : > { %v17767_v29 = vpop.permute.xlu1 %381  ;;  %v844_v15 = vsel %vm840_vm1, %v17758_v20, 0.0  ;;  %v17819_v18 = vperm.slane %v543_v55, %v17630_v19  ;;  %v678_v57 = vrot.slane %v627_v43, 4  ;;  %v677_v28 = vsel %vm22783_vm0, %v676_v56, %v627_v43 }
  0xc2   : > { %v17775_v34 = vpop.permute.xlu0 %375  ;;  %845 = vadd.xlane.f32.xlu1 %v844_v15  ;;  %v17778_v41 = vsel %vm22783_vm0, %v583_v45, %v602_v8  ;;  %v606_v42 = vrot.slane %v563_v25, 4  ;;  %v755_v45 = vsel %vm22783_vm0, %v17767_v29, %v754_v33  ;;  %v506_v33 = vrot.slane %v17718_v38, 4 }
  0xc3   : > { %v766_v47 = vrot.slane %v17775_v34, 4  ;;  %v850_v48 = vsel %vm840_vm1, %v17778_v41, 0.0  ;;  %v17807_v0 = vsel %vm22783_vm0, %v604_v52, %v563_v25  ;;  %v763_v11 = vperm.slane %v755_v45, %v17630_v19 }
  0xc4   : > { %851 = vadd.xlane.f32.xlu2 %v850_v48  ;;  %v17794_v50 = vsel %vm22783_vm0, %v587_v26, %v606_v42  ;;  %v788_v38 = vrot.slane %v17772_v31, 4  ;;  %v17822_v8 = vperm.slane %v531_v60, %v17630_v19  ;;  %v856_v26 = vsel %vm840_vm1, %v17807_v0, 0.0 }
  0xc5   : > { %v767_v35 = vsel %vm22783_vm0, %v17789_v49, %v766_v47  ;;  %v862_v54 = vsel %vm840_vm1, %v17794_v50, 0.0  ;;  %v477_v61 = vsel %vm22783_vm0, %v476_v7, %v17781_v39  ;;  %v507_v53 = vsel %vm22783_vm0, %v17636_v23, %v506_v33 }
  0xc6   : > { %v775_v62 = vperm.slane %v767_v35, %v17630_v19  ;;  %863 = vadd.xlane.f32.xlu0 %v862_v54  ;;  %v859_v47 = vsel %vm840_vm1, %v17814_v4, 0.0  ;;  %v702_v48 = vrot.slane %v651_v9, 4  ;;  %v814_v63 = vrot.slane %v763_v11, 4 }
  0xc7   : > { %v588_v23 = vrot.slane %v17819_v18, 4  ;;  %v17847_v55 = vperm.slane %v677_v28, %v17651_v36  ;;  %v17850_v56 = vperm.slane %v477_v61, %v17651_v36  ;;  %v17853_v35 = vperm.slane %v507_v53, %v17630_v19 }
  0xc8   : > { %v812_v15 = vrot.slane %v775_v62, 4  ;;  %v679_v60 = vsel %vm22783_vm0, %v639_v2, %v678_v57  ;;  %v815_v2 = vsel %vm22783_vm0, %v775_v62, %v814_v63 }
  0xc9   : > { %v17824_v25 = vpop.permute.xlu1 %339  ;;  %v589_v53 = vsel %vm22783_vm0, %v588_v23, %v17822_v8  ;;  %v687_v57 = vperm.slane %v679_v60, %v17651_v36 }
  0xca   : > { %v655_v32 = vsel %vm22783_vm0, %v17824_v25, %v654_v3  ;;  %v17835_v42 = vpop.permute.xlu0 %357  ;;  %857 = vadd.xlane.f32.xlu1 %v856_v26  ;;  %v813_v26 = vsel %vm22783_vm0, %v812_v15, %v763_v11  ;;  %v565_v15 = vsel %vm22783_vm0, %v564_v6, %v17853_v35 }
  0xcb   : > { %v663_v43 = vperm.slane %v655_v32, %v17630_v19  ;;  %v731_v45 = vsel %vm22783_vm0, %v17835_v42, %v730_v46  ;;  %v17876_v11 = vperm.slane %v813_v26, %v17651_v36 }
  0xcc   : > { %v739_v52 = vperm.slane %v731_v45, %v17630_v19  ;;  %860 = vadd.xlane.f32.xlu2 %v859_v47  ;;  %v823_v45 = vperm.slane %v815_v2, %v17651_v36  ;;  %v628_v2 = vrot.slane %v17672_v58, 4  ;;  %v740_v58 = vrot.slane %v17693_v17, 4 }
  0xcd   : > { %v700_v54 = vrot.slane %v663_v43, 4  ;;  %v703_v33 = vsel %vm22783_vm0, %v663_v43, %v702_v48  ;;  %v17893_v43 = vperm.slane %v589_v53, %v17651_v36 }
  0xce   : > { %v790_v46 = vrot.slane %v739_v52, 4  ;;  %v17858_v7 = vperm.slane %v703_v33, %v17651_v36  ;;  %v789_v3 = vsel %vm22783_vm0, %v788_v38, %v739_v52  ;;  %v722_v38 = vrot.slane %v17847_v55, 4 }
  0xcf   : > { %v701_v28 = vsel %vm22783_vm0, %v700_v54, %v651_v9  ;;  %v17864_v61 = vperm.slane %v789_v3, %v17651_v36  ;;  %v17907_v54 = vperm.slane %v565_v15, %v17651_v36  ;;  %v453_v33 = vsel %vm22783_vm0, %v452_v13, %v17710_v30 }
  0xd0   : > { %v724_v32 = vrot.slane %v17858_v7, 4  ;;  %v17872_v47 = vperm.slane %v701_v28, %v17651_v36  ;;  %v791_v62 = vsel %vm22783_vm0, %v17772_v31, %v790_v46  ;;  %v496_v46 = vrot.slane %v17850_v56, 4 }
  0xd1   : > { %v834_v9 = vrot.slane %v17864_v61, 4  ;;  %v799_v60 = vperm.slane %v791_v62, %v17651_v36  ;;  %v652_v3 = vrot.slane %v17824_v25, 4  ;;  %v608_v26 = vrot.slane %v17893_v43, 4 }
  0xd2   : > { %v17886_v48 = vsel %vm22783_vm0, %v724_v32, %v687_v57  ;;  %v17890_v63 = vsel %vm22783_vm0, %v17872_v47, %v722_v38  ;;  %v836_v28 = vrot.slane %v823_v45, 4  ;;  %v459_v53 = vperm.slane %v453_v33, %v17651_v36 }
  0xd3   : > { %v925_v23 = vsel %vm840_vm1, %v17886_v48, 0.0  ;;  %v919_v6 = vsel %vm840_vm1, %v17890_v63, 0.0  ;;  %v17902_v31 = vsel %vm22783_vm0, %v17876_v11, %v834_v9  ;;  %v17921_v32 = vsel %vm22783_vm0, %v608_v26, %v17907_v54 }
  0xd4   : > { %926 = vadd.xlane.f32.xlu0 %v925_v23  ;;  %920 = vadd.xlane.f32.xlu1 %v919_v6  ;;  %v922_v52 = vsel %vm840_vm1, %v17902_v31, 0.0  ;;  %v17924_v38 = vsel %vm22783_vm0, %v836_v28, %v799_v60  ;;  %v640_v13 = vrot.slane %v17728_v44, 4  ;;  %v17928_v9 = vsel %vm22783_vm0, %v496_v46, %v459_v53 }
  0xd5   : > { %923 = vadd.xlane.f32.xlu2 %v922_v52  ;;  %v454_v25 = vrot.slane %v17710_v30, 4  ;;  %v478_v15 = vrot.slane %v17781_v39, 4  ;;  %v653_v62 = vsel %vm22783_vm0, %v652_v3, %v17653_v37  ;;  %v590_v23 = vrot.slane %v17822_v8, 4 }
  0xd6   : > { %v868_v6 = vsel %vm840_vm1, %v17921_v32, 0.0  ;;  %v928_v44 = vsel %vm840_vm1, %v17924_v38, 0.0  ;;  %v629_v52 = vsel %vm22783_vm0, %v628_v2, %v17617_v10  ;;  %v865_v30 = vsel %vm840_vm1, %v17928_v9, 0.0 }
  0xd7   : > { %v566_v37 = vrot.slane %v17853_v35, 4  ;;  %v641_v17 = vsel %vm22783_vm0, %v640_v13, %v17625_v16  ;;  %v17948_v39 = vperm.slane %v653_v62, %v17630_v19  ;;  %v838_v8 = vrot.slane %v799_v60, 4 }
  0xd8   : > { %v726_v33 = vrot.slane %v687_v57, 4  ;;  %v498_v46 = vrot.slane %v459_v53, 4  ;;  %v455_v10 = vsel %vm22783_vm0, %v17713_v22, %v454_v25  ;;  %v479_v3 = vsel %vm22783_vm0, %v17763_v27, %v478_v15 }
  0xd9   : > { %v741_v26 = vsel %vm22783_vm0, %v740_v58, %v17638_v24  ;;  %v616_v35 = vrot.slane %v17737_v51, 4  ;;  %v764_v16 = vrot.slane %v17789_v49, 4  ;;  %v591_v28 = vsel %vm22783_vm0, %v17819_v18, %v590_v23 }
  0xda   : > { %v17961_v60 = vperm.slane %v629_v52, %v17630_v19  ;;  %v17964_v57 = vperm.slane %v641_v17, %v17630_v19  ;;  %v17968_v22 = vsel %vm22783_vm0, %v17858_v7, %v726_v33  ;;  %v17972_v24 = vsel %vm22783_vm0, %v17850_v56, %v498_v46 }
  0xdb   : > { %v688_v51 = vrot.slane %v17948_v39, 4  ;;  %v17976_v27 = vsel %vm22783_vm0, %v823_v45, %v838_v8  ;;  %v567_v49 = vsel %vm22783_vm0, %v17700_v5, %v566_v37  ;;  %v487_v18 = vperm.slane %v479_v3, %v17651_v36 }
  0xdc   : > { %869 = vadd.xlane.f32.xlu0 %v868_v6  ;;  %929 = vadd.xlane.f32.xlu1 %v928_v44  ;;  %v728_v53 = vrot.slane %v17835_v42, 4  ;;  %v599_v2 = vperm.slane %v591_v28, %v17651_v36  ;;  %v832_v7 = vrot.slane %v17876_v11, 4  ;;  %v720_v13 = vrot.slane %v17872_v47, 4 }
  0xdd   : > { %866 = vadd.xlane.f32.xlu2 %v865_v30  ;;  %v752_v56 = vrot.slane %v17767_v29, 4  ;;  %v765_v25 = vsel %vm22783_vm0, %v764_v16, %v17775_v34  ;;  %v931_v45 = vsel %vm840_vm1, %v17968_v22, 0.0  ;;  %v871_v5 = vsel %vm840_vm1, %v17972_v24, 0.0 }
  0xde   : > { %v934_v42 = vsel %vm840_vm1, %v17976_v27, 0.0  ;;  %v610_v11 = vrot.slane %v17907_v54, 4  ;;  %v575_v47 = vperm.slane %v567_v49, %v17651_v36  ;;  %v17998_v29 = vsel %vm22783_vm0, %v832_v7, %v17864_v61 }
  0xdf   : > { %v500_v34 = vrot.slane %v487_v18, 4  ;;  %v689_v15 = vsel %vm22783_vm0, %v688_v51, %v17964_v57  ;;  %v18004_v62 = vsel %vm22783_vm0, %v720_v13, %v17847_v55  ;;  %v747_v58 = vperm.slane %v741_v26, %v17630_v19 }
  0xe0   : > { %v617_v54 = vsel %vm22783_vm0, %v616_v35, %v17555_v1  ;;  %v729_v23 = vsel %vm22783_vm0, %v728_v53, %v17633_v21  ;;  %v612_v6 = vrot.slane %v599_v2, 4  ;;  %v664_v61 = vrot.slane %v17961_v60, 4 }
  0xe1   : > { %v753_v44 = vsel %vm22783_vm0, %v752_v56, %v17621_v12  ;;  %v771_v52 = vperm.slane %v765_v25, %v17630_v19  ;;  %v463_v30 = vperm.slane %v455_v10, %v17651_v36  ;;  %v611_v55 = vsel %vm22783_vm0, %v17893_v43, %v610_v11 }
  0xe2   : > { %v18019_v37 = vsel %vm22783_vm0, %v612_v6, %v575_v47  ;;  %v695_v1 = vperm.slane %v689_v15, %v17651_v36  ;;  %v623_v21 = vperm.slane %v617_v54, %v17630_v19  ;;  %v735_v17 = vperm.slane %v729_v23, %v17630_v19 }
  0xe3   : > { %v501_v8 = vsel %vm22783_vm0, %v500_v34, %v463_v30  ;;  %v776_v33 = vrot.slane %v747_v58, 4  ;;  %v759_v12 = vperm.slane %v753_v44, %v17630_v19  ;;  %v800_v46 = vrot.slane %v771_v52, 4 }
  0xe4   : > { %932 = vadd.xlane.f32.xlu1 %v931_v45  ;;  %872 = vadd.xlane.f32.xlu0 %v871_v5  ;;  %v874_v10 = vsel %vm840_vm1, %v611_v55, 0.0  ;;  %v880_v43 = vsel %vm840_vm1, %v18019_v37, 0.0  ;;  %v665_v3 = vsel %vm22783_vm0, %v664_v61, %v623_v21  ;;  %v877_v26 = vsel %vm840_vm1, %v501_v8, 0.0 }
  0xe5   : > { %935 = vadd.xlane.f32.xlu2 %v934_v42  ;;  %v712_v35 = vrot.slane %v695_v1, 4  ;;  %v614_v16 = vrot.slane %v575_v47, 4  ;;  %v777_v28 = vsel %vm22783_vm0, %v776_v33, %v735_v17  ;;  %v502_v51 = vrot.slane %v463_v30, 4 }
  0xe6   : > { %v671_v49 = vperm.slane %v665_v3, %v17651_v36  ;;  %v801_v53 = vsel %vm22783_vm0, %v800_v46, %v759_v12  ;;  %v783_v56 = vperm.slane %v777_v28, %v17651_v36  ;;  %v802_v23 = vrot.slane %v759_v12, 4 }
  0xe7   : > { %v503_v7 = vsel %vm22783_vm0, %v487_v18, %v502_v51  ;;  %v615_v25 = vsel %vm22783_vm0, %v599_v2, %v614_v16  ;;  %v807_v45 = vperm.slane %v801_v53, %v17651_v36  ;;  %v690_v44 = vrot.slane %v17964_v57, 4 }
  0xe8   : > { %v18036_v13 = vsel %vm22783_vm0, %v712_v35, %v671_v49  ;;  %v883_v5 = vsel %vm840_vm1, %v503_v7, 0.0  ;;  %v886_v11 = vsel %vm840_vm1, %v615_v25, 0.0  ;;  %v826_v47 = vrot.slane %v783_v56, 4 }
  0xe9   : > { %v889_v42 = vsel %vm840_vm1, %v18036_v13, 0.0  ;;  %v824_v18 = vrot.slane %v807_v45, 4  ;;  %v714_v34 = vrot.slane %v671_v49, 4  ;;  %v778_v33 = vrot.slane %v735_v17, 4 }
  0xea   : > { %v18047_v54 = vsel %vm22783_vm0, %v807_v45, %v826_v47  ;;  %v691_v46 = vsel %vm22783_vm0, %v17948_v39, %v690_v44  ;;  %v666_v12 = vrot.slane %v623_v21, 4  ;;  %v1006_v57 = vsel %vm840_vm1, %v17972_v24, -inf }
  0xeb   : > { %v825_v15 = vsel %vm22783_vm0, %v824_v18, %v783_v56  ;;  %v18050_v2 = vsel %vm22783_vm0, %v695_v1, %v714_v34  ;;  %v898_v61 = vsel %vm840_vm1, %v18047_v54, 0.0  ;;  %v803_v1 = vsel %vm22783_vm0, %v771_v52, %v802_v23 }
  0xec   : > { %875 = vadd.xlane.f32.xlu1 %v874_v10  ;;  %881 = vadd.xlane.f32.xlu0 %v880_v43  ;;  %v892_v6 = vsel %vm840_vm1, %v825_v15, 0.0  ;;  %v895_v30 = vsel %vm840_vm1, %v18050_v2, 0.0  ;;  %v779_v10 = vsel %vm22783_vm0, %v747_v58, %v778_v33  ;;  %v699_v43 = vperm.slane %v691_v46, %v17651_v36 }
  0xed   : > { %878 = vadd.xlane.f32.xlu2 %v877_v26  ;;  %v811_v3 = vperm.slane %v803_v1, %v17651_v36  ;;  %v1012_v26 = vsel %vm840_vm1, %v501_v8, -inf  ;;  %v1009_v17 = vsel %vm840_vm1, %v611_v55, -inf  ;;  %v787_v39 = vperm.slane %v779_v10, %v17651_v36 }
  0xee   : > { %v667_v52 = vsel %vm22783_vm0, %v17961_v60, %v666_v12  ;;  %v716_v58 = vrot.slane %v699_v43, 4  ;;  %v1015_v8 = vsel %vm840_vm1, %v18019_v37, -inf  ;;  %v1018_v49 = vsel %vm840_vm1, %v503_v7, -inf }
  0xef   : > { %v828_v21 = vrot.slane %v811_v3, 4  ;;  %v675_v35 = vperm.slane %v667_v52, %v17651_v36  ;;  %v1021_v37 = vsel %vm840_vm1, %v615_v25, -inf  ;;  %v830_v56 = vrot.slane %v787_v39, 4 }
  0xf0   : > { %v976_v7 = vsel %vm840_vm1, %v17690_v14, -inf  ;;  %v982_v25 = vsel %vm840_vm1, %v17675_v59, -inf  ;;  %v985_v47 = vsel %vm840_vm1, %v17778_v41, -inf  ;;  %v17475_v18 = vmov 8.0  }
  0xf1   : > { %v18073_v16 = vsel %vm22783_vm0, %v828_v21, %v787_v39  ;;  %v18076_v24 = vsel %vm22783_vm0, %v716_v58, %v675_v35  ;;  %v718_v28 = vrot.slane %v675_v35, 4  ;;  %v18092_v45 = vsel %vm22783_vm0, %v811_v3, %v830_v56 }
  0xf2   : > { %v904_v55 = vsel %vm840_vm1, %v18073_v16, 0.0  ;;  %v901_v60 = vsel %vm840_vm1, %v18076_v24, 0.0  ;;  %17431 = vrcp.f32 %v17475_v18  ;;  %v916_v14 = vsel %vm840_vm1, %v17998_v29, 0.0 }
  0xf3   : > { %v18085_v51 = vsel %vm22783_vm0, %v699_v43, %v718_v28  ;;  %v913_v59 = vsel %vm840_vm1, %v18004_v62, 0.0  ;;  %v988_v41 = vsel %vm840_vm1, %v17722_v40, -inf  ;;  %v991_v44 = vsel %vm840_vm1, %v17807_v0, -inf }
  0xf4   : > { %884 = vadd.xlane.f32.xlu1 %v883_v5  ;;  %890 = vadd.xlane.f32.xlu0 %v889_v42  ;;  %v907_v53 = vsel %vm840_vm1, %v18085_v51, 0.0  ;;  %v910_v5 = vsel %vm840_vm1, %v18092_v45, 0.0  ;;  %v979_v42 = vsel %vm840_vm1, %v17758_v20, -inf  ;;  %v1027_v20 = vsel %vm840_vm1, %v825_v15, -inf }
  0xf5   : > { %887 = vadd.xlane.f32.xlu2 %v886_v11  ;;  %v1024_v11 = vsel %vm840_vm1, %v18036_v13, -inf  ;;  %v1030_v15 = vsel %vm840_vm1, %v18050_v2, -inf  ;;  %v17476_v12 = vmov 0   ;;  %v1033_v43 = vsel %vm840_vm1, %v18047_v54, -inf }
  0xf6   : > { %282 = vst [vmem:[#allocation2] sm:$0xff] %v17476_v12  ;;  %v997_v40 = vsel %vm840_vm1, %v17794_v50, -inf  ;;  %v994_v0 = vsel %vm840_vm1, %v17814_v4, -inf  ;;  %v1168_v54 = vlaneseq  ;;  %v1036_v52 = vsel %vm840_vm1, %v18076_v24, -inf }
  0xf7   : > { %295 = vst.msk [vmem:[#allocation3] sm:$0xf] %vm294_vm2, %v17476_v12  ;;  %v1054_v58 = vsel %vm840_vm1, %v17890_v63, -inf  ;;  %v1039_v21 = vsel %vm840_vm1, %v18073_v16, -inf }
  0xf8   : > { %v17432_v34 = vpop.eup %17431  ;;  %284 = vst [vmem:[#allocation2 + $0xc] sm:$0xff] %v17476_v12 }
  0xf9   : > { %v938_v13 = vmul.f32 8.0, %v17432_v34  ;;  %vm942_vm3 = vweird.f32 %v17432_v34  ;;  %285 = vst [vmem:[#allocation2 + $0x14] sm:$0xf] %v17476_v12 }
  0xfa   : > { %286 = vst [vmem:[#allocation2 + $0x30] sm:$0xff] %v17476_v12 }
  0xfb   : > { %287 = vst [vmem:[#allocation2 + $0x38] sm:$0xf] %v17476_v12 }
  0xfc   : > { %893 = vadd.xlane.f32.xlu1 %v892_v6  ;;  %899 = vadd.xlane.f32.xlu0 %v898_v61  ;;  %v939_v61 = vsub.f32 1.0, %v938_v13  ;;  %290 = vst [vmem:[#allocation2 + $0x18] sm:$0xf] %v17476_v12  ;;  %v1000_v13 = vsel %vm840_vm1, %v17928_v9, -inf }
  0xfd   : > { %896 = vadd.xlane.f32.xlu2 %v895_v30  ;;  %291 = vst [vmem:[#allocation2 + $0x24] sm:$0xf] %v17476_v12 }
  0xfe   : > { %v940_v46 = vmul.f32 %v17432_v34, %v939_v61  ;;  %292 = vst [vmem:[#allocation2 + $0x20] sm:$0xf] %v17476_v12 }
  0xff   : > { %293 = vst [vmem:[#allocation2 + $0x2c] sm:$0xf] %v17476_v12 }
 0x100   : > { %v941_v10 = vadd.f32 %v17432_v34, %v940_v46  ;;  %296 = vst.msk [vmem:[#allocation3 + $0x4] sm:$0xf] %vm294_vm2, %v17476_v12  ;;  %vm22764_vm2 = vsmask.f32 1280 }
 0x101   : > { %298 = vst.msk [vmem:[#allocation3 + $0x8] sm:$0x7] %vm297_vm4, %v17476_v12  ;;  %vm1233_vm4 = vcmask 1043459  }
 0x102   : > { %v18124_v3 = vsel %vm942_vm3, %v17432_v34, %v941_v10  ;;  %vm1257_vm3 = vmand %vm1255_vm15, %vm22764_vm2 }
 0x104   : > { %1007 = vmax.xlane.f32.xlu1 %v1006_v57  ;;  %1013 = vmax.xlane.f32.xlu0 %v1012_v26 }
 0x105   : > { %1010 = vmax.xlane.f32.xlu2 %v1009_v17 }
 0x10c   : > { %1016 = vmax.xlane.f32.xlu1 %v1015_v8  ;;  %905 = vadd.xlane.f32.xlu0 %v904_v55  ;;  %v18138_v55 = vand.u32 127, %v1168_v54 }
 0x10d   : > { %902 = vadd.xlane.f32.xlu2 %v901_v60 }
 0x114   : > { %1019 = vmax.xlane.f32.xlu1 %v1018_v49  ;;  %908 = vadd.xlane.f32.xlu0 %v907_v53 }
 0x115   : > { %1022 = vmax.xlane.f32.xlu2 %v1021_v37 }
 0x11c   : > { %911 = vadd.xlane.f32.xlu1 %v910_v5  ;;  %980 = vmax.xlane.f32.xlu0 %v979_v42 }
 0x11d   : > { %977 = vmax.xlane.f32.xlu2 %v976_v7  ;;  %v1057_v7 = vsel %vm840_vm1, %v17902_v31, -inf  ;;  %v1060_v31 = vsel %vm840_vm1, %v17886_v48, -inf }
 0x124   : > { %983 = vmax.xlane.f32.xlu1 %v982_v25  ;;  %1025 = vmax.xlane.f32.xlu0 %v1024_v11  ;;  %v1063_v25 = vsel %vm840_vm1, %v17924_v38, -inf  ;;  %v18148_v11 = vadd.s32 4294967293, %v18138_v55  ;;  %v1042_v38 = vsel %vm840_vm1, %v18085_v51, -inf }
 0x125   : > { %986 = vmax.xlane.f32.xlu2 %v985_v47  ;;  %v849_v6 = vpop.xlane.xlu2 %848 }
 0x126   : > { %v946_v50 = vmul.f32 %v18124_v3, %v849_v6 }
 0x127   : > { %v843_v23 = vpop.xlane.xlu0 %842 }
 0x128   : > { %v944_v35 = vmul.f32 %v18124_v3, %v843_v23  ;;  %v1074_v24 = vpack.c.bf16 %v946_v50, %v946_v50 }
 0x12a   : > { %v1072_v5 = vpack.c.bf16 %v944_v35, %v944_v35  ;;  %v1138_v47 = vunpack.c.l.b16 %v1074_v24 }
 0x12c   : > { %1028 = vmax.xlane.f32.xlu1 %v1027_v20  ;;  %917 = vadd.xlane.f32.xlu0 %v916_v14  ;;  %v18151_v14 = vadd.s32 4294967285, %v18138_v55  ;;  %v1136_v6 = vunpack.c.l.b16 %v1072_v5 }
 0x12d   : > { %914 = vadd.xlane.f32.xlu2 %v913_v59 }
 0x12f   : > { %v855_v33 = vpop.xlane.xlu0 %854 }
 0x130   : > { %v948_v8 = vmul.f32 %v18124_v3, %v855_v33 }
 0x132   : > { %v1076_v42 = vpack.c.bf16 %v948_v8, %v948_v8 }
 0x134   : > { %989 = vmax.xlane.f32.xlu1 %v988_v41  ;;  %1031 = vmax.xlane.f32.xlu0 %v1030_v15  ;;  %v1140_v61 = vunpack.c.l.b16 %v1076_v42  ;;  %v1003_v41 = vsel %vm840_vm1, %v17921_v32, -inf  ;;  %v1176_v15 = vperm.slane %v1138_v47, %v18148_v11 }
 0x135   : > { %992 = vmax.xlane.f32.xlu2 %v991_v44  ;;  %v846_v30 = vpop.xlane.xlu1 %845 }
 0x136   : > { %v945_v39 = vmul.f32 %v18124_v3, %v846_v30 }
 0x137   : > { %v852_v1 = vpop.xlane.xlu2 %851 }
 0x138   : > { %v947_v17 = vmul.f32 %v18124_v3, %v852_v1  ;;  %v1073_v28 = vpack.c.bf16 %v945_v39, %v945_v39 }
 0x139   : > { %v864_v2 = vpop.xlane.xlu0 %863 }
 0x13a   : > { %v1075_v60 = vpack.c.bf16 %v947_v17, %v947_v17  ;;  %v951_v49 = vmul.f32 %v18124_v3, %v864_v2  ;;  %v1137_v34 = vunpack.c.l.b16 %v1073_v28  ;;  %v1179_v2 = vperm.slane %v1140_v61, %v18148_v11 }
 0x13c   : > { %1034 = vmax.xlane.f32.xlu1 %v1033_v43  ;;  %998 = vmax.xlane.f32.xlu0 %v997_v40  ;;  %v1139_v18 = vunpack.c.l.b16 %v1075_v60  ;;  %v1079_v23 = vpack.c.bf16 %v951_v49, %v951_v49  ;;  %v1173_v48 = vperm.slane %v1137_v34, %v18151_v14 }
 0x13d   : > { %995 = vmax.xlane.f32.xlu2 %v994_v0  ;;  %v858_v57 = vpop.xlane.xlu1 %857  ;;  %v1171_v0 = vperm.slane %v1136_v6, %v18148_v11  ;;  %v1069_v6 = vsel %vm840_vm1, %v17976_v27, -inf }
 0x13e   : > { %v949_v4 = vmul.f32 %v18124_v3, %v858_v57  ;;  %v1177_v44 = vperm.slane %v1139_v18, %v18151_v14  ;;  %v1143_v33 = vunpack.c.l.b16 %v1079_v23 }
 0x13f   : > { %v861_v26 = vpop.xlane.xlu2 %860  ;;  %v1175_v39 = vsel %vm1174_vm5, %v1173_v48, %v1171_v0  ;;  %v1258_v0 = vld [vmem:[#allocation3 + $0x8] sm:$0x3] }
 0x140   : > { %v950_v63 = vmul.f32 %v18124_v3, %v861_v26  ;;  %v1077_v53 = vpack.c.bf16 %v949_v4, %v949_v4  ;;  %v1178_v26 = vsel %vm1174_vm5, %v1177_v44, %v1176_v15  ;;  %v1183_v4 = vperm.slane %v1143_v33, %v18151_v14 }
 0x141   : > { %v1222_v60 = vsel %vm1221_vm6, %v1178_v26, %v1175_v39  ;;  %v1045_v15 = vsel %vm840_vm1, %v18092_v45, -inf  ;;  %v1066_v44 = vsel %vm840_vm1, %v17968_v22, -inf  ;;  %v1048_v26 = vsel %vm840_vm1, %v18004_v62, -inf }
 0x142   : > { %v1078_v20 = vpack.c.bf16 %v950_v63, %v950_v63  ;;  %v1141_v59 = vunpack.c.l.b16 %v1077_v53 }
 0x144   : > { %1037 = vmax.xlane.f32.xlu1 %v1036_v52  ;;  %1055 = vmax.xlane.f32.xlu0 %v1054_v58  ;;  %v1142_v30 = vunpack.c.l.b16 %v1078_v20  ;;  %v1180_v51 = vperm.slane %v1141_v59, %v18151_v14 }
 0x145   : > { %1040 = vmax.xlane.f32.xlu2 %v1039_v21 }
 0x146   : > { %v1182_v54 = vperm.slane %v1142_v30, %v18148_v11  ;;  %v1181_v52 = vsel %vm1174_vm5, %v1180_v51, %v1179_v2 }
 0x147   : > { %v921_v16 = vpop.xlane.xlu1 %920  ;;  %v927_v37 = vpop.xlane.xlu0 %926  ;;  %v1224_v28 = vsel %vm1223_vm7, %v1181_v52, %v1222_v60 }
 0x148   : > { %v924_v56 = vpop.xlane.xlu2 %923  ;;  %v970_v9 = vmul.f32 %v18124_v3, %v921_v16  ;;  %v972_v10 = vmul.f32 %v18124_v3, %v927_v37  ;;  %v1184_v49 = vsel %vm1174_vm5, %v1183_v4, %v1182_v54  ;;  %v1051_v54 = vsel %vm840_vm1, %v17998_v29, -inf }
 0x149   : > { %v971_v12 = vmul.f32 %v18124_v3, %v924_v56  ;;  %v1226_v20 = vsel %vm1225_vm8, %v1184_v49, %v1224_v28 }
 0x14a   : > { %v1098_v21 = vpack.c.bf16 %v970_v9, %v970_v9  ;;  %v1100_v8 = vpack.c.bf16 %v972_v10, %v972_v10 }
 0x14b   : > { %v1099_v35 = vpack.c.bf16 %v971_v12, %v971_v12 }
 0x14c   : > { %1058 = vmax.xlane.f32.xlu1 %v1057_v7  ;;  %1064 = vmax.xlane.f32.xlu0 %v1063_v25  ;;  %v1162_v42 = vunpack.c.l.b16 %v1098_v21  ;;  %v1164_v25 = vunpack.c.l.b16 %v1100_v8 }
 0x14d   : > { %1061 = vmax.xlane.f32.xlu2 %v1060_v31  ;;  %v1163_v7 = vunpack.c.l.b16 %v1099_v35  ;;  %v1250_v31 = vld [vmem:[#allocation3] sm:$0xe] }
 0x14e   : > { %v1212_v30 = vperm.slane %v1162_v42, %v18148_v11  ;;  %v1215_v33 = vperm.slane %v1164_v25, %v18148_v11 }
 0x14f   : > { %v930_v46 = vpop.xlane.xlu1 %929  ;;  %v870_v1 = vpop.xlane.xlu0 %869  ;;  %v1213_v48 = vperm.slane %v1163_v7, %v18151_v14 }
 0x150   : > { %v973_v32 = vmul.f32 %v18124_v3, %v930_v46  ;;  %v953_v43 = vmul.f32 %v18124_v3, %v870_v1  ;;  %v867_v40 = vpop.xlane.xlu2 %866 }
 0x151   : > { %v952_v57 = vmul.f32 %v18124_v3, %v867_v40  ;;  %v1214_v10 = vsel %vm1174_vm5, %v1213_v48, %v1212_v30 }
 0x152   : > { %v1101_v50 = vpack.c.bf16 %v973_v32, %v973_v32  ;;  %v1081_v17 = vpack.c.bf16 %v953_v43, %v953_v43 }
 0x153   : > { %v1080_v58 = vpack.c.bf16 %v952_v57, %v952_v57 }
 0x154   : > { %v1145_v24 = vunpack.c.l.b16 %v1081_v17  ;;  %1043 = vmax.xlane.f32.xlu0 %v1042_v38  ;;  %1001 = vmax.xlane.f32.xlu1 %v1000_v13  ;;  %v1165_v53 = vunpack.c.l.b16 %v1101_v50 }
 0x155   : > { %v1144_v63 = vunpack.c.l.b16 %v1080_v58  ;;  %1004 = vmax.xlane.f32.xlu2 %v1003_v41 }
 0x156   : > { %v1186_v16 = vperm.slane %v1145_v24, %v18151_v14  ;;  %v1216_v59 = vperm.slane %v1165_v53, %v18151_v14 }
 0x157   : > { %v1185_v37 = vperm.slane %v1144_v63, %v18148_v11  ;;  %v933_v56 = vpop.xlane.xlu1 %932  ;;  %v18183_v5 = vpop.xlane.xlu0 %872 }
 0x158   : > { %v974_v47 = vmul.f32 %v18124_v3, %v933_v56  ;;  %v936_v18 = vpop.xlane.xlu2 %935  ;;  %v1217_v27 = vsel %vm1174_vm5, %v1216_v59, %v1215_v33 }
 0x159   : > { %v1187_v34 = vsel %vm1174_vm5, %v1186_v16, %v1185_v37  ;;  %v975_v23 = vmul.f32 %v18124_v3, %v936_v18  ;;  %v1239_v43 = vsel %vm1229_vm13, %v1217_v27, %v1214_v10  ;;  %v954_v18 = vmul.f32 %v18124_v3, %v18183_v5 }
 0x15a   : > { %v1228_v38 = vsel %vm1227_vm9, %v1187_v34, %v1226_v20  ;;  %v1102_v13 = vpack.c.bf16 %v974_v47, %v974_v47 }
 0x15b   : > { %v1241_v61 = vpack.c.b16 %v1228_v38, %v1228_v38  ;;  %v1103_v41 = vpack.c.bf16 %v975_v23, %v975_v23 }
 0x15c   : > { %v1166_v51 = vunpack.c.l.b16 %v1102_v13  ;;  %1070 = vmax.xlane.f32.xlu0 %v1069_v6  ;;  %1046 = vmax.xlane.f32.xlu1 %v1045_v15 }
 0x15d   : > { %v1251_v9 = vsel %vm1249_vm12, %v1241_v61, %v1250_v31  ;;  %v1167_v46 = vunpack.c.l.b16 %v1103_v41  ;;  %1067 = vmax.xlane.f32.xlu2 %v1066_v44  ;;  %v1082_v41 = vpack.c.bf16 %v954_v18, %v954_v18  ;;  %vm1427_vm12 = vcmask 330953  }
 0x15e   : > { %1252 = vst [vmem:[#allocation3] sm:$0xe] %v1251_v9  ;;  %v1218_v45 = vperm.slane %v1166_v51, %v18148_v11  ;;  %vm18385_vm15 = vmand %vm1427_vm12, %vm1248_vm11  ;;  %vm1434_vm11 = vcmask 328904   ;;  %vm1543_vm12 = vcmask 359424  }
 0x15f   : > { %v1219_v22 = vperm.slane %v1167_v46, %v18151_v14  ;;  %v876_v1 = vpop.xlane.xlu1 %875  ;;  %v882_v12 = vpop.xlane.xlu0 %881 }
 0x160   : > { %v879_v32 = vpop.xlane.xlu2 %878  ;;  %v955_v53 = vmul.f32 %v18124_v3, %v876_v1  ;;  %v957_v16 = vmul.f32 %v18124_v3, %v882_v12 }
 0x161   : > { %v1220_v40 = vsel %vm1174_vm5, %v1219_v22, %v1218_v45  ;;  %v956_v37 = vmul.f32 %v18124_v3, %v879_v32 }
 0x162   : > { %v1240_v2 = vsel %vm1231_vm14, %v1220_v40, %v1239_v43  ;;  %v1083_v34 = vpack.c.bf16 %v955_v53, %v955_v53  ;;  %v1085_v23 = vpack.c.bf16 %v957_v16, %v957_v16  ;;  %v1146_v43 = vunpack.c.l.b16 %v1082_v41 }
 0x163   : > { %v1243_v57 = vpack.c.b16 %v1240_v2, %v1240_v2  ;;  %v1084_v59 = vpack.c.bf16 %v956_v37, %v956_v37 }
 0x164   : > { %1049 = vmax.xlane.f32.xlu1 %v1048_v26  ;;  %v1147_v5 = vunpack.c.l.b16 %v1083_v34  ;;  %v1149_v48 = vunpack.c.l.b16 %v1085_v23 }
 0x165   : > { %v1259_v50 = vsel %vm1257_vm3, %v1243_v57, %v1258_v0  ;;  %1052 = vmax.xlane.f32.xlu2 %v1051_v54  ;;  %v1148_v51 = vunpack.c.l.b16 %v1084_v59  ;;  %vm1435_vm3 = vmand %vm1434_vm11, %vm22764_vm2  ;;  %vm1550_vm11 = vcmask 31744  }
 0x166   : > { %1260 = vst [vmem:[#allocation3 + $0x8] sm:$0x3] %v1259_v50  ;;  %v1189_v57 = vperm.slane %v1147_v5, %v18151_v14  ;;  %v1192_v26 = vperm.slane %v1149_v48, %v18151_v14 }
 0x167   : > { %v885_v17 = vpop.xlane.xlu1 %884  ;;  %v891_v39 = vpop.xlane.xlu0 %890  ;;  %v1191_v50 = vperm.slane %v1148_v51, %v18148_v11 }
 0x168   : > { %v888_v4 = vpop.xlane.xlu2 %887  ;;  %v958_v56 = vmul.f32 %v18124_v3, %v885_v17  ;;  %v960_v38 = vmul.f32 %v18124_v3, %v891_v39 }
 0x169   : > { %v959_v42 = vmul.f32 %v18124_v3, %v888_v4 }
 0x16a   : > { %v1086_v31 = vpack.c.bf16 %v958_v56, %v958_v56  ;;  %v1088_v46 = vpack.c.bf16 %v960_v38, %v960_v38  ;;  %v1193_v56 = vsel %vm1174_vm5, %v1192_v26, %v1191_v50 }
 0x16b   : > { %v1087_v13 = vpack.c.bf16 %v959_v42, %v959_v42 }
 0x16c   : > { %v1150_v9 = vunpack.c.l.b16 %v1086_v31  ;;  %v1152_v39 = vunpack.c.l.b16 %v1088_v46 }
 0x16d   : > { %v1151_v27 = vunpack.c.l.b16 %v1087_v13 }
 0x16e   : > { %v1194_v17 = vperm.slane %v1150_v9, %v18148_v11  ;;  %v1197_v42 = vperm.slane %v1152_v39, %v18148_v11 }
 0x16f   : > { %v894_v52 = vpop.xlane.xlu1 %893  ;;  %v900_v58 = vpop.xlane.xlu0 %899  ;;  %v1195_v4 = vperm.slane %v1151_v27, %v18151_v14 }
 0x170   : > { %v897_v21 = vpop.xlane.xlu2 %896  ;;  %v961_v20 = vmul.f32 %v18124_v3, %v894_v52  ;;  %v963_v6 = vmul.f32 %v18124_v3, %v900_v58 }
 0x171   : > { %v962_v61 = vmul.f32 %v18124_v3, %v897_v21 }
 0x172   : > { %v1089_v15 = vpack.c.bf16 %v961_v20, %v961_v20  ;;  %v1091_v1 = vpack.c.bf16 %v963_v6, %v963_v6 }
 0x173   : > { %v1090_v12 = vpack.c.bf16 %v962_v61, %v962_v61 }
 0x174   : > { %v1153_v40 = vunpack.c.l.b16 %v1089_v15  ;;  %v1155_v52 = vunpack.c.l.b16 %v1091_v1 }
 0x175   : > { %v1154_v58 = vunpack.c.l.b16 %v1090_v12 }
 0x176   : > { %v1201_v34 = vperm.slane %v1155_v52, %v18151_v14 }
 0x177   : > { %v18213_v35 = vpop.xlane.xlu1 %1007  ;;  %v18215_v8 = vpop.xlane.xlu0 %1013  ;;  %v1200_v23 = vperm.slane %v1154_v58, %v18148_v11 }
 0x178   : > { %v18217_v24 = vpop.xlane.xlu2 %1010 }
 0x179   : > { %v1202_v51 = vsel %vm1174_vm5, %v1201_v34, %v1200_v23 }
 0x17f   : > { %v18219_v62 = vpop.xlane.xlu1 %1016  ;;  %v906_v60 = vpop.xlane.xlu0 %905 }
 0x180   : > { %v903_v63 = vpop.xlane.xlu2 %902  ;;  %v965_v44 = vmul.f32 %v18124_v3, %v906_v60  ;;  %v1188_v60 = vperm.slane %v1146_v43, %v18148_v11 }
 0x181   : > { %v964_v30 = vmul.f32 %v18124_v3, %v903_v63  ;;  %v1198_v63 = vperm.slane %v1153_v40, %v18151_v14 }
 0x182   : > { %v1093_v0 = vpack.c.bf16 %v965_v44, %v965_v44  ;;  %v1190_v37 = vsel %vm1174_vm5, %v1189_v57, %v1188_v60  ;;  %v1273_v60 = vpack.c.bf16 %v18215_v8, %v18215_v8 }
 0x183   : > { %v1092_v2 = vpack.c.bf16 %v964_v30, %v964_v30  ;;  %v1199_v13 = vsel %vm1174_vm5, %v1198_v63, %v1197_v42  ;;  %v1230_v15 = vsel %vm1229_vm13, %v1193_v56, %v1190_v37  ;;  %v1272_v37 = vpack.c.bf16 %v18217_v24, %v18217_v24 }
 0x184   : > { %v18310_v42 = vadd.s32 4294967271, %v18138_v55  ;;  %v18314_v34 = vunpack.c.l.b16 %v1273_v60 }
 0x185   : > { %v1156_v53 = vunpack.c.l.b16 %v1092_v2 }
 0x187   : > { %v18221_v29 = vpop.xlane.xlu1 %1019  ;;  %v909_v28 = vpop.xlane.xlu0 %908  ;;  %v1203_v61 = vperm.slane %v1156_v53, %v18148_v11 }
 0x188   : > { %v18223_v49 = vpop.xlane.xlu2 %1022  ;;  %v966_v10 = vmul.f32 %v18124_v3, %v909_v28  ;;  %v1157_v28 = vunpack.c.l.b16 %v1093_v0 }
 0x189   : > { %v1276_v24 = vpack.c.bf16 %v18223_v49, %v18223_v49  ;;  %v1378_v49 = vperm.slane %v18314_v34, %v18310_v42 }
 0x18a   : > { %v1094_v21 = vpack.c.bf16 %v966_v10, %v966_v10  ;;  %v1204_v6 = vperm.slane %v1157_v28, %v18151_v14 }
 0x18c   : > { %v1158_v59 = vunpack.c.l.b16 %v1094_v21  ;;  %v1205_v27 = vsel %vm1174_vm5, %v1204_v6, %v1203_v61  ;;  %v1271_v21 = vpack.c.bf16 %v18213_v35, %v18213_v35  ;;  %v18323_v6 = vadd.s32 4294967263, %v18138_v55 }
 0x18d   : > { %v18325_v61 = vunpack.c.l.b16 %v1272_v37 }
 0x18e   : > { %v1206_v9 = vperm.slane %v1158_v59, %v18148_v11  ;;  %v18312_v8 = vunpack.c.l.b16 %v1271_v21 }
 0x18f   : > { %v912_v7 = vpop.xlane.xlu1 %911  ;;  %v18230_v25 = vpop.xlane.xlu0 %980 }
 0x190   : > { %v18232_v47 = vpop.xlane.xlu2 %977  ;;  %v967_v33 = vmul.f32 %v18124_v3, %v912_v7  ;;  %v1196_v7 = vsel %vm1174_vm5, %v1195_v4, %v1194_v17  ;;  %v1262_v63 = vpack.c.bf16 %v18230_v25, %v18230_v25 }
 0x191   : > { %v1232_v5 = vsel %vm1231_vm14, %v1196_v7, %v1230_v15  ;;  %v1261_v28 = vpack.c.bf16 %v18232_v47, %v18232_v47 }
 0x192   : > { %v1095_v54 = vpack.c.bf16 %v967_v33, %v967_v33  ;;  %v1234_v33 = vsel %vm1233_vm4, %v1199_v13, %v1232_v5  ;;  %v1326_v59 = vunpack.c.l.b16 %v1262_v63 }
 0x193   : > { %v1235_v10 = vsel %vm1221_vm6, %v1202_v51, %v1234_v33 }
 0x194   : > { %v1159_v16 = vunpack.c.l.b16 %v1095_v54  ;;  %v1236_v2 = vsel %vm1223_vm7, %v1205_v27, %v1235_v10  ;;  %v1360_v55 = vperm.slane %v1326_v59, %v18323_v6 }
 0x196   : > { %v1207_v44 = vperm.slane %v1159_v16, %v18151_v14 }
 0x197   : > { %v18243_v45 = vpop.xlane.xlu1 %983  ;;  %v18245_v22 = vpop.xlane.xlu0 %1025 }
 0x198   : > { %v18248_v32 = vpop.xlane.xlu2 %986  ;;  %v1263_v53 = vpack.c.bf16 %v18243_v45, %v18243_v45  ;;  %v1274_v45 = vpack.c.bf16 %v18219_v62, %v18219_v62  ;;  %v1375_v62 = vperm.slane %v18312_v8, %v18310_v42  ;;  %v1277_v27 = vpack.c.bf16 %v18245_v22, %v18245_v22 }
 0x199   : > { %v1264_v16 = vpack.c.bf16 %v18248_v32, %v18248_v32  ;;  %v1275_v32 = vpack.c.bf16 %v18221_v29, %v18221_v29 }
 0x19a   : > { %v18359_v63 = vunpack.c.l.b16 %v1277_v27 }
 0x19b   : > { %v1328_v13 = vunpack.c.l.b16 %v1264_v16  ;;  %v18333_v5 = vunpack.c.l.b16 %v1275_v32 }
 0x19f   : > { %v18261_v18 = vpop.xlane.xlu1 %1028  ;;  %v918_v20 = vpop.xlane.xlu0 %917 }
 0x1a0   : > { %v969_v31 = vmul.f32 %v18124_v3, %v918_v20  ;;  %v915_v38 = vpop.xlane.xlu2 %914 }
 0x1a1   : > { %v968_v41 = vmul.f32 %v18124_v3, %v915_v38  ;;  %v1208_v3 = vsel %vm1174_vm5, %v1207_v44, %v1206_v9  ;;  %v1327_v38 = vunpack.c.l.b16 %v1263_v53  ;;  %v1364_v9 = vperm.slane %v1328_v13, %v18323_v6 }
 0x1a2   : > { %v1097_v30 = vpack.c.bf16 %v969_v31, %v969_v31  ;;  %v1237_v26 = vsel %vm1225_vm8, %v1208_v3, %v1236_v2  ;;  %v1325_v31 = vunpack.c.l.b16 %v1261_v28 }
 0x1a3   : > { %v1096_v48 = vpack.c.bf16 %v968_v41, %v968_v41  ;;  %v1363_v51 = vperm.slane %v1327_v38, %v18310_v42 }
 0x1a4   : > { %v1161_v46 = vunpack.c.l.b16 %v1097_v30  ;;  %v18331_v30 = vunpack.c.l.b16 %v1274_v45  ;;  %v1358_v33 = vperm.slane %v1325_v31, %v18310_v42 }
 0x1a5   : > { %v1160_v1 = vunpack.c.l.b16 %v1096_v48  ;;  %v18335_v48 = vunpack.c.l.b16 %v1276_v24 }
 0x1a6   : > { %v1210_v12 = vperm.slane %v1161_v46, %v18151_v14  ;;  %v1376_v46 = vperm.slane %v18325_v61, %v18323_v6 }
 0x1a7   : > { %v1209_v43 = vperm.slane %v1160_v1, %v18148_v11  ;;  %v990_v40 = vpop.xlane.xlu1 %989  ;;  %v18281_v0 = vpop.xlane.xlu0 %1031 }
 0x1a8   : > { %v993_v57 = vpop.xlane.xlu2 %992  ;;  %v1265_v56 = vpack.c.bf16 %v990_v40, %v990_v40  ;;  %v1279_v32 = vpack.c.bf16 %v18281_v0, %v18281_v0 }
 0x1a9   : > { %v1211_v54 = vsel %vm1174_vm5, %v1210_v12, %v1209_v43  ;;  %v1266_v35 = vpack.c.bf16 %v993_v57, %v993_v57  ;;  %vm1361_vm5 = vcmask 335112  }
 0x1aa   : > { %v1238_v50 = vsel %vm1227_vm9, %v1211_v54, %v1237_v26  ;;  %v1329_v41 = vunpack.c.l.b16 %v1265_v56  ;;  %v1379_v26 = vperm.slane %v18331_v30, %v18323_v6  ;;  %v1381_v54 = vperm.slane %v18333_v5, %v18310_v42 }
 0x1ab   : > { %v1242_v17 = vpack.c.b16 %v1238_v50, %v1238_v50  ;;  %v1330_v15 = vunpack.c.l.b16 %v1266_v35  ;;  %v1365_v21 = vsel %vm1361_vm5, %v1364_v9, %v1363_v51 }
 0x1ac   : > { %v1366_v1 = vperm.slane %v1329_v41, %v18310_v42 }
 0x1ad   : > { %1254 = vst.msk [vmem:[#allocation3 + $0x4] sm:$0xf] %vm1253_vm10, %v1242_v17  ;;  %v1367_v3 = vperm.slane %v1330_v15, %v18323_v6  ;;  %vm1721_vm10 = vcmask 1041408  }
 0x1af   : > { %v18287_v14 = vpop.xlane.xlu1 %1034  ;;  %v999_v39 = vpop.xlane.xlu0 %998  ;;  %v1368_v28 = vsel %vm1361_vm5, %v1367_v3, %v1366_v1 }
 0x1b0   : > { %v996_v4 = vpop.xlane.xlu2 %995  ;;  %v1268_v25 = vpack.c.bf16 %v999_v39, %v999_v39  ;;  %v1382_v39 = vperm.slane %v18335_v48, %v18323_v6 }
 0x1b1   : > { %v1267_v7 = vpack.c.bf16 %v996_v4, %v996_v4  ;;  %v1362_v4 = vsel %vm1361_vm5, %v1360_v55, %v1358_v33  ;;  %v1343_v33 = vunpack.c.l.b16 %v1279_v32 }
 0x1b2   : > { %v1332_v29 = vunpack.c.l.b16 %v1268_v25 }
 0x1b3   : > { %v1331_v44 = vunpack.c.l.b16 %v1267_v7  ;;  %v1408_v7 = vsel %vm1221_vm6, %v1365_v21, %v1362_v4 }
 0x1b4   : > { %v1370_v12 = vperm.slane %v1332_v29, %v18323_v6  ;;  %v1409_v24 = vsel %vm1223_vm7, %v1368_v28, %v1408_v7  ;;  %v1387_v7 = vperm.slane %v1343_v33, %v18310_v42 }
 0x1b5   : > { %v1369_v10 = vperm.slane %v1331_v44, %v18310_v42 }
 0x1b7   : > { %v18289_v11 = vpop.xlane.xlu1 %1037  ;;  %v18291_v52 = vpop.xlane.xlu0 %1055  ;;  %v1371_v37 = vsel %vm1361_vm5, %v1370_v12, %v1369_v10  ;;  %v1429_v12 = vld [vmem:[#allocation3] sm:$0xe] }
 0x1b8   : > { %v18293_v58 = vpop.xlane.xlu2 %1040  ;;  %v1287_v53 = vpack.c.bf16 %v18291_v52, %v18291_v52  ;;  %v1410_v59 = vsel %vm1225_vm8, %v1371_v37, %v1409_v24  ;;  %v1281_v31 = vpack.c.bf16 %v18289_v11, %v18289_v11 }
 0x1b9   : > { %v1282_v38 = vpack.c.bf16 %v18293_v58, %v18293_v58 }
 0x1bf   : > { %v1059_v20 = vpop.xlane.xlu1 %1058  ;;  %v1065_v47 = vpop.xlane.xlu0 %1064 }
 0x1c0   : > { %v1062_v23 = vpop.xlane.xlu2 %1061  ;;  %v1288_v43 = vpack.c.bf16 %v1059_v20, %v1059_v20  ;;  %v1290_v40 = vpack.c.bf16 %v1065_v47, %v1065_v47  ;;  %v1278_v20 = vpack.c.bf16 %v18261_v18, %v18261_v18  ;;  %v1351_v18 = vunpack.c.l.b16 %v1287_v53 }
 0x1c1   : > { %v1289_v22 = vpack.c.bf16 %v1062_v23, %v1062_v23  ;;  %v1280_v23 = vpack.c.bf16 %v18287_v14, %v18287_v14  ;;  %v1383_v53 = vsel %vm1361_vm5, %v1382_v39, %v1381_v54 }
 0x1c2   : > { %v1352_v56 = vunpack.c.l.b16 %v1288_v43  ;;  %v1354_v35 = vunpack.c.l.b16 %v1290_v40  ;;  %v1342_v55 = vunpack.c.l.b16 %v1278_v20  ;;  %v1399_v1 = vperm.slane %v1351_v18, %v18310_v42 }
 0x1c3   : > { %v1353_v47 = vunpack.c.l.b16 %v1289_v22  ;;  %v1344_v27 = vunpack.c.l.b16 %v1280_v23  ;;  %v1345_v43 = vunpack.c.l.b16 %v1281_v31  ;;  %v1346_v40 = vunpack.c.l.b16 %v1282_v38 }
 0x1c4   : > { %v1400_v13 = vperm.slane %v1352_v56, %v18323_v6  ;;  %v1403_v0 = vperm.slane %v1354_v35, %v18323_v6  ;;  %v1377_v20 = vsel %vm1361_vm5, %v1376_v46, %v1375_v62 }
 0x1c5   : > { %v1402_v44 = vperm.slane %v1353_v47, %v18310_v42  ;;  %v1388_v37 = vperm.slane %v1344_v27, %v18323_v6  ;;  %v1390_v34 = vperm.slane %v1345_v43, %v18310_v42 }
 0x1c7   : > { %v18349_v2 = vpop.xlane.xlu0 %1043  ;;  %v1002_v57 = vpop.xlane.xlu1 %1001 }
 0x1c8   : > { %v1269_v50 = vpack.c.bf16 %v1002_v57, %v1002_v57  ;;  %v1005_v17 = vpop.xlane.xlu2 %1004  ;;  %v1283_v3 = vpack.c.bf16 %v18349_v2, %v18349_v2  ;;  %v1380_v2 = vsel %vm1361_vm5, %v1379_v26, %v1378_v49  ;;  %v1391_v49 = vperm.slane %v1346_v40, %v18323_v6 }
 0x1c9   : > { %v1270_v60 = vpack.c.bf16 %v1005_v17, %v1005_v17  ;;  %v1404_v17 = vsel %vm1361_vm5, %v1403_v0, %v1402_v44  ;;  %v1412_v24 = vsel %vm1229_vm13, %v1380_v2, %v1377_v20 }
 0x1ca   : > { %v1333_v16 = vunpack.c.l.b16 %v1269_v50  ;;  %v1401_v50 = vsel %vm1361_vm5, %v1400_v13, %v1399_v1  ;;  %v1347_v56 = vunpack.c.l.b16 %v1283_v3  ;;  %v1413_v18 = vsel %vm1231_vm14, %v1383_v53, %v1412_v24 }
 0x1cb   : > { %v1334_v25 = vunpack.c.l.b16 %v1270_v60  ;;  %v1385_v60 = vperm.slane %v1342_v55, %v18323_v6  ;;  %v1419_v26 = vsel %vm1229_vm13, %v1404_v17, %v1401_v50  ;;  %v1392_v8 = vsel %vm1361_vm5, %v1391_v49, %v1390_v34 }
 0x1cc   : > { %v1372_v45 = vperm.slane %v1333_v16, %v18310_v42  ;;  %v1384_v16 = vperm.slane %v18359_v63, %v18310_v42  ;;  %v1393_v23 = vperm.slane %v1347_v56, %v18310_v42  ;;  %vm1432_vm13 = vcmask 330952  }
 0x1cd   : > { %v1373_v52 = vperm.slane %v1334_v25, %v18323_v6 }
 0x1ce   : > { %v1386_v47 = vsel %vm1361_vm5, %v1385_v60, %v1384_v16 }
 0x1cf   : > { %v1374_v41 = vsel %vm1361_vm5, %v1373_v52, %v1372_v45  ;;  %v1071_v15 = vpop.xlane.xlu0 %1070  ;;  %v1047_v29 = vpop.xlane.xlu1 %1046  ;;  %v1389_v52 = vsel %vm1361_vm5, %v1388_v37, %v1387_v7  ;;  %v1414_v62 = vsel %vm1233_vm4, %v1386_v47, %v1413_v18  ;;  %vm1505_vm4 = vcmask 1045504  }
 0x1d0   : > { %v1411_v11 = vsel %vm1227_vm9, %v1374_v41, %v1410_v59  ;;  %v1292_v30 = vpack.c.bf16 %v1071_v15, %v1071_v15  ;;  %v1284_v48 = vpack.c.bf16 %v1047_v29, %v1047_v29  ;;  %v1068_v58 = vpop.xlane.xlu2 %1067  ;;  %v1436_v59 = vld [vmem:[#allocation3 + $0x8] sm:$0x3]  ;;  %v1415_v0 = vsel %vm1221_vm6, %v1389_v52, %v1414_v62 }
 0x1d1   : > { %v1421_v51 = vpack.c.b16 %v1411_v11, %v1411_v11  ;;  %v1291_v9 = vpack.c.bf16 %v1068_v58, %v1068_v58  ;;  %v1416_v15 = vsel %vm1223_vm7, %v1392_v8, %v1415_v0  ;;  %vm1537_vm6 = vcmask 1044480  }
 0x1d2   : > { %v1356_v10 = vunpack.c.l.b16 %v1292_v30  ;;  %v1348_v21 = vunpack.c.l.b16 %v1284_v48  ;;  %vm1473_vm7 = vcmask 1046528  }
 0x1d3   : > { %v1430_v57 = vsel %vm18385_vm15, %v1421_v51, %v1429_v12  ;;  %v1355_v22 = vunpack.c.l.b16 %v1291_v9  ;;  %vm22765_vm15 = vcmask 719872  }
 0x1d4   : > { %1431 = vst [vmem:[#allocation3] sm:$0xe] %v1430_v57  ;;  %v1406_v4 = vperm.slane %v1356_v10, %v18323_v6  ;;  %v1394_v5 = vperm.slane %v1348_v21, %v18323_v6 }
 0x1d5   : > { %v1405_v28 = vperm.slane %v1355_v22, %v18310_v42 }
 0x1d6   : > { %v1395_v46 = vsel %vm1361_vm5, %v1394_v5, %v1393_v23 }
 0x1d7   : > { %v1407_v35 = vsel %vm1361_vm5, %v1406_v4, %v1405_v28  ;;  %v1050_v25 = vpop.xlane.xlu1 %1049  ;;  %v1417_v29 = vsel %vm1225_vm8, %v1395_v46, %v1416_v15  ;;  %vm1514_vm8 = vsmask.f32 5376 }
 0x1d8   : > { %v1420_v54 = vsel %vm1231_vm14, %v1407_v35, %v1419_v26  ;;  %v1285_v39 = vpack.c.bf16 %v1050_v25, %v1050_v25  ;;  %v1053_v63 = vpop.xlane.xlu2 %1052  ;;  %vm1482_vm14 = vsmask.f32 6400 }
 0x1d9   : > { %v1423_v45 = vpack.c.b16 %v1420_v54, %v1420_v54  ;;  %v1286_v32 = vpack.c.bf16 %v1053_v63, %v1053_v63 }
 0x1da   : > { %v1349_v31 = vunpack.c.l.b16 %v1285_v39 }
 0x1db   : > { %v1437_v38 = vsel %vm1435_vm3, %v1423_v45, %v1436_v59  ;;  %v1350_v61 = vunpack.c.l.b16 %v1286_v32  ;;  %v1446_v51 = vld [vmem:[#allocation3] sm:$0x8]  ;;  %vm22763_vm3 = vcmask 392192  }
 0x1dc   : > { %1438 = vst [vmem:[#allocation3 + $0x8] sm:$0x3] %v1437_v38  ;;  %v1396_v13 = vperm.slane %v1349_v31, %v18310_v42  ;;  %v1442_v9 = vld [vmem:[#allocation3] sm:$0xe]  ;;  %v1535_v40 = vunpack.c.l.b16 %v1446_v51 }
 0x1dd   : > { %v1397_v41 = vperm.slane %v1350_v61, %v18323_v6  ;;  %v1444_v6 = vld [vmem:[#allocation3] sm:$0xc]  ;;  %v1471_v57 = vunpack.c.l.b16 %v1442_v9  ;;  %v16562_v9 = vld [vmem:[%s22745_s1 + $0x17a0] sm:$0xff] }
 0x1de   : > { %v1503_v22 = vunpack.c.l.b16 %v1444_v6  ;;  %v16571_v51 = vld [vmem:[%s22745_s1 + $0x17e8] sm:$0xff] }
 0x1df   : > { %v1398_v44 = vsel %vm1361_vm5, %v1397_v41, %v1396_v13  ;;  %v16575_v6 = vld [vmem:[%s22745_s1 + $0x1808] sm:$0xff]  ;;  %vm1718_vm5 = vcmask 424960  }
 0x1e0   : > { %v1418_v14 = vsel %vm1227_vm9, %v1398_v44, %v1417_v29  ;;  %vm1455_vm9 = vsmask.f32 7424  ;;  %v16565_v29 = vld [vmem:[%s22745_s1 + $0x17b8] sm:$0xff] }
 0x1e1   : > { %v1422_v11 = vpack.c.b16 %v1418_v14, %v1418_v14  ;;  %v1600_v44 = vld [vmem:[%s22745_s1 + $0x1818] sm:$0x3]  ;;  %1725 = vmatpush.bf16.msra.mxu0 %v16565_v29 }
 0x1e2   : > { %v16573_v14 = vld [vmem:[%s22745_s1 + $0x17f8] sm:$0xff] }
 0x1e3   : > { %1433 = vst.msk [vmem:[#allocation3 + $0x4] sm:$0xf] %vm1432_vm13, %v1422_v11  ;;  %v1445_v30 = vld [vmem:[#allocation3 + $0x8] sm:$0x7]  ;;  %1739 = vmatpush.bf16.msra.mxu1 %v16573_v14  ;;  %vm1556_vm13 = vcmask 752640  }
 0x1e4   : > { %v1441_v48 = vld [vmem:[#allocation3 + $0x8] sm:$0x1]  ;;  %v1512_v58 = vunpack.c.l.b16 %v1445_v30  ;;  %v1678_v30 = vunpack.c.l.b16 %v1600_v44 }
 0x1e5   : > { %v1453_v42 = vunpack.c.l.b16 %v1441_v48  ;;  %v1443_v33 = vld [vmem:[#allocation3 + $0x8] sm:$0x3] }
 0x1e6   : > { %v1513_v55 = vpack.c.b16 %v1512_v58, %v1512_v58  ;;  %v1480_v27 = vunpack.c.l.b16 %v1443_v33  ;;  %v16564_v11 = vld [vmem:[%s22745_s1 + $0x17b0] sm:$0xff]  ;;  %v1698_v58 = vpack.c.b16 %v1678_v30, %v1678_v30 }
 0x1e7   : > { %v1454_v3 = vpack.c.b16 %v1453_v42, %v1453_v42  ;;  %v16572_v48 = vld [vmem:[%s22745_s1 + $0x17f0] sm:$0xff]  ;;  %1726 = vmatpush.bf16.msra.mxu0 %v16564_v11 }
 0x1e8   : > { %v1524_v12 = vshrl.u32 %v1513_v55, 16  ;;  %v1527_v10 = vshll.u32 %v1513_v55, 16  ;;  %v1481_v2 = vpack.c.b16 %v1480_v27, %v1480_v27  ;;  %v1539_v60 = vrot.slane %v1513_v55, 3  ;;  %v16563_v55 = vld [vmem:[%s22745_s1 + $0x17a8] sm:$0xff]  ;;  %v16576_v33 = vld [vmem:[%s22745_s1 + $0x1810] sm:$0xff]  ;;  %1740 = vmatpush.bf16.msra.mxu1 %v16572_v48  ;;  %v16561_v27 = vld [vmem:[%s22745_s1 + $0x1798] sm:$0xff] }
 0x1e9   : > { %v1475_v28 = vrot.slane %v1454_v3, 1  ;;  %v1464_v63 = vshll.u32 %v1454_v3, 16  ;;  %v1723_v42 = vsel %vm1721_vm10, %v1698_v58, 0  ;;  %v16560_v3 = vld [vmem:[%s22745_s1 + $0x1790] sm:$0xff] }
 0x1ea   : > { %v18441_v1 = vld [vmem:[#allocation3] sm:$0xff]   ;;  %v1526_v53 = vrot.slane %v1524_v12, 2  ;;  %v1529_v16 = vrot.slane %v1527_v10, 3  ;;  %v1492_v20 = vshrl.u32 %v1481_v2, 16  ;;  %v1495_v24 = vshll.u32 %v1481_v2, 16  ;;  %1757 = vmatpush.bf16.msra.mxu2 %v1723_v42  ;;  %v16574_v12 = vld [vmem:[%s22745_s1 + $0x1800] sm:$0xff] }
 0x1eb   : > { %v17371_v43 = vunpack.c.h.b16 %v18441_v1  ;;  %v1459_v50 = vshll.u32 %v18441_v1, 16  ;;  %v1457_v32 = vshrl.u32 %v18441_v1, 16  ;;  %v1466_v18 = vrot.slane %v1464_v63, 1  ;;  %1727 = vmatpush.bf16.msra.mxu0 %v16563_v55  ;;  %v16559_v10 = vld [vmem:[%s22745_s1 + $0x1788] sm:$0xff]  ;;  %v16581_v63 = vld [vmem:[%s22745_s1 + $0x20] sm:$0xff] }
 0x1ec   : > { %v1530_v45 = vor.u32 %v1529_v16, %v1526_v53  ;;  %v1494_v8 = vrot.slane %v1492_v20, 1  ;;  %v1497_v38 = vrot.slane %v1495_v24, 2  ;;  %v1507_v41 = vrot.slane %v1481_v2, 2  ;;  %1741 = vmatpush.bf16.msra.mxu1 %v16571_v51 }
 0x1ed   : > { %v1536_v17 = vpack.c.b16 %v17371_v43, %v1535_v40  ;;  %v1472_v4 = vpack.c.b16 %v17371_v43, %v1471_v57  ;;  %v1504_v21 = vpack.c.b16 %v17371_v43, %v1503_v22  ;;  %v1461_v26 = vrot.slane %v1459_v50, 1  ;;  %v16570_v43 = vld [vmem:[%s22745_s1 + $0x17e0] sm:$0xff]  ;;  %v16569_v57 = vld [vmem:[%s22745_s1 + $0x17d8] sm:$0xff]  ;;  %v16568_v22 = vld [vmem:[%s22745_s1 + $0x17d0] sm:$0xff] }
 0x1ee   : > { %v1498_v46 = vor.u32 %v1497_v38, %v1494_v8  ;;  %1758 = vmatpush.bf16.msra.mxu2 %v16576_v33  ;;  %v16558_v40 = vld [vmem:[%s22745_s1 + $0x1780] sm:$0xff]  ;;  %v16567_v50 = vld [vmem:[%s22745_s1 + $0x17c8] sm:$0xff] }
 0x1ef   : > { %v1538_v37 = vrot.slane %v1536_v17, 3  ;;  %v1474_v56 = vrot.slane %v1472_v4, 1  ;;  %v1516_v34 = vshrl.u32 %v1504_v21, 16  ;;  %v1519_v49 = vshll.u32 %v1504_v21, 16  ;;  %1728 = vmatpush.bf16.msra.mxu0 %v16562_v9  ;;  %v16566_v17 = vld [vmem:[%s22745_s1 + $0x17c0] sm:$0xff] }
 0x1f0   : > { %v1484_v35 = vshrl.u32 %v1472_v4, 16  ;;  %v1487_v25 = vshll.u32 %v1472_v4, 16  ;;  %v1462_v23 = vor.u32 %v1461_v26, %v1457_v32  ;;  %v1506_v0 = vrot.slane %v1504_v21, 2  ;;  %1742 = vmatpush.bf16.msra.mxu1 %v16570_v43  ;;  %v18544_v43 = vld [vmem:[%s17537_s29] sm:$0xff] }
 0x1f1   : > { %v1540_v7 = vsel %vm1537_vm6, %v1538_v37, %v1539_v60  ;;  %v1476_v5 = vsel %vm1473_vm7, %v1474_v56, %v1475_v28  ;;  %v1518_v54 = vrot.slane %v1516_v34, 2  ;;  %v1521_v39 = vrot.slane %v1519_v49, 3 }
 0x1f2   : > { %1541 = vrot.lane.b32.xlu1 %v1540_v7, %s22777_s11  ;;  %1477 = vrot.lane.b32.xlu2 %v1476_v5, %s22780_s16  ;;  %v1486_v59 = vrot.slane %v1484_v35, 1  ;;  %v1489_v31 = vrot.slane %v1487_v25, 2  ;;  %v1467_v61 = vsel %vm1455_vm9, %v1462_v23, %v1466_v18  ;;  %v1508_v15 = vsel %vm1505_vm4, %v1506_v0, %v1507_v41  ;;  %v16584_v35 = vld [vmem:[%s22745_s1 + $0x38] sm:$0xff]  ;;  %v16582_v7 = vld [vmem:[%s22745_s1 + $0x28] sm:$0xff] }
 0x1f3   : > { %v1522_v47 = vor.u32 %v1521_v39, %v1518_v54  ;;  %1759 = vmatpush.bf16.msra.mxu2 %v16575_v6  ;;  %1729 = vmatpush.bf16.msra.mxu0 %v16561_v27 }
 0x1f4   : > { %v1490_v62 = vor.u32 %v1489_v31, %v1486_v59  ;;  %1743 = vmatpush.bf16.msra.mxu1 %v16569_v57  ;;  %1872 = vmatpush.bf16.msra.mxu3 %v16584_v35  ;;  %v16579_v59 = vld [vmem:[%s22745_s1 + $0x10] sm:$0xff]  ;;  %v18548_v57 = vld [vmem:[%s17537_s29 + $0x8] sm:$0xff]  ;;  %s22789_s29 = smov 24  }
 0x1f5   : > { %v1531_v52 = vsel %vm1514_vm8, %v1522_v47, %v1530_v45  ;;  %v16580_v45 = vld [vmem:[%s22745_s1 + $0x18] sm:$0xff] }
 0x1f6   : > { %1532 = vrot.lane.b32.xlu0 %v1531_v52, %s17477_s22  ;;  %v1499_v13 = vsel %vm1482_vm14, %v1490_v62, %v1498_v46  ;;  %v16577_v62 = vld [vmem:[%s22745_s1] sm:$0xff]  ;;  %s22791_s22 = smov 32  }
 0x1f7   : > { %1730 = vmatpush.bf16.msra.mxu0 %v16560_v3  ;;  %1760 = vmatpush.bf16.msra.mxu2 %v16574_v12 }
 0x1f8   : > { %1744 = vmatpush.bf16.msra.mxu1 %v16568_v22 }
 0x1fa   : > { %1468 = vrot.lane.b32.xlu1 %v1467_v61, %s17478_s23  ;;  %v16578_v61 = vld [vmem:[%s22745_s1 + $0x8] sm:$0xff]  ;;  %s22794_s23 = smov 56  }
 0x1fb   : > { %1731 = vmatpush.bf16.msra.mxu0 %v16559_v10 }
 0x1fc   : > { %1745 = vmatpush.bf16.msra.mxu1 %v16567_v50 }
 0x1fe   : > { %1500 = vrot.lane.b32.xlu0 %v1499_v13, %s17479_s27  ;;  %s22795_s27 = smov 112  }
 0x1ff   : > { %1732 = vmatpush.bf16.msra.mxu0 %v16558_v40 }
 0x200   : > { %1746 = vmatpush.bf16.msra.mxu1 %v16566_v17  ;;  %v17403_v17 = vld [vmem:[%s22747_s3] ss:$0 sm:$0xff] }
 0x206   : > { %1509 = vrot.lane.b32.xlu0 %v1508_v15, %s22759_s19  ;;  %s22792_s19 = smov 64  }
 0x24c   : > { %v1478_v28 = vpop.permute.xlu2 %1477 }
 0x264   : > { %v1542_v4 = vpop.permute.xlu1 %1541 }
 0x268   : > { %v1533_v21 = vpop.permute.xlu0 %1532 }
 0x269   : > { %v1561_v2 = vsel %vm840_vm1, %v1533_v21, %v1542_v4  ;;  %v17404_v4 = vld [vmem:[%s22748_s4] ss:$0 sm:$0xff] }
 0x26a   : > { %13383 = vmatmul.msk.bf16.vlgmr.msra.gmra.mxu2 %vm1718_vm5, %v1561_v2 }
 0x26c   : > { %v1469_v60 = vpop.permute.xlu1 %1468 }
 0x26d   : > { %v1545_v53 = vsel %vm1543_vm12, %v18441_v1, %v1469_v60  ;;  %v16583_v1 = vld [vmem:[%s22745_s1 + $0x30] sm:$0xff] }
 0x26e   : > { %v1548_v16 = vsel %vm22765_vm15, %v1545_v53, %v1478_v28  ;;  %1873 = vmatpush.bf16.msra.mxu3 %v16583_v1  ;;  %v13507_v53 = vld [vmem:[%s22746_s2 + $0xa8] sm:$0xf] }
 0x26f   : > { %1733 = vmatmul.bf16.vlgmr.msra.gmra.mxu0 %v1548_v16  ;;  %v16607_v16 = vld [vmem:[%s22746_s2 + $0xb0] sm:$0xf0] }
 0x270   : > { %v1501_v37 = vpop.permute.xlu0 %1500 }
 0x271   : > { %v1552_v56 = vsel %vm1550_vm11, %v1478_v28, %v1501_v37  ;;  %v13508_v37 = vor.u32 %v16607_v16, %v13507_v53 }
 0x272   : > { %1874 = vmatpush.bf16.msra.mxu3 %v16582_v7  ;;  %v16601_v7 = vld [vmem:[%s22746_s2 + $0x80] sm:$0xf0] }
 0x273   : > { %2945 = vmatpush.bf16.msrb.mxu0 %v13508_v37 }
 0x276   : > { %1875 = vmatpush.bf16.msra.mxu3 %v16581_v63  ;;  %v16598_v63 = vld [vmem:[%s22746_s2 + $0x68] sm:$0xf0] }
 0x278   : > { %v1510_v34 = vpop.permute.xlu0 %1509 }
 0x279   : > { %v1555_v49 = vsel %vm22763_vm3, %v1552_v56, %v1510_v34 }
 0x27a   : > { %v1558_v26 = vsel %vm1556_vm13, %v1555_v49, %v1533_v21  ;;  %1876 = vmatpush.bf16.msra.mxu3 %v16580_v45  ;;  %v13495_v49 = vld [vmem:[%s22746_s2 + $0x90] sm:$0xf]  ;;  %v16595_v45 = vld [vmem:[%s22746_s2 + $0x50] sm:$0xf0] }
 0x27b   : > { %1747 = vmatmul.bf16.vlgmr.msra.gmra.mxu1 %v1558_v26  ;;  %v16604_v26 = vld [vmem:[%s22746_s2 + $0x98] sm:$0xf0] }
 0x27c   : > { %v13496_v1 = vor.u32 %v16604_v26, %v13495_v49 }
 0x27e   : > { %1877 = vmatpush.bf16.msra.mxu3 %v16579_v59  ;;  %2946 = vmatpush.bf16.msrb.mxu0 %v13496_v1  ;;  %v13435_v59 = vld [vmem:[%s22746_s2 + $0x18] sm:$0xf] }
 0x282   : > { %1878 = vmatpush.bf16.msra.mxu3 %v16578_v61 }
 0x286   : > { %1879 = vmatpush.bf16.msra.mxu3 %v16577_v62  ;;  %v18659_v62 = vpack.c.bf16 %v18548_v57, %v18544_v43 }
 0x2ec   : > { %v1734_v25 = vpop.f32.mrf.mxu0 }
 0x2ed   : > { %v1762_v5 = vpop.f32.mrf.mxu2 }
 0x2f4   : > { %v1736_v32 = vpop.f32.mrf.mxu0 }
 0x2f5   : > { %v1764_v23 = vpop.f32.mrf.mxu2 }
 0x2f8   : > { %v1748_v54 = vpop.f32.mrf.mxu1 }
 0x2f9   : > { %v1749_v39 = vadd.f32 %v1748_v54, %v1734_v25  ;;  %v13483_v25 = vld [vmem:[%s22746_s2 + $0x78] sm:$0xf] }
 0x2fb   : > { %v1763_v20 = vadd.f32 %v1762_v5, %v1749_v39  ;;  %v13484_v5 = vor.u32 %v16601_v7, %v13483_v25  ;;  %v13471_v39 = vld [vmem:[%s22746_s2 + $0x60] sm:$0xf] }
 0x2fd   : > { %v13384_v47 = vmul.f32 -1.442695, %v1763_v20  ;;  %2947 = vmatpush.bf16.msrb.mxu0 %v13484_v5  ;;  %v13472_v20 = vor.u32 %v16598_v63, %v13471_v39 }
 0x2ff   : > { %17433 = vpow2.f32 %v13384_v47  ;;  %v13459_v47 = vld [vmem:[%s22746_s2 + $0x48] sm:$0xf] }
 0x300   : > { %v1750_v24 = vpop.f32.mrf.mxu1 }
 0x301   : > { %v1751_v52 = vadd.f32 %v1750_v24, %v1736_v32  ;;  %2948 = vmatpush.bf16.msrb.mxu0 %v13472_v20  ;;  %v13460_v32 = vor.u32 %v16595_v45, %v13459_v47  ;;  %v13447_v24 = vld [vmem:[%s22746_s2 + $0x30] sm:$0xf] }
 0x303   : > { %v1765_v31 = vadd.f32 %v1764_v23, %v1751_v52  ;;  %v16592_v52 = vld [vmem:[%s22746_s2 + $0x38] sm:$0xf0] }
 0x304   : > { %v13448_v23 = vor.u32 %v16592_v52, %v13447_v24 }
 0x305   : > { %v17434_v18 = vpop.eup %17433  ;;  %v13385_v8 = vmul.f32 -1.442695, %v1765_v31  ;;  %2949 = vmatpush.bf16.msrb.mxu0 %v13460_v32  ;;  %v16589_v31 = vld [vmem:[%s22746_s2 + $0x20] sm:$0xf0] }
 0x306   : > { %v1773_v38 = vadd.f32 1.0, %v17434_v18  ;;  %v13436_v18 = vor.u32 %v16589_v31, %v13435_v59 }
 0x307   : > { %17435 = vpow2.f32 %v13385_v8  ;;  %v13423_v8 = vld [vmem:[%s22746_s2] sm:$0xf] }
 0x308   : > { %17437 = vrcp.f32 %v1773_v38  ;;  %v1786_v30 = vand.u32 2147483648, %v1773_v38  ;;  %vm1780_vm5 = vweird.f32 %v1773_v38  ;;  %v1784_v48 = vand.u32 2147483647, %v1773_v38 }
 0x309   : > { %2950 = vmatpush.bf16.msrb.mxu0 %v13448_v23 }
 0x30a   : > { %v1787_v9 = vor.u32 1.1754944e-38, %v1786_v30  ;;  %vm1785_vm13 = vcmp.eq.f32.partialorder %v1784_v48, 8.507059e+37 }
 0x30d   : > { %v17436_v46 = vpop.eup %17435  ;;  %2951 = vmatpush.bf16.msrb.mxu0 %v13436_v18 }
 0x30e   : > { %v17438_v13 = vpop.eup %17437  ;;  %v1774_v0 = vadd.f32 1.0, %v17436_v46 }
 0x30f   : > { %v1776_v41 = vmul.f32 %v17438_v13, %v1773_v38  ;;  %vm1781_vm4 = vweird.f32 %v17438_v13  ;;  %v16586_v38 = vld [vmem:[%s22746_s2 + $0x8] sm:$0xf0] }
 0x310   : > { %17439 = vrcp.f32 %v1774_v0  ;;  %vm1782_vm12 = vmor %vm1780_vm5, %vm1781_vm4  ;;  %v1801_v55 = vand.u32 2147483648, %v1774_v0  ;;  %v1799_v51 = vand.u32 2147483647, %v1774_v0  ;;  %vm1795_vm3 = vweird.f32 %v1774_v0 }
 0x311   : > { %v1777_v15 = vsub.f32 1.0, %v1776_v41  ;;  %v13424_v61 = vor.u32 %v16586_v38, %v13423_v8  ;;  %vm22779_vm4 = vcmask 1042432   ;;  %vm22782_vm5 = vsmask.f32 4352 }
 0x312   : > { %v1802_v3 = vor.u32 1.1754944e-38, %v1801_v55  ;;  %vm1800_vm15 = vcmp.eq.f32.partialorder %v1799_v51, 8.507059e+37 }
 0x313   : > { %v1778_v29 = vmul.f32 %v17438_v13, %v1777_v15  ;;  %2952 = vmatpush.bf16.msrb.mxu0 %v13424_v61 }
 0x315   : > { %v1779_v14 = vadd.f32 %v17438_v13, %v1778_v29 }
 0x316   : > { %v17440_v44 = vpop.eup %17439  ;;  %2953 = vmatmul.bf16.vlgmr.msrb.gmra.mxu0 %v18659_v62 }
 0x317   : > { %v1791_v11 = vmul.f32 %v17440_v44, %v1774_v0  ;;  %v1783_v42 = vsel %vm1782_vm12, %v17438_v13, %v1779_v14  ;;  %vm1796_vm11 = vweird.f32 %v17440_v44  ;;  %vm2757_vm12 = vcmask 195584  }
 0x318   : > { %v1788_v27 = vsel %vm1785_vm13, %v1787_v9, %v1783_v42  ;;  %vm1797_vm2 = vmor %vm1795_vm3, %vm1796_vm11  ;;  %vm2779_vm3 = vcmask 982016   ;;  %vm2775_vm11 = vcmask 850944   ;;  %vm2755_vm13 = vcmask 130048  }
 0x319   : > { %v1792_v58 = vsub.f32 1.0, %v1791_v11  ;;  %v1805_v40 = vmul.f32 %v18544_v43, %v1788_v27 }
 0x31b   : > { %v1793_v33 = vmul.f32 %v17440_v44, %v1792_v58 }
 0x31d   : > { %v1794_v6 = vadd.f32 %v17440_v44, %v1793_v33 }
 0x31f   : > { %v1798_v12 = vsel %vm1797_vm2, %v17440_v44, %v1794_v6 }
 0x320   : > { %v1803_v10 = vsel %vm1800_vm15, %v1802_v3, %v1798_v12  ;;  %vm2588_vm15 = vcmask 1040384  }
 0x321   : > { %v1806_v22 = vmul.f32 %v18548_v57, %v1803_v10 }
 0x323   : > { %v1807_v50 = vpack.c.bf16 %v1806_v22, %v1805_v40 }
 0x325   : > { %1880 = vmatmul.bf16.vlgmr.msra.gmra.mxu3 %v1807_v50 }
 0x3a8   : > { %v1881_v21 = vpop.f32.mrf.mxu3 }
 0x3a9   : > { %v1888_v2 = vmul.f32 %v17403_v17, %v1881_v21 }
 0x3ab   : > { %v1892_v60 = vadd.f32 %v17404_v4, %v1888_v2 }
 0x3ad   : > { %v18557_v28 = vadd.f32 %v1892_v60, %v1805_v40 }
 0x3af   : > { %1958 = vrot.lane.b32.xlu0 %v18557_v28, %s22775_s8  ;;  %1934 = vrot.lane.b32.xlu1 %v18557_v28, %s22770_s12  ;;  %v1990_v14 = vrot.slane %v18557_v28, 4 }
 0x3b0   : > { %1910 = vrot.lane.b32.xlu2 %v18557_v28, %s22772_s9  ;;  %v1883_v56 = vpop.f32.mrf.mxu3 }
 0x3b1   : > { %v1889_v34 = vmul.f32 %v17403_v17, %v1883_v56 }
 0x3b3   : > { %v1893_v35 = vadd.f32 %v17404_v4, %v1889_v34 }
 0x3b5   : > { %v18607_v54 = vadd.f32 %v1893_v35, %v1806_v22 }
 0x3b7   : > { %1904 = vrot.lane.b32.xlu0 %v18557_v28, %s22766_s13  ;;  %1898 = vrot.lane.b32.xlu1 %v18557_v28, %s17465_s14  ;;  %v2214_v26 = vrot.slane %v18607_v54, 4  ;;  %s22798_s13 = smov 8  }
 0x3b8   : > { %1982 = vrot.lane.b32.xlu2 %v18557_v28, %s22777_s11 }
 0x3bf   : > { %1946 = vrot.lane.b32.xlu0 %v18557_v28, %s22768_s15  ;;  %1928 = vrot.lane.b32.xlu1 %v18557_v28, %s22774_s30  ;;  %s22797_s15 = smov 40  }
 0x3c0   : > { %1922 = vrot.lane.b32.xlu2 %v18557_v28, %s22780_s16 }
 0x3c7   : > { %1976 = vrot.lane.b32.xlu0 %v18557_v28, %s22781_s10  ;;  %1970 = vrot.lane.b32.xlu1 %v18557_v28, %s22789_s29 }
 0x3c8   : > { %1952 = vrot.lane.b32.xlu2 %v18557_v28, %s22790_s26 }
 0x3cf   : > { %1964 = vrot.lane.b32.xlu0 %v18557_v28, %s22791_s22  ;;  %1940 = vrot.lane.b32.xlu1 %v18557_v28, %s22792_s19 }
 0x3d0   : > { %1916 = vrot.lane.b32.xlu2 %v18557_v28, %s22793_s21 }
 0x3d7   : > { %1912 = vrot.lane.b32.xlu0 %v18607_v54, %s22772_s9  ;;  %1984 = vrot.lane.b32.xlu1 %v18607_v54, %s22777_s11  ;;  %s22796_s9 = smov 104  }
 0x3d8   : > { %1936 = vrot.lane.b32.xlu2 %v18607_v54, %s22770_s12 }
 0x3df   : > { %1960 = vrot.lane.b32.xlu0 %v18607_v54, %s22775_s8  ;;  %1930 = vrot.lane.b32.xlu1 %v18607_v54, %s22774_s30  ;;  %s22803_s8 = smov 72  }
 0x3e0   : > { %1924 = vrot.lane.b32.xlu2 %v18607_v54, %s22780_s16 }
 0x3e7   : > { %1900 = vrot.lane.b32.xlu0 %v18607_v54, %s17465_s14  ;;  %1978 = vrot.lane.b32.xlu1 %v18607_v54, %s22781_s10 }
 0x3e8   : > { %1972 = vrot.lane.b32.xlu2 %v18607_v54, %s22789_s29 }
 0x3ef   : > { %1948 = vrot.lane.b32.xlu0 %v18607_v54, %s22794_s23  ;;  %1918 = vrot.lane.b32.xlu1 %v18607_v54, %s22793_s21 }
 0x3f0   : > { %1906 = vrot.lane.b32.xlu2 %v18607_v54, %s22795_s27 }
 0x3f7   : > { %1942 = vrot.lane.b32.xlu0 %v18607_v54, %s22792_s19  ;;  %1966 = vrot.lane.b32.xlu1 %v18607_v54, %s22791_s22 }
 0x3f8   : > { %1954 = vrot.lane.b32.xlu2 %v18607_v54, %s22790_s26 }
 0x40a   : > { %v1911_v46 = vpop.permute.xlu2 %1910 }
 0x40b   : > { %v2000_v44 = vrot.slane %v1911_v46, 4 }
 0x412   : > { %v18674_v13 = vpop.permute.xlu2 %1982 }
 0x413   : > { %v2136_v23 = vrot.slane %v18674_v13, 4 }
 0x41a   : > { %v1923_v0 = vpop.permute.xlu2 %1922 }
 0x41b   : > { %v2026_v33 = vrot.slane %v1923_v0, 4 }
 0x421   : > { %v1959_v41 = vpop.permute.xlu0 %1958  ;;  %v1935_v15 = vpop.permute.xlu1 %1934 }
 0x422   : > { %v18676_v29 = vpop.permute.xlu2 %1952  ;;  %v2024_v51 = vrot.slane %v1935_v15, 4  ;;  %v2027_v10 = vsel %vm22783_vm0, %v1935_v15, %v2026_v33  ;;  %v2112_v35 = vrot.slane %v1959_v41, 4 }
 0x423   : > { %v2035_v17 = vperm.slane %v2027_v10, %v17630_v19 }
 0x424   : > { %v2025_v22 = vsel %vm22783_vm0, %v2024_v51, %v1923_v0 }
 0x425   : > { %v2031_v16 = vperm.slane %v2025_v22, %v17630_v19  ;;  %v2072_v1 = vrot.slane %v2035_v17, 4 }
 0x427   : > { %v2060_v47 = vrot.slane %v2031_v16, 4 }
 0x429   : > { %v1905_v11 = vpop.permute.xlu0 %1904  ;;  %v1899_v30 = vpop.permute.xlu1 %1898 }
 0x42a   : > { %v1988_v48 = vrot.slane %v1905_v11, 4  ;;  %v1991_v58 = vsel %vm22783_vm0, %v1905_v11, %v1990_v14  ;;  %v2001_v55 = vsel %vm22783_vm0, %v2000_v44, %v1899_v30  ;;  %v2002_v42 = vrot.slane %v1899_v30, 4  ;;  %v1917_v12 = vpop.permute.xlu2 %1916 }
 0x42b   : > { %v2007_v9 = vperm.slane %v2001_v55, %v17630_v19  ;;  %v1999_v27 = vperm.slane %v1991_v58, %v17630_v19  ;;  %v2014_v2 = vrot.slane %v1917_v12, 4 }
 0x42c   : > { %v1989_v6 = vsel %vm22783_vm0, %v1988_v48, %v18557_v28  ;;  %v2003_v3 = vsel %vm22783_vm0, %v1911_v46, %v2002_v42 }
 0x42d   : > { %v1995_v43 = vperm.slane %v1989_v6, %v17630_v19  ;;  %v2011_v40 = vperm.slane %v2003_v3, %v17630_v19  ;;  %v2036_v57 = vrot.slane %v2007_v9, 4  ;;  %v2050_v4 = vrot.slane %v1999_v27, 4 }
 0x42e   : > { %v2100_v6 = vrot.slane %v18676_v29, 4 }
 0x42f   : > { %v2048_v50 = vrot.slane %v2011_v40, 4  ;;  %v2038_v21 = vrot.slane %v1995_v43, 4  ;;  %v2037_v37 = vsel %vm22783_vm0, %v2036_v57, %v1995_v43  ;;  %v2051_v25 = vsel %vm22783_vm0, %v2011_v40, %v2050_v4 }
 0x430   : > { %v2043_v39 = vperm.slane %v2037_v37, %v17651_v36  ;;  %v2059_v59 = vperm.slane %v2051_v25, %v17651_v36 }
 0x431   : > { %v1947_v60 = vpop.permute.xlu0 %1946  ;;  %v1929_v53 = vpop.permute.xlu1 %1928  ;;  %v2049_v56 = vsel %vm22783_vm0, %v2048_v50, %v1999_v27  ;;  %v2039_v5 = vsel %vm22783_vm0, %v2007_v9, %v2038_v21 }
 0x432   : > { %v2012_v34 = vrot.slane %v1929_v53, 4  ;;  %v2015_v49 = vsel %vm22783_vm0, %v1929_v53, %v2014_v2  ;;  %v2114_v63 = vrot.slane %v1947_v60, 4  ;;  %v2055_v45 = vperm.slane %v2049_v56, %v17651_v36  ;;  %v18704_v52 = vpop.permute.xlu2 %1936 }
 0x433   : > { %v2023_v7 = vperm.slane %v2015_v49, %v17630_v19  ;;  %v2047_v8 = vperm.slane %v2039_v5, %v17651_v36  ;;  %v2113_v38 = vsel %vm22783_vm0, %v2112_v35, %v1947_v60  ;;  %v2086_v0 = vrot.slane %v2043_v39, 4 }
 0x434   : > { %v2013_v20 = vsel %vm22783_vm0, %v2012_v34, %v1917_v12  ;;  %v2115_v15 = vsel %vm22783_vm0, %v1959_v41, %v2114_v63  ;;  %v2094_v48 = vrot.slane %v2055_v45, 4  ;;  %v18718_v33 = vperm.slane %v2113_v38, %v17630_v19 }
 0x435   : > { %v2019_v32 = vperm.slane %v2013_v20, %v17630_v19  ;;  %v2073_v24 = vsel %vm22783_vm0, %v2072_v1, %v2023_v7  ;;  %v2074_v31 = vrot.slane %v2023_v7, 4  ;;  %v2090_v27 = vrot.slane %v2047_v8, 4 }
 0x436   : > { %v2079_v18 = vperm.slane %v2073_v24, %v17651_v36  ;;  %v2098_v3 = vrot.slane %v2059_v59, 4  ;;  %v18724_v12 = vperm.slane %v2115_v15, %v17630_v19  ;;  %v2248_v4 = vrot.slane %v18704_v52, 4 }
 0x437   : > { %v2061_v61 = vsel %vm22783_vm0, %v2060_v47, %v2019_v32  ;;  %v2062_v46 = vrot.slane %v2019_v32, 4  ;;  %v2075_v14 = vsel %vm22783_vm0, %v2035_v17, %v2074_v31  ;;  %v2148_v21 = vrot.slane %v18718_v33, 4 }
 0x438   : > { %v2067_v44 = vperm.slane %v2061_v61, %v17651_v36  ;;  %v2083_v55 = vperm.slane %v2075_v14, %v17651_v36  ;;  %v2092_v42 = vrot.slane %v2079_v18, 4  ;;  %v2095_v40 = vsel %vm22783_vm0, %v2079_v18, %v2094_v48 }
 0x439   : > { %v1977_v11 = vpop.permute.xlu0 %1976  ;;  %v1971_v30 = vpop.permute.xlu1 %1970  ;;  %v2063_v58 = vsel %vm22783_vm0, %v2031_v16, %v2062_v46  ;;  %v2160_v16 = vrot.slane %v18724_v12, 4  ;;  %v2445_v34 = vsel %vm840_vm1, %v2095_v40, 0.0  ;;  %v18744_v7 = vsel %vm840_vm1, %v2095_v40, -inf }
 0x43a   : > { %v2071_v51 = vperm.slane %v2063_v58, %v17651_v36  ;;  %v2084_v9 = vrot.slane %v2067_v44, 4  ;;  %v2087_v41 = vsel %vm22783_vm0, %v2067_v44, %v2086_v0  ;;  %v2096_v57 = vrot.slane %v2083_v55, 4  ;;  %v1925_v49 = vpop.permute.xlu2 %1924 }
 0x43b   : > { %v2093_v22 = vsel %vm22783_vm0, %v2092_v42, %v2055_v45  ;;  %v2437_v17 = vsel %vm840_vm1, %v2087_v41, 0.0  ;;  %v18735_v60 = vsel %vm22783_vm0, %v2083_v55, %v2098_v3  ;;  %v2124_v20 = vrot.slane %v1977_v11, 4 }
 0x43c   : > { %v2085_v10 = vsel %vm22783_vm0, %v2084_v9, %v2043_v39  ;;  %v2088_v43 = vrot.slane %v2071_v51, 4  ;;  %v2091_v37 = vsel %vm22783_vm0, %v2071_v51, %v2090_v27  ;;  %v2097_v35 = vsel %vm22783_vm0, %v2096_v57, %v2059_v59 }
 0x43d   : > { %v2436_v50 = vsel %vm840_vm1, %v2085_v10, 0.0  ;;  %v2443_v25 = vsel %vm840_vm1, %v2093_v22, 0.0  ;;  %v18748_v63 = vsel %vm840_vm1, %v18735_v60, 0.0  ;;  %v2137_v47 = vsel %vm22783_vm0, %v2136_v23, %v1971_v30 }
 0x43e   : > { %v2089_v2 = vsel %vm22783_vm0, %v2088_v43, %v2047_v8  ;;  %v2438_v53 = vadd.f32 %v2437_v17, %v2436_v50  ;;  %v2138_v45 = vrot.slane %v1971_v30, 4  ;;  %v2441_v32 = vsel %vm840_vm1, %v2091_v37, 0.0 }
 0x43f   : > { %v2439_v56 = vsel %vm840_vm1, %v2089_v2, 0.0  ;;  %v18753_v24 = vsel %vm840_vm1, %v2085_v10, -inf  ;;  %v18756_v59 = vsel %vm840_vm1, %v2089_v2, -inf  ;;  %v2143_v31 = vperm.slane %v2137_v47, %v17630_v19 }
 0x440   : > { %v2440_v1 = vadd.f32 %v2439_v56, %v2438_v53  ;;  %v18760_v18 = vsel %vm840_vm1, %v2097_v35, 0.0  ;;  %v18763_v8 = vsel %vm840_vm1, %v2091_v37, -inf  ;;  %v2139_v23 = vsel %vm22783_vm0, %v18674_v13, %v2138_v45 }
 0x441   : > { %v1965_v5 = vpop.permute.xlu0 %1964  ;;  %v1941_v39 = vpop.permute.xlu1 %1940  ;;  %v18769_v46 = vsel %vm840_vm1, %v2087_v41, -inf  ;;  %v2523_v0 = vsel %vm840_vm1, %v2093_v22, -inf  ;;  %v2147_v15 = vperm.slane %v2139_v23, %v17630_v19  ;;  %v2520_v44 = vmax.f32 %v18753_v24, %v18756_v59 }
 0x442   : > { %v2125_v38 = vsel %vm22783_vm0, %v2124_v20, %v1965_v5  ;;  %v2442_v61 = vadd.f32 %v2441_v32, %v2440_v1  ;;  %v2172_v14 = vrot.slane %v2143_v31, 4  ;;  %v2126_v30 = vrot.slane %v1965_v5, 4  ;;  %v18795_v2 = vpop.permute.xlu2 %1972 }
 0x443   : > { %v2131_v48 = vperm.slane %v2125_v38, %v17630_v19  ;;  %v2522_v13 = vmax.f32 %v18769_v46, %v18763_v8  ;;  %v18779_v58 = vsel %vm840_vm1, %v2097_v35, -inf  ;;  %v2250_v55 = vrot.slane %v1925_v49, 4 }
 0x444   : > { %v2101_v42 = vsel %vm22783_vm0, %v2100_v6, %v1941_v39  ;;  %v2127_v51 = vsel %vm22783_vm0, %v1977_v11, %v2126_v30  ;;  %v2102_v27 = vrot.slane %v1941_v39, 4  ;;  %v2444_v3 = vadd.f32 %v2443_v25, %v2442_v61 }
 0x445   : > { %v2173_v9 = vsel %vm22783_vm0, %v2172_v14, %v2131_v48  ;;  %v2174_v41 = vrot.slane %v2131_v48, 4  ;;  %v2184_v10 = vrot.slane %v2147_v15, 4  ;;  %v2135_v43 = vperm.slane %v2127_v51, %v17630_v19 }
 0x446   : > { %v2179_v40 = vperm.slane %v2173_v9, %v17651_v36  ;;  %v2249_v50 = vsel %vm22783_vm0, %v2248_v4, %v1925_v49  ;;  %v2103_v11 = vsel %vm22783_vm0, %v18676_v29, %v2102_v27  ;;  %v2107_v17 = vperm.slane %v2101_v42, %v17630_v19 }
 0x447   : > { %v2175_v6 = vsel %vm22783_vm0, %v2143_v31, %v2174_v41  ;;  %v2251_v53 = vsel %vm22783_vm0, %v18704_v52, %v2250_v55  ;;  %v2185_v56 = vsel %vm22783_vm0, %v2184_v10, %v2135_v43  ;;  %v2186_v35 = vrot.slane %v2135_v43, 4 }
 0x448   : > { %v2183_v37 = vperm.slane %v2175_v6, %v17651_v36  ;;  %v2191_v1 = vperm.slane %v2185_v56, %v17651_v36  ;;  %v2196_v4 = vrot.slane %v2179_v40, 4  ;;  %v2111_v49 = vperm.slane %v2103_v11, %v17630_v19 }
 0x449   : > { %v18786_v57 = vpop.permute.xlu0 %1912  ;;  %v18788_v22 = vpop.permute.xlu1 %1984  ;;  %v2149_v25 = vsel %vm22783_vm0, %v2148_v21, %v2107_v17  ;;  %v2446_v29 = vadd.f32 %v2445_v34, %v2444_v3  ;;  %v2187_v5 = vsel %vm22783_vm0, %v2147_v15, %v2186_v35  ;;  %v2150_v39 = vrot.slane %v2107_v17, 4 }
 0x44a   : > { %v2155_v20 = vperm.slane %v2149_v25, %v17651_v36  ;;  %v18807_v52 = vperm.slane %v2187_v5, %v17651_v36  ;;  %v2200_v47 = vrot.slane %v2183_v37, 4  ;;  %v2161_v45 = vsel %vm22783_vm0, %v2160_v16, %v2111_v49 }
 0x44b   : > { %v2162_v32 = vrot.slane %v2111_v49, 4  ;;  %v2151_v24 = vsel %vm22783_vm0, %v18718_v33, %v2150_v39  ;;  %v2167_v21 = vperm.slane %v2161_v45, %v17651_v36  ;;  %v18817_v31 = vperm.slane %v2249_v50, %v17630_v19 }
 0x44c   : > { %v2197_v34 = vsel %vm22783_vm0, %v2196_v4, %v2155_v20  ;;  %v2198_v59 = vrot.slane %v2155_v20, 4  ;;  %v2204_v8 = vrot.slane %v2191_v1, 4  ;;  %v2159_v23 = vperm.slane %v2151_v24, %v17651_v36 }
 0x44d   : > { %v2467_v38 = vsel %vm840_vm1, %v2197_v34, 0.0  ;;  %v18822_v61 = vperm.slane %v2251_v53, %v17630_v19  ;;  %v2163_v16 = vsel %vm22783_vm0, %v18724_v12, %v2162_v32  ;;  %v2206_v46 = vrot.slane %v2167_v21, 4 }
 0x44e   : > { %v2199_v33 = vsel %vm22783_vm0, %v2179_v40, %v2198_v59  ;;  %v2208_v30 = vrot.slane %v18807_v52, 4  ;;  %v2201_v48 = vsel %vm22783_vm0, %v2200_v47, %v2159_v23  ;;  %v2202_v55 = vrot.slane %v2159_v23, 4  ;;  %v1907_v40 = vpop.permute.xlu2 %1906 }
 0x44f   : > { %v2468_v42 = vsel %vm840_vm1, %v2199_v33, 0.0  ;;  %v2448_v51 = vadd.f32 %v18760_v18, %v2446_v29  ;;  %v18835_v9 = vmax.f32 %v2520_v44, %v2523_v0  ;;  %v18839_v12 = vsel %vm840_vm1, %v18735_v60, -inf }
 0x450   : > { %v2469_v41 = vadd.f32 %v2468_v42, %v2467_v38  ;;  %v2171_v27 = vperm.slane %v2163_v16, %v17651_v36  ;;  %v2203_v3 = vsel %vm22783_vm0, %v2183_v37, %v2202_v55  ;;  %v2205_v10 = vsel %vm22783_vm0, %v2204_v8, %v2167_v21 }
 0x451   : > { %v18827_v15 = vpop.permute.xlu0 %1960  ;;  %v18829_v14 = vpop.permute.xlu1 %1930  ;;  %v2470_v43 = vsel %vm840_vm1, %v2201_v48, 0.0  ;;  %v18846_v50 = vmax.f32 %v2522_v13, %v18744_v7  ;;  %v2284_v18 = vrot.slane %v18817_v31, 4  ;;  %v18850_v0 = vsel %vm22783_vm0, %v2191_v1, %v2206_v46 }
 0x452   : > { %v2471_v60 = vadd.f32 %v2470_v43, %v2469_v41  ;;  %v2296_v44 = vrot.slane %v18822_v61, 4  ;;  %v18854_v6 = vsel %vm22783_vm0, %v2208_v30, %v2171_v27  ;;  %v2472_v11 = vsel %vm840_vm1, %v2203_v3, 0.0 }
 0x453   : > { %v2362_v17 = vrot.slane %v18795_v2, 4  ;;  %v18859_v53 = vadd.f32 %v18748_v63, %v2448_v51  ;;  %v2474_v13 = vsel %vm840_vm1, %v2205_v10, 0.0  ;;  %v2360_v37 = vrot.slane %v18788_v22, 4 }
 0x454   : > { %v2473_v7 = vadd.f32 %v2472_v11, %v2471_v60  ;;  %v2210_v56 = vrot.slane %v2171_v27, 4  ;;  %v2476_v35 = vsel %vm840_vm1, %v18850_v0, 0.0  ;;  %v2550_v1 = vsel %vm840_vm1, %v2201_v48, -inf }
 0x455   : > { %v2212_v4 = vrot.slane %v1907_v40, 4  ;;  %v2478_v25 = vsel %vm840_vm1, %v18854_v6, 0.0  ;;  %v2548_v29 = vsel %vm840_vm1, %v2197_v34, -inf  ;;  %v2363_v63 = vsel %vm22783_vm0, %v18788_v22, %v2362_v17 }
 0x456   : > { %v2475_v49 = vadd.f32 %v2474_v13, %v2473_v7  ;;  %v2224_v20 = vrot.slane %v18786_v57, 4  ;;  %v2361_v47 = vsel %vm22783_vm0, %v2360_v37, %v18795_v2  ;;  %v2215_v32 = vsel %vm22783_vm0, %v1907_v40, %v2214_v26  ;;  %v18895_v55 = vpop.permute.xlu2 %1954 }
 0x457   : > { %v2213_v45 = vsel %vm22783_vm0, %v2212_v4, %v18607_v54  ;;  %v2549_v24 = vsel %vm840_vm1, %v2199_v33, -inf  ;;  %v2551_v21 = vmax.f32 %v2548_v29, %v2550_v1  ;;  %v2552_v22 = vsel %vm840_vm1, %v2203_v3, -inf }
 0x458   : > { %v2219_v34 = vperm.slane %v2213_v45, %v17630_v19  ;;  %v2477_v59 = vadd.f32 %v2476_v35, %v2475_v49  ;;  %v18885_v8 = vperm.slane %v2363_v63, %v17630_v19  ;;  %v2554_v38 = vsel %vm840_vm1, %v2205_v10, -inf  ;;  %v16629_v63 = vld [vmem:[%s22745_s1 + $0xb8] sm:$0xff] }
 0x459   : > { %v1901_v5 = vpop.permute.xlu0 %1900  ;;  %v18871_v39 = vpop.permute.xlu1 %1978  ;;  %v18890_v16 = vperm.slane %v2361_v47, %v17630_v19  ;;  %v2223_v26 = vperm.slane %v2215_v32, %v17630_v19  ;;  %v2553_v46 = vmax.f32 %v2549_v24, %v2552_v22  ;;  %v2336_v48 = vrot.slane %v18827_v15, 4  ;;  %3247 = vmatpush.bf16.msra.mxu0 %v16629_v63 }
 0x45a   : > { %v2225_v2 = vsel %vm22783_vm0, %v2224_v20, %v1901_v5  ;;  %v2226_v23 = vrot.slane %v1901_v5, 4  ;;  %v2262_v30 = vrot.slane %v2219_v34, 4  ;;  %v18899_v51 = vmax.f32 %v2551_v21, %v2554_v38 }
 0x45b   : > { %v2231_v33 = vperm.slane %v2225_v2, %v17630_v19  ;;  %v2236_v41 = vrot.slane %v18829_v14, 4  ;;  %v2408_v10 = vrot.slane %v18885_v8, 4  ;;  %v2211_v40 = vsel %vm22783_vm0, %v18807_v52, %v2210_v56 }
 0x45c   : > { %v2227_v42 = vsel %vm22783_vm0, %v18786_v57, %v2226_v23  ;;  %v2479_v60 = vadd.f32 %v2478_v25, %v2477_v59  ;;  %v2396_v11 = vrot.slane %v18890_v16, 4  ;;  %v2274_v17 = vrot.slane %v2223_v26, 4 }
 0x45d   : > { %v2235_v27 = vperm.slane %v2227_v42, %v17630_v19  ;;  %v2260_v3 = vrot.slane %v2231_v33, 4  ;;  %v2263_v43 = vsel %vm22783_vm0, %v2231_v33, %v2262_v30  ;;  %v2324_v57 = vrot.slane %v18895_v55, 4 }
 0x45e   : > { %v2348_v1 = vrot.slane %v18871_v39, 4  ;;  %v2528_v4 = vmax.f32 %v18835_v9, %v18779_v58  ;;  %v2530_v49 = vmax.f32 %v18846_v50, %v18839_v12  ;;  %v2271_v52 = vperm.slane %v2263_v43, %v17651_v36  ;;  %v2954_v9 = vpop.f32.mrf.mxu0 }
 0x45f   : > { %v2272_v7 = vrot.slane %v2235_v27, 4  ;;  %v2261_v35 = vsel %vm22783_vm0, %v2260_v3, %v2219_v34  ;;  %v2275_v56 = vsel %vm22783_vm0, %v2235_v27, %v2274_v17  ;;  %v2480_v29 = vsel %vm840_vm1, %v2211_v40, 0.0  ;;  %v16628_v34 = vld [vmem:[%s22745_s1 + $0xb0] sm:$0xff] }
 0x460   : > { %v18923_v45 = vadd.f32 %v2480_v29, %v2479_v60  ;;  %v2267_v32 = vperm.slane %v2261_v35, %v17651_v36  ;;  %v2556_v22 = vsel %vm840_vm1, %v18850_v0, -inf  ;;  %v18934_v59 = vperm.slane %v2275_v56, %v17651_v36  ;;  %3248 = vmatpush.bf16.msra.mxu0 %v16628_v34 }
 0x461   : > { %v1949_v13 = vpop.permute.xlu0 %1948  ;;  %v1919_v37 = vpop.permute.xlu1 %1918  ;;  %v2273_v24 = vsel %vm22783_vm0, %v2272_v7, %v2223_v26  ;;  %v18938_v23 = vmax.f32 %v2553_v46, %v2556_v22  ;;  %v18942_v38 = vsel %vm840_vm1, %v18854_v6, -inf  ;;  %v2314_v42 = vrot.slane %v2271_v52, 4 }
 0x462   : > { %v2237_v25 = vsel %vm22783_vm0, %v2236_v41, %v1919_v37  ;;  %v2337_v5 = vsel %vm22783_vm0, %v2336_v48, %v1949_v13  ;;  %v2338_v20 = vrot.slane %v1949_v13, 4  ;;  %v2238_v47 = vrot.slane %v1919_v37, 4  ;;  %v16627_v37 = vld [vmem:[%s22745_s1 + $0xa8] sm:$0xff] }
 0x463   : > { %v2243_v21 = vperm.slane %v2237_v25, %v17630_v19  ;;  %v18945_v26 = vperm.slane %v2337_v5, %v17630_v19  ;;  %v2279_v48 = vperm.slane %v2273_v24, %v17651_v36  ;;  %v2310_v6 = vrot.slane %v2267_v32, 4 }
 0x464   : > { %v2239_v2 = vsel %vm22783_vm0, %v18829_v14, %v2238_v47  ;;  %v2339_v14 = vsel %vm22783_vm0, %v18827_v15, %v2338_v20  ;;  %v18982_v20 = vsel %vm840_vm1, %v2211_v40, -inf  ;;  %3249 = vmatpush.bf16.msra.mxu0 %v16627_v37  ;;  %v16626_v47 = vld [vmem:[%s22745_s1 + $0xa0] sm:$0xff] }
 0x465   : > { %v2247_v0 = vperm.slane %v2239_v2, %v17630_v19  ;;  %v2285_v33 = vsel %vm22783_vm0, %v2284_v18, %v2243_v21  ;;  %v2286_v30 = vrot.slane %v2243_v21, 4  ;;  %v2322_v18 = vrot.slane %v18934_v59, 4 }
 0x466   : > { %v2291_v46 = vperm.slane %v2285_v33, %v17651_v36  ;;  %v18964_v15 = vperm.slane %v2339_v14, %v17630_v19  ;;  %v2372_v7 = vrot.slane %v18945_v26, 4  ;;  %v2318_v24 = vrot.slane %v2279_v48, 4 }
 0x467   : > { %v2287_v41 = vsel %vm22783_vm0, %v18817_v31, %v2286_v30  ;;  %v2297_v27 = vsel %vm22783_vm0, %v2296_v44, %v2247_v0  ;;  %v2298_v3 = vrot.slane %v2247_v0, 4  ;;  %v2559_v44 = vmax.f32 %v18899_v51, %v18942_v38 }
 0x468   : > { %v2295_v43 = vperm.slane %v2287_v41, %v17651_v36  ;;  %v2303_v60 = vperm.slane %v2297_v27, %v17651_v36  ;;  %v2308_v17 = vrot.slane %v2291_v46, 4  ;;  %v2311_v25 = vsel %vm22783_vm0, %v2291_v46, %v2310_v6  ;;  %3250 = vmatpush.bf16.msra.mxu0 %v16626_v47 }
 0x469   : > { %v2299_v31 = vsel %vm22783_vm0, %v18822_v61, %v2298_v3  ;;  %v1943_v13 = vpop.permute.xlu0 %1942  ;;  %v2561_v40 = vmax.f32 %v18938_v23, %v18982_v20  ;;  %v2384_v34 = vrot.slane %v18964_v15, 4  ;;  %v2453_v2 = vsel %vm840_vm1, %v2311_v25, 0.0  ;;  %v1967_v30 = vpop.permute.xlu1 %1966  ;;  %v16625_v3 = vld [vmem:[%s22745_s1 + $0x98] sm:$0xff] }
 0x46a   : > { %v18975_v35 = vperm.slane %v2299_v31, %v17651_v36  ;;  %v2309_v56 = vsel %vm22783_vm0, %v2308_v17, %v2267_v32  ;;  %v2312_v29 = vrot.slane %v2295_v43, 4  ;;  %v2315_v63 = vsel %vm22783_vm0, %v2295_v43, %v2314_v42  ;;  %v2590_v32 = vld [vmem:[%s22749_s5] sm:$0xff] }
 0x46b   : > { %v2316_v5 = vrot.slane %v2303_v60, 4  ;;  %v2451_v61 = vsel %vm840_vm1, %v2309_v56, 0.0  ;;  %v2325_v22 = vsel %vm22783_vm0, %v2324_v57, %v1943_v13  ;;  %2609 = vmatpush.msrb.mxu2 %v2590_v32  ;;  %v2531_v0 = vsel %vm840_vm1, %v2309_v56, -inf  ;;  %v16624_v56 = vld [vmem:[%s22745_s1 + $0x90] sm:$0xff] }
 0x46c   : > { %v2313_v21 = vsel %vm22783_vm0, %v2312_v29, %v2271_v52  ;;  %v2533_v33 = vsel %vm840_vm1, %v2311_v25, -inf  ;;  %v19001_v42 = vsel %vm22783_vm0, %v2303_v60, %v2318_v24  ;;  %v2320_v52 = vrot.slane %v18975_v35, 4  ;;  %3251 = vmatpush.bf16.msra.mxu0 %v16625_v3 }
 0x46d   : > { %v2452_v57 = vadd.f32 %v2451_v61, %v18859_v53  ;;  %v2457_v14 = vsel %vm840_vm1, %v2315_v63, 0.0  ;;  %v19007_v46 = vsel %vm22783_vm0, %v2316_v5, %v2279_v48  ;;  %v2455_v6 = vsel %vm840_vm1, %v2313_v21, 0.0 }
 0x46e   : > { %v2326_v41 = vrot.slane %v1943_v13, 4  ;;  %v2331_v27 = vperm.slane %v2325_v22, %v17630_v19  ;;  %v19017_v43 = vmax.f32 %v2528_v4, %v2531_v0  ;;  %v19022_v53 = vmax.f32 %v2530_v49, %v2533_v33 }
 0x46f   : > { %v2349_v48 = vsel %vm22783_vm0, %v2348_v1, %v1967_v30  ;;  %v2350_v60 = vrot.slane %v1967_v30, 4  ;;  %v2454_v4 = vadd.f32 %v2453_v2, %v2452_v57  ;;  %v19045_v25 = vsel %vm840_vm1, %v2313_v21, -inf }
 0x470   : > { %v2327_v17 = vsel %vm22783_vm0, %v18895_v55, %v2326_v41  ;;  %v2373_v31 = vsel %vm22783_vm0, %v2372_v7, %v2331_v27  ;;  %v2374_v13 = vrot.slane %v2331_v27, 4  ;;  %v2355_v58 = vperm.slane %v2349_v48, %v17630_v19  ;;  %3252 = vmatpush.bf16.msra.mxu0 %v16624_v56 }
 0x471   : > { %v2335_v37 = vperm.slane %v2327_v17, %v17630_v19  ;;  %v2379_v12 = vperm.slane %v2373_v31, %v17651_v36  ;;  %v2351_v50 = vsel %vm22783_vm0, %v18871_v39, %v2350_v60  ;;  %v19057_v32 = vsel %vm840_vm1, %v2315_v63, -inf }
 0x472   : > { %v2375_v1 = vsel %vm22783_vm0, %v18945_v26, %v2374_v13  ;;  %v2359_v49 = vperm.slane %v2351_v50, %v17630_v19  ;;  %v2397_v55 = vsel %vm22783_vm0, %v2396_v11, %v2355_v58  ;;  %v2398_v7 = vrot.slane %v2355_v58, 4 }
 0x473   : > { %v2383_v39 = vperm.slane %v2375_v1, %v17651_v36  ;;  %v2385_v29 = vsel %vm22783_vm0, %v2384_v34, %v2335_v37  ;;  %v2422_v26 = vrot.slane %v2379_v12, 4  ;;  %v2403_v11 = vperm.slane %v2397_v55, %v17651_v36  ;;  %v17405_v34 = vld [vmem:[%s22747_s3 + $0x1] ss:$0 sm:$0xff] }
 0x474   : > { %v2391_v5 = vperm.slane %v2385_v29, %v17651_v36  ;;  %v2399_v61 = vsel %vm22783_vm0, %v18890_v16, %v2398_v7  ;;  %v2409_v47 = vsel %vm22783_vm0, %v2408_v10, %v2359_v49  ;;  %v2386_v24 = vrot.slane %v2335_v37, 4 }
 0x475   : > { %v2407_v21 = vperm.slane %v2399_v61, %v17651_v36  ;;  %v2410_v22 = vrot.slane %v2359_v49, 4  ;;  %v2456_v2 = vadd.f32 %v2455_v6, %v2454_v4  ;;  %v2541_v16 = vsel %vm840_vm1, %v19001_v42, -inf  ;;  %v2956_v4 = vpop.f32.mrf.mxu0 }
 0x476   : > { %v2426_v0 = vrot.slane %v2383_v39, 4  ;;  %v2420_v33 = vrot.slane %v2403_v11, 4  ;;  %v2536_v10 = vmax.f32 %v19017_v43, %v19045_v25  ;;  %v2415_v30 = vperm.slane %v2409_v47, %v17651_v36 }
 0x477   : > { %v2411_v63 = vsel %vm22783_vm0, %v18885_v8, %v2410_v22  ;;  %v2424_v57 = vrot.slane %v2407_v21, 4  ;;  %v2538_v41 = vmax.f32 %v19022_v53, %v19057_v32  ;;  %v2430_v27 = vrot.slane %v2391_v5, 4  ;;  %v17406_v8 = vld [vmem:[%s22748_s4 + $0x1] ss:$0 sm:$0xff] }
 0x478   : > { %v2421_v6 = vsel %vm22783_vm0, %v2420_v33, %v2379_v12  ;;  %v2423_v3 = vsel %vm22783_vm0, %v2403_v11, %v2422_v26  ;;  %v2387_v48 = vsel %vm22783_vm0, %v18964_v15, %v2386_v24  ;;  %v2989_v17 = vmul.f32 %v17405_v34, %v2954_v9 }
 0x479   : > { %v2425_v60 = vsel %vm22783_vm0, %v2424_v57, %v2383_v39  ;;  %v2482_v43 = vsel %vm840_vm1, %v2421_v6, 0.0  ;;  %v2458_v31 = vadd.f32 %v2457_v14, %v2456_v2  ;;  %v2419_v53 = vperm.slane %v2411_v63, %v17651_v36 }
 0x47a   : > { %v2427_v13 = vsel %vm22783_vm0, %v2407_v21, %v2426_v0  ;;  %v2483_v58 = vadd.f32 %v2482_v43, %v18923_v45  ;;  %v2428_v37 = vrot.slane %v2415_v30, 4  ;;  %v2484_v15 = vsel %vm840_vm1, %v2423_v3, 0.0 }
 0x47b   : > { %v2562_v12 = vsel %vm840_vm1, %v2421_v6, -inf  ;;  %v2564_v50 = vsel %vm840_vm1, %v2423_v3, -inf  ;;  %v2395_v9 = vperm.slane %v2387_v48, %v17651_v36  ;;  %v2431_v1 = vsel %vm22783_vm0, %v2415_v30, %v2430_v27 }
 0x47c   : > { %v2485_v49 = vadd.f32 %v2484_v15, %v2483_v58  ;;  %v2486_v14 = vsel %vm840_vm1, %v2425_v60, 0.0  ;;  %v2563_v55 = vmax.f32 %v2559_v44, %v2562_v12  ;;  %v2565_v45 = vmax.f32 %v2561_v40, %v2564_v50 }
 0x47d   : > { %v2993_v7 = vadd.f32 %v17406_v8, %v2989_v17  ;;  %v2990_v56 = vmul.f32 %v17405_v34, %v2956_v4  ;;  %v2432_v25 = vrot.slane %v2419_v53, 4  ;;  %v2566_v29 = vsel %vm840_vm1, %v2425_v60, -inf  ;;  %v16623_v4 = vld [vmem:[%s22745_s1 + $0x88] sm:$0xff] }
 0x47e   : > { %v2487_v39 = vadd.f32 %v2486_v14, %v2485_v49  ;;  %v2568_v26 = vsel %vm840_vm1, %v2427_v13, -inf  ;;  %v2429_v61 = vsel %vm22783_vm0, %v2428_v37, %v2391_v5  ;;  %v2488_v11 = vsel %vm840_vm1, %v2427_v13, 0.0  ;;  %v13519_v37 = vld [vmem:[#allocation2 + $0x18] sm:$0xf]  ;;  %v16622_v49 = vld [vmem:[%s22745_s1 + $0x80] sm:$0xff]  ;;  %3253 = vmatpush.bf16.msra.mxu0 %v16623_v4 }
 0x47f   : > { %v2995_v47 = vpack.c.bf16 %v2993_v7, %v2993_v7  ;;  %v2994_v32 = vadd.f32 %v17406_v8, %v2990_v56  ;;  %v2434_v51 = vrot.slane %v2395_v9, 4  ;;  %v2572_v44 = vsel %vm840_vm1, %v2431_v1, -inf  ;;  %v16591_v4 = vld [vmem:[%s22746_s2 + $0x34] sm:$0xf] }
 0x480   : > { %v2489_v38 = vadd.f32 %v2488_v11, %v2487_v39  ;;  %v2321_v23 = vsel %vm22783_vm0, %v2320_v52, %v18934_v59  ;;  %v2567_v20 = vmax.f32 %v2563_v55, %v2566_v29  ;;  %v2569_v40 = vmax.f32 %v2565_v45, %v2568_v26  ;;  %v16606_v11 = vld [vmem:[%s22746_s2 + $0xac] sm:$0xf] }
 0x481   : > { %2997 = vst [vmem:[#allocation2 + $0x1c] sm:$0xf] %v2995_v47  ;;  %v2996_v24 = vpack.c.bf16 %v2994_v32, %v2994_v32  ;;  %v2459_v5 = vsel %vm840_vm1, %v19007_v46, 0.0  ;;  %v2323_v21 = vsel %vm22783_vm0, %v18975_v35, %v2322_v18  ;;  %v2433_v22 = vsel %vm22783_vm0, %v2432_v25, %v2395_v9  ;;  %v16610_v25 = vld [vmem:[#allocation2 + $0x20] sm:$0xf0] }
 0x482   : > { %v2460_v34 = vadd.f32 %v2459_v5, %v2458_v31  ;;  %v2490_v2 = vsel %vm840_vm1, %v2429_v61, 0.0  ;;  %v2539_v52 = vsel %vm840_vm1, %v19007_v46, -inf  ;;  %v2542_v33 = vmax.f32 %v2538_v41, %v2541_v16  ;;  %3254 = vmatpush.bf16.msra.mxu0 %v16622_v49  ;;  %v13437_v49 = vld [vmem:[%s22746_s2 + $0x24] sm:$0xf0] }
 0x483   : > { %2998 = vst [vmem:[#allocation2 + $0x28] sm:$0xf] %v2996_v24  ;;  %v2491_v0 = vadd.f32 %v2490_v2, %v2489_v38  ;;  %v2435_v63 = vsel %vm22783_vm0, %v2419_v53, %v2434_v51  ;;  %v2461_v30 = vsel %vm840_vm1, %v19001_v42, 0.0  ;;  %v17480_v59 = vmov 16.0   ;;  %v13509_v51 = vld [vmem:[%s22746_s2 + $0xb4] sm:$0xf0] }
 0x484   : > { %17441 = vrcp.f32 %v17480_v59  ;;  %v2540_v57 = vmax.f32 %v2536_v10, %v2539_v52  ;;  %v2543_v18 = vsel %vm840_vm1, %v2321_v23, -inf  ;;  %v2545_v35 = vsel %vm840_vm1, %v2323_v21, -inf  ;;  %v16603_v38 = vld [vmem:[%s22746_s2 + $0x94] sm:$0xf]  ;;  %v16612_v2 = vld [vmem:[#allocation2 + $0x20] sm:$0xf] }
 0x485   : > { %v2570_v27 = vsel %vm840_vm1, %v2429_v61, -inf  ;;  %v2573_v6 = vmax.f32 %v2569_v40, %v2572_v44  ;;  %v2492_v3 = vsel %vm840_vm1, %v2431_v1, 0.0  ;;  %v2546_v46 = vmax.f32 %v2542_v33, %v2545_v35  ;;  %v16600_v59 = vld [vmem:[%s22746_s2 + $0x7c] sm:$0xf] }
 0x486   : > { %v2544_v48 = vmax.f32 %v2540_v57, %v2543_v18  ;;  %v2571_v16 = vmax.f32 %v2567_v20, %v2570_v27  ;;  %v2462_v41 = vadd.f32 %v2461_v30, %v2460_v34  ;;  %v2493_v60 = vadd.f32 %v2492_v3, %v2491_v0  ;;  %v13497_v20 = vld [vmem:[%s22746_s2 + $0x9c] sm:$0xf0]  ;;  %v13533_v0 = vld [vmem:[#allocation2 + $0x28] sm:$0xf0]  ;;  %v16597_v3 = vld [vmem:[%s22746_s2 + $0x64] sm:$0xf] }
 0x487   : > { %v2574_v43 = vsel %vm840_vm1, %v2433_v22, -inf  ;;  %v2576_v42 = vsel %vm840_vm1, %v2435_v63, -inf  ;;  %v2463_v58 = vsel %vm840_vm1, %v2321_v23, 0.0  ;;  %v2494_v9 = vsel %vm840_vm1, %v2433_v22, 0.0 }
 0x488   : > { %v16609_v17 = vld [vmem:[#allocation2 + $0x1c] sm:$0xf]  ;;  %v2547_v10 = vmax.f32 %v2544_v48, %v2546_v46  ;;  %v2575_v8 = vmax.f32 %v2571_v16, %v2574_v43  ;;  %v2577_v31 = vmax.f32 %v2573_v6, %v2576_v42  ;;  %v2464_v55 = vadd.f32 %v2463_v58, %v2462_v41  ;;  %v13473_v48 = vld [vmem:[%s22746_s2 + $0x6c] sm:$0xf0]  ;;  %v16594_v43 = vld [vmem:[%s22746_s2 + $0x4c] sm:$0xf] }
 0x489   : > { %v13527_v53 = vld [vmem:[#allocation2 + $0x1c] sm:$0xf]  ;;  %v2495_v45 = vadd.f32 %v2494_v9, %v2493_v60  ;;  %v13520_v61 = vor.u32 %v16610_v25, %v13519_v37  ;;  %v13512_v23 = vor.u32 %v16606_v11, %v13509_v51  ;;  %v2465_v40 = vsel %vm840_vm1, %v2323_v21, 0.0  ;;  %v13485_v21 = vld [vmem:[%s22746_s2 + $0x84] sm:$0xf0]  ;;  %v16620_v11 = vld [vmem:[%s22745_s1 + $0x70] sm:$0xff] }
 0x48a   : > { %v13531_v13 = vld [vmem:[#allocation2 + $0x1c] sm:$0xf]  ;;  %v17442_v15 = vpop.eup %17441  ;;  %v13521_v12 = vld [vmem:[#allocation2 + $0x24] sm:$0xf0]  ;;  %v2578_v1 = vmax.f32 %v2575_v8, %v2577_v31  ;;  %v2579_v56 = vsel %vm840_vm1, %v2547_v10, -inf  ;;  %v2496_v24 = vsel %vm840_vm1, %v2435_v63, 0.0  ;;  %v2466_v22 = vadd.f32 %v2465_v40, %v2464_v55 }
 0x48b   : > { %v16613_v50 = vld [vmem:[#allocation2 + $0x24] sm:$0xf0]  ;;  %v2499_v7 = vmul.f32 16.0, %v17442_v15  ;;  %v13524_v26 = vor.u32 %v16609_v17, %v13521_v12  ;;  %3013 = vrot.lane.b32.xlu2 %v13520_v61, %s22777_s11  ;;  %v2497_v34 = vadd.f32 %v2496_v24, %v2495_v45  ;;  %vm2503_vm2 = vweird.f32 %v17442_v15  ;;  %2959 = vmatpush.bf16.msrb.mxu1 %v13512_v23  ;;  %v13461_v10 = vld [vmem:[%s22746_s2 + $0x54] sm:$0xf0]  ;;  %v2615_v8 = vld [vmem:[%s22750_s6] sm:$0xff] }
 0x48c   : > { %v16611_v14 = vld [vmem:[#allocation2 + $0x24] sm:$0xf0]  ;;  %v2580_v39 = vsel %vm840_vm1, %v2578_v1, -inf  ;;  %v13532_v29 = vor.u32 %v16613_v50, %v13531_v13  ;;  %v13500_v52 = vor.u32 %v16603_v38, %v13497_v20  ;;  %v13536_v57 = vor.u32 %v16612_v2, %v13533_v0  ;;  %2634 = vmatpush.msra.mxu2 %v2615_v8  ;;  %v13449_v37 = vld [vmem:[%s22746_s2 + $0x3c] sm:$0xf0]  ;;  %v16637_v61 = vld [vmem:[%s22745_s1 + $0xf8] sm:$0xff] }
 0x48d   : > { %v2500_v47 = vsub.f32 1.0, %v2499_v7  ;;  %v2581_v32 = vmax.f32 %v2579_v56, %v2580_v39  ;;  %v13528_v44 = vor.u32 %v16611_v14, %v13527_v53  ;;  %3015 = vrot.lane.b32.xlu1 %v13524_v26, %s22777_s11  ;;  %v13488_v27 = vor.u32 %v16600_v59, %v13485_v21  ;;  %v16588_v1 = vld [vmem:[%s22746_s2 + $0x1c] sm:$0xf]  ;;  %v16585_v56 = vld [vmem:[%s22746_s2 + $0x4] sm:$0xf]  ;;  %v16619_v23 = vld [vmem:[%s22745_s1 + $0x68] sm:$0xff] }
 0x48e   : > { %3034 = vrot.lane.b32.xlu0 %v13532_v29, %s17465_s14  ;;  %v13476_v60 = vor.u32 %v16597_v3, %v13473_v48  ;;  %v13464_v53 = vor.u32 %v16594_v43, %v13461_v10  ;;  %v13452_v12 = vor.u32 %v16591_v4, %v13449_v37  ;;  %v13440_v55 = vor.u32 %v16588_v1, %v13437_v49  ;;  %v13425_v25 = vld [vmem:[%s22746_s2 + $0xc] sm:$0xf0]  ;;  %v16621_v39 = vld [vmem:[%s22745_s1 + $0x78] sm:$0xff]  ;;  %v16634_v51 = vld [vmem:[%s22745_s1 + $0xe0] sm:$0xff] }
 0x48f   : > { %v2501_v5 = vmul.f32 %v17442_v15, %v2500_v47  ;;  %v2582_v30 = vrot.slane %v2581_v32, 4  ;;  %3255 = vmatmul.bf16.vlgmr.msra.gmra.mxu0 %v13528_v44  ;;  %2960 = vmatpush.bf16.msrb.mxu1 %v13500_v52  ;;  %v13428_v26 = vor.u32 %v16585_v56, %v13425_v25  ;;  %v16636_v47 = vld [vmem:[%s22745_s1 + $0xf0] sm:$0xff]  ;;  %v16633_v38 = vld [vmem:[%s22745_s1 + $0xd8] sm:$0xff]  ;;  %v16631_v20 = vld [vmem:[%s22745_s1 + $0xc8] sm:$0xff] }
 0x490   : > { %v16632_v44 = vld [vmem:[%s22745_s1 + $0xd0] sm:$0xff]  ;;  %v16618_v40 = vld [vmem:[%s22745_s1 + $0x60] sm:$0xff]  ;;  %v16608_v21 = vld [vmem:[%s22746_s2 + $0xb8] sm:$0xf0] }
 0x491   : > { %v2502_v33 = vadd.f32 %v17442_v15, %v2501_v5  ;;  %v2583_v6 = vmax.f32 %v2581_v32, %v2582_v30  ;;  %v16635_v32 = vld [vmem:[%s22745_s1 + $0xe8] sm:$0xff]  ;;  %v16630_v24 = vld [vmem:[%s22745_s1 + $0xc0] sm:$0xff]  ;;  %v16617_v5 = vld [vmem:[%s22745_s1 + $0x58] sm:$0xff] }
 0x492   : > { %v16616_v52 = vld [vmem:[%s22745_s1 + $0x50] sm:$0xff]  ;;  %v16614_v30 = vld [vmem:[%s22745_s1 + $0x40] sm:$0xff]  ;;  %v16596_v8 = vld [vmem:[%s22746_s2 + $0x58] sm:$0xf0] }
 0x493   : > { %v2504_v63 = vsel %vm2503_vm2, %v17442_v15, %v2502_v33  ;;  %3036 = vrot.lane.b32.xlu2 %v13536_v57, %s17465_s14  ;;  %2961 = vmatpush.bf16.msrb.mxu1 %v13488_v27  ;;  %v2584_v17 = vrot.slane %v2583_v6, 2  ;;  %v16615_v33 = vld [vmem:[%s22745_s1 + $0x48] sm:$0xff]  ;;  %v13515_v59 = vld [vmem:[%s22746_s2 + $0xb0] sm:$0xf]  ;;  %v16605_v3 = vld [vmem:[%s22746_s2 + $0xa0] sm:$0xf0] }
 0x494   : > { %v2505_v18 = vmul.f32 %v2504_v63, %v2466_v22  ;;  %v2506_v35 = vmul.f32 %v2504_v63, %v2497_v34  ;;  %v13491_v48 = vld [vmem:[%s22746_s2 + $0x80] sm:$0xf]  ;;  %v16599_v43 = vld [vmem:[%s22746_s2 + $0x70] sm:$0xf0]  ;;  %v13467_v10 = vld [vmem:[%s22746_s2 + $0x50] sm:$0xf] }
 0x495   : > { %v2585_v58 = vmax.f32 %v2583_v6, %v2584_v17  ;;  %v13503_v6 = vld [vmem:[%s22746_s2 + $0x98] sm:$0xf]  ;;  %v16660_v1 = vld [vmem:[%s22745_s1 + $0x1b0] sm:$0xff]  ;;  %v16651_v56 = vld [vmem:[%s22745_s1 + $0x168] sm:$0xff]  ;;  %vm2777_vm2 = vcmask 916480  }
 0x496   : > { %v2507_v46 = vsel %vm840_vm1, %v2505_v18, 0.0  ;;  %v2508_v16 = vsel %vm840_vm1, %v2506_v35, 0.0  ;;  %v16661_v37 = vld [vmem:[%s22745_s1 + $0x1b8] sm:$0xff]  ;;  %v16652_v49 = vld [vmem:[%s22745_s1 + $0x170] sm:$0xff] }
 0x497   : > { %v2509_v41 = vadd.f32 %v2508_v16, %v2507_v46  ;;  %2962 = vmatpush.bf16.msrb.mxu1 %v13476_v60  ;;  %v2586_v9 = vrot.slane %v2585_v58, 1  ;;  %v13504_v46 = vor.u32 %v16605_v3, %v13503_v6  ;;  %v16602_v16 = vld [vmem:[%s22746_s2 + $0x88] sm:$0xf0]  ;;  %v13479_v60 = vld [vmem:[%s22746_s2 + $0x68] sm:$0xf]  ;;  %3582 = vmatpush.bf16.msrb.mxu0 %v16661_v37  ;;  %v16654_v3 = vld [vmem:[%s22745_s1 + $0x180] sm:$0xff] }
 0x498   : > { %v3287_v6 = vld [vmem:[#allocation2 + $0x10] sm:$0x8] }
 0x499   : > { %v2510_v42 = vrot.slane %v2509_v41, 4  ;;  %v2587_v7 = vmax.f32 %v2585_v58, %v2586_v9 }
 0x49b   : > { %v2511_v31 = vadd.f32 %v2510_v42, %v2509_v41  ;;  %2963 = vmatpush.bf16.msrb.mxu1 %v13464_v53  ;;  %v13492_v41 = vor.u32 %v16602_v16, %v13491_v48  ;;  %v13480_v42 = vor.u32 %v16599_v43, %v13479_v60  ;;  %v13468_v53 = vor.u32 %v16596_v8, %v13467_v10  ;;  %v3290_v60 = vld [vmem:[#allocation2 + $0x34] sm:$0x1] }
 0x49c   : > { %3583 = vmatpush.bf16.msrb.mxu0 %v16660_v1  ;;  %v16640_v43 = vld [vmem:[%s22745_s1 + $0x110] sm:$0xff]  ;;  %v3309_v10 = vunpack.c.l.b16 %v3290_v60  ;;  %v17413_v60 = vld [vmem:[%s22747_s3 + $0x3] ss:$0 sm:$0xff] }
 0x49d   : > { %v2512_v13 = vrot.slane %v2511_v31, 2 }
 0x49f   : > { %v2513_v15 = vadd.f32 %v2512_v13, %v2511_v31  ;;  %2964 = vmatpush.bf16.msrb.mxu1 %v13452_v12  ;;  %v13455_v31 = vld [vmem:[%s22746_s2 + $0x38] sm:$0xf]  ;;  %v16593_v13 = vld [vmem:[%s22746_s2 + $0x40] sm:$0xf0]  ;;  %v16590_v12 = vld [vmem:[%s22746_s2 + $0x28] sm:$0xf0] }
 0x4a0   : > { %v13456_v4 = vor.u32 %v16593_v13, %v13455_v31  ;;  %v16639_v31 = vld [vmem:[%s22745_s1 + $0x108] sm:$0xff] }
 0x4a1   : > { %v2514_v50 = vrot.slane %v2513_v15, 1 }
 0x4a3   : > { %v2515_v14 = vadd.f32 %v2514_v50, %v2513_v15  ;;  %2965 = vmatpush.bf16.msrb.mxu1 %v13440_v55  ;;  %v13443_v15 = vld [vmem:[%s22746_s2 + $0x20] sm:$0xf]  ;;  %v16653_v50 = vld [vmem:[%s22745_s1 + $0x178] sm:$0xff]  ;;  %v13431_v55 = vld [vmem:[%s22746_s2 + $0x8] sm:$0xf] }
 0x4a5   : > { %v2516_v45 = vmul.f32 %v2515_v14, %v2504_v63  ;;  %v13516_v63 = vor.u32 %v16608_v21, %v13515_v59  ;;  %v13444_v14 = vor.u32 %v16590_v12, %v13443_v15  ;;  %v16642_v21 = vld [vmem:[%s22745_s1 + $0x120] sm:$0xff] }
 0x4a6   : > { %v16638_v15 = vld [vmem:[%s22745_s1 + $0x100] sm:$0xff] }
 0x4a7   : > { %v2589_v29 = vsel %vm2588_vm15, %v2516_v45, %v2587_v7  ;;  %2966 = vmatpush.bf16.msrb.mxu1 %v13428_v26  ;;  %2973 = vmatpush.bf16.msrb.mxu3 %v13516_v63  ;;  %v16587_v45 = vld [vmem:[%s22746_s2 + $0x10] sm:$0xf0]  ;;  %v16659_v7 = vld [vmem:[%s22745_s1 + $0x1a8] sm:$0xff] }
 0x4a8   : > { %13418 = vmatmul.msk.f32.vlgmr.msrb.gmra.mxu2 %vm840_vm1, %v2589_v29  ;;  %v16645_v29 = vld [vmem:[%s22745_s1 + $0x138] sm:$0xff]  ;;  %3584 = vmatpush.bf16.msrb.mxu0 %v16659_v7  ;;  %v16655_v63 = vld [vmem:[%s22745_s1 + $0x188] sm:$0xff] }
 0x4a9   : > { %3233 = vmatpush.bf16.msrb.mxu2 %v16621_v39  ;;  %v13432_v39 = vor.u32 %v16587_v45, %v13431_v55 }
 0x4aa   : > { %2967 = vmatmul.bf16.vlgmr.msrb.gmra.mxu1 %v18659_v62 }
 0x4ab   : > { %3261 = vmatpush.bf16.msra.mxu1 %v16637_v61  ;;  %2974 = vmatpush.bf16.msrb.mxu3 %v13504_v46  ;;  %v16646_v46 = vld [vmem:[%s22745_s1 + $0x140] sm:$0xff] }
 0x4ad   : > { %3234 = vmatpush.bf16.msrb.mxu2 %v16620_v11  ;;  %v16658_v11 = vld [vmem:[%s22745_s1 + $0x1a0] sm:$0xff] }
 0x4ae   : > { %3585 = vmatpush.bf16.msrb.mxu0 %v16658_v11 }
 0x4af   : > { %3262 = vmatpush.bf16.msra.mxu1 %v16636_v47  ;;  %2975 = vmatpush.bf16.msrb.mxu3 %v13492_v41  ;;  %v3294_v41 = vunpack.c.l.b16 %v3287_v6  ;;  %v16675_v6 = vld [vmem:[%s22745_s1 + $0x228] sm:$0xff] }
 0x4b1   : > { %3235 = vmatpush.bf16.msrb.mxu2 %v16619_v23  ;;  %v16644_v23 = vld [vmem:[%s22745_s1 + $0x130] sm:$0xff] }
 0x4b3   : > { %3263 = vmatpush.bf16.msra.mxu1 %v16635_v32  ;;  %2976 = vmatpush.bf16.msrb.mxu3 %v13480_v42  ;;  %v17409_v32 = vld [vmem:[%s22747_s3 + $0x2] ss:$0 sm:$0xff] }
 0x4b5   : > { %3236 = vmatpush.bf16.msrb.mxu2 %v16618_v40 }
 0x4b7   : > { %3264 = vmatpush.bf16.msra.mxu1 %v16634_v51  ;;  %2977 = vmatpush.bf16.msrb.mxu3 %v13468_v53  ;;  %v16650_v51 = vld [vmem:[%s22745_s1 + $0x160] sm:$0xff]  ;;  %v3310_v53 = vpack.c.b16 %v3309_v10, %v3309_v10  ;;  %v16673_v10 = vld [vmem:[%s22745_s1 + $0x218] sm:$0xff] }
 0x4b9   : > { %3237 = vmatpush.bf16.msrb.mxu2 %v16617_v5 }
 0x4bb   : > { %3265 = vmatpush.bf16.msra.mxu1 %v16633_v38  ;;  %2978 = vmatpush.bf16.msrb.mxu3 %v13456_v4 }
 0x4bd   : > { %3238 = vmatpush.bf16.msrb.mxu2 %v16616_v52 }
 0x4bf   : > { %3266 = vmatpush.bf16.msra.mxu1 %v16632_v44  ;;  %2979 = vmatpush.bf16.msrb.mxu3 %v13444_v14  ;;  %v17410_v44 = vld [vmem:[%s22748_s4 + $0x2] ss:$0 sm:$0xff] }
 0x4c1   : > { %3239 = vmatpush.bf16.msrb.mxu2 %v16615_v33  ;;  %v16648_v33 = vld [vmem:[%s22745_s1 + $0x150] sm:$0xff] }
 0x4c3   : > { %3267 = vmatpush.bf16.msra.mxu1 %v16631_v20  ;;  %2980 = vmatpush.bf16.msrb.mxu3 %v13432_v39  ;;  %v16657_v20 = vld [vmem:[%s22745_s1 + $0x198] sm:$0xff] }
 0x4c4   : > { %3586 = vmatpush.bf16.msrb.mxu0 %v16657_v20 }
 0x4c5   : > { %3240 = vmatpush.bf16.msrb.mxu2 %v16614_v30 }
 0x4c6   : > { %2981 = vmatmul.bf16.vlgmr.msrb.gmra.mxu3 %v18659_v62 }
 0x4c7   : > { %3268 = vmatpush.bf16.msra.mxu1 %v16630_v24  ;;  %3554 = vmatpush.bf16.msra.mxu3 %v16645_v29  ;;  %v16649_v24 = vld [vmem:[%s22745_s1 + $0x158] sm:$0xff] }
 0x4cb   : > { %3555 = vmatpush.bf16.msra.mxu3 %v16644_v23 }
 0x4e5   : > { %v3014_v22 = vpop.permute.xlu2 %3013 }
 0x4ed   : > { %v3037_v34 = vpop.permute.xlu2 %3036 }
 0x4ff   : > { %v3016_v35 = vpop.permute.xlu1 %3015 }
 0x500   : > { %v3035_v2 = vpop.permute.xlu0 %3034  ;;  %v3018_v27 = vsel %vm840_vm1, %v3014_v22, %v3016_v35  ;;  %v16643_v22 = vld [vmem:[%s22745_s1 + $0x128] sm:$0xff] }
 0x501   : > { %v3039_v0 = vsel %vm2779_vm3, %v3035_v2, %v3037_v34  ;;  %3556 = vmatpush.bf16.msra.mxu3 %v16643_v22 }
 0x502   : > { %3269 = vmatmul.bf16.vlgmr.msra.gmra.mxu1 %v3039_v0  ;;  %v16656_v0 = vld [vmem:[%s22745_s1 + $0x190] sm:$0xff] }
 0x503   : > { %3587 = vmatpush.bf16.msrb.mxu0 %v16656_v0 }
 0x505   : > { %3557 = vmatpush.bf16.msra.mxu3 %v16642_v21 }
 0x507   : > { %3588 = vmatpush.bf16.msrb.mxu0 %v16655_v63 }
 0x50b   : > { %3589 = vmatpush.bf16.msrb.mxu0 %v16654_v3 }
 0x50c   : > { %v3256_v25 = vpop.f32.mrf.mxu0 }
 0x514   : > { %v3258_v34 = vpop.f32.mrf.mxu0 }
 0x527   : > { %v19271_v17 = vpop.f32.mrf.mxu1 }
 0x52b   : > { %v2611_v57 = vpop.f32.mrf.mxu2 }
 0x52c   : > { %v2614_v18 = vmax.f32 %v2611_v57, 0.0 }
 0x52e   : > { %13419 = vmatmul.msk.f32.vlgmr.msra.gmra.mxu2 %vm840_vm1, %v2614_v18  ;;  %v16647_v18 = vld [vmem:[%s22745_s1 + $0x148] sm:$0xff] }
 0x52f   : > { %v19285_v58 = vpop.f32.mrf.mxu1  ;;  %3568 = vmatpush.bf16.msra.mxu2 %v16653_v50 }
 0x533   : > { %3569 = vmatpush.bf16.msra.mxu2 %v16652_v49  ;;  %v3313_v49 = vrot.slane %v3310_v53, 5 }
 0x536   : > { %3241 = vmatmul.bf16.vlgmr.msrb.gmra.mxu2 %v3018_v27  ;;  %v16641_v27 = vld [vmem:[%s22745_s1 + $0x118] sm:$0xff] }
 0x537   : > { %3570 = vmatpush.bf16.msra.mxu2 %v16651_v56  ;;  %3558 = vmatpush.bf16.msra.mxu3 %v16641_v27  ;;  %v16676_v27 = vld [vmem:[%s22745_s1 + $0x230] sm:$0xff] }
 0x53b   : > { %3571 = vmatpush.bf16.msra.mxu2 %v16650_v51  ;;  %3559 = vmatpush.bf16.msra.mxu3 %v16640_v43 }
 0x53f   : > { %3572 = vmatpush.bf16.msra.mxu2 %v16649_v24  ;;  %3560 = vmatpush.bf16.msra.mxu3 %v16639_v31  ;;  %v17407_v31 = vld [vmem:[%s22747_s3 + $0x5] ss:$0 sm:$0xff] }
 0x543   : > { %3573 = vmatpush.bf16.msra.mxu2 %v16648_v33  ;;  %3561 = vmatpush.bf16.msra.mxu3 %v16638_v15 }
 0x547   : > { %3574 = vmatpush.bf16.msra.mxu2 %v16647_v18  ;;  %v16677_v18 = vld [vmem:[%s22745_s1 + $0x238] sm:$0xff] }
 0x548   : > { %4535 = vmatpush.bf16.msrb.mxu3 %v16677_v18 }
 0x54b   : > { %3575 = vmatpush.bf16.msra.mxu2 %v16646_v46 }
 0x54c   : > { %4536 = vmatpush.bf16.msrb.mxu3 %v16676_v27 }
 0x550   : > { %4537 = vmatpush.bf16.msrb.mxu3 %v16675_v6 }
 0x57f   : > { %v3270_v26 = vpop.f32.mrf.mxu1 }
 0x587   : > { %v3272_v30 = vpop.f32.mrf.mxu1 }
 0x5b1   : > { %v19299_v9 = vpop.f32.mrf.mxu2 }
 0x5b9   : > { %v3242_v61 = vpop.f32.mrf.mxu2 }
 0x5ba   : > { %v3257_v47 = vadd.f32 %v3256_v25, %v3242_v61 }
 0x5bc   : > { %v3271_v38 = vadd.f32 %v3270_v26, %v3257_v47 }
 0x5be   : > { %v3277_v40 = vmul.f32 %v17409_v32, %v3271_v38 }
 0x5c0   : > { %v3281_v5 = vadd.f32 %v17410_v44, %v3277_v40 }
 0x5c1   : > { %v3244_v2 = vpop.f32.mrf.mxu2 }
 0x5c2   : > { %v3283_v52 = vpack.c.bf16 %v3281_v5, %v3281_v5  ;;  %v3259_v62 = vadd.f32 %v3258_v34, %v3244_v2 }
 0x5c4   : > { %3285 = vst [vmem:[#allocation2 + $0x1c] sm:$0xf] %v3283_v52  ;;  %v3273_v59 = vadd.f32 %v3272_v30, %v3259_v62 }
 0x5c6   : > { %v3278_v57 = vmul.f32 %v17409_v32, %v3273_v59 }
 0x5c8   : > { %v3282_v35 = vadd.f32 %v17410_v44, %v3278_v57  ;;  %v19383_v57 = vpop.f32.mrf.mxu3 }
 0x5ca   : > { %v3284_v48 = vpack.c.bf16 %v3282_v35, %v3282_v35 }
 0x5cb   : > { %v3288_v16 = vld [vmem:[#allocation2 + $0x1c] sm:$0xf] }
 0x5cc   : > { %3286 = vst [vmem:[#allocation2 + $0x28] sm:$0xf] %v3284_v48  ;;  %v3295_v42 = vunpack.c.l.b16 %v3288_v16  ;;  %v16674_v16 = vld [vmem:[%s22745_s1 + $0x220] sm:$0xff] }
 0x5cd   : > { %4538 = vmatpush.bf16.msrb.mxu3 %v16674_v16 }
 0x5ce   : > { %v3297_v8 = vpack.c.b16 %v3295_v42, %v3294_v41 }
 0x5d0   : > { %v3365_v4 = vshrl.u32 %v3297_v8, 16  ;;  %v3368_v37 = vshll.u32 %v3297_v8, 16  ;;  %v19388_v35 = vpop.f32.mrf.mxu3 }
 0x5d1   : > { %4539 = vmatpush.bf16.msrb.mxu3 %v16673_v10 }
 0x5d2   : > { %v3367_v14 = vrot.slane %v3365_v4, 3  ;;  %v3370_v55 = vrot.slane %v3368_v37, 4  ;;  %v16672_v37 = vld [vmem:[%s22745_s1 + $0x210] sm:$0xff] }
 0x5d3   : > { %v3289_v13 = vld [vmem:[#allocation2 + $0x28] sm:$0xf] }
 0x5d4   : > { %v3296_v12 = vunpack.c.l.b16 %v3289_v13  ;;  %v3371_v44 = vor.u32 %v3370_v55, %v3367_v14  ;;  %v16671_v55 = vld [vmem:[%s22745_s1 + $0x208] sm:$0xff] }
 0x5d5   : > { %4540 = vmatpush.bf16.msrb.mxu3 %v16672_v37 }
 0x5d6   : > { %v3298_v50 = vpack.c.b16 %v3296_v12, %v3296_v12  ;;  %v3299_v1 = vpack.c.b16 %v3296_v12, %v3295_v42  ;;  %v17414_v42 = vld [vmem:[%s22748_s4 + $0x3] ss:$0 sm:$0xff] }
 0x5d8   : > { %v3373_v45 = vshrl.u32 %v3298_v50, 16  ;;  %v3376_v7 = vshll.u32 %v3298_v50, 16  ;;  %v3312_v56 = vrot.slane %v3299_v1, 5  ;;  %v3301_v25 = vshrl.u32 %v3299_v1, 16 }
 0x5d9   : > { %v3304_v39 = vshll.u32 %v3299_v1, 16  ;;  %v4657_v1 = vmul.f32 %v17407_v31, %v19271_v17  ;;  %4541 = vmatpush.bf16.msrb.mxu3 %v16671_v55  ;;  %v16670_v17 = vld [vmem:[%s22745_s1 + $0x200] sm:$0xff] }
 0x5da   : > { %v3375_v29 = vrot.slane %v3373_v45, 3  ;;  %v3378_v26 = vrot.slane %v3376_v7, 4  ;;  %v3314_v61 = vsel %vm22779_vm4, %v3312_v56, %v3313_v49  ;;  %v3391_v11 = vshrl.u32 %v3312_v56, 16  ;;  %v17408_v49 = vld [vmem:[%s22748_s4 + $0x5] ss:$0 sm:$0xff] }
 0x5db   : > { %v3394_v47 = vshll.u32 %v3312_v56, 16  ;;  %v3399_v32 = vshrl.u32 %v3314_v61, 16  ;;  %v3402_v51 = vshll.u32 %v3314_v61, 16  ;;  %v3303_v38 = vrot.slane %v3301_v25, 4  ;;  %v3614_v7 = vld [vmem:[#allocation2 + $0x10] sm:$0xcc] }
 0x5dc   : > { %v3379_v23 = vor.u32 %v3378_v26, %v3375_v29  ;;  %v3393_v20 = vrot.slane %v3391_v11, 3  ;;  %v3306_v40 = vrot.slane %v3304_v39, 5  ;;  %v3608_v56 = vld [vmem:[#allocation2 + $0xc] sm:$0xcc]  ;;  %v4661_v25 = vadd.f32 %v17408_v49, %v4657_v1 }
 0x5dd   : > { %v3396_v24 = vrot.slane %v3394_v47, 4  ;;  %v3401_v5 = vrot.slane %v3399_v32, 3  ;;  %v3404_v22 = vrot.slane %v3402_v51, 4  ;;  %v3611_v29 = vld [vmem:[#allocation2 + $0x10] sm:$0xc]  ;;  %v3662_v61 = vunpack.c.h.b16 %v3614_v7  ;;  %4542 = vmatpush.bf16.msrb.mxu3 %v16670_v17 }
 0x5de   : > { %v3380_v34 = vsel %vm22782_vm5, %v3371_v44, %v3379_v23  ;;  %v3307_v2 = vor.u32 %v3306_v40, %v3303_v38  ;;  %v3630_v11 = vunpack.c.h.b16 %v3608_v56  ;;  %v3629_v47 = vunpack.c.l.b16 %v3608_v56 }
 0x5df   : > { %3562 = vmatmul.bf16.vlgmr.msra.gmra.mxu3 %v3380_v34  ;;  %v3397_v0 = vor.u32 %v3396_v24, %v3393_v20  ;;  %v3405_v52 = vor.u32 %v3404_v22, %v3401_v5  ;;  %v4658_v32 = vmul.f32 %v17407_v31, %v19285_v58  ;;  %v3653_v23 = vunpack.c.l.b16 %v3611_v29 }
 0x5e0   : > { %v3382_v62 = vshrl.u32 %v3307_v2, 16  ;;  %v3385_v33 = vshll.u32 %v3307_v2, 16  ;;  %v4663_v20 = vpack.c.bf16 %v4661_v25, %v4661_v25  ;;  %vm5160_vm4 = vsmask.f32 2304 }
 0x5e1   : > { %v3406_v30 = vsel %vm22782_vm5, %v3397_v0, %v3405_v52  ;;  %vm2761_vm5 = vcmask 326656  }
 0x5e2   : > { %3590 = vmatmul.bf16.vlgmr.msrb.gmra.mxu0 %v3406_v30  ;;  %v3384_v59 = vrot.slane %v3382_v62, 3  ;;  %v3387_v21 = vrot.slane %v3385_v33, 4  ;;  %v4662_v33 = vadd.f32 %v17408_v49, %v4658_v32 }
 0x5e4   : > { %v3388_v63 = vor.u32 %v3387_v21, %v3384_v59  ;;  %v3661_v59 = vunpack.c.l.b16 %v3614_v7 }
 0x5e6   : > { %3576 = vmatmul.bf16.vlgmr.msra.gmra.mxu2 %v3388_v63  ;;  %v4664_v63 = vpack.c.bf16 %v4662_v33, %v4662_v33  ;;  %v3621_v33 = vld [vmem:[#allocation2 + $0x30] sm:$0x33] }
 0x65f   : > { %v3591_v48 = vpop.f32.mrf.mxu0 }
 0x662   : > { %v3563_v3 = vpop.f32.mrf.mxu3 }
 0x667   : > { %v3593_v50 = vpop.f32.mrf.mxu0 }
 0x669   : > { %v3577_v46 = vpop.f32.mrf.mxu2 }
 0x66a   : > { %v3578_v41 = vadd.f32 %v3577_v46, %v3563_v3  ;;  %v3565_v13 = vpop.f32.mrf.mxu3 }
 0x66c   : > { %v3592_v43 = vadd.f32 %v3591_v48, %v3578_v41 }
 0x66e   : > { %v3598_v8 = vmul.f32 %v17413_v60, %v3592_v43 }
 0x670   : > { %v3602_v53 = vadd.f32 %v17414_v42, %v3598_v8 }
 0x671   : > { %v3579_v4 = vpop.f32.mrf.mxu2 }
 0x672   : > { %v3604_v15 = vpack.c.bf16 %v3602_v53, %v3602_v53  ;;  %v3580_v12 = vadd.f32 %v3579_v4, %v3565_v13 }
 0x674   : > { %3606 = vst [vmem:[#allocation2 + $0x1c] sm:$0xf] %v3604_v15  ;;  %v3594_v14 = vadd.f32 %v3593_v50, %v3580_v12 }
 0x676   : > { %v3599_v45 = vmul.f32 %v17413_v60, %v3594_v14 }
 0x678   : > { %v3603_v39 = vadd.f32 %v17414_v42, %v3599_v45 }
 0x67a   : > { %v3605_v26 = vpack.c.bf16 %v3603_v39, %v3603_v39 }
 0x67b   : > { %v19425_v51 = vld [vmem:[#allocation2 + $0x1c] sm:$0xe] }
 0x67c   : > { %v19427_v38 = vld [vmem:[#allocation2 + $0x1c] sm:$0xff]  ;;  %3607 = vst [vmem:[#allocation2 + $0x28] sm:$0xf] %v3605_v26 }
 0x67d   : > { %v3609_v44 = vld [vmem:[#allocation2 + $0x18] sm:$0xff]  ;;  %v3664_v40 = vunpack.c.h.b16 %v19427_v38  ;;  %v3663_v21 = vunpack.c.l.b16 %v19427_v38 }
 0x67e   : > { %v3632_v24 = vunpack.c.h.b16 %v3609_v44  ;;  %v3631_v5 = vunpack.c.l.b16 %v3609_v44  ;;  %v19430_v22 = vld [vmem:[#allocation2 + $0x1c] sm:$0xf] }
 0x67f   : > { %v19432_v34 = vld [vmem:[#allocation2 + $0x18] sm:$0xee]  ;;  %v3654_v2 = vunpack.c.l.b16 %v19430_v22  ;;  %v3668_v0 = vpack.c.b16 %v3664_v40, %v3662_v61  ;;  %v3667_v53 = vpack.c.b16 %v3663_v21, %v3661_v59 }
 0x680   : > { %v19435_v58 = vld [vmem:[#allocation2 + $0x1c] sm:$0xee]  ;;  %v3636_v52 = vpack.c.b16 %v3632_v24, %v3630_v11  ;;  %v3635_v62 = vpack.c.b16 %v3631_v5, %v3629_v47 }
 0x681   : > { %4665 = vst [vmem:[#allocation2 + $0x1c] sm:$0xf] %v4663_v20  ;;  %v3656_v30 = vpack.c.b16 %v3654_v2, %v3653_v23  ;;  %3673 = vrot.lane.b32.xlu2 %v3668_v0, %s22796_s9 }
 0x682   : > { %3641 = vrot.lane.b32.xlu0 %v3636_v52, %s22789_s29  ;;  %3639 = vrot.lane.b32.xlu1 %v3635_v62, %s22789_s29 }
 0x683   : > { %v19445_v18 = vld [vmem:[#allocation2 + $0x28] sm:$0xf]  ;;  %v3969_v3 = vshrl.u32 %v3656_v30, 16  ;;  %v3972_v10 = vshll.u32 %v3656_v30, 16 }
 0x684   : > { %v19447_v27 = vld [vmem:[#allocation2 + $0x28] sm:$0xff] }
 0x685   : > { %v19449_v6 = vld [vmem:[#allocation2 + $0x24] sm:$0xff]  ;;  %v3720_v48 = vunpack.c.l.b16 %v19447_v27  ;;  %v3971_v1 = vrot.slane %v3969_v3, 2  ;;  %v3974_v49 = vrot.slane %v3972_v10, 3  ;;  %v3721_v61 = vunpack.c.h.b16 %v19447_v27  ;;  %v14019_v27 = vld [vmem:[#allocation2 + $0x18] sm:$0xf] }
 0x686   : > { %v3610_v46 = vld [vmem:[#allocation2 + $0x24] sm:$0x77]  ;;  %v3684_v8 = vunpack.c.h.b16 %v19449_v6  ;;  %v3683_v31 = vunpack.c.l.b16 %v19449_v6  ;;  %v3748_v10 = vunpack.c.h.b16 %v19432_v34 }
 0x687   : > { %v3613_v16 = vld [vmem:[#allocation2 + $0x28] sm:$0x7]  ;;  %v3634_v60 = vunpack.c.h.b16 %v3610_v46  ;;  %v3633_v43 = vunpack.c.l.b16 %v3610_v46  ;;  %v3722_v13 = vpack.c.b16 %v3720_v48, %v3663_v21  ;;  %v3975_v11 = vor.u32 %v3974_v49, %v3971_v1 }
 0x688   : > { %v3616_v41 = vld [vmem:[#allocation2 + $0x28] sm:$0x77]  ;;  %v3655_v42 = vunpack.c.l.b16 %v3613_v16  ;;  %v3686_v45 = vpack.c.b16 %v3684_v8, %v3632_v24  ;;  %v3685_v7 = vpack.c.b16 %v3683_v31, %v3631_v5  ;;  %v3747_v5 = vunpack.c.l.b16 %v19432_v34  ;;  %v3625_v34 = vld [vmem:[#allocation2 + $0x34] sm:$0x33] }
 0x689   : > { %4666 = vst [vmem:[#allocation2 + $0x28] sm:$0xf] %v4664_v63  ;;  %v3638_v4 = vpack.c.b16 %v3634_v60, %v3634_v60  ;;  %v3637_v37 = vpack.c.b16 %v3633_v43, %v3633_v43  ;;  %v3725_v12 = vshrl.u32 %v3722_v13, 16  ;;  %v3728_v50 = vshll.u32 %v3722_v13, 16 }
 0x68a   : > { %v3657_v15 = vpack.c.b16 %v3655_v42, %v3655_v42  ;;  %3671 = vrot.lane.b32.xlu0 %v3667_v53, %s22796_s9  ;;  %v3666_v56 = vunpack.c.h.b16 %v3616_v41  ;;  %v3665_v25 = vunpack.c.l.b16 %v3616_v41  ;;  %v3688_v23 = vshrl.u32 %v3685_v7, 16 }
 0x68b   : > { %3645 = vrot.lane.b32.xlu1 %v3638_v4, %s22789_s29  ;;  %3643 = vrot.lane.b32.xlu2 %v3637_v37, %s22789_s29  ;;  %v3727_v17 = vrot.slane %v3725_v12, 5  ;;  %v3730_v26 = vrot.slane %v3728_v50, 6  ;;  %v3691_v20 = vshll.u32 %v3685_v7, 16  ;;  %v3696_v62 = vshrl.u32 %v3686_v45, 16 }
 0x68c   : > { %v3977_v14 = vshrl.u32 %v3657_v15, 16  ;;  %v3980_v55 = vshll.u32 %v3657_v15, 16  ;;  %v3670_v32 = vpack.c.b16 %v3666_v56, %v3666_v56  ;;  %v3669_v44 = vpack.c.b16 %v3665_v25, %v3665_v25 }
 0x68d   : > { %v3731_v52 = vor.u32 %v3730_v26, %v3727_v17  ;;  %v3699_v24 = vshll.u32 %v3686_v45, 16  ;;  %v3690_v30 = vrot.slane %v3688_v23, 5  ;;  %v3693_v59 = vrot.slane %v3691_v20, 6  ;;  %v16667_v20 = vld [vmem:[%s22745_s1 + $0x1e8] sm:$0xff] }
 0x68e   : > { %v3979_v39 = vrot.slane %v3977_v14, 2  ;;  %v3982_v29 = vrot.slane %v3980_v55, 3  ;;  %v3723_v21 = vpack.c.b16 %v3721_v61, %v3664_v40  ;;  %v3751_v63 = vpack.c.b16 %v3683_v31, %v3747_v5 }
 0x68f   : > { %v3698_v6 = vrot.slane %v3696_v62, 5  ;;  %v3701_v3 = vrot.slane %v3699_v24, 6  ;;  %v3749_v46 = vunpack.c.l.b16 %v3621_v33  ;;  %v3694_v16 = vor.u32 %v3693_v59, %v3690_v30  ;;  %v16734_v24 = vld [vmem:[#allocation2 + $0x1c] sm:$0xf]  ;;  %v16737_v30 = vld [vmem:[#allocation2 + $0x20] sm:$0xf] }
 0x690   : > { %v3983_v47 = vor.u32 %v3982_v29, %v3979_v39  ;;  %v3756_v41 = vrot.slane %v3751_v63, 7  ;;  %v3733_v43 = vshrl.u32 %v3723_v21, 16  ;;  %v3736_v42 = vshll.u32 %v3723_v21, 16  ;;  %v14021_v62 = vld [vmem:[#allocation2 + $0x24] sm:$0xf0]  ;;  %v16692_v21 = vld [vmem:[%s22745_s1 + $0x2b0] sm:$0xff] }
 0x691   : > { %v3702_v60 = vor.u32 %v3701_v3, %v3698_v6  ;;  %v3753_v53 = vpack.c.b16 %v3749_v46, %v3749_v46  ;;  %v3752_v38 = vpack.c.b16 %v3684_v8, %v3748_v10  ;;  %v3750_v4 = vunpack.c.h.b16 %v3621_v33  ;;  %v16665_v33 = vld [vmem:[%s22745_s1 + $0x1d8] sm:$0xff]  ;;  %v14033_v59 = vld [vmem:[#allocation2 + $0x28] sm:$0xf0]  ;;  %v16684_v63 = vld [vmem:[%s22745_s1 + $0x270] sm:$0xff] }
 0x692   : > { %v3984_v0 = vsel %vm1514_vm8, %v3975_v11, %v3983_v47  ;;  %3677 = vrot.lane.b32.xlu0 %v3670_v32, %s22796_s9  ;;  %v3735_v40 = vrot.slane %v3733_v43, 5  ;;  %v3738_v31 = vrot.slane %v3736_v42, 6  ;;  %v3783_v50 = vunpack.c.l.b16 %v19435_v58  ;;  %v16693_v11 = vld [vmem:[%s22745_s1 + $0x2b8] sm:$0xff]  ;;  %v16664_v6 = vld [vmem:[%s22745_s1 + $0x1d0] sm:$0xff]  ;;  %v16738_v46 = vld [vmem:[#allocation2 + $0x24] sm:$0xf0] }
 0x693   : > { %4543 = vmatmul.bf16.vlgmr.msrb.gmra.mxu3 %v3984_v0  ;;  %3675 = vrot.lane.b32.xlu1 %v3669_v44, %s22796_s9  ;;  %v3758_v13 = vrot.slane %v3753_v53, 7  ;;  %v3757_v37 = vrot.slane %v3752_v38, 7  ;;  %v3754_v1 = vpack.c.b16 %v3750_v4, %v3750_v4  ;;  %v3784_v8 = vunpack.c.h.b16 %v19435_v58  ;;  %v16669_v58 = vld [vmem:[%s22745_s1 + $0x1f8] sm:$0xff]  ;;  %v16663_v42 = vld [vmem:[%s22745_s1 + $0x1c8] sm:$0xff]  ;;  %v16662_v53 = vld [vmem:[%s22745_s1 + $0x1c0] sm:$0xff] }
 0x694   : > { %3740 = vrot.lane.b32.xlu2 %v3731_v52, %s22796_s9  ;;  %v3739_v15 = vor.u32 %v3738_v31, %v3735_v40  ;;  %v3787_v49 = vpack.c.b16 %v3720_v48, %v3783_v50  ;;  %v3786_v55 = vunpack.c.h.b16 %v3625_v34  ;;  %v3785_v7 = vunpack.c.l.b16 %v3625_v34  ;;  %v16735_v48 = vld [vmem:[#allocation2 + $0x20] sm:$0xf0]  ;;  %4521 = vmatpush.bf16.msrb.mxu1 %v16669_v58  ;;  %v16685_v47 = vld [vmem:[%s22745_s1 + $0x278] sm:$0xff]  ;;  %v16688_v50 = vld [vmem:[%s22745_s1 + $0x290] sm:$0xff] }
 0x695   : > { %v3759_v12 = vsel %vm2588_vm15, %v3756_v41, %v3758_v13  ;;  %v3788_v14 = vpack.c.b16 %v3721_v61, %v3784_v8  ;;  %v3760_v45 = vrot.slane %v3754_v1, 7  ;;  %v16668_v61 = vld [vmem:[%s22745_s1 + $0x1f0] sm:$0xff]  ;;  %v14020_v44 = vor.u32 %v16735_v48, %v14019_v27  ;;  %4563 = vmatpush.bf16.msra.mxu0 %v16693_v11  ;;  %4549 = vmatpush.bf16.msrb.mxu2 %v16685_v47  ;;  %v16666_v52 = vld [vmem:[%s22745_s1 + $0x1e0] sm:$0xff]  ;;  %v16709_v10 = vld [vmem:[%s22745_s1 + $0x338] sm:$0xff] }
 0x696   : > { %v3791_v56 = vrot.slane %v3787_v49, 7  ;;  %v3790_v39 = vpack.c.b16 %v3786_v55, %v3786_v55  ;;  %v3789_v17 = vpack.c.b16 %v3785_v7, %v3785_v7  ;;  %v14024_v5 = vor.u32 %v16734_v24, %v14021_v62  ;;  %v16690_v38 = vld [vmem:[%s22745_s1 + $0x2a0] sm:$0xff]  ;;  %v16701_v31 = vld [vmem:[%s22745_s1 + $0x2f8] sm:$0xff]  ;;  %4591 = vmatpush.bf16.msra.mxu3 %v16709_v10  ;;  %v16708_v13 = vld [vmem:[%s22745_s1 + $0x330] sm:$0xff] }
 0x697   : > { %v3792_v25 = vrot.slane %v3788_v14, 7  ;;  %v3761_v29 = vsel %vm2588_vm15, %v3757_v37, %v3760_v45  ;;  %v14036_v3 = vor.u32 %v16737_v30, %v14033_v59  ;;  %v16682_v40 = vld [vmem:[%s22745_s1 + $0x260] sm:$0xff]  ;;  %v16689_v4 = vld [vmem:[%s22745_s1 + $0x298] sm:$0xff]  ;;  %v16680_v1 = vld [vmem:[%s22745_s1 + $0x250] sm:$0xff] }
 0x698   : > { %v3795_v26 = vrot.slane %v3790_v39, 7  ;;  %v3793_v32 = vrot.slane %v3789_v17, 7  ;;  %4522 = vmatpush.bf16.msrb.mxu1 %v16668_v61  ;;  %v16699_v34 = vld [vmem:[%s22745_s1 + $0x2e8] sm:$0xff]  ;;  %v16706_v8 = vld [vmem:[%s22745_s1 + $0x320] sm:$0xff]  ;;  %v16705_v45 = vld [vmem:[%s22745_s1 + $0x318] sm:$0xff] }
 0x699   : > { %4564 = vmatpush.bf16.msra.mxu0 %v16692_v21  ;;  %4550 = vmatpush.bf16.msrb.mxu2 %v16684_v63  ;;  %v16687_v49 = vld [vmem:[%s22745_s1 + $0x288] sm:$0xff]  ;;  %v16698_v55 = vld [vmem:[%s22745_s1 + $0x2e0] sm:$0xff]  ;;  %v16725_v39 = vld [vmem:[%s22745_s1 + $0x3b8] sm:$0xff] }
 0x69a   : > { %3703 = vrot.lane.b32.xlu0 %v3694_v16, %s22789_s29  ;;  %v3796_v23 = vsel %vm2588_vm15, %v3792_v25, %v3795_v26  ;;  %v3794_v0 = vsel %vm2588_vm15, %v3791_v56, %v3793_v32  ;;  %v16691_v16 = vld [vmem:[%s22745_s1 + $0x2a8] sm:$0xff]  ;;  %4592 = vmatpush.bf16.msra.mxu3 %v16708_v13  ;;  %v16686_v7 = vld [vmem:[%s22745_s1 + $0x280] sm:$0xff]  ;;  %v16717_v17 = vld [vmem:[%s22745_s1 + $0x378] sm:$0xff] }
 0x69b   : > { %3762 = vrot.lane.b32.xlu1 %v3756_v41, %s22789_s29  ;;  %v14031_v41 = vld [vmem:[#allocation2 + $0x1c] sm:$0xf]  ;;  %v16679_v14 = vld [vmem:[%s22745_s1 + $0x248] sm:$0xff]  ;;  %v16696_v58 = vld [vmem:[%s22745_s1 + $0x2d0] sm:$0xff] }
 0x69c   : > { %3705 = vrot.lane.b32.xlu2 %v3702_v60, %s22789_s29  ;;  %4523 = vmatpush.bf16.msrb.mxu1 %v16667_v20  ;;  %v16683_v60 = vld [vmem:[%s22745_s1 + $0x268] sm:$0xff]  ;;  %v14032_v43 = vor.u32 %v16738_v46, %v14031_v41  ;;  %v16724_v27 = vld [vmem:[%s22745_s1 + $0x3b0] sm:$0xff]  ;;  %v16702_v47 = vld [vmem:[%s22745_s1 + $0x300] sm:$0xff] }
 0x69d   : > { %4565 = vmatpush.bf16.msra.mxu0 %v16691_v16  ;;  %4551 = vmatpush.bf16.msrb.mxu2 %v16683_v60  ;;  %v16703_v48 = vld [vmem:[%s22745_s1 + $0x308] sm:$0xff]  ;;  %v16716_v26 = vld [vmem:[%s22745_s1 + $0x370] sm:$0xff]  ;;  %v16722_v20 = vld [vmem:[%s22745_s1 + $0x3a0] sm:$0xff] }
 0x69e   : > { %v16695_v61 = vld [vmem:[%s22745_s1 + $0x2c8] sm:$0xff]  ;;  %v16721_v62 = vld [vmem:[%s22745_s1 + $0x398] sm:$0xff]  ;;  %v16720_v30 = vld [vmem:[%s22745_s1 + $0x390] sm:$0xff] }
 0x69f   : > { %v16723_v11 = vld [vmem:[%s22745_s1 + $0x3a8] sm:$0xff]  ;;  %v16712_v59 = vld [vmem:[%s22745_s1 + $0x350] sm:$0xff]  ;;  %v16743_v21 = vld [vmem:[%s22745_s1 + $0x420] sm:$0xff] }
 0x6a0   : > { %4524 = vmatpush.bf16.msrb.mxu1 %v16666_v52  ;;  %v16715_v32 = vld [vmem:[%s22745_s1 + $0x368] sm:$0xff]  ;;  %v16745_v52 = vld [vmem:[%s22745_s1 + $0x430] sm:$0xff]  ;;  %v16742_v16 = vld [vmem:[%s22745_s1 + $0x418] sm:$0xff] }
 0x6a1   : > { %4566 = vmatpush.bf16.msra.mxu0 %v16690_v38  ;;  %4552 = vmatpush.bf16.msrb.mxu2 %v16682_v40  ;;  %v16719_v63 = vld [vmem:[%s22745_s1 + $0x388] sm:$0xff]  ;;  %v16718_v60 = vld [vmem:[%s22745_s1 + $0x380] sm:$0xff]  ;;  %v16741_v13 = vld [vmem:[%s22745_s1 + $0x410] sm:$0xff] }
 0x6a2   : > { %3764 = vrot.lane.b32.xlu0 %v3757_v37, %s22789_s29  ;;  %v16681_v37 = vld [vmem:[%s22745_s1 + $0x258] sm:$0xff]  ;;  %v16711_v46 = vld [vmem:[%s22745_s1 + $0x348] sm:$0xff]  ;;  %v16710_v38 = vld [vmem:[%s22745_s1 + $0x340] sm:$0xff] }
 0x6a3   : > { %3742 = vrot.lane.b32.xlu1 %v3739_v15, %s22796_s9  ;;  %v16700_v15 = vld [vmem:[%s22745_s1 + $0x2f0] sm:$0xff] }
 0x6a4   : > { %3766 = vrot.lane.b32.xlu2 %v3759_v12, %s22789_s29  ;;  %4525 = vmatpush.bf16.msrb.mxu1 %v16665_v33  ;;  %v16707_v12 = vld [vmem:[%s22745_s1 + $0x328] sm:$0xff] }
 0x6a5   : > { %4567 = vmatpush.bf16.msra.mxu0 %v16689_v4  ;;  %4553 = vmatpush.bf16.msrb.mxu2 %v16681_v37  ;;  %v16744_v33 = vld [vmem:[%s22745_s1 + $0x428] sm:$0xff] }
 0x6a6   : > { %4593 = vmatpush.bf16.msra.mxu3 %v16707_v12  ;;  %v16740_v37 = vld [vmem:[%s22745_s1 + $0x408] sm:$0xff] }
 0x6a8   : > { %4526 = vmatpush.bf16.msrb.mxu1 %v16664_v6 }
 0x6a9   : > { %4568 = vmatpush.bf16.msra.mxu0 %v16688_v50  ;;  %4554 = vmatpush.bf16.msrb.mxu2 %v16680_v1 }
 0x6aa   : > { %3797 = vrot.lane.b32.xlu0 %v3791_v56, %s22796_s9  ;;  %4594 = vmatpush.bf16.msra.mxu3 %v16706_v8  ;;  %v16678_v56 = vld [vmem:[%s22745_s1 + $0x240] sm:$0xff] }
 0x6ab   : > { %3768 = vrot.lane.b32.xlu1 %v3761_v29, %s22789_s29  ;;  %v16704_v29 = vld [vmem:[%s22745_s1 + $0x310] sm:$0xff] }
 0x6ac   : > { %3799 = vrot.lane.b32.xlu2 %v3792_v25, %s22796_s9  ;;  %4527 = vmatpush.bf16.msrb.mxu1 %v16663_v42  ;;  %v16697_v25 = vld [vmem:[%s22745_s1 + $0x2d8] sm:$0xff]  ;;  %v3709_v42 = vunpack.c.l.b16 %v19445_v18 }
 0x6ad   : > { %4569 = vmatpush.bf16.msra.mxu0 %v16687_v49  ;;  %4555 = vmatpush.bf16.msrb.mxu2 %v16679_v14 }
 0x6ae   : > { %4595 = vmatpush.bf16.msra.mxu3 %v16705_v45 }
 0x6b0   : > { %4528 = vmatpush.bf16.msrb.mxu1 %v16662_v53 }
 0x6b1   : > { %4570 = vmatpush.bf16.msra.mxu0 %v16686_v7  ;;  %4556 = vmatpush.bf16.msrb.mxu2 %v16678_v56 }
 0x6b2   : > { %3803 = vrot.lane.b32.xlu0 %v3796_v23, %s22796_s9  ;;  %4596 = vmatpush.bf16.msra.mxu3 %v16704_v29  ;;  %v16694_v23 = vld [vmem:[%s22745_s1 + $0x2c0] sm:$0xff]  ;;  %v3623_v29 = vld [vmem:[#allocation2 + $0x34] sm:$0x3] }
 0x6b3   : > { %3801 = vrot.lane.b32.xlu1 %v3794_v0, %s22796_s9  ;;  %v16714_v0 = vld [vmem:[%s22745_s1 + $0x360] sm:$0xff] }
 0x6b4   : > { %4681 = vrot.lane.b32.xlu2 %v14020_v44, %s22781_s10  ;;  %4577 = vmatpush.bf16.msra.mxu1 %v16701_v31  ;;  %v3710_v31 = vpack.c.b16 %v3709_v42, %v3654_v2 }
 0x6b5   : > { %4619 = vmatpush.bf16.msrb.mxu0 %v16725_v39  ;;  %4605 = vmatpush.bf16.msra.mxu2 %v16717_v17  ;;  %v16739_v39 = vld [vmem:[%s22745_s1 + $0x400] sm:$0xff] }
 0x6b6   : > { %4597 = vmatpush.bf16.msra.mxu3 %v16703_v48  ;;  %v3712_v2 = vshrl.u32 %v3710_v31, 16 }
 0x6b8   : > { %4578 = vmatpush.bf16.msra.mxu1 %v16700_v15 }
 0x6b9   : > { %4620 = vmatpush.bf16.msrb.mxu0 %v16724_v27  ;;  %4606 = vmatpush.bf16.msra.mxu2 %v16716_v26 }
 0x6ba   : > { %4688 = vrot.lane.b32.xlu0 %v14020_v44, %s22777_s11  ;;  %v16746_v44 = vld [vmem:[%s22745_s1 + $0x438] sm:$0xff]  ;;  %4598 = vmatpush.bf16.msra.mxu3 %v16702_v47 }
 0x6bb   : > { %4683 = vrot.lane.b32.xlu1 %v14024_v5, %s22781_s10 }
 0x6bc   : > { %4690 = vrot.lane.b32.xlu2 %v14024_v5, %s22777_s11  ;;  %4579 = vmatpush.bf16.msra.mxu1 %v16699_v34  ;;  %v16713_v5 = vld [vmem:[%s22745_s1 + $0x358] sm:$0xff]  ;;  %v3715_v34 = vshll.u32 %v3710_v31, 16 }
 0x6bd   : > { %4621 = vmatpush.bf16.msrb.mxu0 %v16723_v11  ;;  %4607 = vmatpush.bf16.msra.mxu2 %v16715_v32  ;;  %v3775_v11 = vunpack.c.l.b16 %v3623_v29 }
 0x6be   : > { %5041 = vmatpush.bf16.msrb.mxu3 %v16746_v44  ;;  %v3717_v27 = vrot.slane %v3715_v34, 6 }
 0x6c0   : > { %4580 = vmatpush.bf16.msra.mxu1 %v16698_v55 }
 0x6c1   : > { %4622 = vmatpush.bf16.msrb.mxu0 %v16722_v20  ;;  %4608 = vmatpush.bf16.msra.mxu2 %v16714_v0  ;;  %v16732_v20 = vld [vmem:[%s22745_s1 + $0x3f0] sm:$0xff] }
 0x6c2   : > { %4716 = vrot.lane.b32.xlu0 %v14036_v3, %s22795_s27  ;;  %5042 = vmatpush.bf16.msrb.mxu3 %v16745_v52 }
 0x6c3   : > { %4714 = vrot.lane.b32.xlu1 %v14032_v43, %s22795_s27 }
 0x6c4   : > { %4708 = vrot.lane.b32.xlu2 %v14032_v43, %s17465_s14  ;;  %4581 = vmatpush.bf16.msra.mxu1 %v16697_v25  ;;  %v16733_v25 = vld [vmem:[%s22745_s1 + $0x3f8] sm:$0xff] }
 0x6c5   : > { %4623 = vmatpush.bf16.msrb.mxu0 %v16721_v62  ;;  %4609 = vmatpush.bf16.msra.mxu2 %v16713_v5 }
 0x6c6   : > { %5043 = vmatpush.bf16.msrb.mxu3 %v16744_v33 }
 0x6c8   : > { %4582 = vmatpush.bf16.msra.mxu1 %v16696_v58  ;;  %v3714_v58 = vrot.slane %v3712_v2, 5 }
 0x6c9   : > { %4624 = vmatpush.bf16.msrb.mxu0 %v16720_v30  ;;  %4610 = vmatpush.bf16.msra.mxu2 %v16712_v59  ;;  %v16731_v59 = vld [vmem:[%s22745_s1 + $0x3e8] sm:$0xff] }
 0x6ca   : > { %5044 = vmatpush.bf16.msrb.mxu3 %v16743_v21  ;;  %v3718_v0 = vor.u32 %v3717_v27, %v3714_v58  ;;  %v16754_v21 = vld [vmem:[%s22745_s1 + $0x478] sm:$0xff]  ;;  %v16751_v58 = vld [vmem:[%s22745_s1 + $0x460] sm:$0xff] }
 0x6cb   : > { %4710 = vrot.lane.b32.xlu1 %v14036_v3, %s17465_s14 }
 0x6cc   : > { %4583 = vmatpush.bf16.msra.mxu1 %v16695_v61 }
 0x6cd   : > { %4625 = vmatpush.bf16.msrb.mxu0 %v16719_v63  ;;  %4611 = vmatpush.bf16.msra.mxu2 %v16711_v46  ;;  %v4012_v46 = vshrl.u32 %v3718_v0, 16 }
 0x6ce   : > { %5045 = vmatpush.bf16.msrb.mxu3 %v16742_v16  ;;  %v4015_v16 = vshll.u32 %v3718_v0, 16 }
 0x6d0   : > { %4584 = vmatpush.bf16.msra.mxu1 %v16694_v23 }
 0x6d1   : > { %4626 = vmatpush.bf16.msrb.mxu0 %v16718_v60  ;;  %4612 = vmatpush.bf16.msra.mxu2 %v16710_v38 }
 0x6d2   : > { %5046 = vmatpush.bf16.msrb.mxu3 %v16741_v13 }
 0x6d6   : > { %5047 = vmatpush.bf16.msrb.mxu3 %v16740_v37  ;;  %v16762_v37 = vld [vmem:[%s22745_s1 + $0x4b8] sm:$0xff] }
 0x6da   : > { %5048 = vmatpush.bf16.msrb.mxu3 %v16739_v39 }
 0x6db   : > { %v3674_v24 = vpop.permute.xlu2 %3673 }
 0x6e5   : > { %v3644_v41 = vpop.permute.xlu2 %3643 }
 0x6ee   : > { %v19690_v8 = vpop.permute.xlu2 %3740 }
 0x6f4   : > { %v3642_v6 = vpop.permute.xlu0 %3641  ;;  %v3640_v3 = vpop.permute.xlu1 %3639 }
 0x6f5   : > { %v3648_v43 = vsel %vm2757_vm12, %v3640_v3, %v3642_v6  ;;  %v3777_v6 = vpack.c.b16 %v3775_v11, %v3775_v11 }
 0x6f6   : > { %v3952_v10 = vshrl.u32 %v3648_v43, 16  ;;  %v3955_v53 = vshll.u32 %v3648_v43, 16  ;;  %v3706_v5 = vpop.permute.xlu2 %3705 }
 0x6f8   : > { %v3954_v15 = vrot.slane %v3952_v10, 2  ;;  %v3957_v12 = vrot.slane %v3955_v53, 3  ;;  %v16730_v53 = vld [vmem:[%s22745_s1 + $0x3e0] sm:$0xff] }
 0x6fa   : > { %v3958_v55 = vor.u32 %v3957_v12, %v3954_v15  ;;  %v16729_v12 = vld [vmem:[%s22745_s1 + $0x3d8] sm:$0xff] }
 0x6fc   : > { %v3672_v40 = vpop.permute.xlu0 %3671 }
 0x6fd   : > { %v3646_v4 = vpop.permute.xlu1 %3645  ;;  %v3680_v22 = vsel %vm2775_vm11, %v3672_v40, %v3674_v24  ;;  %v3774_v24 = vunpack.c.l.b16 %v19425_v51  ;;  %v3779_v40 = vrot.slane %v3777_v6, 7 }
 0x6fe   : > { %v3649_v18 = vsel %vm2757_vm12, %v3644_v41, %v3646_v4  ;;  %v3986_v45 = vshrl.u32 %v3680_v22, 16  ;;  %v3989_v7 = vshll.u32 %v3680_v22, 16  ;;  %v4014_v4 = vrot.slane %v4012_v46, 2  ;;  %v3767_v34 = vpop.permute.xlu2 %3766 }
 0x6ff   : > { %v3960_v50 = vshrl.u32 %v3649_v18, 16  ;;  %v3963_v1 = vshll.u32 %v3649_v18, 16  ;;  %v3776_v63 = vpack.c.b16 %v3709_v42, %v3774_v24  ;;  %v16753_v42 = vld [vmem:[%s22745_s1 + $0x470] sm:$0xff]  ;;  %v4017_v18 = vrot.slane %v4015_v16, 3 }
 0x700   : > { %v3988_v47 = vrot.slane %v3986_v45, 2  ;;  %v3991_v32 = vrot.slane %v3989_v7, 3 }
 0x701   : > { %v3962_v49 = vrot.slane %v3960_v50, 2  ;;  %v3965_v14 = vrot.slane %v3963_v1, 3  ;;  %v3778_v38 = vrot.slane %v3776_v63, 7  ;;  %v16752_v50 = vld [vmem:[%s22745_s1 + $0x468] sm:$0xff]  ;;  %v4018_v2 = vor.u32 %v4017_v18, %v4014_v4 }
 0x702   : > { %v3992_v33 = vor.u32 %v3991_v32, %v3988_v47 }
 0x703   : > { %v3966_v56 = vor.u32 %v3965_v14, %v3962_v49  ;;  %v3780_v1 = vsel %vm2588_vm15, %v3778_v38, %v3779_v40  ;;  %v16761_v14 = vld [vmem:[%s22745_s1 + $0x4b0] sm:$0xff]  ;;  %v4050_v7 = vshll.u32 %v3778_v38, 16 }
 0x704   : > { %v3678_v17 = vpop.permute.xlu0 %3677 }
 0x705   : > { %v3676_v48 = vpop.permute.xlu1 %3675  ;;  %v3967_v26 = vsel %vm1514_vm8, %v3958_v55, %v3966_v56  ;;  %v4047_v55 = vshrl.u32 %v3778_v38, 16  ;;  %v4055_v56 = vshrl.u32 %v3780_v1, 16  ;;  %v4052_v47 = vrot.slane %v4050_v7, 3  ;;  %v16758_v38 = vld [vmem:[%s22745_s1 + $0x498] sm:$0xff] }
 0x706   : > { %v3681_v61 = vsel %vm2775_vm11, %v3676_v48, %v3678_v17  ;;  %4529 = vmatmul.bf16.vlgmr.msrb.gmra.mxu1 %v3967_v26  ;;  %v16728_v17 = vld [vmem:[%s22745_s1 + $0x3d0] sm:$0xff]  ;;  %v16760_v26 = vld [vmem:[%s22745_s1 + $0x4a8] sm:$0xff]  ;;  %v3800_v6 = vpop.permute.xlu2 %3799 }
 0x707   : > { %v3994_v44 = vshrl.u32 %v3681_v61, 16  ;;  %v3997_v23 = vshll.u32 %v3681_v61, 16  ;;  %4633 = vmatpush.bf16.msrb.mxu1 %v16733_v25  ;;  %v4058_v25 = vshll.u32 %v3780_v1, 16  ;;  %v16778_v61 = vld [vmem:[%s22745_s1 + $0x538] sm:$0xff]  ;;  %v4049_v11 = vrot.slane %v4047_v55, 2 }
 0x708   : > { %v4057_v32 = vrot.slane %v4055_v56, 2  ;;  %v16747_v56 = vld [vmem:[%s22745_s1 + $0x440] sm:$0xff] }
 0x709   : > { %v3996_v52 = vrot.slane %v3994_v44, 2  ;;  %v3999_v62 = vrot.slane %v3997_v23, 3  ;;  %v4060_v44 = vrot.slane %v4058_v25, 3  ;;  %v16768_v25 = vld [vmem:[%s22745_s1 + $0x4e8] sm:$0xff] }
 0x70b   : > { %v4000_v30 = vor.u32 %v3999_v62, %v3996_v52  ;;  %4634 = vmatpush.bf16.msrb.mxu1 %v16732_v20  ;;  %v16727_v52 = vld [vmem:[%s22745_s1 + $0x3c8] sm:$0xff]  ;;  %v16750_v62 = vld [vmem:[%s22745_s1 + $0x458] sm:$0xff]  ;;  %v4061_v63 = vor.u32 %v4060_v44, %v4057_v32  ;;  %v16773_v44 = vld [vmem:[%s22745_s1 + $0x510] sm:$0xff] }
 0x70c   : > { %v3704_v3 = vpop.permute.xlu0 %3703 }
 0x70d   : > { %v3707_v41 = vsel %vm2757_vm12, %v3704_v3, %v3706_v5  ;;  %v3763_v51 = vpop.permute.xlu1 %3762  ;;  %v4001_v60 = vsel %vm1514_vm8, %v3992_v33, %v4000_v30  ;;  %v16759_v33 = vld [vmem:[%s22745_s1 + $0x4a0] sm:$0xff] }
 0x70e   : > { %v4003_v43 = vshrl.u32 %v3707_v41, 16  ;;  %v4006_v10 = vshll.u32 %v3707_v41, 16  ;;  %4557 = vmatmul.bf16.vlgmr.msrb.gmra.mxu2 %v4001_v60  ;;  %v16749_v60 = vld [vmem:[%s22745_s1 + $0x450] sm:$0xff] }
 0x70f   : > { %4635 = vmatpush.bf16.msrb.mxu1 %v16731_v59  ;;  %5055 = vmatpush.bf16.msrb.mxu2 %v16754_v21  ;;  %v16777_v59 = vld [vmem:[%s22745_s1 + $0x530] sm:$0xff]  ;;  %v4053_v21 = vor.u32 %v4052_v47, %v4049_v11  ;;  %v16755_v47 = vld [vmem:[%s22745_s1 + $0x480] sm:$0xff] }
 0x710   : > { %v4005_v31 = vrot.slane %v4003_v43, 2  ;;  %v4008_v13 = vrot.slane %v4006_v10, 3  ;;  %v16770_v10 = vld [vmem:[%s22745_s1 + $0x4f8] sm:$0xff] }
 0x711   : > { %v4062_v40 = vsel %vm1514_vm8, %v4053_v21, %v4061_v63  ;;  %v16771_v21 = vld [vmem:[%s22745_s1 + $0x500] sm:$0xff]  ;;  %v16764_v63 = vld [vmem:[%s22745_s1 + $0x4c8] sm:$0xff] }
 0x712   : > { %v4009_v15 = vor.u32 %v4008_v13, %v4005_v31  ;;  %v16776_v31 = vld [vmem:[%s22745_s1 + $0x528] sm:$0xff] }
 0x713   : > { %4636 = vmatpush.bf16.msrb.mxu1 %v16730_v53  ;;  %5056 = vmatpush.bf16.msrb.mxu2 %v16753_v42 }
 0x714   : > { %v3765_v22 = vpop.permute.xlu0 %3764  ;;  %4571 = vmatmul.bf16.vlgmr.msra.gmra.mxu0 %v4009_v15  ;;  %v16748_v15 = vld [vmem:[%s22745_s1 + $0x448] sm:$0xff] }
 0x715   : > { %v3743_v49 = vpop.permute.xlu1 %3742  ;;  %5069 = vmatpush.bf16.msra.mxu0 %v16762_v37  ;;  %v3770_v27 = vsel %vm2757_vm12, %v3763_v51, %v3765_v22  ;;  %v16726_v51 = vld [vmem:[%s22745_s1 + $0x3c0] sm:$0xff] }
 0x716   : > { %v3744_v45 = vsel %vm2775_vm11, %v19690_v8, %v3743_v49  ;;  %4585 = vmatmul.bf16.vlgmr.msra.gmra.mxu1 %v4018_v2  ;;  %v4030_v23 = vshrl.u32 %v3770_v27, 16  ;;  %v4033_v20 = vshll.u32 %v3770_v27, 16  ;;  %v16757_v2 = vld [vmem:[%s22745_s1 + $0x490] sm:$0xff]  ;;  %v16775_v49 = vld [vmem:[%s22745_s1 + $0x520] sm:$0xff]  ;;  %v16774_v27 = vld [vmem:[%s22745_s1 + $0x518] sm:$0xff] }
 0x717   : > { %v4021_v39 = vshrl.u32 %v3744_v45, 16  ;;  %v4024_v29 = vshll.u32 %v3744_v45, 16  ;;  %4637 = vmatpush.bf16.msrb.mxu1 %v16729_v12  ;;  %5057 = vmatpush.bf16.msrb.mxu2 %v16752_v50  ;;  %v16769_v50 = vld [vmem:[%s22745_s1 + $0x4f0] sm:$0xff] }
 0x718   : > { %v4032_v3 = vrot.slane %v4030_v23, 2  ;;  %v4035_v46 = vrot.slane %v4033_v20, 3  ;;  %v16736_v23 = vld [vmem:[#allocation2 + $0x24] sm:$0xf0]  ;;  %v16766_v20 = vld [vmem:[%s22745_s1 + $0x4d8] sm:$0xff] }
 0x719   : > { %v4023_v48 = vrot.slane %v4021_v39, 2  ;;  %v4026_v8 = vrot.slane %v4024_v29, 3  ;;  %5070 = vmatpush.bf16.msra.mxu0 %v16761_v14 }
 0x71a   : > { %v4036_v13 = vor.u32 %v4035_v46, %v4032_v3  ;;  %v16763_v3 = vld [vmem:[%s22745_s1 + $0x4c0] sm:$0xff] }
 0x71b   : > { %v4027_v0 = vor.u32 %v4026_v8, %v4023_v48  ;;  %4638 = vmatpush.bf16.msrb.mxu1 %v16728_v17  ;;  %5058 = vmatpush.bf16.msrb.mxu2 %v16751_v58  ;;  %v16756_v17 = vld [vmem:[%s22745_s1 + $0x488] sm:$0xff]  ;;  %v4682_v58 = vpop.permute.xlu2 %4681 }
 0x71c   : > { %v3798_v24 = vpop.permute.xlu0 %3797 }
 0x71d   : > { %v3769_v5 = vpop.permute.xlu1 %3768  ;;  %4599 = vmatmul.bf16.vlgmr.msra.gmra.mxu3 %v4027_v0  ;;  %5071 = vmatpush.bf16.msra.mxu0 %v16760_v26  ;;  %v3805_v43 = vsel %vm2775_vm11, %v3798_v24, %v3800_v6  ;;  %v16767_v26 = vld [vmem:[%s22745_s1 + $0x4e0] sm:$0xff]  ;;  %v16772_v24 = vld [vmem:[%s22745_s1 + $0x508] sm:$0xff] }
 0x71e   : > { %v3771_v30 = vsel %vm2757_vm12, %v3767_v34, %v3769_v5  ;;  %5097 = vmatpush.bf16.msra.mxu3 %v16778_v61  ;;  %v4064_v4 = vshrl.u32 %v3805_v43, 16  ;;  %v4067_v18 = vshll.u32 %v3805_v43, 16 }
 0x71f   : > { %v4038_v16 = vshrl.u32 %v3771_v30, 16  ;;  %v4041_v41 = vshll.u32 %v3771_v30, 16  ;;  %4639 = vmatpush.bf16.msrb.mxu1 %v16727_v52  ;;  %5059 = vmatpush.bf16.msrb.mxu2 %v16750_v62  ;;  %v14027_v52 = vld [vmem:[#allocation2 + $0x1c] sm:$0xf] }
 0x720   : > { %v4066_v14 = vrot.slane %v4064_v4, 2  ;;  %v4069_v55 = vrot.slane %v4067_v18, 3  ;;  %v14028_v62 = vor.u32 %v16736_v23, %v14027_v52  ;;  %v16780_v23 = vld [vmem:[%s22745_s1 + $0x548] sm:$0xff] }
 0x721   : > { %v4040_v53 = vrot.slane %v4038_v16, 2  ;;  %v4043_v42 = vrot.slane %v4041_v41, 3  ;;  %5072 = vmatpush.bf16.msra.mxu0 %v16759_v33  ;;  %v16765_v33 = vld [vmem:[%s22745_s1 + $0x4d0] sm:$0xff]  ;;  %v16792_v52 = vld [vmem:[%s22745_s1 + $0x5a8] sm:$0xff] }
 0x722   : > { %5098 = vmatpush.bf16.msra.mxu3 %v16777_v59  ;;  %v4070_v48 = vor.u32 %v4069_v55, %v4066_v14 }
 0x723   : > { %v4044_v37 = vor.u32 %v4043_v42, %v4040_v53  ;;  %4640 = vmatpush.bf16.msrb.mxu1 %v16726_v51  ;;  %5060 = vmatpush.bf16.msrb.mxu2 %v16749_v60  ;;  %v4691_v5 = vpop.permute.xlu2 %4690 }
 0x724   : > { %v3804_v12 = vpop.permute.xlu0 %3803  ;;  %4627 = vmatmul.bf16.vlgmr.msrb.gmra.mxu0 %v4062_v40 }
 0x725   : > { %v3802_v1 = vpop.permute.xlu1 %3801  ;;  %v4045_v22 = vsel %vm1514_vm8, %v4036_v13, %v4044_v37  ;;  %5073 = vmatpush.bf16.msra.mxu0 %v16758_v38  ;;  %v16786_v37 = vld [vmem:[%s22745_s1 + $0x578] sm:$0xff] }
 0x726   : > { %v3806_v34 = vsel %vm2775_vm11, %v3802_v1, %v3804_v12  ;;  %4613 = vmatmul.bf16.vlgmr.msra.gmra.mxu2 %v4045_v22  ;;  %5099 = vmatpush.bf16.msra.mxu3 %v16776_v31  ;;  %v16785_v12 = vld [vmem:[%s22745_s1 + $0x570] sm:$0xff] }
 0x727   : > { %5083 = vmatpush.bf16.msra.mxu1 %v16770_v10  ;;  %v4072_v45 = vshrl.u32 %v3806_v34, 16  ;;  %v4075_v7 = vshll.u32 %v3806_v34, 16  ;;  %5061 = vmatpush.bf16.msrb.mxu2 %v16748_v15  ;;  %v4544_v10 = vpop.f32.mrf.mxu3  ;;  %v16784_v34 = vld [vmem:[%s22745_s1 + $0x568] sm:$0xff] }
 0x729   : > { %v4074_v39 = vrot.slane %v4072_v45, 2  ;;  %v4077_v29 = vrot.slane %v4075_v7, 3  ;;  %5074 = vmatpush.bf16.msra.mxu0 %v16757_v2  ;;  %v16802_v2 = vld [vmem:[%s22745_s1 + $0x5f8] sm:$0xff] }
 0x72a   : > { %5100 = vmatpush.bf16.msra.mxu3 %v16775_v49 }
 0x72b   : > { %5084 = vmatpush.bf16.msra.mxu1 %v16769_v50  ;;  %v4078_v8 = vor.u32 %v4077_v29, %v4074_v39  ;;  %5062 = vmatpush.bf16.msrb.mxu2 %v16747_v56  ;;  %v4709_v41 = vpop.permute.xlu2 %4708  ;;  %v16783_v56 = vld [vmem:[%s22745_s1 + $0x560] sm:$0xff]  ;;  %v16794_v29 = vld [vmem:[%s22745_s1 + $0x5b8] sm:$0xff] }
 0x72c   : > { %v4689_v0 = vpop.permute.xlu0 %4688 }
 0x72d   : > { %v4684_v61 = vpop.permute.xlu1 %4683  ;;  %v4079_v11 = vsel %vm1514_vm8, %v4070_v48, %v4078_v8  ;;  %5075 = vmatpush.bf16.msra.mxu0 %v16756_v17  ;;  %v4692_v30 = vsel %vm840_vm1, %v4689_v0, %v4691_v5  ;;  %v16798_v0 = vld [vmem:[%s22745_s1 + $0x5d8] sm:$0xff]  ;;  %v16779_v5 = vld [vmem:[%s22745_s1 + $0x540] sm:$0xff] }
 0x72e   : > { %v4686_v32 = vsel %vm2755_vm13, %v4682_v58, %v4684_v61  ;;  %4641 = vmatmul.bf16.vlgmr.msrb.gmra.mxu1 %v4079_v11  ;;  %5101 = vmatpush.bf16.msra.mxu3 %v16774_v27  ;;  %v16782_v58 = vld [vmem:[%s22745_s1 + $0x558] sm:$0xff]  ;;  %v16800_v27 = vld [vmem:[%s22745_s1 + $0x5e8] sm:$0xff]  ;;  %v16781_v11 = vld [vmem:[%s22745_s1 + $0x550] sm:$0xff] }
 0x72f   : > { %5085 = vmatpush.bf16.msra.mxu1 %v16768_v25  ;;  %5049 = vmatmul.bf16.vlgmr.msrb.gmra.mxu3 %v4686_v32  ;;  %v19836_v18 = vpop.f32.mrf.mxu3  ;;  %v16801_v25 = vld [vmem:[%s22745_s1 + $0x5f0] sm:$0xff]  ;;  %v16799_v32 = vld [vmem:[%s22745_s1 + $0x5e0] sm:$0xff] }
 0x730   : > { %5520 = vmatpush.bf16.msra.mxu2 %v16786_v37 }
 0x731   : > { %5076 = vmatpush.bf16.msra.mxu0 %v16755_v47  ;;  %v16810_v47 = vld [vmem:[%s22745_s1 + $0x638] sm:$0xff] }
 0x732   : > { %5102 = vmatpush.bf16.msra.mxu3 %v16773_v44  ;;  %v16793_v44 = vld [vmem:[%s22745_s1 + $0x5b0] sm:$0xff] }
 0x733   : > { %5086 = vmatpush.bf16.msra.mxu1 %v16767_v26 }
 0x734   : > { %5077 = vmatmul.bf16.vlgmr.msra.gmra.mxu0 %v14028_v62  ;;  %v4717_v6 = vpop.permute.xlu0 %4716  ;;  %5521 = vmatpush.bf16.msra.mxu2 %v16785_v12 }
 0x735   : > { %v4715_v59 = vpop.permute.xlu1 %4714  ;;  %5534 = vmatpush.bf16.msrb.mxu0 %v16794_v29 }
 0x736   : > { %5063 = vmatmul.bf16.vlgmr.msrb.gmra.mxu2 %v4692_v30  ;;  %5103 = vmatpush.bf16.msra.mxu3 %v16772_v24  ;;  %v4719_v46 = vsel %vm2777_vm2, %v4715_v59, %v4717_v6  ;;  %v16818_v59 = vld [vmem:[%s22745_s1 + $0x678] sm:$0xff]  ;;  %v16791_v6 = vld [vmem:[%s22745_s1 + $0x5a0] sm:$0xff] }
 0x737   : > { %5087 = vmatpush.bf16.msra.mxu1 %v16766_v20  ;;  %v16809_v20 = vld [vmem:[%s22745_s1 + $0x630] sm:$0xff] }
 0x738   : > { %5522 = vmatpush.bf16.msra.mxu2 %v16784_v34  ;;  %v16805_v34 = vld [vmem:[%s22745_s1 + $0x610] sm:$0xff] }
 0x739   : > { %5535 = vmatpush.bf16.msrb.mxu0 %v16793_v44  ;;  %v16803_v44 = vld [vmem:[%s22745_s1 + $0x600] sm:$0xff] }
 0x73a   : > { %5104 = vmatpush.bf16.msra.mxu3 %v16771_v21  ;;  %v16797_v21 = vld [vmem:[%s22745_s1 + $0x5d0] sm:$0xff] }
 0x73b   : > { %5088 = vmatpush.bf16.msra.mxu1 %v16765_v33  ;;  %v16808_v33 = vld [vmem:[%s22745_s1 + $0x628] sm:$0xff] }
 0x73c   : > { %5523 = vmatpush.bf16.msra.mxu2 %v16783_v56 }
 0x73d   : > { %v4711_v16 = vpop.permute.xlu1 %4710  ;;  %5536 = vmatpush.bf16.msrb.mxu0 %v16792_v52 }
 0x73e   : > { %v4712_v51 = vsel %vm2779_vm3, %v4709_v41, %v4711_v16  ;;  %5562 = vmatpush.bf16.msrb.mxu3 %v16810_v47  ;;  %v16817_v16 = vld [vmem:[%s22745_s1 + $0x670] sm:$0xff]  ;;  %v16796_v41 = vld [vmem:[%s22745_s1 + $0x5c8] sm:$0xff]  ;;  %v16787_v47 = vld [vmem:[%s22745_s1 + $0x580] sm:$0xff] }
 0x73f   : > { %5089 = vmatpush.bf16.msra.mxu1 %v16764_v63  ;;  %5105 = vmatmul.bf16.vlgmr.msra.gmra.mxu3 %v4719_v46  ;;  %v16807_v46 = vld [vmem:[%s22745_s1 + $0x620] sm:$0xff] }
 0x740   : > { %5524 = vmatpush.bf16.msra.mxu2 %v16782_v58  ;;  %v16804_v58 = vld [vmem:[%s22745_s1 + $0x608] sm:$0xff] }
 0x741   : > { %5537 = vmatpush.bf16.msrb.mxu0 %v16791_v6  ;;  %v16811_v6 = vld [vmem:[%s22745_s1 + $0x640] sm:$0xff] }
 0x742   : > { %5563 = vmatpush.bf16.msrb.mxu3 %v16809_v20  ;;  %v16813_v20 = vld [vmem:[%s22745_s1 + $0x650] sm:$0xff] }
 0x743   : > { %5090 = vmatpush.bf16.msra.mxu1 %v16763_v3 }
 0x744   : > { %5525 = vmatpush.bf16.msra.mxu2 %v16781_v11 }
 0x746   : > { %5091 = vmatmul.bf16.vlgmr.msra.gmra.mxu1 %v4712_v51  ;;  %5564 = vmatpush.bf16.msrb.mxu3 %v16808_v33  ;;  %v16812_v33 = vld [vmem:[%s22745_s1 + $0x648] sm:$0xff] }
 0x747   : > { %5548 = vmatpush.bf16.msrb.mxu1 %v16802_v2 }
 0x748   : > { %5526 = vmatpush.bf16.msra.mxu2 %v16780_v23  ;;  %v5123_v23 = vld [vmem:[#allocation2 + $0x10] sm:$0x8] }
 0x74a   : > { %5565 = vmatpush.bf16.msrb.mxu3 %v16807_v46 }
 0x74b   : > { %5549 = vmatpush.bf16.msrb.mxu1 %v16801_v25  ;;  %v16788_v25 = vld [vmem:[%s22745_s1 + $0x588] sm:$0xff] }
 0x74c   : > { %5527 = vmatpush.bf16.msra.mxu2 %v16779_v5 }
 0x74f   : > { %5550 = vmatpush.bf16.msrb.mxu1 %v16800_v27 }
 0x750   : > { %5576 = vmatpush.bf16.msrb.mxu2 %v16818_v59  ;;  %v5127_v59 = vld [vmem:[#allocation2 + $0x34] sm:$0x1] }
 0x753   : > { %5551 = vmatpush.bf16.msrb.mxu1 %v16799_v32 }
 0x754   : > { %5577 = vmatpush.bf16.msrb.mxu2 %v16817_v16 }
 0x757   : > { %5552 = vmatpush.bf16.msrb.mxu1 %v16798_v0 }
 0x75b   : > { %5553 = vmatpush.bf16.msrb.mxu1 %v16797_v21 }
 0x75f   : > { %5554 = vmatpush.bf16.msrb.mxu1 %v16796_v41 }
 0x783   : > { %v4530_v60 = vpop.f32.mrf.mxu1 }
 0x784   : > { %v4545_v53 = vadd.f32 %v4544_v10, %v4530_v60  ;;  %v16790_v60 = vld [vmem:[%s22745_s1 + $0x598] sm:$0xff] }
 0x785   : > { %5538 = vmatpush.bf16.msrb.mxu0 %v16790_v60 }
 0x78b   : > { %v19834_v43 = vpop.f32.mrf.mxu1 }
 0x791   : > { %v4558_v42 = vpop.f32.mrf.mxu2  ;;  %v4572_v38 = vpop.f32.mrf.mxu0 }
 0x792   : > { %v4559_v40 = vadd.f32 %v4558_v42, %v4545_v53 }
 0x793   : > { %v4586_v13 = vpop.f32.mrf.mxu1 }
 0x794   : > { %v4573_v31 = vadd.f32 %v4572_v38, %v4559_v40  ;;  %v17417_v38 = vld [vmem:[%s22747_s3 + $0x6] ss:$0 sm:$0xff]  ;;  %v16806_v40 = vld [vmem:[%s22745_s1 + $0x618] sm:$0xff] }
 0x795   : > { %5566 = vmatpush.bf16.msrb.mxu3 %v16806_v40 }
 0x796   : > { %v4587_v4 = vadd.f32 %v4586_v13, %v4573_v31  ;;  %v16816_v13 = vld [vmem:[%s22745_s1 + $0x668] sm:$0xff] }
 0x797   : > { %5578 = vmatpush.bf16.msrb.mxu2 %v16816_v13 }
 0x799   : > { %v19841_v15 = vpop.f32.mrf.mxu0  ;;  %v19846_v1 = vpop.f32.mrf.mxu2  ;;  %5567 = vmatpush.bf16.msrb.mxu3 %v16805_v34 }
 0x79b   : > { %v19854_v49 = vpop.f32.mrf.mxu1 }
 0x79d   : > { %5568 = vmatpush.bf16.msrb.mxu3 %v16804_v58 }
 0x7a0   : > { %v4600_v50 = vpop.f32.mrf.mxu3 }
 0x7a1   : > { %v4601_v22 = vadd.f32 %v4600_v50, %v4587_v4  ;;  %v4628_v14 = vpop.f32.mrf.mxu0  ;;  %v16795_v4 = vld [vmem:[%s22745_s1 + $0x5c0] sm:$0xff]  ;;  %5569 = vmatpush.bf16.msrb.mxu3 %v16803_v44 }
 0x7a2   : > { %v17418_v50 = vld [vmem:[%s22748_s4 + $0x6] ss:$0 sm:$0xff]  ;;  %5555 = vmatpush.bf16.msrb.mxu1 %v16795_v4 }
 0x7a8   : > { %v19856_v45 = vpop.f32.mrf.mxu3 }
 0x7a9   : > { %v4614_v55 = vpop.f32.mrf.mxu2  ;;  %v19877_v26 = vpop.f32.mrf.mxu0 }
 0x7aa   : > { %v4615_v7 = vadd.f32 %v4614_v55, %v4601_v22  ;;  %v16789_v22 = vld [vmem:[%s22745_s1 + $0x590] sm:$0xff]  ;;  %v16815_v55 = vld [vmem:[%s22745_s1 + $0x660] sm:$0xff] }
 0x7ab   : > { %v4642_v17 = vpop.f32.mrf.mxu1  ;;  %5539 = vmatpush.bf16.msrb.mxu0 %v16789_v22  ;;  %5579 = vmatpush.bf16.msrb.mxu2 %v16815_v55 }
 0x7ac   : > { %v4629_v39 = vadd.f32 %v4628_v14, %v4615_v7 }
 0x7ae   : > { %v19873_v48 = vadd.f32 %v4642_v17, %v4629_v39 }
 0x7af   : > { %5540 = vmatpush.bf16.msrb.mxu0 %v16788_v25 }
 0x7b1   : > { %v19875_v8 = vpop.f32.mrf.mxu2  ;;  %v5078_v3 = vpop.f32.mrf.mxu0 }
 0x7b2   : > { %v5050_v61 = vpop.f32.mrf.mxu3 }
 0x7b3   : > { %v19903_v62 = vpop.f32.mrf.mxu1  ;;  %5541 = vmatpush.bf16.msrb.mxu0 %v16787_v47 }
 0x7b9   : > { %v5064_v24 = vpop.f32.mrf.mxu2  ;;  %v5080_v14 = vpop.f32.mrf.mxu0 }
 0x7ba   : > { %v5052_v30 = vpop.f32.mrf.mxu3  ;;  %v5065_v63 = vadd.f32 %v5064_v24, %v5050_v61  ;;  %v16814_v61 = vld [vmem:[%s22745_s1 + $0x658] sm:$0xff]  ;;  %v5132_v24 = vunpack.c.l.b16 %v5123_v23 }
 0x7bb   : > { %5580 = vmatpush.bf16.msrb.mxu2 %v16814_v61 }
 0x7bc   : > { %v5079_v51 = vadd.f32 %v5078_v3, %v5065_v63  ;;  %v5158_v63 = vunpack.c.l.b16 %v5127_v59 }
 0x7be   : > { %v5159_v41 = vpack.c.b16 %v5158_v63, %v5158_v63 }
 0x7bf   : > { %5581 = vmatpush.bf16.msrb.mxu2 %v16813_v20 }
 0x7c0   : > { %v5179_v20 = vrot.slane %v5159_v41, 6 }
 0x7c1   : > { %v5066_v42 = vpop.f32.mrf.mxu2 }
 0x7c2   : > { %v5106_v31 = vpop.f32.mrf.mxu3  ;;  %v5067_v37 = vadd.f32 %v5066_v42, %v5052_v30 }
 0x7c3   : > { %v5092_v10 = vpop.f32.mrf.mxu1  ;;  %5582 = vmatpush.bf16.msrb.mxu2 %v16812_v33 }
 0x7c4   : > { %v5093_v53 = vadd.f32 %v5092_v10, %v5079_v51  ;;  %v5081_v56 = vadd.f32 %v5080_v14, %v5067_v37 }
 0x7c6   : > { %v5107_v12 = vadd.f32 %v5106_v31, %v5093_v53  ;;  %v5170_v53 = vshll.u32 %v5159_v41, 16 }
 0x7c7   : > { %5583 = vmatpush.bf16.msrb.mxu2 %v16811_v6 }
 0x7c8   : > { %v5113_v2 = vmul.f32 %v17417_v38, %v5107_v12  ;;  %v5172_v14 = vrot.slane %v5170_v53, 6  ;;  %v16831_v53 = vld [vmem:[%s22745_s1 + $0x6e0] sm:$0xff] }
 0x7ca   : > { %v5117_v7 = vadd.f32 %v17418_v50, %v5113_v2  ;;  %v5108_v27 = vpop.f32.mrf.mxu3 }
 0x7cb   : > { %v5094_v39 = vpop.f32.mrf.mxu1 }
 0x7cc   : > { %v5119_v29 = vpack.c.bf16 %v5117_v7, %v5117_v7  ;;  %v5095_v17 = vadd.f32 %v5094_v39, %v5081_v56 }
 0x7ce   : > { %5121 = vst [vmem:[#allocation2 + $0x1c] sm:$0xf] %v5119_v29  ;;  %v5109_v11 = vadd.f32 %v5108_v27, %v5095_v17 }
 0x7d0   : > { %v5114_v32 = vmul.f32 %v17417_v38, %v5109_v11 }
 0x7d2   : > { %v5118_v0 = vadd.f32 %v17418_v50, %v5114_v32 }
 0x7d4   : > { %v5120_v52 = vpack.c.bf16 %v5118_v0, %v5118_v0 }
 0x7d5   : > { %v5124_v5 = vld [vmem:[#allocation2 + $0x1c] sm:$0xf] }
 0x7d6   : > { %5122 = vst [vmem:[#allocation2 + $0x28] sm:$0xf] %v5120_v52  ;;  %v5133_v30 = vunpack.c.l.b16 %v5124_v5  ;;  %v5128_v31 = vld [vmem:[#allocation2 + $0x1c] sm:$0xe] }
 0x7d7   : > { %v5175_v55 = vunpack.c.l.b16 %v5128_v31 }
 0x7d8   : > { %v5135_v21 = vpack.c.b16 %v5133_v30, %v5132_v24 }
 0x7da   : > { %v5143_v3 = vshll.u32 %v5135_v21, 16  ;;  %v5261_v13 = vrot.slane %v5135_v21, 3  ;;  %v5141_v4 = vshrl.u32 %v5135_v21, 16  ;;  %v16834_v21 = vld [vmem:[%s22745_s1 + $0x6f8] sm:$0xff] }
 0x7db   : > { %6528 = vmatpush.bf16.msra.mxu1 %v16834_v21 }
 0x7dc   : > { %v5145_v10 = vrot.slane %v5143_v3, 1  ;;  %v16833_v3 = vld [vmem:[%s22745_s1 + $0x6f0] sm:$0xff] }
 0x7dd   : > { %v5126_v46 = vld [vmem:[#allocation2 + $0x28] sm:$0xf] }
 0x7de   : > { %v5125_v16 = vld [vmem:[#allocation2 + $0x28] sm:$0x7]  ;;  %v5138_v51 = vunpack.c.l.b16 %v5126_v46  ;;  %v5146_v2 = vor.u32 %v5145_v10, %v5141_v4  ;;  %v17420_v4 = vld [vmem:[%s22748_s4 + $0x7] ss:$0 sm:$0xff] }
 0x7df   : > { %v5134_v60 = vunpack.c.l.b16 %v5125_v16  ;;  %6529 = vmatpush.bf16.msra.mxu1 %v16833_v3 }
 0x7e0   : > { %v5155_v42 = vpack.c.b16 %v5138_v51, %v5133_v30  ;;  %v5139_v40 = vpack.c.b16 %v5138_v51, %v5138_v51  ;;  %v5176_v29 = vpack.c.b16 %v5138_v51, %v5175_v55  ;;  %v16832_v51 = vld [vmem:[%s22745_s1 + $0x6e8] sm:$0xff]  ;;  %v16829_v55 = vld [vmem:[%s22745_s1 + $0x6d0] sm:$0xff] }
 0x7e1   : > { %v5136_v38 = vpack.c.b16 %v5134_v60, %v5134_v60 }
 0x7e2   : > { %v5162_v37 = vshrl.u32 %v5155_v42, 16  ;;  %v5165_v12 = vshll.u32 %v5155_v42, 16  ;;  %5556 = vmatmul.bf16.vlgmr.msrb.gmra.mxu1 %v5155_v42  ;;  %v5148_v22 = vshll.u32 %v5139_v40, 16  ;;  %v5152_v34 = vshrl.u32 %v5139_v40, 16 }
 0x7e3   : > { %v5262_v50 = vrot.slane %v5136_v38, 3  ;;  %v5178_v23 = vrot.slane %v5176_v29, 6  ;;  %6530 = vmatpush.bf16.msra.mxu1 %v16832_v51  ;;  %v17419_v38 = vld [vmem:[%s22747_s3 + $0x7] ss:$0 sm:$0xff]  ;;  %v17412_v29 = vld [vmem:[%s22748_s4 + $0x9] ss:$0 sm:$0xff] }
 0x7e4   : > { %v5150_v56 = vrot.slane %v5148_v22, 1  ;;  %v5164_v25 = vrot.slane %v5162_v37, 5  ;;  %v5167_v39 = vrot.slane %v5165_v12, 6  ;;  %v16830_v37 = vld [vmem:[%s22745_s1 + $0x6d8] sm:$0xff] }
 0x7e5   : > { %v5263_v7 = vsel %vm1537_vm6, %v5261_v13, %v5262_v50  ;;  %v5180_v24 = vsel %vm1721_vm10, %v5178_v23, %v5179_v20  ;;  %v5272_v5 = vrot.slane %v5178_v23, 3 }
 0x7e6   : > { %5528 = vmatmul.bf16.vlgmr.msra.gmra.mxu2 %v5263_v7  ;;  %v5151_v17 = vsel %vm1455_vm9, %v5146_v2, %v5150_v56  ;;  %v5154_v58 = vor.u32 %v5152_v34, %v5150_v56  ;;  %v5168_v27 = vor.u32 %v5167_v39, %v5164_v25  ;;  %v5273_v33 = vrot.slane %v5180_v24, 3  ;;  %v17411_v2 = vld [vmem:[%s22747_s3 + $0x9] ss:$0 sm:$0xff] }
 0x7e7   : > { %v5264_v61 = vrot.slane %v5151_v17, 3  ;;  %6531 = vmatpush.bf16.msra.mxu1 %v16831_v53  ;;  %v6650_v39 = vmul.f32 %v17411_v2, %v19383_v57  ;;  %v16827_v57 = vld [vmem:[%s22745_s1 + $0x6c0] sm:$0xff]  ;;  %v6651_v24 = vmul.f32 %v17411_v2, %v19388_v35 }
 0x7e8   : > { %v5265_v11 = vrot.slane %v5154_v58, 3  ;;  %v5173_v47 = vsel %vm5160_vm4, %v5168_v27, %v5172_v14  ;;  %v5269_v32 = vrot.slane %v5168_v27, 3  ;;  %v5274_v30 = vsel %vm1537_vm6, %v5272_v5, %v5273_v33  ;;  %v16828_v58 = vld [vmem:[%s22745_s1 + $0x6c8] sm:$0xff] }
 0x7e9   : > { %v5270_v44 = vrot.slane %v5173_v47, 3  ;;  %v6654_v47 = vadd.f32 %v17412_v29, %v6650_v39  ;;  %v6655_v53 = vadd.f32 %v17412_v29, %v6651_v24  ;;  %vm22799_vm4 = vcmask 719872  }
 0x7ea   : > { %v5266_v0 = vsel %vm1537_vm6, %v5264_v61, %v5265_v11  ;;  %v5608_v61 = vld [vmem:[#allocation2 + $0x10] sm:$0xee]  ;;  %vm22800_vm0 = vmmov %vm22799_vm4 }
 0x7eb   : > { %5542 = vmatmul.bf16.vlgmr.msrb.gmra.mxu0 %v5266_v0  ;;  %v5271_v52 = vsel %vm1537_vm6, %v5269_v32, %v5270_v44  ;;  %6532 = vmatpush.bf16.msra.mxu1 %v16830_v37  ;;  %v5602_v11 = vld [vmem:[#allocation2 + $0xc] sm:$0xee]  ;;  %v5656_v20 = vunpack.c.h.b16 %v5608_v61  ;;  %v5655_v0 = vunpack.c.l.b16 %v5608_v61  ;;  %v6656_v21 = vpack.c.bf16 %v6654_v47, %v6654_v47 }
 0x7ec   : > { %5570 = vmatmul.bf16.vlgmr.msrb.gmra.mxu3 %v5271_v52  ;;  %v5605_v44 = vld [vmem:[#allocation2 + $0x10] sm:$0xe]  ;;  %v5624_v52 = vunpack.c.h.b16 %v5602_v11 }
 0x7ef   : > { %6533 = vmatpush.bf16.msra.mxu1 %v16829_v55 }
 0x7f3   : > { %6534 = vmatpush.bf16.msra.mxu1 %v16828_v58 }
 0x7f6   : > { %5584 = vmatmul.bf16.vlgmr.msrb.gmra.mxu2 %v5274_v30 }
 0x7f7   : > { %6535 = vmatpush.bf16.msra.mxu1 %v16827_v57 }
 0x85f   : > { %v5557_v16 = vpop.f32.mrf.mxu1 }
 0x867   : > { %v5559_v50 = vpop.f32.mrf.mxu1 }
 0x868   : > { %v5543_v63 = vpop.f32.mrf.mxu0 }
 0x869   : > { %v5529_v59 = vpop.f32.mrf.mxu2 }
 0x86a   : > { %v5544_v46 = vadd.f32 %v5543_v63, %v5529_v59  ;;  %v5647_v59 = vunpack.c.l.b16 %v5605_v44 }
 0x86c   : > { %v5558_v60 = vadd.f32 %v5557_v16, %v5544_v46 }
 0x86f   : > { %v5571_v41 = vpop.f32.mrf.mxu3 }
 0x870   : > { %v5545_v10 = vpop.f32.mrf.mxu0  ;;  %v5572_v42 = vadd.f32 %v5571_v41, %v5558_v60 }
 0x871   : > { %v5531_v6 = vpop.f32.mrf.mxu2 }
 0x872   : > { %v5546_v31 = vadd.f32 %v5545_v10, %v5531_v6 }
 0x874   : > { %v5560_v34 = vadd.f32 %v5559_v50, %v5546_v31  ;;  %v6657_v31 = vpack.c.bf16 %v6655_v53, %v6655_v53 }
 0x877   : > { %v5573_v22 = vpop.f32.mrf.mxu3 }
 0x878   : > { %v5574_v7 = vadd.f32 %v5573_v22, %v5560_v34 }
 0x879   : > { %v5585_v40 = vpop.f32.mrf.mxu2 }
 0x87a   : > { %v5586_v13 = vadd.f32 %v5585_v40, %v5572_v42 }
 0x87c   : > { %v5592_v12 = vmul.f32 %v17419_v38, %v5586_v13 }
 0x87e   : > { %v5596_v14 = vadd.f32 %v17420_v4, %v5592_v12 }
 0x880   : > { %v5598_v56 = vpack.c.bf16 %v5596_v14, %v5596_v14 }
 0x881   : > { %v5587_v25 = vpop.f32.mrf.mxu2 }
 0x882   : > { %5600 = vst [vmem:[#allocation2 + $0x1c] sm:$0xf] %v5598_v56  ;;  %v5588_v17 = vadd.f32 %v5587_v25, %v5574_v7  ;;  %v5615_v25 = vld [vmem:[#allocation2 + $0x30] sm:$0x77] }
 0x884   : > { %v5593_v27 = vmul.f32 %v17419_v38, %v5588_v17  ;;  %v5623_v38 = vunpack.c.l.b16 %v5602_v11 }
 0x886   : > { %v5597_v32 = vadd.f32 %v17420_v4, %v5593_v27 }
 0x888   : > { %v5599_v23 = vpack.c.bf16 %v5597_v32, %v5597_v32  ;;  %v5743_v32 = vunpack.c.l.b16 %v5615_v25 }
 0x889   : > { %v20024_v5 = vld [vmem:[#allocation2 + $0x1c] sm:$0xc] }
 0x88a   : > { %v20026_v33 = vld [vmem:[#allocation2 + $0x1c] sm:$0xff]  ;;  %5601 = vst [vmem:[#allocation2 + $0x28] sm:$0xf] %v5599_v23 }
 0x88b   : > { %v5603_v30 = vld [vmem:[#allocation2 + $0x18] sm:$0xff]  ;;  %v5658_v63 = vunpack.c.h.b16 %v20026_v33  ;;  %v5657_v6 = vunpack.c.l.b16 %v20026_v33 }
 0x88c   : > { %v5626_v3 = vunpack.c.h.b16 %v5603_v30  ;;  %v20030_v46 = vld [vmem:[#allocation2 + $0x1c] sm:$0xf]  ;;  %v5625_v40 = vunpack.c.l.b16 %v5603_v30 }
 0x88d   : > { %v20032_v16 = vld [vmem:[#allocation2 + $0x18] sm:$0xcc]  ;;  %v5648_v35 = vunpack.c.l.b16 %v20030_v46  ;;  %v5662_v51 = vpack.c.b16 %v5658_v63, %v5656_v20  ;;  %v5661_v60 = vpack.c.b16 %v5657_v6, %v5655_v0 }
 0x88e   : > { %v20035_v41 = vld [vmem:[#allocation2 + $0x1c] sm:$0xcc]  ;;  %v5630_v10 = vpack.c.b16 %v5626_v3, %v5624_v52  ;;  %v5629_v29 = vpack.c.b16 %v5625_v40, %v5623_v38  ;;  %v5741_v38 = vunpack.c.l.b16 %v20032_v16 }
 0x88f   : > { %6658 = vst [vmem:[#allocation2 + $0x1c] sm:$0xf] %v6656_v21  ;;  %v5650_v42 = vpack.c.b16 %v5648_v35, %v5647_v59  ;;  %5667 = vrot.lane.b32.xlu2 %v5662_v51, %s22780_s16  ;;  %5665 = vrot.lane.b32.xlu0 %v5661_v60, %s22780_s16  ;;  %v5742_v60 = vunpack.c.h.b16 %v20032_v16 }
 0x890   : > { %5635 = vrot.lane.b32.xlu1 %v5630_v10, %s22797_s15  ;;  %v5744_v10 = vunpack.c.h.b16 %v5615_v25 }
 0x891   : > { %v20046_v13 = vld [vmem:[#allocation2 + $0x28] sm:$0xf]  ;;  %v5962_v12 = vshrl.u32 %v5650_v42, 16  ;;  %v5965_v56 = vshll.u32 %v5650_v42, 16 }
 0x892   : > { %v20048_v4 = vld [vmem:[#allocation2 + $0x28] sm:$0xff] }
 0x893   : > { %v5611_v37 = vld [vmem:[#allocation2 + $0x24] sm:$0xff]  ;;  %v5964_v44 = vrot.slane %v5962_v12, 1  ;;  %v5967_v57 = vrot.slane %v5965_v56, 2 }
 0x894   : > { %v5610_v50 = vld [vmem:[#allocation2 + $0x28] sm:$0x33]  ;;  %v5677_v22 = vunpack.c.l.b16 %v5611_v37  ;;  %v5678_v39 = vunpack.c.h.b16 %v5611_v37 }
 0x895   : > { %v5607_v2 = vld [vmem:[#allocation2 + $0x28] sm:$0x3]  ;;  %v5660_v14 = vunpack.c.h.b16 %v5610_v50  ;;  %v5659_v55 = vunpack.c.l.b16 %v5610_v50  ;;  %v5968_v53 = vor.u32 %v5967_v57, %v5964_v44  ;;  %v5619_v44 = vld [vmem:[#allocation2 + $0x34] sm:$0x77] }
 0x896   : > { %v5604_v34 = vld [vmem:[#allocation2 + $0x24] sm:$0x33]  ;;  %v5649_v7 = vunpack.c.l.b16 %v5607_v2  ;;  %v5679_v17 = vpack.c.b16 %v5677_v22, %v5625_v40  ;;  %v5680_v0 = vpack.c.b16 %v5678_v39, %v5626_v3  ;;  %v5747_v40 = vpack.c.b16 %v5743_v32, %v5743_v32 }
 0x897   : > { %6659 = vst [vmem:[#allocation2 + $0x28] sm:$0xf] %v6657_v31  ;;  %v5664_v58 = vpack.c.b16 %v5660_v14, %v5660_v14  ;;  %v5663_v27 = vpack.c.b16 %v5659_v55, %v5659_v55  ;;  %5633 = vrot.lane.b32.xlu2 %v5629_v29, %s22797_s15  ;;  %v5627_v52 = vunpack.c.l.b16 %v5604_v34  ;;  %v5628_v24 = vunpack.c.h.b16 %v5604_v34 }
 0x898   : > { %v5651_v61 = vpack.c.b16 %v5649_v7, %v5649_v7  ;;  %v5682_v11 = vshrl.u32 %v5679_v17, 16  ;;  %v5685_v47 = vshll.u32 %v5679_v17, 16  ;;  %v5714_v31 = vunpack.c.l.b16 %v20048_v4 }
 0x899   : > { %5671 = vrot.lane.b32.xlu0 %v5664_v58, %s22780_s16  ;;  %5669 = vrot.lane.b32.xlu1 %v5663_v27, %s22780_s16  ;;  %v5631_v37 = vpack.c.b16 %v5627_v52, %v5627_v52  ;;  %v5632_v12 = vpack.c.b16 %v5628_v24, %v5628_v24  ;;  %v5690_v50 = vshrl.u32 %v5680_v0, 16  ;;  %v5693_v34 = vshll.u32 %v5680_v0, 16 }
 0x89a   : > { %v5970_v23 = vshrl.u32 %v5651_v61, 16  ;;  %v5973_v20 = vshll.u32 %v5651_v61, 16  ;;  %v5684_v21 = vrot.slane %v5682_v11, 6  ;;  %v5687_v51 = vrot.slane %v5685_v47, 7 }
 0x89b   : > { %v5745_v14 = vpack.c.b16 %v5677_v22, %v5741_v38  ;;  %v5746_v55 = vpack.c.b16 %v5678_v39, %v5742_v60  ;;  %v5748_v7 = vpack.c.b16 %v5744_v10, %v5744_v10  ;;  %v5750_v16 = vrot.slane %v5747_v40, 1 }
 0x89c   : > { %v5972_v30 = vrot.slane %v5970_v23, 1  ;;  %v5975_v59 = vrot.slane %v5973_v20, 2  ;;  %v5688_v2 = vor.u32 %v5687_v51, %v5684_v21  ;;  %v5716_v56 = vpack.c.b16 %v5714_v31, %v5657_v6 }
 0x89d   : > { %v5692_v25 = vrot.slane %v5690_v50, 6  ;;  %v5695_v29 = vrot.slane %v5693_v34, 7  ;;  %v5749_v17 = vrot.slane %v5745_v14, 1  ;;  %v5752_v58 = vrot.slane %v5746_v55, 1  ;;  %v14648_v50 = vld [vmem:[#allocation2 + $0x18] sm:$0xf] }
 0x89e   : > { %v5976_v42 = vor.u32 %v5975_v59, %v5972_v30  ;;  %v5753_v27 = vrot.slane %v5748_v7, 1  ;;  %v5715_v22 = vunpack.c.h.b16 %v20048_v4  ;;  %v5719_v39 = vshrl.u32 %v5716_v56, 16  ;;  %v16826_v14 = vld [vmem:[%s22745_s1 + $0x6b8] sm:$0xff]  ;;  %v16840_v55 = vld [vmem:[%s22745_s1 + $0x728] sm:$0xff] }
 0x89f   : > { %5639 = vrot.lane.b32.xlu2 %v5632_v12, %s22797_s15  ;;  %v5696_v61 = vor.u32 %v5695_v29, %v5692_v25  ;;  %v5751_v11 = vsel %vm1473_vm7, %v5749_v17, %v5750_v16  ;;  %v5722_v47 = vshll.u32 %v5716_v56, 16  ;;  %v5778_v4 = vunpack.c.l.b16 %v5619_v44  ;;  %v16842_v12 = vld [vmem:[%s22745_s1 + $0x738] sm:$0xff]  ;;  %6514 = vmatpush.bf16.msra.mxu0 %v16826_v14  ;;  %v16839_v56 = vld [vmem:[%s22745_s1 + $0x720] sm:$0xff]  ;;  %v14650_v25 = vld [vmem:[#allocation2 + $0x24] sm:$0xf0] }
 0x8a0   : > { %v5977_v3 = vsel %vm1482_vm14, %v5968_v53, %v5976_v42  ;;  %v5754_v32 = vsel %vm1473_vm7, %v5752_v58, %v5753_v27  ;;  %v5717_v6 = vpack.c.b16 %v5715_v22, %v5658_v63  ;;  %v5721_v57 = vrot.slane %v5719_v39, 6  ;;  %6542 = vmatpush.bf16.msra.mxu3 %v16842_v12  ;;  %v16850_v7 = vld [vmem:[%s22745_s1 + $0x778] sm:$0xff]  ;;  %v16824_v58 = vld [vmem:[%s22745_s1 + $0x6a8] sm:$0xff]  ;;  %v16855_v14 = vld [vmem:[%s22745_s1 + $0x7a0] sm:$0xff] }
 0x8a1   : > { %6536 = vmatmul.bf16.vlgmr.msra.gmra.mxu1 %v5977_v3  ;;  %5637 = vrot.lane.b32.xlu0 %v5631_v37, %s22797_s15  ;;  %v5724_v23 = vrot.slane %v5722_v47, 7  ;;  %v5779_v20 = vunpack.c.h.b16 %v5619_v44  ;;  %v5776_v0 = vunpack.c.l.b16 %v20035_v41  ;;  %v5777_v24 = vunpack.c.h.b16 %v20035_v41  ;;  %v16892_v3 = vld [vmem:[#allocation2 + $0x20] sm:$0xf0]  ;;  %v16891_v29 = vld [vmem:[#allocation2 + $0x1c] sm:$0xf]  ;;  %v16848_v47 = vld [vmem:[%s22745_s1 + $0x768] sm:$0xff] }
 0x8a2   : > { %5697 = vrot.lane.b32.xlu1 %v5688_v2, %s22797_s15  ;;  %v5727_v52 = vshrl.u32 %v5717_v6, 16  ;;  %v5730_v59 = vshll.u32 %v5717_v6, 16  ;;  %v5782_v51 = vpack.c.b16 %v5778_v4, %v5778_v4  ;;  %v16841_v2 = vld [vmem:[%s22745_s1 + $0x730] sm:$0xff]  ;;  %v14649_v34 = vor.u32 %v16892_v3, %v14648_v50  ;;  %6556 = vmatpush.bf16.msra.mxu2 %v16850_v7  ;;  %v16895_v39 = vld [vmem:[#allocation2 + $0x24] sm:$0xf0]  ;;  %v16822_v6 = vld [vmem:[%s22745_s1 + $0x698] sm:$0xff] }
 0x8a3   : > { %v5725_v30 = vor.u32 %v5724_v23, %v5721_v57  ;;  %v5780_v21 = vpack.c.b16 %v5714_v31, %v5776_v0  ;;  %v5781_v60 = vpack.c.b16 %v5715_v22, %v5777_v24  ;;  %v5783_v10 = vpack.c.b16 %v5779_v20, %v5779_v20  ;;  %v16849_v22 = vld [vmem:[%s22745_s1 + $0x770] sm:$0xff]  ;;  %v16836_v57 = vld [vmem:[%s22745_s1 + $0x708] sm:$0xff]  ;;  %v16894_v23 = vld [vmem:[#allocation2 + $0x20] sm:$0xf] }
 0x8a4   : > { %v5729_v33 = vrot.slane %v5727_v52, 6  ;;  %v5732_v63 = vrot.slane %v5730_v59, 7  ;;  %v5785_v42 = vrot.slane %v5782_v51, 1  ;;  %6543 = vmatpush.bf16.msra.mxu3 %v16841_v2  ;;  %v14653_v17 = vor.u32 %v16891_v29, %v14650_v25  ;;  %v14662_v4 = vld [vmem:[#allocation2 + $0x28] sm:$0xf0]  ;;  %v16847_v20 = vld [vmem:[%s22745_s1 + $0x760] sm:$0xff] }
 0x8a5   : > { %v5784_v53 = vrot.slane %v5780_v21, 1  ;;  %v5787_v38 = vrot.slane %v5781_v60, 1  ;;  %v5788_v40 = vrot.slane %v5783_v10, 1  ;;  %v16821_v0 = vld [vmem:[%s22745_s1 + $0x690] sm:$0xff]  ;;  %v16835_v52 = vld [vmem:[%s22745_s1 + $0x700] sm:$0xff]  ;;  %v16874_v24 = vld [vmem:[%s22745_s1 + $0x838] sm:$0xff] }
 0x8a6   : > { %v5733_v37 = vor.u32 %v5732_v63, %v5729_v33  ;;  %6557 = vmatpush.bf16.msra.mxu2 %v16849_v22  ;;  %v16846_v59 = vld [vmem:[%s22745_s1 + $0x758] sm:$0xff]  ;;  %v16820_v21 = vld [vmem:[%s22745_s1 + $0x688] sm:$0xff]  ;;  %v16873_v51 = vld [vmem:[%s22745_s1 + $0x830] sm:$0xff] }
 0x8a7   : > { %5755 = vrot.lane.b32.xlu2 %v5751_v11, %s22797_s15  ;;  %v5786_v41 = vsel %vm1473_vm7, %v5784_v53, %v5785_v42  ;;  %v5789_v31 = vsel %vm1473_vm7, %v5787_v38, %v5788_v40  ;;  %v16837_v11 = vld [vmem:[%s22745_s1 + $0x710] sm:$0xff]  ;;  %v16866_v60 = vld [vmem:[%s22745_s1 + $0x7f8] sm:$0xff]  ;;  %v16819_v33 = vld [vmem:[%s22745_s1 + $0x680] sm:$0xff] }
 0x8a8   : > { %6544 = vmatpush.bf16.msra.mxu3 %v16840_v55  ;;  %v16845_v10 = vld [vmem:[%s22745_s1 + $0x750] sm:$0xff]  ;;  %6584 = vmatpush.bf16.msrb.mxu1 %v16866_v60  ;;  %v16858_v63 = vld [vmem:[%s22745_s1 + $0x7b8] sm:$0xff]  ;;  %v16872_v53 = vld [vmem:[%s22745_s1 + $0x828] sm:$0xff] }
 0x8a9   : > { %5699 = vrot.lane.b32.xlu0 %v5696_v61, %s22797_s15  ;;  %v16823_v61 = vld [vmem:[%s22745_s1 + $0x6a0] sm:$0xff]  ;;  %v16844_v38 = vld [vmem:[%s22745_s1 + $0x748] sm:$0xff]  ;;  %v16882_v12 = vld [vmem:[%s22745_s1 + $0x878] sm:$0xff] }
 0x8aa   : > { %5757 = vrot.lane.b32.xlu1 %v5754_v32, %s22797_s15  ;;  %v14660_v32 = vld [vmem:[#allocation2 + $0x1c] sm:$0xf]  ;;  %6558 = vmatpush.bf16.msra.mxu2 %v16848_v47  ;;  %v16856_v50 = vld [vmem:[%s22745_s1 + $0x7a8] sm:$0xff]  ;;  %v16863_v2 = vld [vmem:[%s22745_s1 + $0x7e0] sm:$0xff] }
 0x8ab   : > { %v14661_v44 = vor.u32 %v16895_v39, %v14660_v32  ;;  %v16870_v3 = vld [vmem:[%s22745_s1 + $0x818] sm:$0xff]  ;;  %v16869_v55 = vld [vmem:[%s22745_s1 + $0x810] sm:$0xff]  ;;  %v16868_v29 = vld [vmem:[%s22745_s1 + $0x808] sm:$0xff] }
 0x8ac   : > { %6545 = vmatpush.bf16.msra.mxu3 %v16839_v56  ;;  %v16880_v56 = vld [vmem:[%s22745_s1 + $0x868] sm:$0xff]  ;;  %v16854_v25 = vld [vmem:[%s22745_s1 + $0x798] sm:$0xff]  ;;  %v16867_v22 = vld [vmem:[%s22745_s1 + $0x800] sm:$0xff] }
 0x8ad   : > { %v16878_v39 = vld [vmem:[%s22745_s1 + $0x858] sm:$0xff]  ;;  %v16852_v47 = vld [vmem:[%s22745_s1 + $0x788] sm:$0xff]  ;;  %v16859_v32 = vld [vmem:[%s22745_s1 + $0x7c0] sm:$0xff] }
 0x8ae   : > { %6559 = vmatpush.bf16.msra.mxu2 %v16847_v20  ;;  %v16900_v60 = vld [vmem:[%s22745_s1 + $0x8e0] sm:$0xff] }
 0x8af   : > { %5761 = vrot.lane.b32.xlu2 %v5753_v27, %s22797_s15  ;;  %v16838_v27 = vld [vmem:[%s22745_s1 + $0x718] sm:$0xff] }
 0x8b0   : > { %6546 = vmatpush.bf16.msra.mxu3 %v16838_v27  ;;  %v16853_v27 = vld [vmem:[%s22745_s1 + $0x790] sm:$0xff] }
 0x8b1   : > { %5759 = vrot.lane.b32.xlu0 %v5750_v16, %s22797_s15  ;;  %v16825_v16 = vld [vmem:[%s22745_s1 + $0x6b0] sm:$0xff] }
 0x8b2   : > { %5734 = vrot.lane.b32.xlu1 %v5725_v30, %s22780_s16  ;;  %6515 = vmatpush.bf16.msra.mxu0 %v16825_v16  ;;  %v14665_v30 = vor.u32 %v16894_v23, %v14662_v4  ;;  %v16862_v16 = vld [vmem:[%s22745_s1 + $0x7d8] sm:$0xff]  ;;  %v16902_v23 = vld [vmem:[%s22745_s1 + $0x8f0] sm:$0xff] }
 0x8b3   : > { %6560 = vmatpush.bf16.msra.mxu2 %v16846_v59 }
 0x8b4   : > { %6547 = vmatpush.bf16.msra.mxu3 %v16837_v11  ;;  %v16860_v11 = vld [vmem:[%s22745_s1 + $0x7c8] sm:$0xff] }
 0x8b6   : > { %6516 = vmatpush.bf16.msra.mxu0 %v16824_v58  ;;  %v16879_v58 = vld [vmem:[%s22745_s1 + $0x860] sm:$0xff] }
 0x8b7   : > { %5790 = vrot.lane.b32.xlu2 %v5786_v41, %s22780_s16  ;;  %6561 = vmatpush.bf16.msra.mxu2 %v16845_v10  ;;  %v16864_v41 = vld [vmem:[%s22745_s1 + $0x7e8] sm:$0xff] }
 0x8b8   : > { %6548 = vmatpush.bf16.msra.mxu3 %v16836_v57  ;;  %v16851_v57 = vld [vmem:[%s22745_s1 + $0x780] sm:$0xff] }
 0x8b9   : > { %5736 = vrot.lane.b32.xlu0 %v5733_v37, %s22780_s16  ;;  %v16871_v37 = vld [vmem:[%s22745_s1 + $0x820] sm:$0xff] }
 0x8ba   : > { %5792 = vrot.lane.b32.xlu1 %v5789_v31, %s22780_s16  ;;  %6517 = vmatpush.bf16.msra.mxu0 %v16823_v61  ;;  %v16843_v31 = vld [vmem:[%s22745_s1 + $0x740] sm:$0xff] }
 0x8bb   : > { %6562 = vmatpush.bf16.msra.mxu2 %v16844_v38 }
 0x8bc   : > { %6549 = vmatpush.bf16.msra.mxu3 %v16835_v52 }
 0x8be   : > { %6518 = vmatpush.bf16.msra.mxu0 %v16822_v6  ;;  %v16877_v6 = vld [vmem:[%s22745_s1 + $0x850] sm:$0xff] }
 0x8bf   : > { %5796 = vrot.lane.b32.xlu2 %v5788_v40, %s22780_s16  ;;  %v16857_v40 = vld [vmem:[%s22745_s1 + $0x7b0] sm:$0xff]  ;;  %6563 = vmatpush.bf16.msra.mxu2 %v16843_v31 }
 0x8c0   : > { %6598 = vmatpush.bf16.msrb.mxu3 %v16874_v24  ;;  %v16901_v24 = vld [vmem:[%s22745_s1 + $0x8e8] sm:$0xff] }
 0x8c1   : > { %5794 = vrot.lane.b32.xlu0 %v5785_v42, %s22780_s16  ;;  %v16865_v42 = vld [vmem:[%s22745_s1 + $0x7f0] sm:$0xff] }
 0x8c2   : > { %6680 = vrot.lane.b32.xlu1 %v14649_v34, %s22781_s10  ;;  %6519 = vmatpush.bf16.msra.mxu0 %v16821_v0  ;;  %v16876_v0 = vld [vmem:[%s22745_s1 + $0x848] sm:$0xff] }
 0x8c3   : > { %6585 = vmatpush.bf16.msrb.mxu1 %v16865_v42  ;;  %6612 = vmatpush.bf16.msrb.mxu2 %v16882_v12  ;;  %v16899_v42 = vld [vmem:[%s22745_s1 + $0x8d8] sm:$0xff]  ;;  %v5703_v12 = vunpack.c.l.b16 %v20046_v13 }
 0x8c4   : > { %6599 = vmatpush.bf16.msrb.mxu3 %v16873_v51 }
 0x8c6   : > { %6520 = vmatpush.bf16.msra.mxu0 %v16820_v21 }
 0x8c7   : > { %6686 = vrot.lane.b32.xlu2 %v14649_v34, %s22798_s13  ;;  %6586 = vmatpush.bf16.msrb.mxu1 %v16864_v41 }
 0x8c8   : > { %6600 = vmatpush.bf16.msrb.mxu3 %v16872_v53 }
 0x8c9   : > { %6682 = vrot.lane.b32.xlu0 %v14653_v17, %s22781_s10 }
 0x8ca   : > { %6688 = vrot.lane.b32.xlu1 %v14653_v17, %s22798_s13  ;;  %6521 = vmatpush.bf16.msra.mxu0 %v16819_v33 }
 0x8cb   : > { %6587 = vmatpush.bf16.msrb.mxu1 %v16863_v2 }
 0x8cc   : > { %6601 = vmatpush.bf16.msrb.mxu3 %v16871_v37 }
 0x8ce   : > { %6570 = vmatpush.bf16.msrb.mxu0 %v16858_v63 }
 0x8cf   : > { %6676 = vrot.lane.b32.xlu2 %v14653_v17, %s22789_s29  ;;  %6588 = vmatpush.bf16.msrb.mxu1 %v16862_v16  ;;  %v16861_v17 = vld [vmem:[%s22745_s1 + $0x7d0] sm:$0xff]  ;;  %v5704_v16 = vpack.c.b16 %v5703_v12, %v5648_v35 }
 0x8d0   : > { %6602 = vmatpush.bf16.msrb.mxu3 %v16870_v3 }
 0x8d1   : > { %6674 = vrot.lane.b32.xlu0 %v14649_v34, %s22789_s29  ;;  %v16881_v34 = vld [vmem:[%s22745_s1 + $0x870] sm:$0xff] }
 0x8d2   : > { %6712 = vrot.lane.b32.xlu1 %v14661_v44, %s22795_s27  ;;  %6571 = vmatpush.bf16.msrb.mxu0 %v16857_v40 }
 0x8d3   : > { %6613 = vmatpush.bf16.msrb.mxu2 %v16881_v34  ;;  %6589 = vmatpush.bf16.msrb.mxu1 %v16861_v17 }
 0x8d4   : > { %6603 = vmatpush.bf16.msrb.mxu3 %v16869_v55 }
 0x8d6   : > { %6572 = vmatpush.bf16.msrb.mxu0 %v16856_v50 }
 0x8d7   : > { %6718 = vrot.lane.b32.xlu2 %v14661_v44, %s22796_s9  ;;  %6614 = vmatpush.bf16.msrb.mxu2 %v16880_v56  ;;  %v16898_v56 = vld [vmem:[%s22745_s1 + $0x8d0] sm:$0xff] }
 0x8d8   : > { %6604 = vmatpush.bf16.msrb.mxu3 %v16868_v29  ;;  %6590 = vmatpush.bf16.msrb.mxu1 %v16860_v11  ;;  %v16910_v11 = vld [vmem:[%s22745_s1 + $0x930] sm:$0xff] }
 0x8d9   : > { %6714 = vrot.lane.b32.xlu0 %v14665_v30, %s22795_s27 }
 0x8da   : > { %6720 = vrot.lane.b32.xlu1 %v14665_v30, %s22796_s9  ;;  %6573 = vmatpush.bf16.msrb.mxu0 %v16855_v14 }
 0x8db   : > { %6615 = vmatpush.bf16.msrb.mxu2 %v16879_v58  ;;  %v16897_v58 = vld [vmem:[%s22745_s1 + $0x8c8] sm:$0xff] }
 0x8dc   : > { %6605 = vmatpush.bf16.msrb.mxu3 %v16867_v22  ;;  %6591 = vmatpush.bf16.msrb.mxu1 %v16859_v32  ;;  %v5709_v32 = vshll.u32 %v5704_v16, 16 }
 0x8de   : > { %6574 = vmatpush.bf16.msrb.mxu0 %v16854_v25 }
 0x8df   : > { %6708 = vrot.lane.b32.xlu2 %v14665_v30, %s17465_s14  ;;  %6616 = vmatpush.bf16.msrb.mxu2 %v16878_v39  ;;  %v16875_v30 = vld [vmem:[%s22745_s1 + $0x840] sm:$0xff] }
 0x8e1   : > { %6706 = vrot.lane.b32.xlu0 %v14661_v44, %s17465_s14  ;;  %v16903_v44 = vld [vmem:[%s22745_s1 + $0x8f8] sm:$0xff] }
 0x8e2   : > { %6575 = vmatpush.bf16.msrb.mxu0 %v16853_v27  ;;  %7172 = vmatpush.bf16.msra.mxu1 %v16903_v44  ;;  %v5617_v27 = vld [vmem:[#allocation2 + $0x34] sm:$0x7] }
 0x8e3   : > { %6617 = vmatpush.bf16.msrb.mxu2 %v16877_v6 }
 0x8e6   : > { %6576 = vmatpush.bf16.msrb.mxu0 %v16852_v47  ;;  %7173 = vmatpush.bf16.msra.mxu1 %v16902_v23  ;;  %v5706_v47 = vshrl.u32 %v5704_v16, 16  ;;  %v16907_v16 = vld [vmem:[%s22745_s1 + $0x918] sm:$0xff] }
 0x8e7   : > { %6618 = vmatpush.bf16.msrb.mxu2 %v16876_v0  ;;  %v16909_v0 = vld [vmem:[%s22745_s1 + $0x928] sm:$0xff] }
 0x8e9   : > { %v5668_v7 = vpop.permute.xlu2 %5667 }
 0x8ea   : > { %6577 = vmatpush.bf16.msrb.mxu0 %v16851_v57  ;;  %7174 = vmatpush.bf16.msra.mxu1 %v16901_v24  ;;  %v5768_v57 = vunpack.c.l.b16 %v5617_v27  ;;  %v5708_v24 = vrot.slane %v5706_v47, 6 }
 0x8eb   : > { %6619 = vmatpush.bf16.msrb.mxu2 %v16875_v30  ;;  %v5711_v30 = vrot.slane %v5709_v32, 7 }
 0x8ee   : > { %7175 = vmatpush.bf16.msra.mxu1 %v16900_v60 }
 0x8f1   : > { %v5634_v61 = vpop.permute.xlu2 %5633 }
 0x8f2   : > { %7176 = vmatpush.bf16.msra.mxu1 %v16899_v42 }
 0x8f6   : > { %7177 = vmatpush.bf16.msra.mxu1 %v16898_v56 }
 0x8f9   : > { %v5640_v4 = vpop.permute.xlu2 %5639 }
 0x8fa   : > { %7178 = vmatpush.bf16.msra.mxu1 %v16897_v58  ;;  %v16918_v58 = vld [vmem:[%s22745_s1 + $0x970] sm:$0xff] }
 0x901   : > { %v5666_v20 = vpop.permute.xlu0 %5665  ;;  %v20275_v63 = vpop.permute.xlu2 %5755 }
 0x902   : > { %v5636_v52 = vpop.permute.xlu1 %5635  ;;  %v5674_v59 = vsel %vm22799_vm4, %v5666_v20, %v5668_v7  ;;  %v16911_v7 = vld [vmem:[%s22745_s1 + $0x938] sm:$0xff]  ;;  %vm22801_vm4 = vmmov %vm22800_vm0 }
 0x903   : > { %v5979_v21 = vshrl.u32 %v5674_v59, 16  ;;  %v5982_v51 = vshll.u32 %v5674_v59, 16  ;;  %v5642_v31 = vsel %vm2761_vm5, %v5634_v61, %v5636_v52  ;;  %v16890_v20 = vld [vmem:[%s22745_s1 + $0x8b8] sm:$0xff]  ;;  %v16896_v52 = vld [vmem:[%s22745_s1 + $0x8c0] sm:$0xff]  ;;  %v5767_v59 = vunpack.c.l.b16 %v20024_v5 }
 0x904   : > { %v5945_v34 = vshrl.u32 %v5642_v31, 16  ;;  %v5948_v14 = vshll.u32 %v5642_v31, 16  ;;  %7179 = vmatpush.bf16.msra.mxu1 %v16896_v52  ;;  %v16908_v5 = vld [vmem:[%s22745_s1 + $0x920] sm:$0xff] }
 0x905   : > { %v5981_v38 = vrot.slane %v5979_v21, 1  ;;  %v5984_v40 = vrot.slane %v5982_v51, 2 }
 0x906   : > { %v5947_v22 = vrot.slane %v5945_v34, 1  ;;  %v5950_v46 = vrot.slane %v5948_v14, 2 }
 0x907   : > { %v5985_v2 = vor.u32 %v5984_v40, %v5981_v38  ;;  %v16889_v40 = vld [vmem:[%s22745_s1 + $0x8b0] sm:$0xff] }
 0x908   : > { %v5951_v23 = vor.u32 %v5950_v46, %v5947_v22 }
 0x909   : > { %v5762_v39 = vpop.permute.xlu2 %5761 }
 0x90b   : > { %v5672_v10 = vpop.permute.xlu0 %5671  ;;  %v5670_v33 = vpop.permute.xlu1 %5669 }
 0x90c   : > { %v5675_v53 = vsel %vm22800_vm0, %v5670_v33, %v5672_v10  ;;  %v5769_v33 = vpack.c.b16 %v5703_v12, %v5767_v59 }
 0x90d   : > { %v5987_v37 = vshrl.u32 %v5675_v53, 16  ;;  %v5990_v41 = vshll.u32 %v5675_v53, 16  ;;  %v5770_v53 = vpack.c.b16 %v5768_v57, %v5768_v57 }
 0x90f   : > { %v5989_v50 = vrot.slane %v5987_v37, 1  ;;  %v5992_v3 = vrot.slane %v5990_v41, 2  ;;  %v5712_v41 = vor.u32 %v5711_v30, %v5708_v24  ;;  %v5772_v34 = vrot.slane %v5770_v53, 1  ;;  %v16886_v30 = vld [vmem:[%s22745_s1 + $0x898] sm:$0xff] }
 0x911   : > { %v5993_v55 = vor.u32 %v5992_v3, %v5989_v50  ;;  %v20319_v50 = vpop.permute.xlu2 %5790  ;;  %v16919_v3 = vld [vmem:[%s22745_s1 + $0x978] sm:$0xff]  ;;  %v6005_v56 = vshrl.u32 %v5712_v41, 16 }
 0x913   : > { %v5638_v25 = vpop.permute.xlu0 %5637  ;;  %v5994_v29 = vsel %vm1482_vm14, %v5985_v2, %v5993_v55  ;;  %v5771_v2 = vrot.slane %v5769_v33, 1  ;;  %v6007_v47 = vrot.slane %v6005_v56, 1 }
 0x914   : > { %v5698_v13 = vpop.permute.xlu1 %5697  ;;  %v5643_v17 = vsel %vm2761_vm5, %v5638_v25, %v5640_v4  ;;  %6550 = vmatmul.bf16.vlgmr.msra.gmra.mxu3 %v5994_v29  ;;  %v6008_v25 = vshll.u32 %v5712_v41, 16 }
 0x915   : > { %v5953_v35 = vshrl.u32 %v5643_v17, 16  ;;  %v5956_v61 = vshll.u32 %v5643_v17, 16  ;;  %7186 = vmatpush.bf16.msra.mxu3 %v16911_v7  ;;  %v5773_v27 = vsel %vm1473_vm7, %v5771_v2, %v5772_v34  ;;  %v16904_v2 = vld [vmem:[%s22745_s1 + $0x900] sm:$0xff] }
 0x916   : > { %v6010_v32 = vrot.slane %v6008_v25, 2 }
 0x917   : > { %v5955_v44 = vrot.slane %v5953_v35, 1  ;;  %v5958_v6 = vrot.slane %v5956_v61, 2 }
 0x919   : > { %v5959_v4 = vor.u32 %v5958_v6, %v5955_v44  ;;  %7187 = vmatpush.bf16.msra.mxu3 %v16910_v11  ;;  %v16887_v11 = vld [vmem:[%s22745_s1 + $0x8a0] sm:$0xff]  ;;  %v6048_v44 = vshrl.u32 %v5772_v34, 16  ;;  %v6051_v6 = vshll.u32 %v5772_v34, 16  ;;  %v5797_v59 = vpop.permute.xlu2 %5796 }
 0x91b   : > { %v5700_v21 = vpop.permute.xlu0 %5699  ;;  %v5960_v60 = vsel %vm1482_vm14, %v5951_v23, %v5959_v4  ;;  %v6040_v4 = vshrl.u32 %v5773_v27, 16 }
 0x91c   : > { %v5758_v51 = vpop.permute.xlu1 %5757  ;;  %v5701_v10 = vsel %vm2761_vm5, %v5698_v13, %v5700_v21  ;;  %6522 = vmatmul.bf16.vlgmr.msra.gmra.mxu0 %v5960_v60  ;;  %v6011_v21 = vor.u32 %v6010_v32, %v6007_v47  ;;  %v6050_v60 = vrot.slane %v6048_v44, 1  ;;  %v16914_v32 = vld [vmem:[%s22745_s1 + $0x950] sm:$0xff]  ;;  %v16883_v44 = vld [vmem:[%s22745_s1 + $0x880] sm:$0xff] }
 0x91d   : > { %v5996_v42 = vshrl.u32 %v5701_v10, 16  ;;  %v5999_v38 = vshll.u32 %v5701_v10, 16  ;;  %6626 = vmatpush.bf16.msra.mxu0 %v16890_v20  ;;  %7188 = vmatpush.bf16.msra.mxu3 %v16909_v0  ;;  %v5763_v37 = vsel %vm2761_vm5, %v20275_v63, %v5758_v51  ;;  %v16888_v63 = vld [vmem:[%s22745_s1 + $0x8a8] sm:$0xff]  ;;  %v6043_v20 = vshll.u32 %v5773_v27, 16  ;;  %v16942_v27 = vld [vmem:[%s22745_s1 + $0xa30] sm:$0xff] }
 0x91e   : > { %v6023_v55 = vshrl.u32 %v5763_v37, 16  ;;  %v6026_v7 = vshll.u32 %v5763_v37, 16  ;;  %v16917_v0 = vld [vmem:[%s22745_s1 + $0x968] sm:$0xff]  ;;  %v16916_v37 = vld [vmem:[%s22745_s1 + $0x960] sm:$0xff] }
 0x91f   : > { %v5998_v31 = vrot.slane %v5996_v42, 1  ;;  %v6001_v12 = vrot.slane %v5999_v38, 2  ;;  %v16905_v51 = vld [vmem:[%s22745_s1 + $0x908] sm:$0xff]  ;;  %v6042_v42 = vrot.slane %v6040_v4, 1  ;;  %v6045_v38 = vrot.slane %v6043_v20, 2 }
 0x920   : > { %v6025_v22 = vrot.slane %v6023_v55, 1  ;;  %v6028_v46 = vrot.slane %v6026_v7, 2  ;;  %v16943_v55 = vld [vmem:[%s22745_s1 + $0xa38] sm:$0xff]  ;;  %v16941_v20 = vld [vmem:[%s22745_s1 + $0xa28] sm:$0xff] }
 0x921   : > { %v6002_v14 = vor.u32 %v6001_v12, %v5998_v31  ;;  %6627 = vmatpush.bf16.msra.mxu0 %v16889_v40  ;;  %7189 = vmatpush.bf16.msra.mxu3 %v16908_v5  ;;  %v6053_v40 = vrot.slane %v6051_v6, 2  ;;  %v16885_v12 = vld [vmem:[%s22745_s1 + $0x890] sm:$0xff]  ;;  %v6046_v7 = vor.u32 %v6045_v38, %v6042_v42  ;;  %v16951_v42 = vld [vmem:[%s22745_s1 + $0xa78] sm:$0xff]  ;;  %v16925_v38 = vld [vmem:[%s22745_s1 + $0x9a8] sm:$0xff] }
 0x922   : > { %v6029_v52 = vor.u32 %v6028_v46, %v6025_v22  ;;  %v16934_v46 = vld [vmem:[%s22745_s1 + $0x9f0] sm:$0xff] }
 0x923   : > { %v5760_v13 = vpop.permute.xlu0 %5759  ;;  %6564 = vmatmul.bf16.vlgmr.msra.gmra.mxu2 %v6002_v14 }
 0x924   : > { %v5735_v29 = vpop.permute.xlu1 %5734  ;;  %v5764_v17 = vsel %vm2761_vm5, %v5760_v13, %v5762_v39  ;;  %7200 = vmatpush.bf16.msra.mxu2 %v16919_v3  ;;  %v16906_v39 = vld [vmem:[%s22745_s1 + $0x910] sm:$0xff]  ;;  %v16915_v13 = vld [vmem:[%s22745_s1 + $0x958] sm:$0xff] }
 0x925   : > { %v6031_v35 = vshrl.u32 %v5764_v17, 16  ;;  %v6034_v61 = vshll.u32 %v5764_v17, 16  ;;  %6628 = vmatpush.bf16.msra.mxu0 %v16888_v63  ;;  %7190 = vmatpush.bf16.msra.mxu3 %v16907_v16  ;;  %v6054_v63 = vor.u32 %v6053_v40, %v6050_v60  ;;  %v16935_v16 = vld [vmem:[%s22745_s1 + $0x9f8] sm:$0xff]  ;;  %v16940_v60 = vld [vmem:[%s22745_s1 + $0xa20] sm:$0xff] }
 0x927   : > { %v6033_v57 = vrot.slane %v6031_v35, 1  ;;  %v6036_v23 = vrot.slane %v6034_v61, 2  ;;  %v6687_v35 = vpop.permute.xlu2 %6686 }
 0x928   : > { %7201 = vmatpush.bf16.msra.mxu2 %v16918_v58  ;;  %v6055_v58 = vsel %vm1482_vm14, %v6046_v7, %v6054_v63  ;;  %v16949_v7 = vld [vmem:[%s22745_s1 + $0xa68] sm:$0xff]  ;;  %v16923_v63 = vld [vmem:[%s22745_s1 + $0x998] sm:$0xff] }
 0x929   : > { %v6037_v24 = vor.u32 %v6036_v23, %v6033_v57  ;;  %6629 = vmatpush.bf16.msra.mxu0 %v16887_v11  ;;  %7191 = vmatpush.bf16.msra.mxu3 %v16906_v39  ;;  %v16927_v57 = vld [vmem:[%s22745_s1 + $0x9b8] sm:$0xff] }
 0x92b   : > { %v5737_v10 = vpop.permute.xlu0 %5736  ;;  %v6038_v53 = vsel %vm1482_vm14, %v6029_v52, %v6037_v24 }
 0x92c   : > { %v5793_v33 = vpop.permute.xlu1 %5792  ;;  %v5738_v5 = vsel %vm22800_vm0, %v5735_v29, %v5737_v10  ;;  %7202 = vmatpush.bf16.msra.mxu2 %v16917_v0  ;;  %6578 = vmatmul.bf16.vlgmr.msrb.gmra.mxu0 %v6011_v21  ;;  %v16884_v29 = vld [vmem:[%s22745_s1 + $0x888] sm:$0xff] }
 0x92d   : > { %v6014_v41 = vshrl.u32 %v5738_v5, 16  ;;  %v6017_v31 = vshll.u32 %v5738_v5, 16  ;;  %6606 = vmatmul.bf16.vlgmr.msrb.gmra.mxu3 %v6038_v53  ;;  %6630 = vmatpush.bf16.msra.mxu0 %v16886_v30  ;;  %v5798_v3 = vsel %vm22801_vm4, %v20319_v50, %v5793_v33  ;;  %v16933_v0 = vld [vmem:[%s22745_s1 + $0x9e8] sm:$0xff]  ;;  %v16932_v33 = vld [vmem:[%s22745_s1 + $0x9e0] sm:$0xff]  ;;  %v16939_v5 = vld [vmem:[%s22745_s1 + $0xa18] sm:$0xff]  ;;  %vm22806_vm4 = vcmask 1047556  }
 0x92e   : > { %7192 = vmatpush.bf16.msra.mxu3 %v16905_v51  ;;  %v6057_v50 = vshrl.u32 %v5798_v3, 16  ;;  %v6060_v25 = vshll.u32 %v5798_v3, 16  ;;  %v16913_v30 = vld [vmem:[%s22745_s1 + $0x948] sm:$0xff]  ;;  %v16912_v53 = vld [vmem:[%s22745_s1 + $0x940] sm:$0xff] }
 0x92f   : > { %v6016_v34 = vrot.slane %v6014_v41, 1  ;;  %v6019_v14 = vrot.slane %v6017_v31, 2  ;;  %v6677_v40 = vpop.permute.xlu2 %6676  ;;  %v16931_v41 = vld [vmem:[%s22745_s1 + $0x9d8] sm:$0xff]  ;;  %v16950_v31 = vld [vmem:[%s22745_s1 + $0xa70] sm:$0xff] }
 0x930   : > { %7203 = vmatpush.bf16.msra.mxu2 %v16916_v37  ;;  %v6059_v61 = vrot.slane %v6057_v50, 1  ;;  %v6062_v11 = vrot.slane %v6060_v25, 2  ;;  %v16948_v25 = vld [vmem:[%s22745_s1 + $0xa60] sm:$0xff] }
 0x931   : > { %v6020_v56 = vor.u32 %v6019_v14, %v6016_v34  ;;  %6631 = vmatpush.bf16.msra.mxu0 %v16885_v12  ;;  %v16924_v12 = vld [vmem:[%s22745_s1 + $0x9a0] sm:$0xff]  ;;  %v16938_v34 = vld [vmem:[%s22745_s1 + $0xa10] sm:$0xff] }
 0x932   : > { %7193 = vmatpush.bf16.msra.mxu3 %v16904_v2  ;;  %v6063_v52 = vor.u32 %v6062_v11, %v6059_v61  ;;  %v16946_v11 = vld [vmem:[%s22745_s1 + $0xa50] sm:$0xff] }
 0x933   : > { %v5795_v17 = vpop.permute.xlu0 %5794  ;;  %6592 = vmatmul.bf16.vlgmr.msrb.gmra.mxu1 %v6020_v56  ;;  %6620 = vmatmul.bf16.vlgmr.msrb.gmra.mxu2 %v6055_v58  ;;  %v16929_v56 = vld [vmem:[%s22745_s1 + $0x9c8] sm:$0xff]  ;;  %v16928_v58 = vld [vmem:[%s22745_s1 + $0x9c0] sm:$0xff] }
 0x934   : > { %v5799_v22 = vsel %vm22800_vm0, %v5795_v17, %v5797_v59  ;;  %7228 = vmatpush.bf16.msrb.mxu1 %v16935_v16  ;;  %7204 = vmatpush.bf16.msra.mxu2 %v16915_v13  ;;  %v6681_v6 = vpop.permute.xlu1 %6680  ;;  %v16926_v59 = vld [vmem:[%s22745_s1 + $0x9b0] sm:$0xff]  ;;  %v16937_v16 = vld [vmem:[%s22745_s1 + $0xa08] sm:$0xff]  ;;  %v16936_v17 = vld [vmem:[%s22745_s1 + $0xa00] sm:$0xff] }
 0x935   : > { %v6065_v39 = vshrl.u32 %v5799_v22, 16  ;;  %v6068_v47 = vshll.u32 %v5799_v22, 16  ;;  %6632 = vmatpush.bf16.msra.mxu0 %v16884_v29  ;;  %v16922_v13 = vld [vmem:[%s22745_s1 + $0x990] sm:$0xff]  ;;  %v16921_v22 = vld [vmem:[%s22745_s1 + $0x988] sm:$0xff]  ;;  %vm22807_vm0 = vmmov %vm22806_vm4 }
 0x936   : > { %7242 = vmatpush.bf16.msrb.mxu3 %v16943_v55  ;;  %v16930_v55 = vld [vmem:[%s22745_s1 + $0x9d0] sm:$0xff] }
 0x937   : > { %v6067_v23 = vrot.slane %v6065_v39, 1  ;;  %v6070_v4 = vrot.slane %v6068_v47, 2  ;;  %v6719_v50 = vpop.permute.xlu2 %6718  ;;  %v16920_v47 = vld [vmem:[%s22745_s1 + $0x980] sm:$0xff] }
 0x938   : > { %7229 = vmatpush.bf16.msrb.mxu1 %v16934_v46  ;;  %7205 = vmatpush.bf16.msra.mxu2 %v16914_v32 }
 0x939   : > { %v6071_v24 = vor.u32 %v6070_v4, %v6067_v23  ;;  %6633 = vmatpush.bf16.msra.mxu0 %v16883_v44  ;;  %v16893_v44 = vld [vmem:[#allocation2 + $0x24] sm:$0xf0]  ;;  %v16944_v4 = vld [vmem:[%s22745_s1 + $0xa40] sm:$0xff] }
 0x93a   : > { %7243 = vmatpush.bf16.msrb.mxu3 %v16942_v27  ;;  %v16947_v27 = vld [vmem:[%s22745_s1 + $0xa58] sm:$0xff] }
 0x93b   : > { %v6683_v21 = vpop.permute.xlu0 %6682  ;;  %v6072_v51 = vsel %vm1482_vm14, %v6063_v52, %v6071_v24  ;;  %v6537_v52 = vpop.f32.mrf.mxu1 }
 0x93c   : > { %v6684_v10 = vsel %vm2755_vm13, %v6681_v6, %v6683_v21  ;;  %6634 = vmatmul.bf16.vlgmr.msra.gmra.mxu0 %v6072_v51  ;;  %7230 = vmatpush.bf16.msrb.mxu1 %v16933_v0  ;;  %v6689_v37 = vpop.permute.xlu1 %6688  ;;  %v16945_v6 = vld [vmem:[%s22745_s1 + $0xa48] sm:$0xff] }
 0x93d   : > { %7214 = vmatpush.bf16.msrb.mxu0 %v16927_v57  ;;  %7206 = vmatpush.bf16.msra.mxu2 %v16913_v30  ;;  %v6690_v3 = vsel %vm840_vm1, %v6687_v35, %v6689_v37  ;;  %v14656_v57 = vld [vmem:[#allocation2 + $0x1c] sm:$0xf] }
 0x93e   : > { %7244 = vmatpush.bf16.msrb.mxu3 %v16941_v20  ;;  %v14657_v23 = vor.u32 %v16893_v44, %v14656_v57  ;;  %v16964_v44 = vld [vmem:[%s22745_s1 + $0xae0] sm:$0xff]  ;;  %v16971_v57 = vld [vmem:[%s22745_s1 + $0xb18] sm:$0xff] }
 0x93f   : > { %7194 = vmatmul.bf16.vlgmr.msra.gmra.mxu3 %v6684_v10  ;;  %v6709_v61 = vpop.permute.xlu2 %6708 }
 0x940   : > { %7231 = vmatpush.bf16.msrb.mxu1 %v16932_v33 }
 0x941   : > { %7215 = vmatpush.bf16.msrb.mxu0 %v16926_v59  ;;  %7207 = vmatpush.bf16.msra.mxu2 %v16912_v53 }
 0x942   : > { %7245 = vmatpush.bf16.msrb.mxu3 %v16940_v60 }
 0x943   : > { %v6675_v2 = vpop.permute.xlu0 %6674  ;;  %v20488_v33 = vpop.f32.mrf.mxu1 }
 0x944   : > { %v6678_v14 = vsel %vm2757_vm12, %v6675_v2, %v6677_v40  ;;  %7208 = vmatmul.bf16.vlgmr.msra.gmra.mxu2 %v6690_v3  ;;  %7232 = vmatpush.bf16.msrb.mxu1 %v16931_v41  ;;  %v6713_v46 = vpop.permute.xlu1 %6712 }
 0x945   : > { %7256 = vmatpush.bf16.msrb.mxu2 %v16951_v42  ;;  %7216 = vmatpush.bf16.msrb.mxu0 %v16925_v38 }
 0x946   : > { %7246 = vmatpush.bf16.msrb.mxu3 %v16939_v5  ;;  %7180 = vmatmul.bf16.vlgmr.msra.gmra.mxu1 %v6678_v14 }
 0x948   : > { %7233 = vmatpush.bf16.msrb.mxu1 %v16930_v55  ;;  %v16959_v55 = vld [vmem:[%s22745_s1 + $0xab8] sm:$0xff] }
 0x949   : > { %7257 = vmatpush.bf16.msrb.mxu2 %v16950_v31  ;;  %7217 = vmatpush.bf16.msrb.mxu0 %v16924_v12 }
 0x94a   : > { %7247 = vmatpush.bf16.msrb.mxu3 %v16938_v34 }
 0x94b   : > { %v6715_v29 = vpop.permute.xlu0 %6714 }
 0x94c   : > { %7234 = vmatpush.bf16.msrb.mxu1 %v16929_v56  ;;  %v6716_v35 = vsel %vm2777_vm2, %v6713_v46, %v6715_v29  ;;  %v6721_v20 = vpop.permute.xlu1 %6720  ;;  %v16967_v56 = vld [vmem:[%s22745_s1 + $0xaf8] sm:$0xff] }
 0x94d   : > { %7258 = vmatpush.bf16.msrb.mxu2 %v16949_v7  ;;  %7218 = vmatpush.bf16.msrb.mxu0 %v16923_v63  ;;  %v6722_v0 = vsel %vm2775_vm11, %v6719_v50, %v6721_v20  ;;  %v16975_v63 = vld [vmem:[%s22745_s1 + $0xb38] sm:$0xff]  ;;  %v16954_v20 = vld [vmem:[%s22745_s1 + $0xa90] sm:$0xff] }
 0x94e   : > { %7248 = vmatpush.bf16.msrb.mxu3 %v16937_v16  ;;  %v16958_v16 = vld [vmem:[%s22745_s1 + $0xab0] sm:$0xff] }
 0x950   : > { %7235 = vmatpush.bf16.msrb.mxu1 %v16928_v58  ;;  %v16966_v58 = vld [vmem:[%s22745_s1 + $0xaf0] sm:$0xff] }
 0x951   : > { %7259 = vmatpush.bf16.msrb.mxu2 %v16948_v25  ;;  %7219 = vmatpush.bf16.msrb.mxu0 %v16922_v13  ;;  %v16974_v25 = vld [vmem:[%s22745_s1 + $0xb30] sm:$0xff] }
 0x952   : > { %7249 = vmatpush.bf16.msrb.mxu3 %v16936_v17  ;;  %v16957_v17 = vld [vmem:[%s22745_s1 + $0xaa8] sm:$0xff] }
 0x953   : > { %v6707_v39 = vpop.permute.xlu0 %6706 }
 0x954   : > { %v6710_v32 = vsel %vm2779_vm3, %v6707_v39, %v6709_v61  ;;  %7938 = vmatpush.bf16.msra.mxu1 %v16967_v56  ;;  %v16965_v61 = vld [vmem:[%s22745_s1 + $0xae8] sm:$0xff] }
 0x955   : > { %7250 = vmatmul.bf16.vlgmr.msrb.gmra.mxu3 %v6716_v35  ;;  %7260 = vmatpush.bf16.msrb.mxu2 %v16947_v27  ;;  %v16973_v27 = vld [vmem:[%s22745_s1 + $0xb28] sm:$0xff]  ;;  %v16956_v35 = vld [vmem:[%s22745_s1 + $0xaa0] sm:$0xff] }
 0x956   : > { %7220 = vmatpush.bf16.msrb.mxu0 %v16921_v22  ;;  %7236 = vmatmul.bf16.vlgmr.msrb.gmra.mxu1 %v6710_v32  ;;  %v16955_v32 = vld [vmem:[%s22745_s1 + $0xa98] sm:$0xff] }
 0x957   : > { %7952 = vmatpush.bf16.msra.mxu3 %v16975_v63  ;;  %v16991_v63 = vld [vmem:[%s22745_s1 + $0xbb8] sm:$0xff] }
 0x958   : > { %7939 = vmatpush.bf16.msra.mxu1 %v16966_v58 }
 0x959   : > { %7261 = vmatpush.bf16.msrb.mxu2 %v16946_v11  ;;  %v16972_v11 = vld [vmem:[%s22745_s1 + $0xb20] sm:$0xff] }
 0x95a   : > { %7221 = vmatpush.bf16.msrb.mxu0 %v16920_v47 }
 0x95b   : > { %7953 = vmatpush.bf16.msra.mxu3 %v16974_v25  ;;  %v16968_v25 = vld [vmem:[%s22745_s1 + $0xb00] sm:$0xff] }
 0x95c   : > { %7940 = vmatpush.bf16.msra.mxu1 %v16965_v61  ;;  %v16990_v61 = vld [vmem:[%s22745_s1 + $0xbb0] sm:$0xff] }
 0x95d   : > { %7222 = vmatmul.bf16.vlgmr.msrb.gmra.mxu0 %v14657_v23  ;;  %7262 = vmatpush.bf16.msrb.mxu2 %v16945_v6  ;;  %v16983_v6 = vld [vmem:[%s22745_s1 + $0xb78] sm:$0xff] }
 0x95e   : > { %7924 = vmatpush.bf16.msra.mxu0 %v16959_v55 }
 0x95f   : > { %7954 = vmatpush.bf16.msra.mxu3 %v16973_v27  ;;  %v17423_v27 = vld [vmem:[%s22747_s3 + $0xa] ss:$0 sm:$0xff] }
 0x960   : > { %7941 = vmatpush.bf16.msra.mxu1 %v16964_v44 }
 0x961   : > { %7263 = vmatpush.bf16.msrb.mxu2 %v16944_v4 }
 0x962   : > { %7925 = vmatpush.bf16.msra.mxu0 %v16958_v16  ;;  %v16980_v16 = vld [vmem:[%s22745_s1 + $0xb60] sm:$0xff] }
 0x963   : > { %7955 = vmatpush.bf16.msra.mxu3 %v16972_v11  ;;  %v16979_v11 = vld [vmem:[%s22745_s1 + $0xb58] sm:$0xff] }
 0x964   : > { %7264 = vmatmul.bf16.vlgmr.msrb.gmra.mxu2 %v6722_v0  ;;  %v16963_v0 = vld [vmem:[%s22745_s1 + $0xad8] sm:$0xff] }
 0x965   : > { %7966 = vmatpush.bf16.msra.mxu2 %v16983_v6  ;;  %7942 = vmatpush.bf16.msra.mxu1 %v16963_v0  ;;  %v17006_v6 = vld [vmem:[%s22745_s1 + $0xc30] sm:$0xff] }
 0x966   : > { %7926 = vmatpush.bf16.msra.mxu0 %v16957_v17 }
 0x967   : > { %7956 = vmatpush.bf16.msra.mxu3 %v16971_v57 }
 0x96a   : > { %7927 = vmatpush.bf16.msra.mxu0 %v16956_v35 }
 0x96e   : > { %7928 = vmatpush.bf16.msra.mxu0 %v16955_v32  ;;  %v16999_v32 = vld [vmem:[%s22745_s1 + $0xbf8] sm:$0xff] }
 0x972   : > { %7929 = vmatpush.bf16.msra.mxu0 %v16954_v20  ;;  %v16978_v20 = vld [vmem:[%s22745_s1 + $0xb50] sm:$0xff] }
 0x997   : > { %v6551_v59 = vpop.f32.mrf.mxu3 }
 0x999   : > { %v6523_v24 = vpop.f32.mrf.mxu0 }
 0x99a   : > { %v6538_v30 = vadd.f32 %v6537_v52, %v6523_v24  ;;  %v16982_v24 = vld [vmem:[%s22745_s1 + $0xb70] sm:$0xff] }
 0x99b   : > { %7967 = vmatpush.bf16.msra.mxu2 %v16982_v24 }
 0x99c   : > { %v6552_v21 = vadd.f32 %v6551_v59, %v6538_v30  ;;  %v16970_v30 = vld [vmem:[%s22745_s1 + $0xb10] sm:$0xff] }
 0x99d   : > { %7957 = vmatpush.bf16.msra.mxu3 %v16970_v30  ;;  %v17005_v30 = vld [vmem:[%s22745_s1 + $0xc28] sm:$0xff] }
 0x99f   : > { %v20490_v42 = vpop.f32.mrf.mxu3 }
 0x9a1   : > { %v20486_v51 = vpop.f32.mrf.mxu0 }
 0x9a6   : > { %v6565_v60 = vpop.f32.mrf.mxu2 }
 0x9a7   : > { %v6566_v10 = vadd.f32 %v6565_v60, %v6552_v21  ;;  %v16953_v60 = vld [vmem:[%s22745_s1 + $0xa88] sm:$0xff] }
 0x9a8   : > { %7930 = vmatpush.bf16.msra.mxu0 %v16953_v60 }
 0x9a9   : > { %v6579_v53 = vpop.f32.mrf.mxu0 }
 0x9aa   : > { %v6580_v38 = vadd.f32 %v6579_v53, %v6566_v10  ;;  %v16962_v10 = vld [vmem:[%s22745_s1 + $0xad0] sm:$0xff] }
 0x9ab   : > { %7943 = vmatpush.bf16.msra.mxu1 %v16962_v10  ;;  %v16988_v10 = vld [vmem:[%s22745_s1 + $0xba0] sm:$0xff] }
 0x9ae   : > { %v20492_v40 = vpop.f32.mrf.mxu2 }
 0x9b0   : > { %v6593_v5 = vpop.f32.mrf.mxu1  ;;  %v6607_v31 = vpop.f32.mrf.mxu3 }
 0x9b1   : > { %v6594_v37 = vadd.f32 %v6593_v5, %v6580_v38  ;;  %v20494_v41 = vpop.f32.mrf.mxu0  ;;  %v16981_v5 = vld [vmem:[%s22745_s1 + $0xb68] sm:$0xff] }
 0x9b2   : > { %7968 = vmatpush.bf16.msra.mxu2 %v16981_v5  ;;  %v16997_v5 = vld [vmem:[%s22745_s1 + $0xbe8] sm:$0xff] }
 0x9b3   : > { %v6608_v12 = vadd.f32 %v6607_v31, %v6594_v37  ;;  %v16969_v37 = vld [vmem:[%s22745_s1 + $0xb08] sm:$0xff] }
 0x9b4   : > { %7958 = vmatpush.bf16.msra.mxu3 %v16969_v37  ;;  %v17004_v37 = vld [vmem:[%s22745_s1 + $0xc20] sm:$0xff] }
 0x9b6   : > { %v6621_v3 = vpop.f32.mrf.mxu2  ;;  %7969 = vmatpush.bf16.msra.mxu2 %v16980_v16  ;;  %v17003_v16 = vld [vmem:[%s22745_s1 + $0xc18] sm:$0xff] }
 0x9b7   : > { %v6622_v2 = vadd.f32 %v6621_v3, %v6608_v12  ;;  %v16952_v3 = vld [vmem:[%s22745_s1 + $0xa80] sm:$0xff] }
 0x9b8   : > { %v20501_v7 = vpop.f32.mrf.mxu1  ;;  %v20512_v50 = vpop.f32.mrf.mxu3  ;;  %7931 = vmatpush.bf16.msra.mxu0 %v16952_v3  ;;  %7959 = vmatpush.bf16.msra.mxu3 %v16968_v25  ;;  %v16987_v3 = vld [vmem:[%s22745_s1 + $0xb98] sm:$0xff] }
 0x9b9   : > { %v6635_v34 = vpop.f32.mrf.mxu0 }
 0x9ba   : > { %v20496_v14 = vadd.f32 %v6635_v34, %v6622_v2  ;;  %v16961_v2 = vld [vmem:[%s22745_s1 + $0xac8] sm:$0xff]  ;;  %7970 = vmatpush.bf16.msra.mxu2 %v16979_v11  ;;  %v17002_v11 = vld [vmem:[%s22745_s1 + $0xc10] sm:$0xff] }
 0x9bb   : > { %7944 = vmatpush.bf16.msra.mxu1 %v16961_v2  ;;  %v16976_v2 = vld [vmem:[%s22745_s1 + $0xb40] sm:$0xff] }
 0x9bc   : > { %7980 = vmatpush.bf16.msrb.mxu0 %v16991_v63  ;;  %v16996_v63 = vld [vmem:[%s22745_s1 + $0xbe0] sm:$0xff] }
 0x9be   : > { %v20517_v13 = vpop.f32.mrf.mxu2  ;;  %7971 = vmatpush.bf16.msra.mxu2 %v16978_v20  ;;  %v16994_v20 = vld [vmem:[%s22745_s1 + $0xbd0] sm:$0xff] }
 0x9c0   : > { %7981 = vmatpush.bf16.msrb.mxu0 %v16990_v61  ;;  %v16995_v61 = vld [vmem:[%s22745_s1 + $0xbd8] sm:$0xff] }
 0x9c1   : > { %v20528_v46 = vpop.f32.mrf.mxu0 }
 0x9c2   : > { %v7195_v22 = vpop.f32.mrf.mxu3 }
 0x9c3   : > { %v7181_v29 = vpop.f32.mrf.mxu1 }
 0x9c4   : > { %v7196_v23 = vadd.f32 %v7195_v22, %v7181_v29  ;;  %v17007_v29 = vld [vmem:[%s22745_s1 + $0xc38] sm:$0xff]  ;;  %v16960_v22 = vld [vmem:[%s22745_s1 + $0xac0] sm:$0xff] }
 0x9c5   : > { %8008 = vmatpush.bf16.msrb.mxu3 %v17007_v29  ;;  %7945 = vmatpush.bf16.msra.mxu1 %v16960_v22 }
 0x9c7   : > { %v7209_v39 = vpop.f32.mrf.mxu2 }
 0x9c8   : > { %v7210_v59 = vadd.f32 %v7209_v39, %v7196_v23 }
 0x9c9   : > { %7994 = vmatpush.bf16.msrb.mxu1 %v16999_v32  ;;  %8009 = vmatpush.bf16.msrb.mxu3 %v17006_v6 }
 0x9ca   : > { %v7197_v52 = vpop.f32.mrf.mxu3 }
 0x9cb   : > { %v7183_v47 = vpop.f32.mrf.mxu1 }
 0x9cc   : > { %v7198_v31 = vadd.f32 %v7197_v52, %v7183_v47  ;;  %v17424_v47 = vld [vmem:[%s22748_s4 + $0xa] ss:$0 sm:$0xff]  ;;  %v16998_v52 = vld [vmem:[%s22745_s1 + $0xbf0] sm:$0xff] }
 0x9cd   : > { %7995 = vmatpush.bf16.msrb.mxu1 %v16998_v52  ;;  %8010 = vmatpush.bf16.msrb.mxu3 %v17005_v30  ;;  %v17001_v52 = vld [vmem:[%s22745_s1 + $0xc08] sm:$0xff] }
 0x9cf   : > { %v7211_v53 = vpop.f32.mrf.mxu2 }
 0x9d0   : > { %v7212_v56 = vadd.f32 %v7211_v53, %v7198_v31  ;;  %v16977_v53 = vld [vmem:[%s22745_s1 + $0xb48] sm:$0xff] }
 0x9d1   : > { %7972 = vmatpush.bf16.msra.mxu2 %v16977_v53  ;;  %7996 = vmatpush.bf16.msrb.mxu1 %v16997_v5 }
 0x9d2   : > { %8011 = vmatpush.bf16.msrb.mxu3 %v17004_v37 }
 0x9d3   : > { %v7237_v38 = vpop.f32.mrf.mxu1 }
 0x9d5   : > { %7973 = vmatpush.bf16.msra.mxu2 %v16976_v2  ;;  %7997 = vmatpush.bf16.msrb.mxu1 %v16996_v63  ;;  %v17000_v63 = vld [vmem:[%s22745_s1 + $0xc00] sm:$0xff] }
 0x9d6   : > { %8012 = vmatpush.bf16.msrb.mxu3 %v17003_v16 }
 0x9d8   : > { %v7251_v34 = vpop.f32.mrf.mxu3 }
 0x9d9   : > { %7998 = vmatpush.bf16.msrb.mxu1 %v16995_v61 }
 0x9da   : > { %v7223_v4 = vpop.f32.mrf.mxu0  ;;  %8013 = vmatpush.bf16.msrb.mxu3 %v17002_v11 }
 0x9db   : > { %v7224_v21 = vadd.f32 %v7223_v4, %v7210_v59  ;;  %v7239_v44 = vpop.f32.mrf.mxu1  ;;  %v16989_v4 = vld [vmem:[%s22745_s1 + $0xba8] sm:$0xff] }
 0x9dc   : > { %7982 = vmatpush.bf16.msrb.mxu0 %v16989_v4 }
 0x9dd   : > { %v7238_v12 = vadd.f32 %v7237_v38, %v7224_v21  ;;  %7999 = vmatpush.bf16.msrb.mxu1 %v16994_v20 }
 0x9de   : > { %8014 = vmatpush.bf16.msrb.mxu3 %v17001_v52 }
 0x9df   : > { %v7252_v58 = vadd.f32 %v7251_v34, %v7238_v12  ;;  %v7282_v12 = vld [vmem:[#allocation2 + $0x10] sm:$0xc] }
 0x9e0   : > { %v7253_v24 = vpop.f32.mrf.mxu3  ;;  %7983 = vmatpush.bf16.msrb.mxu0 %v16988_v10  ;;  %v7285_v34 = vld [vmem:[#allocation2 + $0x10] sm:$0x8]  ;;  %v7293_v25 = vunpack.c.l.b16 %v7282_v12  ;;  %v16993_v12 = vld [vmem:[%s22745_s1 + $0xbc8] sm:$0xff] }
 0x9e1   : > { %v7299_v29 = vunpack.c.l.b16 %v7285_v34  ;;  %8000 = vmatpush.bf16.msrb.mxu1 %v16993_v12 }
 0x9e2   : > { %v7225_v55 = vpop.f32.mrf.mxu0  ;;  %8015 = vmatpush.bf16.msrb.mxu3 %v17000_v63 }
 0x9e3   : > { %v7226_v17 = vadd.f32 %v7225_v55, %v7212_v56 }
 0x9e4   : > { %7984 = vmatpush.bf16.msrb.mxu0 %v16987_v3 }
 0x9e5   : > { %v7240_v57 = vadd.f32 %v7239_v44, %v7226_v17  ;;  %v7287_v17 = vld [vmem:[#allocation2 + $0x34] sm:$0x1]  ;;  %v16985_v44 = vld [vmem:[%s22745_s1 + $0xb88] sm:$0xff] }
 0x9e6   : > { %v7332_v22 = vunpack.c.l.b16 %v7287_v17 }
 0x9e7   : > { %v7265_v35 = vpop.f32.mrf.mxu2  ;;  %v7254_v21 = vadd.f32 %v7253_v24, %v7240_v57 }
 0x9e8   : > { %v7266_v39 = vadd.f32 %v7265_v35, %v7252_v58  ;;  %v20662_v6 = vpack.c.b16 %v7332_v22, %v7332_v22 }
 0x9ea   : > { %v7272_v23 = vmul.f32 %v17423_v27, %v7266_v39  ;;  %v7289_v39 = vld [vmem:[#allocation2 + $0x34] sm:$0x3]  ;;  %v7349_v5 = vshrl.u32 %v20662_v6, 16  ;;  %v7352_v16 = vshll.u32 %v20662_v6, 16 }
 0x9eb   : > { %v7358_v57 = vunpack.c.l.b16 %v7289_v39 }
 0x9ec   : > { %v7276_v0 = vadd.f32 %v17424_v47, %v7272_v23  ;;  %v20687_v61 = vrot.slane %v7349_v5, 6 }
 0x9ee   : > { %v7278_v59 = vpack.c.bf16 %v7276_v0, %v7276_v0 }
 0x9ef   : > { %v7267_v60 = vpop.f32.mrf.mxu2 }
 0x9f0   : > { %7280 = vst [vmem:[#allocation2 + $0x1c] sm:$0xf] %v7278_v59  ;;  %v7268_v38 = vadd.f32 %v7267_v60, %v7254_v21  ;;  %v16984_v21 = vld [vmem:[%s22745_s1 + $0xb80] sm:$0xff] }
 0x9f2   : > { %v7273_v31 = vmul.f32 %v17423_v27, %v7268_v38  ;;  %v16986_v27 = vld [vmem:[%s22745_s1 + $0xb90] sm:$0xff]  ;;  %v20673_v38 = vpack.c.b16 %v7358_v57, %v7358_v57 }
 0x9f3   : > { %7985 = vmatpush.bf16.msrb.mxu0 %v16986_v27 }
 0x9f4   : > { %v7277_v55 = vadd.f32 %v17424_v47, %v7273_v31  ;;  %v7361_v22 = vrot.slane %v20673_v38, 7 }
 0x9f6   : > { %v7279_v56 = vpack.c.bf16 %v7277_v55, %v7277_v55  ;;  %v7335_v55 = vrot.slane %v20662_v6, 6 }
 0x9f7   : > { %v7283_v58 = vld [vmem:[#allocation2 + $0x1c] sm:$0xf]  ;;  %7986 = vmatpush.bf16.msrb.mxu0 %v16985_v44  ;;  %v16992_v44 = vld [vmem:[%s22745_s1 + $0xbc0] sm:$0xff] }
 0x9f8   : > { %7281 = vst [vmem:[#allocation2 + $0x28] sm:$0xf] %v7279_v56  ;;  %v7294_v35 = vunpack.c.l.b16 %v7283_v58  ;;  %v7288_v24 = vld [vmem:[#allocation2 + $0x1c] sm:$0xe]  ;;  %8001 = vmatpush.bf16.msrb.mxu1 %v16992_v44 }
 0x9f9   : > { %v7338_v3 = vunpack.c.l.b16 %v7288_v24 }
 0x9fa   : > { %v7296_v47 = vpack.c.b16 %v7294_v35, %v7293_v25  ;;  %v7300_v32 = vpack.c.b16 %v7294_v35, %v7299_v29 }
 0x9fb   : > { %7987 = vmatpush.bf16.msrb.mxu0 %v16984_v21 }
 0x9fc   : > { %v7476_v23 = vshrl.u32 %v7296_v47, 16  ;;  %v7479_v4 = vshll.u32 %v7296_v47, 16  ;;  %v7304_v0 = vshll.u32 %v7300_v32, 16  ;;  %v7319_v2 = vrot.slane %v7300_v32, 1 }
 0x9fd   : > { %v7302_v34 = vshrl.u32 %v7300_v32, 16 }
 0x9fe   : > { %v7478_v30 = vrot.slane %v7476_v23, 2  ;;  %v7481_v59 = vrot.slane %v7479_v4, 3  ;;  %v7306_v53 = vrot.slane %v7304_v0, 1  ;;  %v20695_v23 = vrot.slane %v7352_v16, 7 }
 0x9ff   : > { %v7284_v60 = vld [vmem:[#allocation2 + $0x28] sm:$0x7] }
 0xa00   : > { %v7286_v10 = vld [vmem:[#allocation2 + $0x28] sm:$0xf]  ;;  %v7295_v37 = vunpack.c.l.b16 %v7284_v60  ;;  %v7482_v58 = vor.u32 %v7481_v59, %v7478_v30  ;;  %v7307_v27 = vor.u32 %v7306_v53, %v7302_v34 }
 0xa01   : > { %v7317_v31 = vunpack.c.l.b16 %v7286_v10 }
 0xa02   : > { %v7297_v56 = vpack.c.b16 %v7295_v37, %v7295_v37 }
 0xa03   : > { %v7318_v25 = vpack.c.b16 %v7317_v31, %v7317_v31  ;;  %v7322_v29 = vpack.c.b16 %v7317_v31, %v7294_v35  ;;  %v20684_v17 = vpack.c.b16 %v7317_v31, %v7338_v3 }
 0xa04   : > { %v7309_v11 = vshll.u32 %v7297_v56, 16  ;;  %v7313_v39 = vshrl.u32 %v7297_v56, 16 }
 0xa05   : > { %v7320_v47 = vrot.slane %v7318_v25, 1  ;;  %v7324_v32 = vshrl.u32 %v7322_v29, 16  ;;  %v7327_v6 = vshll.u32 %v7322_v29, 16  ;;  %v7334_v35 = vrot.slane %v7322_v29, 6 }
 0xa06   : > { %v20693_v57 = vrot.slane %v20684_v17, 7  ;;  %v7311_v4 = vrot.slane %v7309_v11, 1  ;;  %v7483_v20 = vrot.slane %v7313_v39, 2  ;;  %v7484_v0 = vrot.slane %v7309_v11, 3 }
 0xa07   : > { %v7321_v52 = vsel %vm1473_vm7, %v7319_v2, %v7320_v47  ;;  %v7513_v59 = vshrl.u32 %v7320_v47, 16  ;;  %v7516_v21 = vshll.u32 %v7320_v47, 16  ;;  %v7326_v10 = vrot.slane %v7324_v32, 5 }
 0xa08   : > { %v7505_v24 = vshrl.u32 %v7321_v52, 16  ;;  %v7508_v30 = vshll.u32 %v7321_v52, 16  ;;  %v7485_v60 = vor.u32 %v7484_v0, %v7483_v20  ;;  %v7329_v53 = vrot.slane %v7327_v6, 6 }
 0xa09   : > { %v7312_v38 = vsel %vm1455_vm9, %v7307_v27, %v7311_v4  ;;  %v7515_v31 = vrot.slane %v7513_v59, 2  ;;  %v7518_v12 = vrot.slane %v7516_v21, 3  ;;  %v7315_v63 = vor.u32 %v7313_v39, %v7311_v4 }
 0xa0a   : > { %v7507_v5 = vrot.slane %v7505_v24, 2  ;;  %v7510_v37 = vrot.slane %v7508_v30, 3  ;;  %v7486_v3 = vsel %vm1514_vm8, %v7482_v58, %v7485_v60  ;;  %v7330_v34 = vor.u32 %v7329_v53, %v7326_v10 }
 0xa0b   : > { %v7488_v16 = vshrl.u32 %v7312_v38, 16  ;;  %7932 = vmatmul.bf16.vlgmr.msra.gmra.mxu0 %v7486_v3  ;;  %v7519_v56 = vor.u32 %v7518_v12, %v7515_v31  ;;  %v7491_v25 = vshll.u32 %v7312_v38, 16  ;;  %v7336_v29 = vsel %vm1721_vm10, %v7334_v35, %v7335_v55 }
 0xa0c   : > { %v7511_v2 = vor.u32 %v7510_v37, %v7507_v5  ;;  %v7522_v11 = vshrl.u32 %v7330_v34, 16  ;;  %v7525_v47 = vshll.u32 %v7330_v34, 16  ;;  %v7496_v27 = vshrl.u32 %v7315_v63, 16 }
 0xa0d   : > { %v7490_v32 = vrot.slane %v7488_v16, 2  ;;  %v7493_v6 = vrot.slane %v7491_v25, 3  ;;  %v7499_v20 = vshll.u32 %v7315_v63, 16  ;;  %v7531_v0 = vshrl.u32 %v7334_v35, 16 }
 0xa0e   : > { %v7520_v44 = vsel %vm1514_vm8, %v7511_v2, %v7519_v56  ;;  %v7524_v58 = vrot.slane %v7522_v11, 2  ;;  %v7527_v52 = vrot.slane %v7525_v47, 3  ;;  %v7498_v39 = vrot.slane %v7496_v27, 2 }
 0xa0f   : > { %7960 = vmatmul.bf16.vlgmr.msra.gmra.mxu3 %v7520_v44  ;;  %v7534_v4 = vshll.u32 %v7334_v35, 16  ;;  %v7494_v24 = vor.u32 %v7493_v6, %v7490_v32  ;;  %v7501_v30 = vrot.slane %v7499_v20, 3  ;;  %v7539_v59 = vshrl.u32 %v7336_v29, 16 }
 0xa10   : > { %v7341_v21 = vshrl.u32 %v20684_v17, 16  ;;  %v7528_v55 = vor.u32 %v7527_v52, %v7524_v58  ;;  %v7533_v60 = vrot.slane %v7531_v0, 2  ;;  %v7542_v10 = vshll.u32 %v7336_v29, 16 }
 0xa11   : > { %v7362_v53 = vsel %vm2588_vm15, %v20693_v57, %v7361_v22  ;;  %v7502_v38 = vor.u32 %v7501_v30, %v7498_v39  ;;  %v7536_v5 = vrot.slane %v7534_v4, 3  ;;  %v7565_v37 = vshrl.u32 %v20693_v57, 16 }
 0xa12   : > { %v7568_v31 = vshll.u32 %v20693_v57, 16  ;;  %7974 = vmatmul.bf16.vlgmr.msra.gmra.mxu2 %v7528_v55  ;;  %v7541_v12 = vrot.slane %v7539_v59, 2  ;;  %v7544_v35 = vrot.slane %v7542_v10, 3  ;;  %v7573_v3 = vshrl.u32 %v7362_v53, 16  ;;  %v17023_v10 = vld [vmem:[%s22745_s1 + $0xcb8] sm:$0xff] }
 0xa13   : > { %v7576_v34 = vshll.u32 %v7362_v53, 16  ;;  %v7503_v63 = vsel %vm1514_vm8, %v7494_v24, %v7502_v38  ;;  %v7343_v16 = vrot.slane %v7341_v21, 6  ;;  %v7344_v2 = vshll.u32 %v20684_v17, 16  ;;  %8944 = vmatpush.bf16.msra.mxu0 %v17023_v10  ;;  %v17022_v53 = vld [vmem:[%s22745_s1 + $0xcb0] sm:$0xff]  ;;  %v17426_v10 = vld [vmem:[%s22748_s4 + $0xb] ss:$0 sm:$0xff] }
 0xa14   : > { %7946 = vmatmul.bf16.vlgmr.msra.gmra.mxu1 %v7503_v63  ;;  %v7567_v56 = vrot.slane %v7565_v37, 2  ;;  %v7570_v25 = vrot.slane %v7568_v31, 3  ;;  %v7575_v22 = vrot.slane %v7573_v3, 2  ;;  %v7537_v11 = vor.u32 %v7536_v5, %v7533_v60  ;;  %v17021_v31 = vld [vmem:[%s22745_s1 + $0xca8] sm:$0xff]  ;;  %v8051_v3 = vld [vmem:[#allocation2 + $0x34] sm:$0xff] }
 0xa15   : > { %v7578_v29 = vrot.slane %v7576_v34, 3  ;;  %v7545_v47 = vor.u32 %v7544_v35, %v7541_v12  ;;  %v7346_v32 = vrot.slane %v7344_v2, 7  ;;  %v7355_v57 = vor.u32 %v20695_v23, %v20687_v61  ;;  %v20724_v12 = vld [vmem:[#allocation2] sm:$0xff] }
 0xa16   : > { %v7571_v44 = vor.u32 %v7570_v25, %v7567_v56  ;;  %vm22802_vm7 = vsmask.f32 1280  ;;  %v20727_v35 = vunpack.c.l.b16 %v20724_v12  ;;  %v8216_v34 = vunpack.c.h.b16 %v8051_v3  ;;  %v17020_v56 = vld [vmem:[%s22745_s1 + $0xca0] sm:$0xff] }
 0xa17   : > { %v7347_v27 = vor.u32 %v7346_v32, %v7343_v16  ;;  %v7579_v6 = vor.u32 %v7578_v29, %v7575_v22  ;;  %v7546_v20 = vsel %vm1514_vm8, %v7537_v11, %v7545_v47  ;;  %8945 = vmatpush.bf16.msra.mxu0 %v17022_v53  ;;  %v8215_v63 = vunpack.c.l.b16 %v8051_v3 }
 0xa18   : > { %v8184_v2 = vpack.c.b16 %v20727_v35, %v20727_v35  ;;  %v20734_v25 = vpack.c.b16 %v8216_v34, %v8216_v34 }
 0xa19   : > { %v7356_v0 = vsel %vm22802_vm7, %v7347_v27, %v7355_v57  ;;  %v7548_v58 = vshrl.u32 %v7347_v27, 16  ;;  %v7551_v52 = vshll.u32 %v7347_v27, 16  ;;  %v7580_v30 = vsel %vm1514_vm8, %v7571_v44, %v7579_v6  ;;  %v17019_v6 = vld [vmem:[%s22745_s1 + $0xc98] sm:$0xff]  ;;  %vm22808_vm7 = vmmov %vm22807_vm0 }
 0xa1a   : > { %v7556_v17 = vshrl.u32 %v7356_v0, 16  ;;  %v7559_v39 = vshll.u32 %v7356_v0, 16  ;;  %v20736_v22 = vpack.c.b16 %v8215_v63, %v8215_v63  ;;  %v20738_v11 = vrot.slane %v8184_v2, 3 }
 0xa1b   : > { %7988 = vmatmul.bf16.vlgmr.msrb.gmra.mxu0 %v7546_v20  ;;  %v7550_v4 = vrot.slane %v7548_v58, 2  ;;  %v7553_v24 = vrot.slane %v7551_v52, 3  ;;  %v22786_v57 = vrot.slane %v20734_v25, 3  ;;  %v17018_v52 = vld [vmem:[%s22745_s1 + $0xc90] sm:$0xff] }
 0xa1c   : > { %v7558_v59 = vrot.slane %v7556_v17, 2  ;;  %v7561_v21 = vrot.slane %v7559_v39, 3  ;;  %8946 = vmatpush.bf16.msra.mxu0 %v17021_v31  ;;  %v8222_v27 = vrot.slane %v20736_v22, 3  ;;  %8196 = vrot.lane.b32.xlu0 %v20738_v11, %s22794_s23  ;;  %v2640_v17 = vrot.slane %v19299_v9, 1 }
 0xa1d   : > { %v7554_v61 = vor.u32 %v7553_v24, %v7550_v4  ;;  %8233 = vrot.lane.b32.xlu1 %v22786_v57, %s22803_s8 }
 0xa1e   : > { %v7562_v23 = vor.u32 %v7561_v21, %v7558_v59  ;;  %8231 = vrot.lane.b32.xlu2 %v8222_v27, %s22803_s8  ;;  %v17425_v21 = vld [vmem:[%s22747_s3 + $0xb] ss:$0 sm:$0xff] }
 0xa1f   : > { %8016 = vmatmul.bf16.vlgmr.msrb.gmra.mxu3 %v7580_v30 }
 0xa20   : > { %v7563_v55 = vsel %vm1514_vm8, %v7554_v61, %v7562_v23  ;;  %8947 = vmatpush.bf16.msra.mxu0 %v17020_v56  ;;  %v17017_v61 = vld [vmem:[%s22745_s1 + $0xc88] sm:$0xff]  ;;  %v2642_v23 = vadd.f32 %v2640_v17, %v19299_v9 }
 0xa22   : > { %v13420_v31 = vmul.f32 -1.442695, %v2642_v23 }
 0xa24   : > { %8002 = vmatmul.bf16.vlgmr.msrb.gmra.mxu1 %v7563_v55  ;;  %8948 = vmatpush.bf16.msra.mxu0 %v17019_v6  ;;  %17443 = vpow2.f32 %v13420_v31 }
 0xa28   : > { %8949 = vmatpush.bf16.msra.mxu0 %v17018_v52 }
 0xa2a   : > { %v17444_v6 = vpop.eup %17443 }
 0xa2c   : > { %8950 = vmatpush.bf16.msra.mxu0 %v17017_v61 }
 0xa88   : > { %v7933_v60 = vpop.f32.mrf.mxu0 }
 0xa90   : > { %v7935_v38 = vpop.f32.mrf.mxu0 }
 0xa91   : > { %v7947_v5 = vpop.f32.mrf.mxu1 }
 0xa92   : > { %v7961_v37 = vpop.f32.mrf.mxu3  ;;  %v7948_v16 = vadd.f32 %v7947_v5, %v7933_v60 }
 0xa94   : > { %v7962_v44 = vadd.f32 %v7961_v37, %v7948_v16  ;;  %v17016_v37 = vld [vmem:[%s22745_s1 + $0xc80] sm:$0xff] }
 0xa95   : > { %v7975_v29 = vpop.f32.mrf.mxu2  ;;  %8951 = vmatpush.bf16.msra.mxu0 %v17016_v37 }
 0xa96   : > { %v7976_v0 = vadd.f32 %v7975_v29, %v7962_v44  ;;  %v8037_v44 = vld [vmem:[#allocation2 + $0x10] sm:$0xf] }
 0xa98   : > { %v7989_v20 = vpop.f32.mrf.mxu0 }
 0xa99   : > { %v7949_v47 = vpop.f32.mrf.mxu1  ;;  %v7990_v39 = vadd.f32 %v7989_v20, %v7976_v0 }
 0xa9a   : > { %v7963_v32 = vpop.f32.mrf.mxu3  ;;  %v7950_v58 = vadd.f32 %v7949_v47, %v7935_v38  ;;  %v8040_v47 = vld [vmem:[#allocation2 + $0x10] sm:$0xff] }
 0xa9b   : > { %v8087_v0 = vunpack.c.l.b16 %v8040_v47 }
 0xa9c   : > { %v7964_v30 = vadd.f32 %v7963_v32, %v7950_v58  ;;  %v8056_v58 = vunpack.c.h.b16 %v20724_v12 }
 0xa9d   : > { %v7977_v55 = vpop.f32.mrf.mxu2 }
 0xa9e   : > { %v7978_v38 = vadd.f32 %v7977_v55, %v7964_v30 }
 0xaa0   : > { %v7991_v53 = vpop.f32.mrf.mxu0 }
 0xaa1   : > { %v8003_v4 = vpop.f32.mrf.mxu1  ;;  %v7992_v3 = vadd.f32 %v7991_v53, %v7978_v38  ;;  %v8088_v38 = vunpack.c.h.b16 %v8040_v47 }
 0xaa2   : > { %v8017_v24 = vpop.f32.mrf.mxu3  ;;  %v8004_v59 = vadd.f32 %v8003_v4, %v7990_v39  ;;  %v8079_v4 = vunpack.c.l.b16 %v8037_v44 }
 0xaa4   : > { %v8018_v60 = vadd.f32 %v8017_v24, %v8004_v59  ;;  %v20777_v24 = vadd.f32 1.0, %v17444_v6 }
 0xaa6   : > { %v8024_v5 = vmul.f32 %v17425_v21, %v8018_v60  ;;  %17445 = vrcp.f32 %v20777_v24  ;;  %vm2652_vm14 = vweird.f32 %v20777_v24 }
 0xaa8   : > { %v8028_v34 = vadd.f32 %v17426_v10, %v8024_v5 }
 0xaa9   : > { %v8005_v63 = vpop.f32.mrf.mxu1 }
 0xaaa   : > { %v8019_v16 = vpop.f32.mrf.mxu3  ;;  %v8030_v9 = vpack.c.bf16 %v8028_v34, %v8028_v34  ;;  %v8006_v2 = vadd.f32 %v8005_v63, %v7992_v3 }
 0xaac   : > { %8032 = vst [vmem:[#allocation2 + $0x1c] sm:$0xf] %v8030_v9  ;;  %v8020_v56 = vadd.f32 %v8019_v16, %v8006_v2 }
 0xaae   : > { %v8025_v29 = vmul.f32 %v17425_v21, %v8020_v56  ;;  %v20801_v56 = vpop.eup %17445 }
 0xaaf   : > { %vm2653_vm8 = vweird.f32 %v20801_v56 }
 0xab0   : > { %v8029_v32 = vadd.f32 %v17426_v10, %v8025_v29  ;;  %vm2654_vm10 = vmor %vm2652_vm14, %vm2653_vm8 }
 0xab1   : > { %vm22810_vm8 = vmmov %vm22807_vm0 }
 0xab2   : > { %v8031_v20 = vpack.c.bf16 %v8029_v32, %v8029_v32  ;;  %vm22811_vm14 = vmmov %vm22807_vm0 }
 0xab3   : > { %v20771_v52 = vld [vmem:[#allocation2 + $0x1c] sm:$0xff] }
 0xab4   : > { %v20773_v17 = vld [vmem:[#allocation2 + $0x18] sm:$0xff]  ;;  %8033 = vst [vmem:[#allocation2 + $0x28] sm:$0xf] %v8031_v20  ;;  %v8089_v30 = vunpack.c.l.b16 %v20771_v52  ;;  %v8090_v5 = vunpack.c.h.b16 %v20771_v52 }
 0xab5   : > { %v20775_v39 = vld [vmem:[#allocation2 + $0x1c] sm:$0xf]  ;;  %v8058_v59 = vunpack.c.h.b16 %v20773_v17  ;;  %v22785_v21 = vunpack.c.l.b16 %v20773_v17 }
 0xab6   : > { %v22784_v61 = vunpack.c.l.b16 %v20775_v39  ;;  %v8093_v12 = vpack.c.b16 %v8089_v30, %v8087_v0  ;;  %v20794_v53 = vld [vmem:[#allocation2 + $0x18] sm:$0x88]  ;;  %v8094_v6 = vpack.c.b16 %v8090_v5, %v8088_v38  ;;  %v8185_v0 = vpack.c.b16 %v8056_v58, %v8056_v58 }
 0xab7   : > { %v8062_v23 = vpack.c.b16 %v8058_v59, %v8056_v58  ;;  %v8061_v55 = vpack.c.b16 %v22785_v21, %v20727_v35  ;;  %v8179_v2 = vunpack.c.h.b16 %v20794_v53 }
 0xab8   : > { %v8082_v60 = vpack.c.b16 %v22784_v61, %v8079_v4  ;;  %8097 = vrot.lane.b32.xlu2 %v8093_v12, %s22803_s8  ;;  %v20808_v38 = vrot.slane %v8185_v0, 3 }
 0xab9   : > { %8067 = vrot.lane.b32.xlu0 %v8062_v23, %s22794_s23  ;;  %8065 = vrot.lane.b32.xlu1 %v8061_v55, %s22794_s23  ;;  %v2648_v55 = vmul.f32 %v20801_v56, %v20777_v24 }
 0xaba   : > { %v8396_v10 = vshll.u32 %v8082_v60, 16  ;;  %v8394_v4 = vshrl.u32 %v8082_v60, 16 }
 0xabb   : > { %v8042_v37 = vld [vmem:[#allocation2 + $0x28] sm:$0x11]  ;;  %v2649_v60 = vsub.f32 1.0, %v2648_v55 }
 0xabc   : > { %v8036_v31 = vld [vmem:[#allocation2 + $0x24] sm:$0x11]  ;;  %v8091_v3 = vunpack.c.l.b16 %v8042_v37  ;;  %v8398_v47 = vrot.slane %v8396_v10, 1 }
 0xabd   : > { %v8039_v35 = vld [vmem:[#allocation2 + $0x28] sm:$0x1]  ;;  %v8059_v34 = vunpack.c.l.b16 %v8036_v31  ;;  %v8060_v58 = vunpack.c.h.b16 %v8036_v31 }
 0xabe   : > { %v8081_v63 = vunpack.c.l.b16 %v8039_v35  ;;  %v20797_v16 = vld [vmem:[#allocation2 + $0x24] sm:$0xff]  ;;  %v8095_v29 = vpack.c.b16 %v8091_v3, %v8091_v3  ;;  %v8399_v35 = vor.u32 %v8398_v47, %v8394_v4 }
 0xabf   : > { %v8110_v9 = vunpack.c.h.b16 %v20797_v16  ;;  %v8063_v32 = vpack.c.b16 %v8059_v34, %v8059_v34  ;;  %v8045_v23 = vld [vmem:[#allocation2 + $0x28] sm:$0xff]  ;;  %v8092_v34 = vunpack.c.h.b16 %v8042_v37 }
 0xac0   : > { %v8083_v44 = vpack.c.b16 %v8081_v63, %v8081_v63  ;;  %v8050_v63 = vld [vmem:[#allocation2 + $0x1c] sm:$0x88] }
 0xac1   : > { %v8183_v20 = vpack.c.b16 %v8110_v9, %v8179_v2  ;;  %8101 = vrot.lane.b32.xlu0 %v8095_v29, %s22803_s8  ;;  %8069 = vrot.lane.b32.xlu2 %v8063_v32, %s22794_s23  ;;  %v8148_v2 = vunpack.c.l.b16 %v8045_v23  ;;  %v8149_v32 = vunpack.c.h.b16 %v8045_v23  ;;  %v8096_v61 = vpack.c.b16 %v8092_v34, %v8092_v34 }
 0xac2   : > { %v8401_v12 = vshll.u32 %v8083_v44, 16  ;;  %8099 = vrot.lane.b32.xlu1 %v8094_v6, %s22803_s8  ;;  %v8213_v44 = vunpack.c.l.b16 %v8050_v63  ;;  %v8112_v21 = vpack.c.b16 %v8110_v9, %v8058_v59  ;;  %v8214_v57 = vunpack.c.h.b16 %v8050_v63 }
 0xac3   : > { %v8189_v10 = vrot.slane %v8183_v20, 3  ;;  %v8064_v6 = vpack.c.b16 %v8060_v58, %v8060_v58  ;;  %v2650_v20 = vmul.f32 %v20801_v56, %v2649_v60  ;;  %v8109_v59 = vunpack.c.l.b16 %v20797_v16 }
 0xac4   : > { %v8403_v3 = vrot.slane %v8401_v12, 1  ;;  %v8217_v37 = vpack.c.b16 %v8148_v2, %v8213_v44  ;;  %v8218_v31 = vpack.c.b16 %v8149_v32, %v8214_v57  ;;  %v8121_v0 = vshrl.u32 %v8112_v21, 16 }
 0xac5   : > { %v8191_v47 = vsel %vm1537_vm6, %v8189_v10, %v20808_v38  ;;  %v2658_v9 = vand.u32 2147483648, %v20777_v24  ;;  %v2651_v23 = vadd.f32 %v20801_v56, %v2650_v20  ;;  %v8178_v57 = vunpack.c.l.b16 %v20794_v53 }
 0xac6   : > { %v8404_v29 = vsel %vm1455_vm9, %v8399_v35, %v8403_v3  ;;  %v8221_v4 = vrot.slane %v8217_v37, 3  ;;  %v8224_v12 = vrot.slane %v8218_v31, 3  ;;  %v8123_v55 = vrot.slane %v8121_v0, 7 }
 0xac7   : > { %8952 = vmatmul.bf16.vlgmr.msra.gmra.mxu0 %v8404_v29  ;;  %v20826_v35 = vpack.c.b16 %v8149_v32, %v8090_v5  ;;  %v2656_v3 = vand.u32 2147483647, %v20777_v24  ;;  %v22804_v34 = vrot.slane %v20734_v25, 3  ;;  %v2655_v53 = vsel %vm2654_vm10, %v20801_v56, %v2651_v23  ;;  %vm22812_vm10 = vmmov %vm22807_vm0 }
 0xac8   : > { %v8223_v16 = vsel %vm1537_vm6, %v8221_v4, %v8222_v27  ;;  %v22805_v24 = vunpack.c.l.b16 %v20773_v17  ;;  %v2659_v63 = vor.u32 1.1754944e-38, %v2658_v9  ;;  %v17015_v4 = vld [vmem:[%s22745_s1 + $0xc78] sm:$0xff] }
 0xac9   : > { %8194 = vrot.lane.b32.xlu0 %v8191_v47, %s22794_s23  ;;  %8103 = vrot.lane.b32.xlu2 %v8096_v61, %s22803_s8  ;;  %v20823_v61 = vpack.c.b16 %v8148_v2, %v8089_v30  ;;  %v8226_v52 = vsel %vm1537_vm6, %v8224_v12, %v22804_v34  ;;  %v8182_v30 = vpack.c.b16 %v8109_v59, %v8178_v57  ;;  %v8160_v27 = vshrl.u32 %v20826_v35, 16 }
 0xaca   : > { %8071 = vrot.lane.b32.xlu1 %v8064_v6, %s22794_s23  ;;  %v8111_v5 = vpack.c.b16 %v8109_v59, %v22805_v24  ;;  %vm2657_vm15 = vcmp.eq.f32.partialorder %v2656_v3, 8.507059e+37  ;;  %v8124_v47 = vshll.u32 %v8112_v21, 16  ;;  %8930 = vmatpush.bf16.msrb.mxu2 %v17015_v4  ;;  %v17013_v3 = vld [vmem:[%s22745_s1 + $0xc68] sm:$0xff]  ;;  %v17044_v4 = vld [vmem:[%s22745_s1 + $0xd60] sm:$0xff] }
 0xacb   : > { %v8153_v22 = vshrl.u32 %v20823_v61, 16  ;;  %v8186_v25 = vrot.slane %v8182_v30, 3  ;;  %v2660_v10 = vsel %vm2657_vm15, %v2659_v63, %v2655_v53  ;;  %v8162_v2 = vrot.slane %v8160_v27, 7  ;;  %v17012_v30 = vld [vmem:[%s22745_s1 + $0xc60] sm:$0xff]  ;;  %v17031_v53 = vld [vmem:[%s22745_s1 + $0xcf8] sm:$0xff]  ;;  %vm22813_vm15 = vmmov %vm22807_vm0 }
 0xacc   : > { %v8114_v29 = vshrl.u32 %v8111_v5, 16  ;;  %v2662_v32 = vperm.slane %v2660_v10, 0  ;;  %v8117_v44 = vshll.u32 %v8111_v5, 16  ;;  %v8126_v31 = vor.u32 %v8124_v47, %v8123_v55  ;;  %8958 = vmatpush.bf16.msra.mxu1 %v17031_v53  ;;  %v17011_v5 = vld [vmem:[%s22745_s1 + $0xc58] sm:$0xff]  ;;  %v20931_v47 = vpop.permute.xlu2 %8231 }
 0xacd   : > { %v8155_v58 = vrot.slane %v8153_v22, 7  ;;  %v8188_v56 = vsel %vm1537_vm6, %v8186_v25, %v20738_v11  ;;  %v8163_v27 = vshll.u32 %v20826_v35, 16  ;;  %v8156_v24 = vshll.u32 %v20823_v61, 16  ;;  %v17030_v35 = vld [vmem:[%s22745_s1 + $0xcf0] sm:$0xff]  ;;  %v17035_v53 = vld [vmem:[%s22745_s1 + $0xd18] sm:$0xff] }
 0xace   : > { %v8116_v60 = vrot.slane %v8114_v29, 7  ;;  %v2668_v17 = vperm.slane %v2662_v32, %v17630_v19  ;;  %v2663_v6 = vrot.slane %v2662_v32, 4  ;;  %v17010_v61 = vld [vmem:[%s22745_s1 + $0xc50] sm:$0xff]  ;;  %v17028_v32 = vld [vmem:[%s22745_s1 + $0xce0] sm:$0xff] }
 0xacf   : > { %v8165_v63 = vor.u32 %v8163_v27, %v8162_v2  ;;  %v8158_v10 = vor.u32 %v8156_v24, %v8155_v58  ;;  %v17040_v27 = vld [vmem:[%s22745_s1 + $0xd40] sm:$0xff]  ;;  %v17034_v24 = vld [vmem:[%s22745_s1 + $0xd10] sm:$0xff] }
 0xad0   : > { %v8119_v37 = vor.u32 %v8117_v44, %v8116_v60  ;;  %v2673_v20 = vrot.slane %v2668_v17, 4  ;;  %v20853_v0 = vperm.slane %v2668_v17, %v17651_v36  ;;  %v2664_v11 = vsel %vm22806_vm4, 0.0, %v2663_v6  ;;  %8959 = vmatpush.bf16.msra.mxu1 %v17030_v35  ;;  %v17027_v17 = vld [vmem:[%s22745_s1 + $0xcd8] sm:$0xff]  ;;  %v17046_v44 = vld [vmem:[%s22745_s1 + $0xd70] sm:$0xff]  ;;  %v17033_v35 = vld [vmem:[%s22745_s1 + $0xd08] sm:$0xff] }
 0xad1   : > { %8133 = vrot.lane.b32.xlu0 %v8123_v55, %s22794_s23  ;;  %8227 = vrot.lane.b32.xlu2 %v8223_v16, %s22803_s8  ;;  %v2672_v12 = vperm.slane %v2664_v11, %v17630_v19  ;;  %v17014_v19 = vld [vmem:[%s22745_s1 + $0xc70] sm:$0xff]  ;;  %v17025_v11 = vld [vmem:[%s22745_s1 + $0xcc8] sm:$0xff]  ;;  %vm2764_vm4 = vcmask 457728  }
 0xad2   : > { %8229 = vrot.lane.b32.xlu1 %v8226_v52, %s22803_s8  ;;  %v2674_v21 = vsel %vm22807_vm0, 0.0, %v2673_v20  ;;  %v2693_v59 = vrot.slane %v20853_v0, 4  ;;  %8931 = vmatpush.bf16.msrb.mxu2 %v17014_v19  ;;  %v17026_v6 = vld [vmem:[%s22745_s1 + $0xcd0] sm:$0xff]  ;;  %v17039_v20 = vld [vmem:[%s22745_s1 + $0xd38] sm:$0xff]  ;;  %vm2768_vm0 = vcmask 588800  }
 0xad3   : > { %v2682_v9 = vperm.slane %v2674_v21, %v17651_v36  ;;  %v2688_v23 = vperm.slane %v2672_v12, %v17651_v36  ;;  %v2683_v52 = vrot.slane %v2672_v12, 4  ;;  %8972 = vmatpush.bf16.msra.mxu3 %v17039_v20  ;;  %v17024_v21 = vld [vmem:[%s22745_s1 + $0xcc0] sm:$0xff]  ;;  %v17038_v12 = vld [vmem:[%s22745_s1 + $0xd30] sm:$0xff] }
 0xad4   : > { %v2694_v55 = vsel %vm22808_vm7, 0.0, %v2693_v59  ;;  %v17063_v59 = vld [vmem:[%s22745_s1 + $0xdf8] sm:$0xff]  ;;  %v17062_v19 = vld [vmem:[%s22745_s1 + $0xdf0] sm:$0xff]  ;;  %v17056_v20 = vld [vmem:[%s22745_s1 + $0xdc0] sm:$0xff]  ;;  %vm2759_vm7 = vcmask 261120  }
 0xad5   : > { %v2695_v57 = vrot.slane %v2682_v9, 4  ;;  %v2697_v16 = vrot.slane %v2688_v23, 4  ;;  %v2684_v22 = vsel %vm22812_vm10, 0.0, %v2683_v52  ;;  %v20988_v52 = vpop.permute.xlu1 %8233 }
 0xad6   : > { %8932 = vmatpush.bf16.msrb.mxu2 %v17013_v3  ;;  %v2692_v25 = vperm.slane %v2684_v22, %v17651_v36  ;;  %v17029_v36 = vld [vmem:[%s22745_s1 + $0xce8] sm:$0xff]  ;;  %v20980_v3 = vpop.permute.xlu0 %8196  ;;  %v17060_v22 = vld [vmem:[%s22745_s1 + $0xde0] sm:$0xff] }
 0xad7   : > { %v2696_v34 = vsel %vm22810_vm8, 0.0, %v2695_v57  ;;  %8960 = vmatpush.bf16.msra.mxu1 %v17029_v36  ;;  %8973 = vmatpush.bf16.msra.mxu3 %v17038_v12  ;;  %v17042_v57 = vld [vmem:[%s22745_s1 + $0xd50] sm:$0xff]  ;;  %v17032_v36 = vld [vmem:[%s22745_s1 + $0xd00] sm:$0xff]  ;;  %v22816_v12 = vunpack.c.l.b16 %v20775_v39  ;;  %vm22818_vm8 = vcmask 719872  }
 0xad8   : > { %v2699_v29 = vrot.slane %v2692_v25, 4 }
 0xad9   : > { %8170 = vrot.lane.b32.xlu0 %v8155_v58, %s22803_s8  ;;  %8172 = vrot.lane.b32.xlu2 %v8162_v2, %s22803_s8  ;;  %v17009_v58 = vld [vmem:[%s22745_s1 + $0xc48] sm:$0xff] }
 0xada   : > { %8192 = vrot.lane.b32.xlu1 %v8188_v56, %s22794_s23  ;;  %8933 = vmatpush.bf16.msrb.mxu2 %v17012_v30  ;;  %v2700_v2 = vsel %vm22813_vm15, 0.0, %v2699_v29  ;;  %v17008_v56 = vld [vmem:[%s22745_s1 + $0xc40] sm:$0xff]  ;;  %v21013_v29 = vld [vmem:[#allocation2 + $0x28] sm:$0xf] }
 0xadb   : > { %8961 = vmatpush.bf16.msra.mxu1 %v17028_v32 }
 0xade   : > { %8934 = vmatpush.bf16.msrb.mxu2 %v17011_v5  ;;  %v17059_v5 = vld [vmem:[%s22745_s1 + $0xdd8] sm:$0xff] }
 0xadf   : > { %8962 = vmatpush.bf16.msra.mxu1 %v17027_v17 }
 0xae1   : > { %8127 = vrot.lane.b32.xlu0 %v8119_v37, %s22794_s23  ;;  %8129 = vrot.lane.b32.xlu2 %v8126_v31, %s22794_s23  ;;  %v17045_v37 = vld [vmem:[%s22745_s1 + $0xd68] sm:$0xff] }
 0xae2   : > { %8131 = vrot.lane.b32.xlu1 %v8116_v60, %s22794_s23  ;;  %8935 = vmatpush.bf16.msrb.mxu2 %v17010_v61  ;;  %v17047_v60 = vld [vmem:[%s22745_s1 + $0xd78] sm:$0xff]  ;;  %v17058_v61 = vld [vmem:[%s22745_s1 + $0xdd0] sm:$0xff] }
 0xae3   : > { %8963 = vmatpush.bf16.msra.mxu1 %v17026_v6 }
 0xae6   : > { %8936 = vmatpush.bf16.msrb.mxu2 %v17009_v58  ;;  %v17057_v58 = vld [vmem:[%s22745_s1 + $0xdc8] sm:$0xff] }
 0xae7   : > { %8964 = vmatpush.bf16.msra.mxu1 %v17025_v11  ;;  %v17070_v11 = vld [vmem:[%s22745_s1 + $0xe30] sm:$0xff] }
 0xae9   : > { %8198 = vrot.lane.b32.xlu2 %v20808_v38, %s22794_s23  ;;  %2706 = vrot.lane.b32.xlu0 %v2682_v9, %s22809_s20  ;;  %v2698_v38 = vsel %vm22811_vm14, 0.0, %v2697_v16  ;;  %v17036_v16 = vld [vmem:[%s22745_s1 + $0xd20] sm:$0xff]  ;;  %vm2773_vm14 = vcmask 785408  }
 0xaea   : > { %2702 = vrot.lane.b32.xlu1 %v2694_v55, %s22798_s13  ;;  %8937 = vmatpush.bf16.msrb.mxu2 %v17008_v56  ;;  %v17071_v56 = vld [vmem:[%s22745_s1 + $0xe38] sm:$0xff] }
 0xaeb   : > { %8965 = vmatpush.bf16.msra.mxu1 %v17024_v21 }
 0xaee   : > { %8986 = vmatpush.bf16.msra.mxu2 %v17047_v60 }
 0xaef   : > { %9014 = vmatpush.bf16.msrb.mxu1 %v17063_v59 }
 0xaf1   : > { %2710 = vrot.lane.b32.xlu2 %v2696_v34, %s22789_s29  ;;  %2718 = vrot.lane.b32.xlu0 %v2698_v38, %s22797_s15  ;;  %s22866_s29 = sshll.u32 %s22868_s25, 4 }
 0xaf2   : > { %2714 = vrot.lane.b32.xlu1 %v2688_v23, %s22791_s22  ;;  %8987 = vmatpush.bf16.msra.mxu2 %v17046_v44 }
 0xaf3   : > { %9015 = vmatpush.bf16.msrb.mxu1 %v17062_v19  ;;  %v17055_v19 = vld [vmem:[%s22745_s1 + $0xdb8] sm:$0xff] }
 0xaf4   : > { %9000 = vmatpush.bf16.msrb.mxu0 %v17055_v19 }
 0xaf6   : > { %8988 = vmatpush.bf16.msra.mxu2 %v17045_v37 }
 0xaf9   : > { %8168 = vrot.lane.b32.xlu0 %v8165_v63, %s22803_s8  ;;  %2722 = vrot.lane.b32.xlu2 %v2692_v25, %s22790_s26 }
 0xafa   : > { %8166 = vrot.lane.b32.xlu1 %v8158_v10, %s22803_s8  ;;  %8989 = vmatpush.bf16.msra.mxu2 %v17044_v4 }
 0xb01   : > { %2730 = vrot.lane.b32.xlu0 %v20853_v0, %s22792_s19  ;;  %2733 = vrot.lane.b32.xlu2 %v2694_v55, %s22803_s8  ;;  %v17037_v55 = vld [vmem:[%s22745_s1 + $0xd28] sm:$0xff]  ;;  %s278_s19 = scalar_lea.vmem %s22751_s7, %s22866_s29 }
 0xb02   : > { %2726 = vrot.lane.b32.xlu1 %v2700_v2, %s22794_s23  ;;  %8974 = vmatpush.bf16.msra.mxu3 %v17037_v55 }
 0xb06   : > { %8975 = vmatpush.bf16.msra.mxu3 %v17036_v16 }
 0xb09   : > { %2739 = vrot.lane.b32.xlu0 %v2696_v34, %s22814_s28  ;;  %2742 = vrot.lane.b32.xlu2 %v2688_v23, %s22793_s21  ;;  %v17043_v23 = vld [vmem:[%s22745_s1 + $0xd58] sm:$0xff]  ;;  %v17061_v34 = vld [vmem:[%s22745_s1 + $0xde8] sm:$0xff] }
 0xb0a   : > { %2736 = vrot.lane.b32.xlu1 %v2682_v9, %s22815_s18  ;;  %8990 = vmatpush.bf16.msra.mxu2 %v17043_v23 }
 0xb0b   : > { %9016 = vmatpush.bf16.msrb.mxu1 %v17061_v34  ;;  %8976 = vmatpush.bf16.msra.mxu3 %v17035_v53 }
 0xb0e   : > { %8991 = vmatpush.bf16.msra.mxu2 %v17042_v57  ;;  %v17069_v57 = vld [vmem:[%s22745_s1 + $0xe28] sm:$0xff] }
 0xb0f   : > { %9017 = vmatpush.bf16.msrb.mxu1 %v17060_v22  ;;  %8977 = vmatpush.bf16.msra.mxu3 %v17034_v24 }
 0xb11   : > { %2748 = vrot.lane.b32.xlu0 %v2692_v25, %s22795_s27  ;;  %2751 = vrot.lane.b32.xlu2 %v2700_v2, %s17465_s14  ;;  %v8138_v2 = vunpack.c.l.b16 %v21013_v29 }
 0xb12   : > { %2745 = vrot.lane.b32.xlu1 %v2698_v38, %s22796_s9  ;;  %v20943_v31 = vpop.permute.xlu2 %8097  ;;  %v17041_v38 = vld [vmem:[%s22745_s1 + $0xd48] sm:$0xff] }
 0xb13   : > { %8992 = vmatpush.bf16.msra.mxu2 %v17041_v38  ;;  %9018 = vmatpush.bf16.msrb.mxu1 %v17059_v5  ;;  %v8139_v59 = vpack.c.b16 %v8138_v2, %v22816_v12  ;;  %v17068_v5 = vld [vmem:[%s22745_s1 + $0xe20] sm:$0xff] }
 0xb14   : > { %8978 = vmatpush.bf16.msra.mxu3 %v17033_v35 }
 0xb15   : > { %v8141_v38 = vshrl.u32 %v8139_v59, 16 }
 0xb17   : > { %8993 = vmatpush.bf16.msra.mxu2 %v17040_v27  ;;  %9019 = vmatpush.bf16.msrb.mxu1 %v17058_v61  ;;  %v8143_v61 = vrot.slane %v8141_v38, 7 }
 0xb18   : > { %8979 = vmatpush.bf16.msra.mxu3 %v17032_v36  ;;  %v17053_v36 = vld [vmem:[%s22745_s1 + $0xda8] sm:$0xff] }
 0xb1b   : > { %v20963_v9 = vpop.permute.xlu2 %8069  ;;  %9020 = vmatpush.bf16.msrb.mxu1 %v17057_v58 }
 0xb1c   : > { %9028 = vmatpush.bf16.msrb.mxu3 %v17071_v56  ;;  %v8144_v56 = vshll.u32 %v8139_v59, 16  ;;  %v17051_v59 = vld [vmem:[%s22745_s1 + $0xd98] sm:$0xff] }
 0xb1f   : > { %9021 = vmatpush.bf16.msrb.mxu1 %v17056_v20  ;;  %v17052_v20 = vld [vmem:[%s22745_s1 + $0xda0] sm:$0xff] }
 0xb20   : > { %9029 = vmatpush.bf16.msrb.mxu3 %v17070_v11 }
 0xb23   : > { %v8104_v30 = vpop.permute.xlu2 %8103 }
 0xb24   : > { %9030 = vmatpush.bf16.msrb.mxu3 %v17069_v57 }
 0xb28   : > { %9031 = vmatpush.bf16.msrb.mxu3 %v17068_v5 }
 0xb2b   : > { %v8068_v63 = vpop.permute.xlu0 %8067  ;;  %v21005_v25 = vpop.permute.xlu2 %8227 }
 0xb2c   : > { %v8066_v10 = vpop.permute.xlu1 %8065 }
 0xb2d   : > { %v8074_v6 = vsel %vm2764_vm4, %v8066_v10, %v8068_v63 }
 0xb2e   : > { %v8384_v23 = vshll.u32 %v8074_v6, 16  ;;  %v8382_v63 = vshrl.u32 %v8074_v6, 16  ;;  %v8146_v6 = vor.u32 %v8144_v56, %v8143_v61 }
 0xb30   : > { %v8386_v53 = vrot.slane %v8384_v23, 1  ;;  %v8432_v12 = vshll.u32 %v8146_v6, 16 }
 0xb32   : > { %v8387_v58 = vor.u32 %v8386_v53, %v8382_v63  ;;  %v8434_v19 = vrot.slane %v8432_v12, 1  ;;  %v8430_v53 = vshrl.u32 %v8146_v6, 16 }
 0xb33   : > { %v8102_v32 = vpop.permute.xlu0 %8101  ;;  %v21026_v44 = vpop.permute.xlu2 %8172 }
 0xb34   : > { %v8100_v60 = vpop.permute.xlu1 %8099  ;;  %v8107_v17 = vsel %vm2768_vm0, %v8102_v32, %v8104_v30  ;;  %v17054_v30 = vld [vmem:[%s22745_s1 + $0xdb0] sm:$0xff] }
 0xb35   : > { %v8106_v37 = vsel %vm2768_vm0, %v20943_v31, %v8100_v60  ;;  %v8413_v21 = vshll.u32 %v8107_v17, 16  ;;  %9001 = vmatpush.bf16.msrb.mxu0 %v17054_v30  ;;  %v17067_v60 = vld [vmem:[%s22745_s1 + $0xe18] sm:$0xff]  ;;  %v17076_v30 = vld [vmem:[%s22745_s1 + $0xe60] sm:$0xff] }
 0xb36   : > { %v8408_v4 = vshll.u32 %v8106_v37, 16  ;;  %v8406_v55 = vshrl.u32 %v8106_v37, 16  ;;  %9032 = vmatpush.bf16.msrb.mxu3 %v17067_v60 }
 0xb37   : > { %v8415_v34 = vrot.slane %v8413_v21, 1  ;;  %v17066_v21 = vld [vmem:[%s22745_s1 + $0xe10] sm:$0xff] }
 0xb38   : > { %v8410_v31 = vrot.slane %v8408_v4, 1  ;;  %v17078_v4 = vld [vmem:[%s22745_s1 + $0xe70] sm:$0xff] }
 0xb39   : > { %9002 = vmatpush.bf16.msrb.mxu0 %v17053_v36  ;;  %v8048_v36 = vld [vmem:[#allocation2 + $0x1c] sm:$0x8] }
 0xb3a   : > { %v8411_v16 = vor.u32 %v8410_v31, %v8406_v55  ;;  %v17077_v55 = vld [vmem:[%s22745_s1 + $0xe68] sm:$0xff]  ;;  %9033 = vmatpush.bf16.msrb.mxu3 %v17066_v21  ;;  %v8204_v6 = vunpack.c.l.b16 %v8048_v36 }
 0xb3b   : > { %v8195_v39 = vpop.permute.xlu0 %8194  ;;  %v21056_v35 = vpop.permute.xlu2 %8129  ;;  %v17065_v31 = vld [vmem:[%s22745_s1 + $0xe08] sm:$0xff] }
 0xb3c   : > { %v8072_v22 = vpop.permute.xlu1 %8071  ;;  %v8416_v27 = vsel %vm1455_vm9, %v8411_v16, %v8415_v34  ;;  %v17050_v34 = vld [vmem:[%s22745_s1 + $0xd90] sm:$0xff] }
 0xb3d   : > { %v8075_v24 = vsel %vm2764_vm4, %v20963_v9, %v8072_v22  ;;  %8966 = vmatmul.bf16.vlgmr.msra.gmra.mxu1 %v8416_v27  ;;  %v17079_v9 = vld [vmem:[%s22745_s1 + $0xe78] sm:$0xff]  ;;  %9003 = vmatpush.bf16.msrb.mxu0 %v17052_v20  ;;  %v8437_v22 = vshll.u32 %v8143_v61, 16  ;;  %v8049_v27 = vld [vmem:[#allocation2 + $0x34] sm:$0xf]  ;;  %v17049_v20 = vld [vmem:[%s22745_s1 + $0xd88] sm:$0xff] }
 0xb3e   : > { %v8389_v10 = vshll.u32 %v8075_v24, 16  ;;  %9034 = vmatpush.bf16.msrb.mxu3 %v17065_v31  ;;  %v17075_v61 = vld [vmem:[%s22745_s1 + $0xe58] sm:$0xff]  ;;  %v17074_v31 = vld [vmem:[%s22745_s1 + $0xe50] sm:$0xff] }
 0xb3f   : > { %v8439_v56 = vrot.slane %v8437_v22, 1  ;;  %v8236_v22 = vsel %vm2768_vm0, %v20931_v47, %v20988_v52  ;;  %v17095_v47 = vld [vmem:[%s22745_s1 + $0xef8] sm:$0xff] }
 0xb40   : > { %v8391_v32 = vrot.slane %v8389_v10, 1  ;;  %v8435_v10 = vor.u32 %v8434_v19, %v8430_v53  ;;  %v8206_v19 = vpack.c.b16 %v8138_v2, %v8204_v6  ;;  %v17073_v53 = vld [vmem:[%s22745_s1 + $0xe48] sm:$0xff]  ;;  %12739 = vmatpush.bf16.msra.mxu1 %v17095_v47 }
 0xb41   : > { %9004 = vmatpush.bf16.msrb.mxu0 %v17051_v59 }
 0xb42   : > { %v8392_v17 = vsel %vm1455_vm9, %v8387_v58, %v8391_v32  ;;  %v8205_v58 = vunpack.c.l.b16 %v8049_v27  ;;  %v8208_v29 = vrot.slane %v8206_v19, 3 }
 0xb43   : > { %8938 = vmatmul.bf16.vlgmr.msrb.gmra.mxu2 %v8392_v17  ;;  %v8134_v37 = vpop.permute.xlu0 %8133  ;;  %v8199_v23 = vpop.permute.xlu2 %8198  ;;  %v8440_v17 = vsel %vm1455_vm9, %v8435_v10, %v8439_v56 }
 0xb44   : > { %v8230_v11 = vpop.permute.xlu1 %8229  ;;  %9042 = vmatpush.bf16.msrb.mxu2 %v17079_v9  ;;  %v8201_v57 = vsel %vm2764_vm4, %v20980_v3, %v8199_v23  ;;  %v17064_v3 = vld [vmem:[%s22745_s1 + $0xe00] sm:$0xff]  ;;  %v8207_v12 = vpack.c.b16 %v8205_v58, %v8205_v58 }
 0xb45   : > { %v8461_v5 = vshll.u32 %v8201_v57, 16  ;;  %9005 = vmatpush.bf16.msrb.mxu0 %v17050_v34  ;;  %9035 = vmatpush.bf16.msrb.mxu3 %v17064_v3  ;;  %v17072_v58 = vld [vmem:[%s22745_s1 + $0xe40] sm:$0xff] }
 0xb46   : > { %v8209_v2 = vrot.slane %v8207_v12, 3 }
 0xb48   : > { %9043 = vmatpush.bf16.msrb.mxu2 %v17078_v4  ;;  %v8235_v4 = vsel %vm2768_vm0, %v21005_v25, %v8230_v11  ;;  %v17048_v25 = vld [vmem:[%s22745_s1 + $0xd80] sm:$0xff]  ;;  %v8473_v6 = vshll.u32 %v8209_v2, 16 }
 0xb49   : > { %9006 = vmatpush.bf16.msrb.mxu0 %v17049_v20  ;;  %v8478_v10 = vshrl.u32 %v8235_v4, 16 }
 0xb4a   : > { %v8475_v12 = vrot.slane %v8473_v6, 1 }
 0xb4b   : > { %v21088_v16 = vpop.permute.xlu0 %8170  ;;  %v2711_v56 = vpop.permute.xlu2 %2710 }
 0xb4c   : > { %v8193_v38 = vpop.permute.xlu1 %8192  ;;  %9044 = vmatpush.bf16.msrb.mxu2 %v17077_v55 }
 0xb4d   : > { %v8200_v24 = vsel %vm2764_vm4, %v8193_v38, %v8195_v39  ;;  %v8463_v39 = vrot.slane %v8461_v5, 1  ;;  %9007 = vmatpush.bf16.msrb.mxu0 %v17048_v25 }
 0xb4e   : > { %v8456_v63 = vshll.u32 %v8200_v24, 16  ;;  %v8454_v32 = vshrl.u32 %v8200_v24, 16 }
 0xb50   : > { %v8458_v9 = vrot.slane %v8456_v63, 1  ;;  %9045 = vmatpush.bf16.msrb.mxu2 %v17076_v30  ;;  %v8485_v63 = vshll.u32 %v8236_v22, 16 }
 0xb52   : > { %v8459_v60 = vor.u32 %v8458_v9, %v8454_v32  ;;  %v8210_v32 = vsel %vm1537_vm6, %v8208_v29, %v8209_v2 }
 0xb53   : > { %8994 = vmatmul.bf16.vlgmr.msra.gmra.mxu2 %v8440_v17  ;;  %v8128_v21 = vpop.permute.xlu0 %8127  ;;  %v8468_v52 = vshll.u32 %v8210_v32, 16 }
 0xb54   : > { %v8135_v59 = vsel %vm2764_vm4, %v8128_v21, %v21056_v35  ;;  %v8132_v23 = vpop.permute.xlu1 %8131  ;;  %9046 = vmatpush.bf16.msrb.mxu2 %v17075_v61  ;;  %v8464_v55 = vsel %vm1455_vm9, %v8459_v60, %v8463_v39  ;;  %v8480_v35 = vshll.u32 %v8235_v4, 16  ;;  %v8487_v61 = vrot.slane %v8485_v63, 1 }
 0xb55   : > { %v8420_v11 = vshll.u32 %v8135_v59, 16  ;;  %v8136_v57 = vsel %vm2764_vm4, %v8132_v23, %v8134_v37  ;;  %9022 = vmatmul.bf16.vlgmr.msrb.gmra.mxu1 %v8464_v55  ;;  %v8418_v38 = vshrl.u32 %v8135_v59, 16  ;;  %v8470_v17 = vrot.slane %v8468_v52, 1  ;;  %v2723_v59 = vpop.permute.xlu2 %2722 }
 0xb56   : > { %v8425_v34 = vshll.u32 %v8136_v57, 16  ;;  %v8482_v37 = vrot.slane %v8480_v35, 1  ;;  %v8466_v4 = vshrl.u32 %v8210_v32, 16  ;;  %v8175_v55 = vsel %vm2768_vm0, %v21088_v16, %v21026_v44 }
 0xb57   : > { %v8422_v30 = vrot.slane %v8420_v11, 1  ;;  %v8449_v35 = vshll.u32 %v8175_v55, 16 }
 0xb58   : > { %9047 = vmatpush.bf16.msrb.mxu2 %v17074_v31  ;;  %v8427_v24 = vrot.slane %v8425_v34, 1  ;;  %v8483_v9 = vor.u32 %v8482_v37, %v8478_v10  ;;  %v8471_v21 = vor.u32 %v8470_v17, %v8466_v4  ;;  %v17092_v10 = vld [vmem:[%s22745_s1 + $0xee0] sm:$0xff] }
 0xb59   : > { %v8423_v27 = vor.u32 %v8422_v30, %v8418_v38  ;;  %v8451_v29 = vrot.slane %v8449_v35, 1 }
 0xb5a   : > { %v8488_v39 = vsel %vm1455_vm9, %v8483_v9, %v8487_v61  ;;  %v8476_v19 = vsel %vm1455_vm9, %v8471_v21, %v8475_v12 }
 0xb5b   : > { %v2707_v3 = vpop.permute.xlu0 %2706  ;;  %v8428_v5 = vsel %vm1455_vm9, %v8423_v27, %v8427_v24  ;;  %v4547_v27 = vadd.f32 %v19836_v18, %v19834_v43  ;;  %v6540_v18 = vadd.f32 %v20488_v33, %v20486_v51 }
 0xb5c   : > { %9048 = vmatpush.bf16.msrb.mxu2 %v17073_v53  ;;  %v2703_v36 = vpop.permute.xlu1 %2702  ;;  %8980 = vmatmul.bf16.vlgmr.msra.gmra.mxu3 %v8428_v5  ;;  %v17093_v53 = vld [vmem:[%s22745_s1 + $0xee8] sm:$0xff] }
 0xb5d   : > { %v2754_v23 = vsel %vm840_vm1, %v20853_v0, %v2703_v36  ;;  %v17094_v0 = vld [vmem:[%s22745_s1 + $0xef0] sm:$0xff]  ;;  %v2734_v2 = vpop.permute.xlu2 %2733  ;;  %v4561_v63 = vadd.f32 %v19846_v1, %v4547_v27  ;;  %v17091_v1 = vld [vmem:[%s22745_s1 + $0xed8] sm:$0xff]  ;;  %v6554_v61 = vadd.f32 %v20490_v42, %v6540_v18 }
 0xb5e   : > { %v2756_v25 = vsel %vm2755_vm13, %v2754_v23, %v2707_v3  ;;  %12740 = vmatpush.bf16.msra.mxu1 %v17094_v0  ;;  %vm2766_vm13 = vcmask 523264   ;;  %v9074_v0 = vld [vmem:[#allocation2 + $0x10] sm:$0x88] }
 0xb5f   : > { %v2758_v38 = vsel %vm2757_vm12, %v2756_v25, %v2711_v56  ;;  %vm22817_vm12 = vcmask 392192   ;;  %v4575_v43 = vadd.f32 %v19841_v15, %v4561_v63  ;;  %v17090_v15 = vld [vmem:[%s22745_s1 + $0xed0] sm:$0xff] }
 0xb60   : > { %9049 = vmatpush.bf16.msrb.mxu2 %v17072_v58 }
 0xb61   : > { %v4589_v52 = vadd.f32 %v19854_v49, %v4575_v43  ;;  %v17089_v49 = vld [vmem:[%s22745_s1 + $0xec8] sm:$0xff] }
 0xb62   : > { %12741 = vmatpush.bf16.msra.mxu1 %v17093_v53  ;;  %v17422_v53 = vld [vmem:[%s22748_s4 + $0x8] ss:$0 sm:$0xff] }
 0xb63   : > { %9050 = vmatmul.bf16.vlgmr.msrb.gmra.mxu2 %v8488_v39  ;;  %v2719_v60 = vpop.permute.xlu0 %2718  ;;  %v4603_v33 = vadd.f32 %v19856_v45, %v4589_v52 }
 0xb64   : > { %v2715_v20 = vpop.permute.xlu1 %2714 }
 0xb65   : > { %v2760_v30 = vsel %vm2759_vm7, %v2758_v38, %v2715_v20  ;;  %v2743_v56 = vpop.permute.xlu2 %2742  ;;  %v4617_v17 = vadd.f32 %v19875_v8, %v4603_v33  ;;  %v17088_v8 = vld [vmem:[%s22745_s1 + $0xec0] sm:$0xff] }
 0xb66   : > { %v2762_v24 = vsel %vm2761_vm5, %v2760_v30, %v2719_v60  ;;  %12742 = vmatpush.bf16.msra.mxu1 %v17092_v10  ;;  %vm2770_vm5 = vcmask 654336   ;;  %v6568_v60 = vadd.f32 %v20492_v40, %v6554_v61  ;;  %v21213_v30 = vld [vmem:[#allocation2 + $0xc] sm:$0x88] }
 0xb67   : > { %v2763_v36 = vsel %vm22817_vm12, %v2762_v24, %v2723_v59  ;;  %v4631_v12 = vadd.f32 %v19877_v26, %v4617_v17  ;;  %v9132_v27 = vunpack.c.h.b16 %v21213_v30 }
 0xb68   : > { %v6582_v42 = vadd.f32 %v20494_v41, %v6568_v60  ;;  %v17415_v41 = vld [vmem:[%s22747_s3 + $0x4] ss:$0 sm:$0xff] }
 0xb69   : > { %v4645_v26 = vadd.f32 %v19903_v62, %v4631_v12 }
 0xb6a   : > { %12743 = vmatpush.bf16.msra.mxu1 %v17091_v1  ;;  %v6596_v45 = vadd.f32 %v20501_v7, %v6582_v42 }
 0xb6b   : > { %v8169_v31 = vpop.permute.xlu0 %8168 }
 0xb6c   : > { %v8167_v11 = vpop.permute.xlu1 %8166  ;;  %9036 = vmatmul.bf16.vlgmr.msrb.gmra.mxu3 %v8476_v19  ;;  %v6610_v7 = vadd.f32 %v20512_v50, %v6596_v45 }
 0xb6d   : > { %v8174_v57 = vsel %vm2768_vm0, %v8167_v11, %v8169_v31  ;;  %v2752_v59 = vpop.permute.xlu2 %2751  ;;  %v4649_v11 = vmul.f32 %v17415_v41, %v19873_v48 }
 0xb6e   : > { %v8444_v34 = vshll.u32 %v8174_v57, 16  ;;  %v8442_v44 = vshrl.u32 %v8174_v57, 16  ;;  %12744 = vmatpush.bf16.msra.mxu1 %v17090_v15  ;;  %v17416_v57 = vld [vmem:[%s22748_s4 + $0x4] ss:$0 sm:$0xff]  ;;  %v6624_v35 = vadd.f32 %v20517_v13, %v6610_v7  ;;  %v9071_v13 = vld [vmem:[#allocation2 + $0x10] sm:$0x8] }
 0xb6f   : > { %v9154_v24 = vunpack.c.l.b16 %v9071_v13  ;;  %v9111_v15 = vld [vmem:[#allocation2 + $0x34] sm:$0x11] }
 0xb70   : > { %v8446_v16 = vrot.slane %v8444_v34, 1  ;;  %v4650_v34 = vmul.f32 %v17415_v41, %v4645_v26  ;;  %v6638_v48 = vadd.f32 %v20528_v46, %v6624_v35 }
 0xb72   : > { %v8447_v22 = vor.u32 %v8446_v16, %v8442_v44  ;;  %12745 = vmatpush.bf16.msra.mxu1 %v17089_v49  ;;  %v4654_v38 = vadd.f32 %v17416_v57, %v4650_v34  ;;  %v9109_v34 = vld [vmem:[#allocation2 + $0x30] sm:$0x11] }
 0xb73   : > { %v2731_v37 = vpop.permute.xlu0 %2730 }
 0xb74   : > { %v2727_v3 = vpop.permute.xlu1 %2726  ;;  %v8452_v5 = vsel %vm1455_vm9, %v8447_v22, %v8451_v29  ;;  %v9162_v22 = vunpack.c.l.b16 %v9074_v0  ;;  %v9081_v46 = vpack.c.bf16 %v4654_v38, %v4654_v38  ;;  %v9563_v38 = vunpack.c.l.b16 %v9109_v34 }
 0xb75   : > { %9008 = vmatmul.bf16.vlgmr.msrb.gmra.mxu0 %v8452_v5  ;;  %v2765_v58 = vsel %vm2764_vm4, %v2763_v36, %v2727_v3 }
 0xb76   : > { %v2767_v32 = vsel %vm2766_vm13, %v2765_v58, %v2731_v37  ;;  %12746 = vmatpush.bf16.msra.mxu1 %v17088_v8  ;;  %v9565_v13 = vpack.c.b16 %v9563_v38, %v9563_v38 }
 0xb77   : > { %v2769_v39 = vsel %vm2768_vm0, %v2767_v32, %v2734_v2  ;;  %v9163_v2 = vunpack.c.h.b16 %v9074_v0 }
 0xb7b   : > { %v2740_v9 = vpop.permute.xlu0 %2739 }
 0xb7c   : > { %v2737_v47 = vpop.permute.xlu1 %2736 }
 0xb7d   : > { %v2771_v51 = vsel %vm2770_vm5, %v2769_v39, %v2737_v47 }
 0xb7e   : > { %v2772_v6 = vsel %vm22818_vm8, %v2771_v51, %v2740_v9 }
 0xb7f   : > { %v2774_v4 = vsel %vm2773_vm14, %v2772_v6, %v2743_v56  ;;  %v9095_v56 = vld [vmem:[#allocation2 + $0x34] sm:$0x11] }
 0xb80   : > { %v9419_v6 = vunpack.c.l.b16 %v9095_v56  ;;  %v9420_v0 = vunpack.c.h.b16 %v9095_v56 }
 0xb82   : > { %v9421_v7 = vpack.c.b16 %v9419_v6, %v9419_v6 }
 0xb83   : > { %v2749_v20 = vpop.permute.xlu0 %2748 }
 0xb84   : > { %v2746_v21 = vpop.permute.xlu1 %2745 }
 0xb85   : > { %v2776_v40 = vsel %vm2775_vm11, %v2774_v4, %v2746_v21  ;;  %vm22819_vm11 = vsmask.f32 4352 }
 0xb86   : > { %v2778_v23 = vsel %vm2777_vm2, %v2776_v40, %v2749_v20  ;;  %v9582_v20 = vunpack.c.h.b16 %v9111_v15  ;;  %vm22820_vm2 = vcmask 1042432   ;;  %vm22825_vm7 = vmmov %vm22819_vm11 }
 0xb87   : > { %v2780_v55 = vsel %vm2779_vm3, %v2778_v23, %v2752_v59  ;;  %v9131_v59 = vunpack.c.l.b16 %v21213_v30  ;;  %vm22821_vm10 = vmmov %vm22820_vm2 }
 0xb88   : > { %v2781_v31 = vperm.slane %v2780_v55, 0  ;;  %vm22822_vm15 = vmmov %vm22820_vm2 }
 0xb89   : > { %vm22823_vm4 = vmmov %vm22820_vm2 }
 0xb8a   : > { %v21195_v19 = vmul.f32 %v2781_v31, %v18557_v28  ;;  %v21198_v25 = vmul.f32 %v2781_v31, %v18607_v54  ;;  %v4653_v28 = vadd.f32 %v17416_v57, %v4649_v11  ;;  %v17421_v54 = vld [vmem:[%s22747_s3 + $0x8] ss:$0 sm:$0xff]  ;;  %vm22824_vm0 = vmmov %vm22820_vm2 }
 0xb8b   : > { %v6642_v16 = vmul.f32 %v17421_v54, %v20496_v14  ;;  %v6643_v29 = vmul.f32 %v17421_v54, %v6638_v48  ;;  %v9564_v48 = vunpack.c.h.b16 %v9109_v34  ;;  %vm22826_vm12 = vmmov %vm22824_vm0 }
 0xb8c   : > { %v9064_v62 = vpack.c.bf16 %v21195_v19, %v21195_v19  ;;  %v9065_v50 = vpack.c.bf16 %v21198_v25, %v21198_v25  ;;  %v9080_v44 = vpack.c.bf16 %v4653_v28, %v4653_v28  ;;  %vm22827_vm13 = vmmov %vm22824_vm0 }
 0xb8d   : > { %v6646_v1 = vadd.f32 %v17422_v53, %v6642_v16  ;;  %v6647_v32 = vadd.f32 %v17422_v53, %v6643_v29  ;;  %v9566_v30 = vpack.c.b16 %v9564_v48, %v9564_v48  ;;  %v9581_v16 = vunpack.c.l.b16 %v9111_v15  ;;  %vm22828_vm5 = vmmov %vm22825_vm7 }
 0xb8e   : > { %9066 = vst [vmem:[#allocation2 + $0x1c] sm:$0xf] %v9064_v62  ;;  %vm22829_vm8 = vmmov %vm22828_vm5 }
 0xb8f   : > { %9067 = vst [vmem:[#allocation2 + $0x28] sm:$0xf] %v9065_v50  ;;  %v9096_v4 = vpack.c.bf16 %v6646_v1, %v6646_v1  ;;  %v9097_v21 = vpack.c.bf16 %v6647_v32, %v6647_v32  ;;  %v9584_v50 = vpack.c.b16 %v9582_v20, %v9582_v20  ;;  %vm22830_vm14 = vmmov %vm22828_vm5 }
 0xb95   : > { %v21220_v37 = vld [vmem:[#allocation2 + $0x1c] sm:$0xff] }
 0xb96   : > { %v21222_v3 = vld [vmem:[#allocation2 + $0x18] sm:$0xff]  ;;  %v9165_v63 = vunpack.c.h.b16 %v21220_v37  ;;  %v9164_v14 = vunpack.c.l.b16 %v21220_v37  ;;  %v9073_v36 = vld [vmem:[#allocation2 + $0x28] sm:$0xf] }
 0xb97   : > { %v9072_v5 = vld [vmem:[#allocation2 + $0x1c] sm:$0xf]  ;;  %v9134_v10 = vunpack.c.h.b16 %v21222_v3  ;;  %v9076_v43 = vld [vmem:[#allocation2 + $0x28] sm:$0xff]  ;;  %v9156_v9 = vunpack.c.l.b16 %v9073_v36  ;;  %v9133_v23 = vunpack.c.l.b16 %v21222_v3 }
 0xb98   : > { %v9155_v58 = vunpack.c.l.b16 %v9072_v5  ;;  %9082 = vst [vmem:[#allocation2 + $0x1c] sm:$0xf] %v9080_v44  ;;  %v21227_v18 = vld [vmem:[#allocation2 + $0x24] sm:$0xff]  ;;  %v9169_v47 = vpack.c.b16 %v9165_v63, %v9163_v2  ;;  %v9168_v52 = vpack.c.b16 %v9164_v14, %v9162_v22  ;;  %v9422_v44 = vpack.c.b16 %v9420_v0, %v9420_v0 }
 0xb99   : > { %9083 = vst [vmem:[#allocation2 + $0x28] sm:$0xf] %v9081_v46  ;;  %v9138_v61 = vpack.c.b16 %v9134_v10, %v9132_v27  ;;  %v9158_v51 = vpack.c.b16 %v9156_v9, %v9156_v9  ;;  %v9137_v54 = vpack.c.b16 %v9133_v23, %v9131_v59  ;;  %v9167_v53 = vunpack.c.h.b16 %v9076_v43 }
 0xb9a   : > { %v9157_v39 = vpack.c.b16 %v9155_v58, %v9154_v24  ;;  %v21235_v33 = vpack.c.b16 %v9156_v9, %v9155_v58  ;;  %9174 = vrot.lane.b32.xlu0 %v9169_v47, %s17465_s14  ;;  %9172 = vrot.lane.b32.xlu1 %v9168_v52, %s17465_s14  ;;  %v9166_v29 = vunpack.c.l.b16 %v9076_v43  ;;  %v9583_v2 = vpack.c.b16 %v9581_v16, %v9581_v16  ;;  %v9090_v24 = vld [vmem:[#allocation2 + $0x10] sm:$0x88] }
 0xb9b   : > { %9143 = vrot.lane.b32.xlu2 %v9138_v61, %s22798_s13  ;;  %v10455_v49 = vshrl.u32 %v9158_v51, 16  ;;  %v10458_v42 = vshll.u32 %v9158_v51, 16  ;;  %v9171_v22 = vpack.c.b16 %v9167_v53, %v9167_v53  ;;  %v9135_v46 = vunpack.c.l.b16 %v21227_v18  ;;  %v9084_v9 = vld [vmem:[#allocation2 + $0xc] sm:$0x88] }
 0xb9c   : > { %v10447_v60 = vshrl.u32 %v9157_v39, 16  ;;  %v10450_v17 = vshll.u32 %v9157_v39, 16  ;;  %v9170_v27 = vpack.c.b16 %v9166_v29, %v9166_v29  ;;  %v9136_v5 = vunpack.c.h.b16 %v21227_v18 }
 0xb9d   : > { %v10457_v40 = vrot.slane %v10455_v49, 3  ;;  %v10460_v8 = vrot.slane %v10458_v42, 4  ;;  %v9319_v36 = vunpack.c.l.b16 %v9090_v24  ;;  %v9139_v1 = vpack.c.b16 %v9135_v46, %v9135_v46 }
 0xb9e   : > { %v10449_v12 = vrot.slane %v10447_v60, 3  ;;  %v10452_v45 = vrot.slane %v10450_v17, 4  ;;  %v9140_v32 = vpack.c.b16 %v9136_v5, %v9136_v5  ;;  %v9320_v56 = vunpack.c.h.b16 %v9090_v24  ;;  %v9077_v60 = vld [vmem:[#allocation2 + $0x30] sm:$0x11] }
 0xb9f   : > { %v21242_v41 = vld [vmem:[#allocation2 + $0x1c] sm:$0xff]  ;;  %v10461_v62 = vor.u32 %v10460_v8, %v10457_v40  ;;  %v21277_v18 = vpack.c.b16 %v9136_v5, %v9134_v10  ;;  %v9289_v52 = vunpack.c.h.b16 %v9084_v9  ;;  %v9288_v10 = vunpack.c.l.b16 %v9084_v9 }
 0xba0   : > { %v21244_v55 = vld [vmem:[#allocation2 + $0x18] sm:$0xff]  ;;  %v10453_v26 = vor.u32 %v10452_v45, %v10449_v12  ;;  %v21248_v11 = vld [vmem:[#allocation2 + $0x28] sm:$0xff]  ;;  %v9321_v58 = vunpack.c.l.b16 %v21242_v41  ;;  %v9322_v47 = vunpack.c.h.b16 %v21242_v41  ;;  %v9238_v6 = vunpack.c.l.b16 %v9077_v60 }
 0xba1   : > { %v21246_v31 = vld [vmem:[#allocation2 + $0x1c] sm:$0xf]  ;;  %v21250_v57 = vld [vmem:[#allocation2 + $0x24] sm:$0xff]  ;;  %v9291_v61 = vunpack.c.h.b16 %v21244_v55  ;;  %v9243_v15 = vrot.slane %v21277_v18, 5  ;;  %v9290_v17 = vunpack.c.l.b16 %v21244_v55  ;;  %v21293_v49 = vpack.c.b16 %v9167_v53, %v9165_v63  ;;  %v9079_v12 = vld [vmem:[#allocation2 + $0x34] sm:$0x11] }
 0xba2   : > { %v21252_v35 = vld [vmem:[#allocation2 + $0x28] sm:$0xf]  ;;  %9098 = vst [vmem:[#allocation2 + $0x1c] sm:$0xf] %v9096_v4  ;;  %v10462_v28 = vsel %vm22819_vm11, %v10453_v26, %v10461_v62  ;;  %9427 = vrot.lane.b32.xlu1 %v9421_v7, %s17465_s14  ;;  %9141 = vrot.lane.b32.xlu0 %v9137_v54, %s22798_s13  ;;  %v9325_v43 = vpack.c.b16 %v9321_v58, %v9319_v36  ;;  %v9265_v63 = vunpack.c.l.b16 %v9079_v12  ;;  %v9103_v62 = vld [vmem:[#allocation2 + $0x10] sm:$0x8]  ;;  %v9239_v48 = vunpack.c.h.b16 %v9077_v60  ;;  %vm22831_vm11 = vmmov %vm22824_vm0 }
 0xba3   : > { %9099 = vst [vmem:[#allocation2 + $0x28] sm:$0xf] %v9097_v21  ;;  %12747 = vmatmul.bf16.vlgmr.msra.gmra.mxu1 %v10462_v28  ;;  %9591 = vrot.lane.b32.xlu2 %v9584_v50, %s17465_s14  ;;  %v9326_v39 = vpack.c.b16 %v9322_v47, %v9320_v56  ;;  %v9295_v51 = vpack.c.b16 %v9291_v61, %v9289_v52  ;;  %v9270_v45 = vrot.slane %v21293_v49, 5  ;;  %v9465_v0 = vunpack.c.l.b16 %v9103_v62 }
 0xba4   : > { %v9182_v42 = vpack.c.b16 %v9135_v46, %v9133_v23  ;;  %v9294_v4 = vpack.c.b16 %v9290_v17, %v9288_v10  ;;  %v9240_v21 = vpack.c.b16 %v9238_v6, %v9238_v6  ;;  %v9214_v3 = vpack.c.b16 %v9166_v29, %v9164_v14 }
 0xba5   : > { %v9241_v29 = vpack.c.b16 %v9239_v48, %v9239_v48  ;;  %v9193_v56 = vshrl.u32 %v21277_v18, 16  ;;  %v9196_v52 = vshll.u32 %v21277_v18, 16  ;;  %v9324_v18 = vunpack.c.h.b16 %v21248_v11 }
 0xba6   : > { %v9242_v40 = vrot.slane %v9182_v42, 5  ;;  %v9185_v8 = vshrl.u32 %v9182_v42, 16  ;;  %v9188_v59 = vshll.u32 %v9182_v42, 16  ;;  %v9244_v28 = vrot.slane %v9240_v21, 5 }
 0xba7   : > { %v9217_v37 = vshrl.u32 %v9214_v3, 16  ;;  %v9220_v14 = vshll.u32 %v9214_v3, 16  ;;  %v9246_v36 = vrot.slane %v9241_v29, 5  ;;  %v9228_v48 = vshll.u32 %v21293_v49, 16 }
 0xba8   : > { %v9187_v50 = vrot.slane %v9185_v8, 4  ;;  %v9190_v34 = vrot.slane %v9188_v59, 5  ;;  %v9245_v53 = vsel %vm22820_vm2, %v9242_v40, %v9244_v28  ;;  %v9225_v28 = vshrl.u32 %v21293_v49, 16  ;;  %v17087_v49 = vld [vmem:[%s22745_s1 + $0xeb8] sm:$0xff]  ;;  %vm22832_vm2 = vmmov %vm22828_vm5 }
 0xba9   : > { %v9104_v20 = vld [vmem:[#allocation2 + $0x1c] sm:$0xf]  ;;  %v9222_v24 = vrot.slane %v9220_v14, 5  ;;  %v9247_v10 = vsel %vm22822_vm15, %v9243_v15, %v9246_v36  ;;  %v9292_v14 = vunpack.c.l.b16 %v21250_v57  ;;  %v9323_v29 = vunpack.c.l.b16 %v21248_v11  ;;  %12725 = vmatpush.bf16.msra.mxu0 %v17087_v49  ;;  %v17086_v11 = vld [vmem:[%s22745_s1 + $0xeb0] sm:$0xff]  ;;  %vm22834_vm15 = vmmov %vm22832_vm2 }
 0xbaa   : > { %9573 = vrot.lane.b32.xlu1 %v9566_v30, %s22798_s13  ;;  %9429 = vrot.lane.b32.xlu0 %v9422_v44, %s17465_s14  ;;  %v9105_v26 = vld [vmem:[#allocation2 + $0x28] sm:$0xf]  ;;  %v9466_v7 = vunpack.c.l.b16 %v9104_v20  ;;  %v9267_v44 = vpack.c.b16 %v9265_v63, %v9265_v63  ;;  %v9191_v16 = vor.u32 %v9190_v34, %v9187_v50  ;;  %v8953_v63 = vpop.f32.mrf.mxu0 }
 0xbab   : > { %9571 = vrot.lane.b32.xlu2 %v9565_v13, %s22798_s13  ;;  %v9467_v23 = vunpack.c.l.b16 %v9105_v26  ;;  %v9269_v13 = vrot.slane %v9214_v3, 5 }
 0xbac   : > { %v9271_v46 = vrot.slane %v9267_v44, 5 }
 0xbad   : > { %v21309_v38 = vpack.c.b16 %v9467_v23, %v9466_v7  ;;  %v9469_v30 = vpack.c.b16 %v9467_v23, %v9467_v23  ;;  %12726 = vmatpush.bf16.msra.mxu0 %v17086_v11 }
 0xbae   : > { %v9272_v60 = vsel %vm22821_vm10, %v9269_v13, %v9271_v46  ;;  %v9327_v46 = vpack.c.b16 %v9323_v29, %v9323_v29  ;;  %vm22833_vm10 = vmmov %vm22832_vm2 }
 0xbb2   : > { %9178 = vrot.lane.b32.xlu1 %v9171_v22, %s17465_s14  ;;  %9589 = vrot.lane.b32.xlu0 %v9583_v2, %s17465_s14  ;;  %v9468_v2 = vpack.c.b16 %v9466_v7, %v9465_v0  ;;  %v9471_v22 = vrot.slane %v9469_v30, 3  ;;  %v9328_v30 = vpack.c.b16 %v9324_v18, %v9324_v18 }
 0xbb3   : > { %9176 = vrot.lane.b32.xlu2 %v9170_v27, %s17465_s14  ;;  %v9219_v27 = vrot.slane %v9217_v37, 4  ;;  %v9230_v37 = vrot.slane %v9228_v48, 5 }
 0xbb4   : > { %v9470_v5 = vrot.slane %v9468_v2, 3 }
 0xbba   : > { %9145 = vrot.lane.b32.xlu1 %v9139_v1, %s22798_s13  ;;  %9147 = vrot.lane.b32.xlu0 %v9140_v32, %s22798_s13  ;;  %v9266_v1 = vunpack.c.h.b16 %v9079_v12  ;;  %v9795_v32 = vrot.slane %v9471_v22, 5  ;;  %v9195_v12 = vrot.slane %v9193_v56, 4  ;;  %v8967_v62 = vpop.f32.mrf.mxu1  ;;  %v9293_v56 = vunpack.c.h.b16 %v21250_v57 }
 0xbbb   : > { %9329 = vrot.lane.b32.xlu2 %v9325_v43, %s17465_s14  ;;  %v9472_v43 = vsel %vm1537_vm6, %v9470_v5, %v9471_v22  ;;  %v9371_v57 = vpack.c.b16 %v9323_v29, %v9321_v58 }
 0xbbc   : > { %v9268_v6 = vpack.c.b16 %v9266_v1, %v9266_v1 }
 0xbbe   : > { %v9273_v7 = vrot.slane %v9268_v6, 5  ;;  %v9297_v6 = vpack.c.b16 %v9293_v56, %v9293_v56 }
 0xbc0   : > { %v9274_v44 = vsel %vm22824_vm0, %v9270_v45, %v9273_v7  ;;  %v17083_v7 = vld [vmem:[%s22745_s1 + $0xe98] sm:$0xff]  ;;  %vm22836_vm0 = vmmov %vm22832_vm2 }
 0xbc2   : > { %9331 = vrot.lane.b32.xlu1 %v9326_v39, %s17465_s14  ;;  %9300 = vrot.lane.b32.xlu0 %v9295_v51, %s22798_s13  ;;  %v9776_v39 = vrot.slane %v9472_v43, 5  ;;  %v9223_v51 = vor.u32 %v9222_v24, %v9219_v27  ;;  %v8955_v27 = vpop.f32.mrf.mxu0  ;;  %v9296_v24 = vpack.c.b16 %v9292_v14, %v9292_v14  ;;  %v8969_v5 = vpop.f32.mrf.mxu1 }
 0xbc3   : > { %9250 = vrot.lane.b32.xlu2 %v9243_v15, %s22798_s13 }
 0xbc4   : > { %v9796_v42 = vsel %vm22823_vm4, %v9776_v39, %v9795_v32  ;;  %v10705_v20 = vshrl.u32 %v9776_v39, 16  ;;  %v9093_v32 = vld [vmem:[#allocation2 + $0x30] sm:$0x11]  ;;  %vm22835_vm4 = vmmov %vm22832_vm2 }
 0xbc5   : > { %v10713_v21 = vshrl.u32 %v9796_v42, 16  ;;  %v10716_v59 = vshll.u32 %v9796_v42, 16 }
 0xbc6   : > { %v21307_v54 = vpop.f32.mrf.mxu2  ;;  %v10707_v8 = vrot.slane %v10705_v20, 3  ;;  %v9372_v20 = vpack.c.b16 %v9324_v18, %v9322_v47 }
 0xbc7   : > { %v10715_v15 = vrot.slane %v10713_v21, 3  ;;  %v10718_v3 = vrot.slane %v10716_v59, 4  ;;  %v8954_v2 = vadd.f32 %v8953_v63, %v21307_v54  ;;  %v17102_v54 = vld [vmem:[%s22745_s1 + $0xf30] sm:$0xff]  ;;  %v17100_v21 = vld [vmem:[%s22745_s1 + $0xf20] sm:$0xff] }
 0xbc8   : > { %v9385_v48 = vshll.u32 %v9372_v20, 16 }
 0xbc9   : > { %v10719_v0 = vor.u32 %v10718_v3, %v10715_v15  ;;  %v8968_v1 = vadd.f32 %v8967_v62, %v8954_v2  ;;  %v17099_v3 = vld [vmem:[%s22745_s1 + $0xf18] sm:$0xff] }
 0xbca   : > { %9298 = vrot.lane.b32.xlu1 %v9294_v4, %s22798_s13  ;;  %9248 = vrot.lane.b32.xlu0 %v9242_v40, %s22798_s13  ;;  %v10708_v4 = vshll.u32 %v9776_v39, 16  ;;  %v9198_v40 = vrot.slane %v9196_v52, 5  ;;  %v17085_v39 = vld [vmem:[%s22745_s1 + $0xea8] sm:$0xff]  ;;  %v9387_v11 = vrot.slane %v9385_v48, 5  ;;  %v17134_v48 = vld [vmem:[%s22745_s1 + $0x1030] sm:$0xff] }
 0xbcb   : > { %9277 = vrot.lane.b32.xlu2 %v9270_v45, %s17465_s14  ;;  %v17103_v45 = vld [vmem:[%s22745_s1 + $0xf38] sm:$0xff]  ;;  %12727 = vmatpush.bf16.msra.mxu0 %v17085_v39 }
 0xbcc   : > { %v10710_v26 = vrot.slane %v10708_v4, 4  ;;  %v9199_v34 = vor.u32 %v9198_v40, %v9195_v12  ;;  %12753 = vmatpush.bf16.msra.mxu3 %v17103_v45  ;;  %v17084_v4 = vld [vmem:[%s22745_s1 + $0xea0] sm:$0xff] }
 0xbce   : > { %v21316_v9 = vpop.f32.mrf.mxu2  ;;  %v10711_v23 = vor.u32 %v10710_v26, %v10707_v8  ;;  %v21385_v26 = vpack.c.b16 %v9293_v56, %v9291_v61  ;;  %v17427_v61 = vld [vmem:[%s22747_s3 + $0xc] ss:$0 sm:$0xff] }
 0xbcf   : > { %12728 = vmatpush.bf16.msra.mxu0 %v17084_v4  ;;  %v9108_v4 = vld [vmem:[#allocation2 + $0x28] sm:$0xff] }
 0xbd0   : > { %12754 = vmatpush.bf16.msra.mxu3 %v17102_v54 }
 0xbd2   : > { %9252 = vrot.lane.b32.xlu1 %v9245_v53, %s22798_s13  ;;  %9275 = vrot.lane.b32.xlu0 %v9269_v13, %s17465_s14  ;;  %v9227_v53 = vrot.slane %v9225_v28, 4  ;;  %v9023_v12 = vpop.f32.mrf.mxu1  ;;  %v9382_v28 = vshrl.u32 %v9372_v20, 16 }
 0xbd3   : > { %9200 = vrot.lane.b32.xlu2 %v9191_v16, %s22798_s13  ;;  %v21336_v16 = vsel %vm22825_vm7, %v10711_v23, %v10719_v0  ;;  %12729 = vmatpush.bf16.msra.mxu0 %v17083_v7  ;;  %v21449_v7 = vunpack.c.h.b16 %v9108_v4  ;;  %vm22837_vm7 = vmmov %vm22831_vm11 }
 0xbd4   : > { %v9231_v22 = vor.u32 %v9230_v37, %v9227_v53  ;;  %v17082_v37 = vld [vmem:[%s22745_s1 + $0xe90] sm:$0xff] }
 0xbd6   : > { %v8995_v13 = vpop.f32.mrf.mxu2 }
 0xbd7   : > { %12730 = vmatpush.bf16.msra.mxu0 %v17082_v37 }
 0xbda   : > { %9279 = vrot.lane.b32.xlu1 %v9272_v60, %s17465_s14  ;;  %9254 = vrot.lane.b32.xlu0 %v9247_v10, %s22798_s13  ;;  %v9395_v60 = vunpack.c.l.b16 %v9093_v32  ;;  %v8956_v10 = vadd.f32 %v8955_v27, %v21316_v9  ;;  %v21378_v9 = vpack.c.b16 %v9292_v14, %v9290_v17  ;;  %v9396_v17 = vunpack.c.h.b16 %v9093_v32  ;;  %v17098_v14 = vld [vmem:[%s22745_s1 + $0xf10] sm:$0xff]  ;;  %v17081_v32 = vld [vmem:[%s22745_s1 + $0xe88] sm:$0xff] }
 0xbdb   : > { %9232 = vrot.lane.b32.xlu2 %v9223_v51, %s17465_s14  ;;  %v17101_v51 = vld [vmem:[%s22745_s1 + $0xf28] sm:$0xff]  ;;  %12731 = vmatpush.bf16.msra.mxu0 %v17081_v32 }
 0xbdc   : > { %12755 = vmatpush.bf16.msra.mxu3 %v17101_v51  ;;  %v9397_v41 = vpack.c.b16 %v9395_v60, %v9395_v60  ;;  %v8970_v58 = vadd.f32 %v8969_v5, %v8956_v10  ;;  %v9399_v23 = vrot.slane %v21378_v9, 5  ;;  %v9398_v53 = vpack.c.b16 %v9396_v17, %v9396_v17  ;;  %v17111_v51 = vld [vmem:[%s22745_s1 + $0xf78] sm:$0xff] }
 0xbdd   : > { %12767 = vmatpush.bf16.msra.mxu2 %v17111_v51  ;;  %v17126_v51 = vld [vmem:[%s22745_s1 + $0xff0] sm:$0xff] }
 0xbde   : > { %v8997_v43 = vpop.f32.mrf.mxu2  ;;  %v9401_v62 = vrot.slane %v9397_v41, 5  ;;  %v9342_v41 = vshrl.u32 %v21378_v9, 16 }
 0xbdf   : > { %v8981_v50 = vpop.f32.mrf.mxu3 }
 0xbe0   : > { %v8982_v52 = vadd.f32 %v8981_v50, %v8968_v1  ;;  %12756 = vmatpush.bf16.msra.mxu3 %v17100_v21  ;;  %v9374_v50 = vshrl.u32 %v9371_v57, 16  ;;  %v9402_v2 = vsel %vm22826_vm12, %v9399_v23, %v9401_v62  ;;  %v9403_v1 = vrot.slane %v9398_v53, 5  ;;  %v21428_v21 = vld [vmem:[#allocation2 + $0x18] sm:$0xff]  ;;  %vm22838_vm12 = vmmov %vm22837_vm7 }
 0xbe1   : > { %v9344_v62 = vrot.slane %v9342_v41, 4  ;;  %v17127_v53 = vld [vmem:[%s22745_s1 + $0xff8] sm:$0xff]  ;;  %v17125_v41 = vld [vmem:[%s22745_s1 + $0xfe8] sm:$0xff] }
 0xbe2   : > { %9202 = vrot.lane.b32.xlu1 %v9199_v34, %s22798_s13  ;;  %9281 = vrot.lane.b32.xlu0 %v9274_v44, %s17465_s14  ;;  %v8996_v42 = vadd.f32 %v8995_v13, %v8982_v52  ;;  %v9377_v34 = vshll.u32 %v9371_v57, 16  ;;  %v9400_v44 = vrot.slane %v21385_v26, 5  ;;  %v9376_v27 = vrot.slane %v9374_v50, 4 }
 0xbe3   : > { %9335 = vrot.lane.b32.xlu2 %v9328_v30, %s17465_s14  ;;  %v17428_v30 = vld [vmem:[%s22748_s4 + $0xc] ss:$0 sm:$0xff]  ;;  %12795 = vmatpush.bf16.msrb.mxu1 %v17127_v53 }
 0xbe4   : > { %12757 = vmatpush.bf16.msra.mxu3 %v17099_v3 }
 0xbe6   : > { %v9051_v63 = vpop.f32.mrf.mxu2 }
 0xbe7   : > { %v8983_v36 = vpop.f32.mrf.mxu3  ;;  %12796 = vmatpush.bf16.msrb.mxu1 %v17126_v51  ;;  %v17143_v51 = vld [vmem:[%s22745_s1 + $0x1078] sm:$0xff] }
 0xbe8   : > { %v8984_v59 = vadd.f32 %v8983_v36, %v8970_v58  ;;  %12758 = vmatpush.bf16.msra.mxu3 %v17098_v14  ;;  %v9345_v58 = vshll.u32 %v21378_v9, 16  ;;  %v17135_v9 = vld [vmem:[%s22745_s1 + $0x1038] sm:$0xff] }
 0xbea   : > { %9234 = vrot.lane.b32.xlu1 %v9231_v22, %s17465_s14  ;;  %9333 = vrot.lane.b32.xlu0 %v9327_v46, %s17465_s14  ;;  %v8998_v13 = vadd.f32 %v8997_v43, %v8984_v59  ;;  %v9025_v22 = vpop.f32.mrf.mxu1  ;;  %v9384_v46 = vrot.slane %v9382_v28, 4  ;;  %v17097_v43 = vld [vmem:[%s22745_s1 + $0xf08] sm:$0xff]  ;;  %v17119_v59 = vld [vmem:[%s22745_s1 + $0xfb8] sm:$0xff] }
 0xbeb   : > { %9302 = vrot.lane.b32.xlu2 %v9296_v24, %s22798_s13  ;;  %v9379_v24 = vrot.slane %v9377_v34, 5  ;;  %v9102_v28 = vld [vmem:[#allocation2 + $0x24] sm:$0xff]  ;;  %12797 = vmatpush.bf16.msrb.mxu1 %v17125_v41 }
 0xbec   : > { %12759 = vmatpush.bf16.msra.mxu3 %v17097_v43 }
 0xbed   : > { %v9380_v10 = vor.u32 %v9379_v24, %v9376_v27  ;;  %v9480_v24 = vunpack.c.l.b16 %v9108_v4 }
 0xbee   : > { %v9053_v60 = vpop.f32.mrf.mxu2 }
 0xbef   : > { %v9037_v8 = vpop.f32.mrf.mxu3 }
 0xbf2   : > { %v9009_v40 = vpop.f32.mrf.mxu0  ;;  %9304 = vrot.lane.b32.xlu1 %v9297_v6, %s22798_s13  ;;  %9423 = vrot.lane.b32.xlu0 %v9371_v57, %s17465_s14  ;;  %v9388_v6 = vor.u32 %v9387_v11, %v9384_v46  ;;  %v21426_v57 = vld [vmem:[#allocation2 + $0x1c] sm:$0xff]  ;;  %v9439_v46 = vunpack.c.h.b16 %v21428_v21  ;;  %v9441_v11 = vunpack.c.h.b16 %v9102_v28 }
 0xbf3   : > { %v9010_v47 = vadd.f32 %v9009_v40, %v8996_v42  ;;  %9425 = vrot.lane.b32.xlu2 %v9372_v20, %s17465_s14  ;;  %v9350_v42 = vshrl.u32 %v21385_v26, 16  ;;  %v9353_v20 = vshll.u32 %v21385_v26, 16  ;;  %v9404_v40 = vsel %vm22827_vm13, %v9400_v44, %v9403_v1  ;;  %v17132_v1 = vld [vmem:[%s22745_s1 + $0x1020] sm:$0xff]  ;;  %vm22839_vm13 = vmmov %vm22837_vm7 }
 0xbf4   : > { %v9479_v17 = vunpack.c.h.b16 %v21426_v57  ;;  %v9478_v27 = vunpack.c.l.b16 %v21426_v57  ;;  %v21504_v43 = vpack.c.b16 %v9441_v11, %v9439_v46 }
 0xbf5   : > { %v9024_v18 = vadd.f32 %v9023_v12, %v9010_v47  ;;  %v21387_v15 = vpop.permute.xlu2 %9143  ;;  %v17080_v47 = vld [vmem:[%s22745_s1 + $0xe80] sm:$0xff]  ;;  %v9352_v26 = vrot.slane %v9350_v42, 4 }
 0xbf6   : > { %12732 = vmatpush.bf16.msra.mxu0 %v17080_v47  ;;  %v21459_v34 = vpack.c.b16 %v21449_v7, %v9479_v17  ;;  %v21502_v32 = vpack.c.b16 %v9480_v24, %v9478_v27  ;;  %v17114_v47 = vld [vmem:[%s22745_s1 + $0xf90] sm:$0xff]  ;;  %v9512_v57 = vshrl.u32 %v21504_v43, 16 }
 0xbf7   : > { %v9038_v55 = vadd.f32 %v9037_v8, %v9024_v18  ;;  %v9039_v56 = vpop.f32.mrf.mxu3  ;;  %v17096_v8 = vld [vmem:[%s22745_s1 + $0xf00] sm:$0xff] }
 0xbf8   : > { %12760 = vmatpush.bf16.msra.mxu3 %v17096_v8 }
 0xbf9   : > { %v9052_v0 = vadd.f32 %v9051_v63, %v9038_v55  ;;  %v9347_v55 = vrot.slane %v9345_v58, 5 }
 0xbfa   : > { %v9011_v29 = vpop.f32.mrf.mxu0  ;;  %9405 = vrot.lane.b32.xlu1 %v9399_v23, %s22798_s13  ;;  %9407 = vrot.lane.b32.xlu0 %v9400_v44, %s22798_s13  ;;  %v9355_v23 = vrot.slane %v9353_v20, 5  ;;  %v17110_v44 = vld [vmem:[%s22745_s1 + $0xf70] sm:$0xff] }
 0xbfb   : > { %v9058_v49 = vmul.f32 %v17427_v61, %v9052_v0  ;;  %v9012_v45 = vadd.f32 %v9011_v29, %v8998_v13  ;;  %9409 = vrot.lane.b32.xlu2 %v9402_v2, %s22798_s13  ;;  %12781 = vmatpush.bf16.msrb.mxu0 %v17119_v59  ;;  %v17117_v13 = vld [vmem:[%s22745_s1 + $0xfa8] sm:$0xff]  ;;  %v9438_v29 = vunpack.c.l.b16 %v21428_v21  ;;  %v9440_v2 = vunpack.c.l.b16 %v9102_v28  ;;  %v17130_v59 = vld [vmem:[%s22745_s1 + $0x1010] sm:$0xff] }
 0xbfc   : > { %12809 = vmatpush.bf16.msrb.mxu3 %v17135_v9  ;;  %v9356_v0 = vor.u32 %v9355_v23, %v9352_v26  ;;  %12768 = vmatpush.bf16.msra.mxu2 %v17110_v44  ;;  %v9484_v21 = vpack.c.b16 %v9480_v24, %v9480_v24  ;;  %v9485_v28 = vpack.c.b16 %v21449_v7, %v21449_v7  ;;  %v17105_v7 = vld [vmem:[%s22745_s1 + $0xf48] sm:$0xff]  ;;  %v17112_v24 = vld [vmem:[%s22745_s1 + $0xf80] sm:$0xff] }
 0xbfd   : > { %v9062_v54 = vadd.f32 %v17428_v30, %v9058_v49  ;;  %v9026_v5 = vadd.f32 %v9025_v22, %v9012_v45  ;;  %v21413_v36 = vpop.permute.xlu2 %9591  ;;  %v17133_v49 = vld [vmem:[%s22745_s1 + $0x1028] sm:$0xff]  ;;  %v9444_v4 = vpack.c.b16 %v9440_v2, %v9440_v2 }
 0xbfe   : > { %v17109_v45 = vld [vmem:[%s22745_s1 + $0xf68] sm:$0xff] }
 0xbff   : > { %v9112_v52 = vpack.c.bf16 %v9062_v54, %v9062_v54  ;;  %v9040_v39 = vadd.f32 %v9039_v56, %v9026_v5  ;;  %v17116_v54 = vld [vmem:[%s22745_s1 + $0xfa0] sm:$0xff]  ;;  %v21495_v5 = vpack.c.b16 %v9440_v2, %v9438_v29  ;;  %v9100_v56 = vld [vmem:[#allocation2 + $0xc] sm:$0x88]  ;;  %v9447_v9 = vrot.slane %v9444_v4, 3  ;;  %v17123_v2 = vld [vmem:[%s22745_s1 + $0xfd8] sm:$0xff] }
 0xc00   : > { %12810 = vmatpush.bf16.msrb.mxu3 %v17134_v48  ;;  %12769 = vmatpush.bf16.msra.mxu2 %v17109_v45  ;;  %v9437_v58 = vunpack.c.h.b16 %v9100_v56  ;;  %v17129_v48 = vld [vmem:[%s22745_s1 + $0x1008] sm:$0xff] }
 0xc01   : > { %v9054_v12 = vadd.f32 %v9053_v60, %v9040_v39  ;;  %9114 = vst [vmem:[#allocation2 + $0x1c] sm:$0xf] %v9112_v52  ;;  %v17115_v52 = vld [vmem:[%s22745_s1 + $0xf98] sm:$0xff]  ;;  %v17108_v39 = vld [vmem:[%s22745_s1 + $0xf60] sm:$0xff] }
 0xc02   : > { %9411 = vrot.lane.b32.xlu1 %v9404_v40, %s22798_s13  ;;  %9389 = vrot.lane.b32.xlu0 %v9380_v10, %s17465_s14  ;;  %v9445_v10 = vpack.c.b16 %v9441_v11, %v9441_v11  ;;  %v17107_v40 = vld [vmem:[%s22745_s1 + $0xf58] sm:$0xff]  ;;  %v9443_v23 = vpack.c.b16 %v9439_v46, %v9437_v58  ;;  %v9490_v46 = vrot.slane %v9485_v28, 3  ;;  %v17128_v11 = vld [vmem:[%s22745_s1 + $0x1000] sm:$0xff] }
 0xc03   : > { %v9059_v18 = vmul.f32 %v17427_v61, %v9054_v12  ;;  %9391 = vrot.lane.b32.xlu2 %v9388_v6, %s17465_s14  ;;  %v17118_v61 = vld [vmem:[%s22745_s1 + $0xfb0] sm:$0xff]  ;;  %v17131_v6 = vld [vmem:[%s22745_s1 + $0x1018] sm:$0xff]  ;;  %v9436_v12 = vunpack.c.l.b16 %v9100_v56  ;;  %v17120_v28 = vld [vmem:[%s22745_s1 + $0xfc0] sm:$0xff] }
 0xc04   : > { %12782 = vmatpush.bf16.msrb.mxu0 %v17118_v61  ;;  %12811 = vmatpush.bf16.msrb.mxu3 %v17133_v49  ;;  %v9450_v8 = vrot.slane %v9445_v10, 3  ;;  %v17124_v61 = vld [vmem:[%s22745_s1 + $0xfe0] sm:$0xff]  ;;  %v9449_v45 = vrot.slane %v9443_v23, 3  ;;  %v9546_v23 = vshrl.u32 %v21459_v34, 16 }
 0xc05   : > { %v9063_v3 = vadd.f32 %v17428_v30, %v9059_v18  ;;  %v21451_v63 = vpop.permute.xlu2 %9571  ;;  %v9348_v30 = vor.u32 %v9347_v55, %v9344_v62  ;;  %12770 = vmatpush.bf16.msra.mxu2 %v17108_v39  ;;  %v21540_v18 = vrot.slane %v9484_v21, 3  ;;  %v9442_v26 = vpack.c.b16 %v9438_v29, %v9436_v12  ;;  %v17113_v62 = vld [vmem:[%s22745_s1 + $0xf88] sm:$0xff]  ;;  %v17106_v55 = vld [vmem:[%s22745_s1 + $0xf50] sm:$0xff]  ;;  %12798 = vmatpush.bf16.msrb.mxu1 %v17124_v61  ;;  %v17104_v39 = vld [vmem:[%s22745_s1 + $0xf40] sm:$0xff] }
 0xc07   : > { %v9113_v50 = vpack.c.bf16 %v9063_v3, %v9063_v3  ;;  %v9106_v3 = vld [vmem:[#allocation2 + $0x10] sm:$0x88]  ;;  %v9446_v44 = vrot.slane %v9442_v26, 3 }
 0xc08   : > { %12783 = vmatpush.bf16.msrb.mxu0 %v17117_v13  ;;  %12812 = vmatpush.bf16.msrb.mxu3 %v17132_v1  ;;  %v9476_v53 = vunpack.c.l.b16 %v9106_v3  ;;  %v9477_v29 = vunpack.c.h.b16 %v9106_v3  ;;  %v17142_v26 = vld [vmem:[%s22745_s1 + $0x1070] sm:$0xff]  ;;  %v21620_v3 = vrot.slane %v9512_v57, 7 }
 0xc09   : > { %9115 = vst [vmem:[#allocation2 + $0x28] sm:$0xf] %v9113_v50  ;;  %12771 = vmatpush.bf16.msra.mxu2 %v17107_v40  ;;  %v9448_v1 = vsel %vm1537_vm6, %v9446_v44, %v9447_v9  ;;  %12799 = vmatpush.bf16.msrb.mxu1 %v17123_v2  ;;  %v17159_v44 = vld [vmem:[%s22745_s1 + $0x10f8] sm:$0xff]  ;;  %v9548_v2 = vrot.slane %v9546_v23, 7 }
 0xc0a   : > { %9587 = vrot.lane.b32.xlu1 %v21459_v34, %s17465_s14  ;;  %9357 = vrot.lane.b32.xlu0 %v9348_v30, %s22798_s13 }
 0xc0b   : > { %9359 = vrot.lane.b32.xlu2 %v9356_v0, %s22798_s13 }
 0xc0c   : > { %v21477_v37 = vpop.permute.xlu0 %9174  ;;  %v21479_v14 = vpop.permute.xlu1 %9172  ;;  %12784 = vmatpush.bf16.msrb.mxu0 %v17116_v54  ;;  %12813 = vmatpush.bf16.msrb.mxu3 %v17131_v6 }
 0xc0d   : > { %v21488_v22 = vpop.permute.xlu2 %9176  ;;  %12772 = vmatpush.bf16.msra.mxu2 %v17106_v55 }
 0xc10   : > { %12785 = vmatpush.bf16.msrb.mxu0 %v17115_v52  ;;  %12814 = vmatpush.bf16.msrb.mxu3 %v17130_v59  ;;  %v9451_v52 = vsel %vm1537_vm6, %v9449_v45, %v9450_v8  ;;  %v9549_v45 = vshll.u32 %v21459_v34, 16  ;;  %v17140_v34 = vld [vmem:[%s22745_s1 + $0x1060] sm:$0xff] }
 0xc11   : > { %12773 = vmatpush.bf16.msra.mxu2 %v17105_v7  ;;  %v9539_v7 = vshrl.u32 %v21502_v32, 16 }
 0xc12   : > { %9567 = vrot.lane.b32.xlu1 %v21495_v5, %s22798_s13  ;;  %9569 = vrot.lane.b32.xlu0 %v21504_v43, %s22798_s13  ;;  %v9551_v57 = vor.u32 %v9549_v45, %v9548_v2 }
 0xc13   : > { %9585 = vrot.lane.b32.xlu2 %v21502_v32, %s17465_s14 }
 0xc14   : > { %v9428_v60 = vpop.permute.xlu1 %9427  ;;  %v21524_v42 = vpop.permute.xlu0 %9141  ;;  %12786 = vmatpush.bf16.msrb.mxu0 %v17114_v47  ;;  %12815 = vmatpush.bf16.msrb.mxu3 %v17129_v48 }
 0xc15   : > { %v21526_v20 = vpop.permute.xlu2 %9329  ;;  %12774 = vmatpush.bf16.msra.mxu2 %v17104_v39 }
 0xc18   : > { %12787 = vmatpush.bf16.msrb.mxu0 %v17113_v62  ;;  %12816 = vmatpush.bf16.msrb.mxu3 %v17128_v11 }
 0xc19   : > { %12823 = vmatpush.bf16.msrb.mxu2 %v17143_v51  ;;  %v17165_v51 = vld [vmem:[%s22745_s1 + $0x1128] sm:$0xff] }
 0xc1a   : > { %9458 = vrot.lane.b32.xlu1 %v9450_v8, %s22798_s13  ;;  %9496 = vrot.lane.b32.xlu0 %v21540_v18, %s17465_s14  ;;  %v17121_v8 = vld [vmem:[%s22745_s1 + $0xfc8] sm:$0xff] }
 0xc1b   : > { %9456 = vrot.lane.b32.xlu2 %v9447_v9, %s22798_s13 }
 0xc1c   : > { %v9574_v50 = vpop.permute.xlu1 %9573  ;;  %v9430_v30 = vpop.permute.xlu0 %9429  ;;  %12788 = vmatpush.bf16.msrb.mxu0 %v17112_v24  ;;  %v17166_v24 = vld [vmem:[%s22745_s1 + $0x1130] sm:$0xff] }
 0xc1d   : > { %v21562_v0 = vsel %vm840_vm1, %v21451_v63, %v9574_v50  ;;  %v21564_v13 = vpop.permute.xlu2 %9250  ;;  %v9180_v63 = vsel %vm2779_vm3, %v21479_v14, %v21477_v37  ;;  %v21576_v49 = vsel %vm2779_vm3, %v9428_v60, %v9430_v30  ;;  %v9482_v37 = vpack.c.b16 %v9478_v27, %v9476_v53  ;;  %12824 = vmatpush.bf16.msrb.mxu2 %v17142_v26  ;;  %v17141_v30 = vld [vmem:[%s22745_s1 + $0x1068] sm:$0xff] }
 0xc1e   : > { %v10464_v54 = vshrl.u32 %v9180_v63, 16  ;;  %v9483_v14 = vpack.c.b16 %v9479_v17, %v9477_v29  ;;  %v10467_v56 = vshll.u32 %v9180_v63, 16  ;;  %v17122_v17 = vld [vmem:[%s22745_s1 + $0xfd0] sm:$0xff] }
 0xc1f   : > { %v9486_v21 = vrot.slane %v9482_v37, 3  ;;  %12800 = vmatpush.bf16.msrb.mxu1 %v17122_v17  ;;  %v9207_v37 = vshrl.u32 %v21235_v33, 16  ;;  %v9505_v17 = vshrl.u32 %v21495_v5, 16  ;;  %v21685_v26 = vld [vmem:[#allocation2 + $0xc] sm:$0x88] }
 0xc20   : > { %v10466_v60 = vrot.slane %v10464_v54, 3  ;;  %v9489_v12 = vrot.slane %v9483_v14, 3  ;;  %v10469_v40 = vrot.slane %v10467_v56, 4  ;;  %v9210_v14 = vshll.u32 %v21235_v33, 16  ;;  %v17158_v56 = vld [vmem:[%s22745_s1 + $0x10f0] sm:$0xff] }
 0xc21   : > { %v9488_v61 = vsel %vm1537_vm6, %v9486_v21, %v21540_v18  ;;  %12825 = vmatpush.bf16.msrb.mxu2 %v17141_v30  ;;  %v9118_v21 = vld [vmem:[#allocation2 + $0x24] sm:$0xff] }
 0xc22   : > { %9452 = vrot.lane.b32.xlu1 %v9448_v1, %s22798_s13  ;;  %9454 = vrot.lane.b32.xlu0 %v9451_v52, %s22798_s13  ;;  %v10470_v62 = vor.u32 %v10469_v40, %v10466_v60  ;;  %v9209_v40 = vrot.slane %v9207_v37, 4  ;;  %v17162_v37 = vld [vmem:[%s22745_s1 + $0x1110] sm:$0xff] }
 0xc23   : > { %9498 = vrot.lane.b32.xlu2 %v9490_v46, %s17465_s14  ;;  %12801 = vmatpush.bf16.msrb.mxu1 %v17121_v8  ;;  %v17157_v8 = vld [vmem:[%s22745_s1 + $0x10e8] sm:$0xff] }
 0xc24   : > { %v9179_v27 = vpop.permute.xlu1 %9178  ;;  %v9590_v6 = vpop.permute.xlu0 %9589 }
 0xc25   : > { %v9181_v10 = vsel %vm2779_vm3, %v21488_v22, %v9179_v27  ;;  %v21605_v4 = vpop.permute.xlu2 %9277  ;;  %v21609_v47 = vsel %vm2779_vm3, %v9590_v6, %v21413_v36  ;;  %v9149_v22 = vsel %vm840_vm1, %v21524_v42, %v21387_v15  ;;  %v9491_v36 = vsel %vm1537_vm6, %v9489_v12, %v9490_v46  ;;  %v17167_v15 = vld [vmem:[%s22745_s1 + $0x1138] sm:$0xff]  ;;  %12826 = vmatpush.bf16.msrb.mxu2 %v17140_v34 }
 0xc26   : > { %v10472_v41 = vshrl.u32 %v9181_v10, 16  ;;  %v10475_v58 = vshll.u32 %v9181_v10, 16  ;;  %v10430_v42 = vshrl.u32 %v9149_v22, 16  ;;  %v10433_v50 = vshll.u32 %v9149_v22, 16  ;;  %v17151_v6 = vld [vmem:[%s22745_s1 + $0x10b8] sm:$0xff] }
 0xc27   : > { %12802 = vmatpush.bf16.msrb.mxu1 %v17120_v28  ;;  %v21659_v27 = vrot.slane %v9539_v7, 7  ;;  %v9602_v34 = vunpack.c.l.b16 %v9118_v21 }
 0xc28   : > { %v10474_v59 = vrot.slane %v10472_v41, 3  ;;  %v10477_v9 = vrot.slane %v10475_v58, 4  ;;  %v10432_v46 = vrot.slane %v10430_v42, 3  ;;  %v10435_v11 = vrot.slane %v10433_v50, 4  ;;  %v17139_v58 = vld [vmem:[%s22745_s1 + $0x1058] sm:$0xff] }
 0xc29   : > { %v9212_v41 = vrot.slane %v9210_v14, 5  ;;  %v9508_v42 = vshll.u32 %v21495_v5, 16  ;;  %v9599_v50 = vunpack.c.h.b16 %v21685_v26  ;;  %12827 = vmatpush.bf16.msrb.mxu2 %v17139_v58  ;;  %v17148_v14 = vld [vmem:[%s22745_s1 + $0x10a0] sm:$0xff]  ;;  %v9122_v58 = vld [vmem:[#allocation2 + $0x10] sm:$0x88] }
 0xc2a   : > { %v10478_v55 = vor.u32 %v10477_v9, %v10474_v59  ;;  %9494 = vrot.lane.b32.xlu1 %v9491_v36, %s17465_s14  ;;  %9524 = vrot.lane.b32.xlu0 %v21620_v3, %s22798_s13  ;;  %v10436_v60 = vor.u32 %v10435_v11, %v10432_v46  ;;  %v21687_v36 = vld [vmem:[#allocation2 + $0x18] sm:$0xff] }
 0xc2b   : > { %9492 = vrot.lane.b32.xlu2 %v9488_v61, %s17465_s14  ;;  %12851 = vmatpush.bf16.msra.mxu1 %v17159_v44  ;;  %v17164_v61 = vld [vmem:[%s22745_s1 + $0x1120] sm:$0xff]  ;;  %v9601_v28 = vunpack.c.h.b16 %v21687_v36  ;;  %v17155_v11 = vld [vmem:[%s22745_s1 + $0x10d8] sm:$0xff] }
 0xc2c   : > { %v9146_v48 = vpop.permute.xlu1 %9145  ;;  %v10479_v18 = vsel %vm22828_vm5, %v10470_v62, %v10478_v55  ;;  %v9148_v53 = vpop.permute.xlu0 %9147  ;;  %v9507_v62 = vrot.slane %v9505_v17, 7  ;;  %v9603_v55 = vunpack.c.h.b16 %v9118_v21  ;;  %v17156_v44 = vld [vmem:[%s22745_s1 + $0x10e0] sm:$0xff]  ;;  %v17161_v21 = vld [vmem:[%s22745_s1 + $0x1108] sm:$0xff]  ;;  %vm22840_vm5 = vmmov %vm22836_vm0 }
 0xc2d   : > { %v21643_v29 = vpop.permute.xlu2 %9200  ;;  %12761 = vmatmul.bf16.vlgmr.msra.gmra.mxu3 %v10479_v18  ;;  %v9150_v63 = vsel %vm840_vm1, %v9146_v48, %v9148_v53  ;;  %v9213_v48 = vor.u32 %v9212_v41, %v9209_v40  ;;  %v17138_v18 = vld [vmem:[%s22745_s1 + $0x1050] sm:$0xff]  ;;  %v17163_v53 = vld [vmem:[%s22745_s1 + $0x1118] sm:$0xff]  ;;  %v9606_v41 = vpack.c.b16 %v9602_v34, %v9602_v34 }
 0xc2e   : > { %12865 = vmatpush.bf16.msra.mxu3 %v17167_v15  ;;  %v10438_v54 = vshrl.u32 %v9150_v63, 16  ;;  %v10441_v1 = vshll.u32 %v9150_v63, 16  ;;  %v9515_v15 = vshll.u32 %v21504_v43, 16  ;;  %v9510_v43 = vor.u32 %v9508_v42, %v9507_v62  ;;  %12828 = vmatpush.bf16.msrb.mxu2 %v17138_v18  ;;  %v17147_v40 = vld [vmem:[%s22745_s1 + $0x1098] sm:$0xff]  ;;  %v17146_v18 = vld [vmem:[%s22745_s1 + $0x1090] sm:$0xff] }
 0xc2f   : > { %12852 = vmatpush.bf16.msra.mxu1 %v17158_v56  ;;  %v9607_v5 = vpack.c.b16 %v9603_v55, %v9603_v55  ;;  %v10490_v63 = vshrl.u32 %v9213_v48, 16  ;;  %v10493_v45 = vshll.u32 %v9213_v48, 16  ;;  %v9638_v42 = vunpack.c.l.b16 %v9122_v58  ;;  %v17160_v48 = vld [vmem:[%s22745_s1 + $0x1100] sm:$0xff] }
 0xc30   : > { %v10440_v52 = vrot.slane %v10438_v54, 3  ;;  %v10443_v39 = vrot.slane %v10441_v1, 4  ;;  %v9517_v30 = vor.u32 %v9515_v15, %v21620_v3  ;;  %v17149_v3 = vld [vmem:[%s22745_s1 + $0x10a8] sm:$0xff]  ;;  %v9542_v1 = vshll.u32 %v21502_v32, 16  ;;  %v17136_v32 = vld [vmem:[%s22745_s1 + $0x1040] sm:$0xff] }
 0xc31   : > { %v9612_v54 = vrot.slane %v9607_v5, 3  ;;  %v10495_v17 = vrot.slane %v10493_v45, 4  ;;  %v17153_v15 = vld [vmem:[%s22745_s1 + $0x10c8] sm:$0xff]  ;;  %v17152_v45 = vld [vmem:[%s22745_s1 + $0x10c0] sm:$0xff] }
 0xc32   : > { %9558 = vrot.lane.b32.xlu1 %v9548_v2, %s17465_s14  ;;  %12866 = vmatpush.bf16.msra.mxu3 %v17166_v24  ;;  %v10444_v10 = vor.u32 %v10443_v39, %v10440_v52  ;;  %v9605_v2 = vpack.c.b16 %v9601_v28, %v9599_v50  ;;  %v17137_v24 = vld [vmem:[%s22745_s1 + $0x1048] sm:$0xff]  ;;  %v9544_v52 = vor.u32 %v9542_v1, %v21659_v27 }
 0xc33   : > { %9556 = vrot.lane.b32.xlu2 %v21659_v27, %s17465_s14  ;;  %9554 = vrot.lane.b32.xlu0 %v9551_v57, %s17465_s14  ;;  %v10492_v57 = vrot.slane %v10490_v63, 3 }
 0xc34   : > { %v9332_v12 = vpop.permute.xlu1 %9331  ;;  %v21682_v59 = vpop.permute.xlu0 %9300  ;;  %v10445_v9 = vsel %vm22829_vm8, %v10436_v60, %v10444_v10  ;;  %12853 = vmatpush.bf16.msra.mxu1 %v17157_v8  ;;  %v9611_v39 = vrot.slane %v9605_v2, 3  ;;  %12829 = vmatpush.bf16.msrb.mxu2 %v17137_v24  ;;  %v9598_v60 = vunpack.c.l.b16 %v21685_v26  ;;  %v9600_v10 = vunpack.c.l.b16 %v21687_v36  ;;  %v21754_v8 = vld [vmem:[#allocation2 + $0x1c] sm:$0xff]  ;;  %v9087_v24 = vld [vmem:[#allocation2 + $0x10] sm:$0x8]  ;;  %vm22841_vm8 = vmmov %vm22836_vm0 }
 0xc35   : > { %v21680_v22 = vsel %vm2779_vm3, %v21526_v20, %v9332_v12  ;;  %v21689_v23 = vpop.permute.xlu2 %9232  ;;  %12733 = vmatmul.bf16.vlgmr.msra.gmra.mxu0 %v10445_v9  ;;  %v17150_v20 = vld [vmem:[%s22745_s1 + $0x10b0] sm:$0xff]  ;;  %v9124_v12 = vld [vmem:[#allocation2 + $0x28] sm:$0xff]  ;;  %v10496_v26 = vor.u32 %v10495_v17, %v10492_v57  ;;  %v9640_v50 = vunpack.c.l.b16 %v21754_v8  ;;  %v9641_v5 = vunpack.c.h.b16 %v21754_v8 }
 0xc36   : > { %12867 = vmatpush.bf16.msra.mxu3 %v17165_v51  ;;  %12837 = vmatpush.bf16.msra.mxu0 %v17151_v6  ;;  %v21738_v51 = vpack.c.b16 %v9603_v55, %v9601_v28  ;;  %v17154_v6 = vld [vmem:[%s22745_s1 + $0x10d0] sm:$0xff]  ;;  %v9613_v27 = vsel %vm1537_vm6, %v9611_v39, %v9612_v54  ;;  %v9604_v55 = vpack.c.b16 %v9600_v10, %v9598_v60  ;;  %v21766_v28 = vunpack.c.h.b16 %v9124_v12 }
 0xc37   : > { %v9311_v57 = vunpack.c.l.b16 %v9087_v24  ;;  %v9312_v17 = vunpack.c.l.b16 %v21246_v31 }
 0xc38   : > { %12854 = vmatpush.bf16.msra.mxu1 %v17156_v44  ;;  %12830 = vmatpush.bf16.msrb.mxu2 %v17136_v32  ;;  %v21805_v32 = vunpack.c.l.b16 %v21252_v35 }
 0xc3a   : > { %9522 = vrot.lane.b32.xlu1 %v9507_v62, %s22798_s13  ;;  %12868 = vmatpush.bf16.msra.mxu3 %v17164_v61  ;;  %v9674_v62 = vshrl.u32 %v21738_v51, 16  ;;  %v21758_v61 = vunpack.c.l.b16 %v9124_v12 }
 0xc3b   : > { %12838 = vmatpush.bf16.msra.mxu0 %v17150_v20  ;;  %9520 = vrot.lane.b32.xlu2 %v9517_v30, %s22798_s13  ;;  %v21760_v20 = vpack.c.b16 %v9602_v34, %v9600_v10  ;;  %v9609_v30 = vrot.slane %v9606_v41, 3  ;;  %v17145_v34 = vld [vmem:[%s22745_s1 + $0x1088] sm:$0xff] }
 0xc3c   : > { %9518 = vrot.lane.b32.xlu0 %v9510_v43, %s22798_s13  ;;  %v21717_v7 = vpop.permute.xlu1 %9298  ;;  %v9249_v46 = vpop.permute.xlu0 %9248  ;;  %12855 = vmatpush.bf16.msra.mxu1 %v17155_v11  ;;  %v9639_v43 = vunpack.c.h.b16 %v9122_v58  ;;  %v9646_v2 = vpack.c.b16 %v21758_v61, %v21758_v61  ;;  %v9647_v11 = vpack.c.b16 %v21766_v28, %v21766_v28 }
 0xc3d   : > { %v21732_v56 = vpop.permute.xlu2 %9335  ;;  %v9256_v44 = vsel %vm840_vm1, %v9249_v46, %v21564_v13  ;;  %v9667_v63 = vshrl.u32 %v21760_v20, 16  ;;  %v9644_v46 = vpack.c.b16 %v9640_v50, %v9638_v42 }
 0xc3e   : > { %12869 = vmatpush.bf16.msra.mxu3 %v17163_v53  ;;  %v21779_v53 = vrot.slane %v9674_v62, 7  ;;  %v10508_v1 = vshrl.u32 %v9256_v44, 16  ;;  %v9645_v39 = vpack.c.b16 %v9641_v5, %v9639_v43  ;;  %v21807_v10 = vrot.slane %v9646_v2, 3 }
 0xc3f   : > { %12839 = vmatpush.bf16.msra.mxu0 %v17149_v3  ;;  %v9608_v3 = vrot.slane %v9604_v55, 3  ;;  %v9648_v12 = vrot.slane %v9644_v46, 3  ;;  %v21815_v41 = vrot.slane %v9647_v11, 3  ;;  %v17199_v11 = vld [vmem:[%s22745_s1 + $0x1238] sm:$0xff] }
 0xc40   : > { %12856 = vmatpush.bf16.msra.mxu1 %v17154_v6  ;;  %v21811_v6 = vrot.slane %v9667_v63, 7  ;;  %v10510_v58 = vrot.slane %v10508_v1, 3 }
 0xc42   : > { %9552 = vrot.lane.b32.xlu1 %v9544_v52, %s17465_s14  ;;  %12870 = vmatpush.bf16.msra.mxu3 %v17162_v37  ;;  %v10511_v37 = vshll.u32 %v9256_v44, 16 }
 0xc43   : > { %12840 = vmatpush.bf16.msra.mxu0 %v17148_v14  ;;  %9616 = vrot.lane.b32.xlu2 %v9613_v27, %s22798_s13  ;;  %v9610_v14 = vsel %vm1537_vm6, %v9608_v3, %v9609_v30  ;;  %v9650_v3 = vsel %vm1537_vm6, %v9648_v12, %v21807_v10 }
 0xc44   : > { %9620 = vrot.lane.b32.xlu0 %v9612_v54, %s22798_s13  ;;  %v9253_v9 = vpop.permute.xlu1 %9252  ;;  %v9276_v36 = vpop.permute.xlu0 %9275  ;;  %12857 = vmatpush.bf16.msra.mxu1 %v17153_v15  ;;  %v9078_v54 = vld [vmem:[#allocation2 + $0x34] sm:$0x1]  ;;  %v17144_v15 = vld [vmem:[%s22745_s1 + $0x1080] sm:$0xff] }
 0xc45   : > { %12789 = vmatmul.bf16.vlgmr.msrb.gmra.mxu0 %v10496_v26  ;;  %v21787_v13 = vpop.permute.xlu2 %9302  ;;  %v9259_v27 = vunpack.c.l.b16 %v9078_v54  ;;  %v10513_v26 = vrot.slane %v10511_v37, 4  ;;  %v9283_v42 = vsel %vm2779_vm3, %v9276_v36, %v21605_v4  ;;  %v17182_v37 = vld [vmem:[%s22745_s1 + $0x11b0] sm:$0xff] }
 0xc46   : > { %12871 = vmatpush.bf16.msra.mxu3 %v17161_v21  ;;  %v10545_v24 = vshll.u32 %v9283_v42, 16 }
 0xc47   : > { %12841 = vmatpush.bf16.msra.mxu0 %v17147_v40  ;;  %v9670_v40 = vshll.u32 %v21760_v20, 16  ;;  %v10514_v2 = vor.u32 %v10513_v26, %v10510_v58  ;;  %v21856_v26 = vld [vmem:[#allocation2 + $0x34] sm:$0x11] }
 0xc48   : > { %12858 = vmatpush.bf16.msra.mxu1 %v17152_v45  ;;  %v10542_v45 = vshrl.u32 %v9283_v42, 16 }
 0xc49   : > { %v9672_v4 = vor.u32 %v9670_v40, %v21811_v6 }
 0xc4a   : > { %9618 = vrot.lane.b32.xlu1 %v9609_v30, %s22798_s13  ;;  %12872 = vmatpush.bf16.msra.mxu3 %v17160_v48  ;;  %v9651_v48 = vrot.slane %v9645_v39, 3  ;;  %v21829_v30 = vpack.c.b16 %v21805_v32, %v21805_v32  ;;  %v21850_v39 = vrot.slane %v21235_v33, 5  ;;  %v21860_v33 = vld [vmem:[#allocation2 + $0x30] sm:$0x11]  ;;  %v10544_v42 = vrot.slane %v10542_v45, 3 }
 0xc4b   : > { %12842 = vmatpush.bf16.msra.mxu0 %v17146_v18  ;;  %9686 = vrot.lane.b32.xlu2 %v21779_v53, %s22798_s13  ;;  %v9314_v18 = vpack.c.b16 %v9312_v17, %v9311_v57 }
 0xc4c   : > { %9614 = vrot.lane.b32.xlu0 %v9610_v14, %s22798_s13  ;;  %v9280_v52 = vpop.permute.xlu1 %9279  ;;  %v9255_v60 = vpop.permute.xlu0 %9254  ;;  %v9653_v36 = vsel %vm1537_vm6, %v9651_v48, %v21815_v41  ;;  %v10584_v58 = vshrl.u32 %v21829_v30, 16  ;;  %v10587_v45 = vshll.u32 %v21829_v30, 16  ;;  %v17197_v30 = vld [vmem:[%s22745_s1 + $0x1228] sm:$0xff] }
 0xc4d   : > { %v9257_v21 = vsel %vm840_vm1, %v9253_v9, %v9255_v60  ;;  %v17183_v9 = vld [vmem:[%s22745_s1 + $0x11b8] sm:$0xff]  ;;  %v21843_v54 = vpop.permute.xlu2 %9425  ;;  %v10576_v14 = vshrl.u32 %v9314_v18, 16  ;;  %v10579_v12 = vshll.u32 %v9314_v18, 16  ;;  %v17198_v18 = vld [vmem:[%s22745_s1 + $0x1230] sm:$0xff] }
 0xc4e   : > { %v10516_v35 = vshrl.u32 %v9257_v21, 16  ;;  %v10519_v55 = vshll.u32 %v9257_v21, 16 }
 0xc4f   : > { %12843 = vmatpush.bf16.msra.mxu0 %v17145_v34  ;;  %v9260_v34 = vpack.c.b16 %v9259_v27, %v9259_v27  ;;  %v9677_v27 = vshll.u32 %v21738_v51, 16  ;;  %v17231_v51 = vld [vmem:[%s22745_s1 + $0x1338] sm:$0xff] }
 0xc50   : > { %v10518_v44 = vrot.slane %v10516_v35, 3  ;;  %v10521_v43 = vrot.slane %v10519_v55, 4 }
 0xc52   : > { %9654 = vrot.lane.b32.xlu1 %v9650_v3, %s17465_s14  ;;  %v10522_v46 = vor.u32 %v10521_v43, %v10518_v44  ;;  %v9679_v3 = vor.u32 %v9677_v27, %v21779_v53  ;;  %v9706_v53 = vunpack.c.l.b16 %v21860_v33 }
 0xc53   : > { %12844 = vmatpush.bf16.msra.mxu0 %v17144_v15  ;;  %9680 = vrot.lane.b32.xlu2 %v9672_v4, %s22798_s13  ;;  %v9262_v4 = vrot.slane %v9260_v34, 5 }
 0xc54   : > { %9656 = vrot.lane.b32.xlu0 %v9653_v36, %s17465_s14  ;;  %v9203_v1 = vpop.permute.xlu1 %9202  ;;  %v9282_v57 = vpop.permute.xlu0 %9281  ;;  %v10523_v21 = vsel %vm22830_vm14, %v10514_v2, %v10522_v46  ;;  %vm22842_vm14 = vmmov %vm22837_vm7 }
 0xc55   : > { %v9204_v60 = vsel %vm840_vm1, %v21643_v29, %v9203_v1  ;;  %v9284_v35 = vsel %vm2779_vm3, %v9280_v52, %v9282_v57  ;;  %12817 = vmatmul.bf16.vlgmr.msrb.gmra.mxu3 %v10523_v21  ;;  %v17181_v52 = vld [vmem:[%s22745_s1 + $0x11a8] sm:$0xff]  ;;  %v21880_v1 = vpack.c.b16 %v21758_v61, %v9640_v50  ;;  %v21888_v57 = vrot.slane %v10576_v14, 3  ;;  %v17180_v50 = vld [vmem:[%s22745_s1 + $0x11a0] sm:$0xff]  ;;  %v21910_v8 = vpop.permute.xlu2 %9409 }
 0xc56   : > { %v10481_v55 = vshrl.u32 %v9204_v60, 16  ;;  %v10484_v15 = vshll.u32 %v9204_v60, 16  ;;  %v10550_v48 = vshrl.u32 %v9284_v35, 16  ;;  %v10553_v29 = vshll.u32 %v9284_v35, 16  ;;  %12921 = vmatpush.bf16.msrb.mxu3 %v17199_v11  ;;  %v17175_v11 = vld [vmem:[%s22745_s1 + $0x1178] sm:$0xff] }
 0xc57   : > { %12893 = vmatpush.bf16.msrb.mxu0 %v17183_v9  ;;  %v10547_v9 = vrot.slane %v10545_v24, 4  ;;  %v9740_v24 = vunpack.c.l.b16 %v21856_v26  ;;  %v21890_v60 = vrot.slane %v10579_v12, 4  ;;  %v10586_v21 = vrot.slane %v10584_v58, 3  ;;  %v17174_v58 = vld [vmem:[%s22745_s1 + $0x1170] sm:$0xff] }
 0xc58   : > { %v10483_v44 = vrot.slane %v10481_v55, 3  ;;  %v10486_v43 = vrot.slane %v10484_v15, 4  ;;  %v10552_v36 = vrot.slane %v10550_v48, 3  ;;  %v10555_v2 = vrot.slane %v10553_v29, 4 }
 0xc59   : > { %v9741_v14 = vunpack.c.h.b16 %v21856_v26  ;;  %v9263_v12 = vsel %vm22831_vm11, %v21850_v39, %v9262_v4  ;;  %v10589_v15 = vrot.slane %v10587_v45, 4  ;;  %v9747_v26 = vshll.u32 %v21880_v1, 16  ;;  %vm22843_vm11 = vmmov %vm22836_vm0 }
 0xc5a   : > { %v10487_v46 = vor.u32 %v10486_v43, %v10483_v44  ;;  %9682 = vrot.lane.b32.xlu1 %v9679_v3, %s22798_s13  ;;  %v10556_v34 = vor.u32 %v10555_v2, %v10552_v36  ;;  %12922 = vmatpush.bf16.msrb.mxu3 %v17198_v18  ;;  %v10525_v48 = vshrl.u32 %v21850_v39, 16  ;;  %v10528_v29 = vshll.u32 %v21850_v39, 16  ;;  %v17179_v3 = vld [vmem:[%s22745_s1 + $0x1198] sm:$0xff] }
 0xc5b   : > { %12894 = vmatpush.bf16.msrb.mxu0 %v17182_v37  ;;  %v10548_v37 = vor.u32 %v10547_v9, %v10544_v42  ;;  %9658 = vrot.lane.b32.xlu2 %v21807_v10, %s17465_s14  ;;  %v21900_v10 = vpack.c.b16 %v21766_v28, %v9641_v5  ;;  %v9742_v42 = vpack.c.b16 %v9740_v24, %v9740_v24  ;;  %v10533_v18 = vshrl.u32 %v9263_v12, 16 }
 0xc5c   : > { %9684 = vrot.lane.b32.xlu0 %v21811_v6, %s22798_s13  ;;  %v9235_v61 = vpop.permute.xlu1 %9234  ;;  %v21905_v35 = vpop.permute.xlu0 %9333  ;;  %12775 = vmatmul.bf16.vlgmr.msra.gmra.mxu2 %v10487_v46  ;;  %v9708_v9 = vpack.c.b16 %v9706_v53, %v9706_v53  ;;  %v10536_v44 = vshll.u32 %v9263_v12, 16  ;;  %v9743_v4 = vpack.c.b16 %v9741_v14, %v9741_v14  ;;  %v10582_v2 = vor.u32 %v21890_v60, %v21888_v57  ;;  %v17191_v53 = vld [vmem:[%s22745_s1 + $0x11f8] sm:$0xff] }
 0xc5d   : > { %v9236_v6 = vsel %vm2779_vm3, %v21689_v23, %v9235_v61  ;;  %v10557_v55 = vsel %vm22832_vm2, %v10548_v37, %v10556_v34  ;;  %12879 = vmatpush.bf16.msra.mxu2 %v17175_v11  ;;  %v17196_v23 = vld [vmem:[%s22745_s1 + $0x1220] sm:$0xff]  ;;  %v9759_v36 = vshll.u32 %v21900_v10, 16  ;;  %v10590_v45 = vor.u32 %v10589_v15, %v10586_v21  ;;  %v17173_v11 = vld [vmem:[%s22745_s1 + $0x1168] sm:$0xff]  ;;  %v17195_v61 = vld [vmem:[%s22745_s1 + $0x1218] sm:$0xff] }
 0xc5e   : > { %v10499_v28 = vshrl.u32 %v9236_v6, 16  ;;  %v10502_v5 = vshll.u32 %v9236_v6, 16  ;;  %12845 = vmatmul.bf16.vlgmr.msra.gmra.mxu0 %v10557_v55  ;;  %12923 = vmatpush.bf16.msrb.mxu3 %v17197_v30  ;;  %v9752_v24 = vshll.u32 %v9742_v42, 16  ;;  %v9710_v39 = vrot.slane %v9670_v40, 1  ;;  %vm22844_vm2 = vmmov %vm22837_vm7 }
 0xc5f   : > { %12895 = vmatpush.bf16.msrb.mxu0 %v17181_v52  ;;  %v9749_v37 = vrot.slane %v9747_v26, 1  ;;  %v9713_v34 = vshll.u32 %v9708_v9, 16  ;;  %v9707_v30 = vunpack.c.h.b16 %v21860_v33  ;;  %v10527_v40 = vrot.slane %v10525_v48, 3  ;;  %v17178_v33 = vld [vmem:[%s22745_s1 + $0x1190] sm:$0xff]  ;;  %v17177_v48 = vld [vmem:[%s22745_s1 + $0x1188] sm:$0xff] }
 0xc60   : > { %v10501_v43 = vrot.slane %v10499_v28, 3  ;;  %v10504_v52 = vrot.slane %v10502_v5, 4  ;;  %v10530_v57 = vrot.slane %v10528_v29, 4  ;;  %v10535_v60 = vrot.slane %v10533_v18, 3 }
 0xc61   : > { %12880 = vmatpush.bf16.msra.mxu2 %v17174_v58  ;;  %v9761_v21 = vrot.slane %v9759_v36, 1  ;;  %v9764_v14 = vshll.u32 %v9743_v4, 16  ;;  %v10538_v12 = vrot.slane %v10536_v44, 4  ;;  %v10591_v55 = vsel %vm22833_vm10, %v10582_v2, %v10590_v45  ;;  %v17190_v58 = vld [vmem:[%s22745_s1 + $0x11f0] sm:$0xff]  ;;  %v17189_v4 = vld [vmem:[%s22745_s1 + $0x11e8] sm:$0xff]  ;;  %vm22845_vm10 = vmmov %vm22836_vm0 }
 0xc62   : > { %v10505_v46 = vor.u32 %v10504_v52, %v10501_v43  ;;  %9660 = vrot.lane.b32.xlu1 %v21815_v41, %s17465_s14  ;;  %12924 = vmatpush.bf16.msrb.mxu3 %v17196_v23  ;;  %v9754_v15 = vrot.slane %v9752_v24, 1  ;;  %v9711_v42 = vor.u32 %v9710_v39, %v9667_v63  ;;  %v9757_v28 = vshrl.u32 %v21900_v10, 16 }
 0xc63   : > { %12896 = vmatpush.bf16.msrb.mxu0 %v17180_v50  ;;  %9702 = vrot.lane.b32.xlu2 %v21900_v10, %s17465_s14  ;;  %v9745_v50 = vshrl.u32 %v21880_v1, 16  ;;  %v9715_v9 = vrot.slane %v9713_v34, 1  ;;  %v9709_v23 = vpack.c.b16 %v9707_v30, %v9707_v30  ;;  %v10531_v20 = vor.u32 %v10530_v57, %v10527_v40  ;;  %v21966_v10 = vpop.permute.xlu2 %9391  ;;  %v17170_v40 = vld [vmem:[%s22745_s1 + $0x1150] sm:$0xff]  ;;  %v17188_v57 = vld [vmem:[%s22745_s1 + $0x11e0] sm:$0xff] }
 0xc64   : > { %9700 = vrot.lane.b32.xlu0 %v21880_v1, %s17465_s14  ;;  %v9305_v41 = vpop.permute.xlu1 %9304  ;;  %v21949_v6 = vpop.permute.xlu0 %9423  ;;  %12803 = vmatmul.bf16.vlgmr.msrb.gmra.mxu1 %v10505_v46  ;;  %v17172_v1 = vld [vmem:[%s22745_s1 + $0x1160] sm:$0xff]  ;;  %v9306_v63 = vsel %vm840_vm1, %v21717_v7, %v21682_v59  ;;  %v9762_v29 = vor.u32 %v9761_v21, %v9757_v28  ;;  %v9766_v18 = vrot.slane %v9764_v14, 1  ;;  %v10539_v44 = vor.u32 %v10538_v12, %v10535_v60 }
 0xc65   : > { %12881 = vmatpush.bf16.msra.mxu2 %v17173_v11  ;;  %12907 = vmatpush.bf16.msrb.mxu1 %v17191_v53  ;;  %v9307_v5 = vsel %vm840_vm1, %v21787_v13, %v9305_v41  ;;  %v9750_v26 = vor.u32 %v9749_v37, %v9745_v50  ;;  %v17194_v13 = vld [vmem:[%s22745_s1 + $0x1210] sm:$0xff]  ;;  %v9716_v7 = vsel %vm1455_vm9, %v9711_v42, %v9715_v9  ;;  %v9717_v36 = vrot.slane %v9677_v27, 1  ;;  %v17193_v27 = vld [vmem:[%s22745_s1 + $0x1208] sm:$0xff]  ;;  %v17176_v37 = vld [vmem:[%s22745_s1 + $0x1180] sm:$0xff] }
 0xc66   : > { %12873 = vmatmul.bf16.vlgmr.msra.gmra.mxu3 %v10591_v55  ;;  %v10567_v43 = vshrl.u32 %v9307_v5, 16  ;;  %v10570_v52 = vshll.u32 %v9307_v5, 16  ;;  %v9720_v2 = vshll.u32 %v9709_v23, 16  ;;  %v10559_v45 = vshrl.u32 %v9306_v63, 16  ;;  %v17169_v42 = vld [vmem:[%s22745_s1 + $0x1148] sm:$0xff] }
 0xc67   : > { %12897 = vmatpush.bf16.msrb.mxu0 %v17179_v3  ;;  %12925 = vmatpush.bf16.msrb.mxu3 %v17195_v61  ;;  %v9755_v59 = vsel %vm1455_vm9, %v9750_v26, %v9754_v15  ;;  %v17171_v3 = vld [vmem:[%s22745_s1 + $0x1158] sm:$0xff]  ;;  %v10562_v24 = vshll.u32 %v9306_v63, 16  ;;  %v21989_v39 = vpack.c.b16 %v21805_v32, %v9312_v17  ;;  %v9767_v46 = vsel %vm1455_vm9, %v9762_v29, %v9766_v18  ;;  %v17213_v29 = vld [vmem:[%s22745_s1 + $0x12a8] sm:$0xff] }
 0xc68   : > { %v10540_v11 = vsel %vm22834_vm15, %v10531_v20, %v10539_v44  ;;  %v10569_v31 = vrot.slane %v10567_v43, 3  ;;  %v10572_v34 = vrot.slane %v10570_v52, 4  ;;  %v17215_v32 = vld [vmem:[%s22745_s1 + $0x12b8] sm:$0xff]  ;;  %v9338_v30 = vsel %vm2779_vm3, %v21905_v35, %v21732_v56  ;;  %v17192_v56 = vld [vmem:[%s22745_s1 + $0x1200] sm:$0xff]  ;;  %v9094_v43 = vld [vmem:[#allocation2 + $0x34] sm:$0x1] }
 0xc69   : > { %12882 = vmatpush.bf16.msra.mxu2 %v17172_v1  ;;  %12908 = vmatpush.bf16.msrb.mxu1 %v17190_v58  ;;  %v9718_v60 = vor.u32 %v9717_v36, %v9674_v62  ;;  %v9722_v41 = vrot.slane %v9720_v2, 1  ;;  %v10561_v61 = vrot.slane %v10559_v45, 3  ;;  %v9364_v35 = vshrl.u32 %v21989_v39, 16  ;;  %v17214_v62 = vld [vmem:[%s22745_s1 + $0x12b0] sm:$0xff]  ;;  %v17187_v58 = vld [vmem:[%s22745_s1 + $0x11d8] sm:$0xff]  ;;  %v17168_v44 = vld [vmem:[%s22745_s1 + $0x1140] sm:$0xff] }
 0xc6a   : > { %9768 = vrot.lane.b32.xlu1 %v9755_v59, %s17465_s14  ;;  %v9367_v50 = vshll.u32 %v21989_v39, 16  ;;  %v10601_v21 = vshrl.u32 %v9338_v30, 16  ;;  %v10604_v14 = vshll.u32 %v9338_v30, 16  ;;  %v10573_v12 = vor.u32 %v10572_v34, %v10569_v31  ;;  %v17185_v34 = vld [vmem:[%s22745_s1 + $0x11c8] sm:$0xff]  ;;  %vm22846_vm15 = vmmov %vm22844_vm2 }
 0xc6b   : > { %12898 = vmatpush.bf16.msrb.mxu0 %v17178_v33  ;;  %9724 = vrot.lane.b32.xlu2 %v9716_v7, %s22798_s13  ;;  %v10564_v33 = vrot.slane %v10562_v24, 4  ;;  %v22029_v55 = vpop.permute.xlu2 %9359  ;;  %v9723_v15 = vsel %vm1455_vm9, %v9718_v60, %v9722_v41  ;;  %v10593_v28 = vshrl.u32 %v21680_v22, 16  ;;  %v10596_v5 = vshll.u32 %v21680_v22, 16  ;;  %v17230_v22 = vld [vmem:[%s22745_s1 + $0x1330] sm:$0xff] }
 0xc6c   : > { %12926 = vmatpush.bf16.msrb.mxu3 %v17194_v13  ;;  %v21993_v53 = vpop.permute.xlu1 %9405  ;;  %9770 = vrot.lane.b32.xlu0 %v9767_v46, %s17465_s14  ;;  %v22002_v17 = vpop.permute.xlu0 %9407  ;;  %v9366_v9 = vrot.slane %v9364_v35, 4  ;;  %v9369_v23 = vrot.slane %v9367_v50, 5  ;;  %v10603_v20 = vrot.slane %v10601_v21, 3  ;;  %v10606_v63 = vrot.slane %v10604_v14, 4  ;;  %v17229_v46 = vld [vmem:[%s22745_s1 + $0x1328] sm:$0xff]  ;;  %v17211_v35 = vld [vmem:[%s22745_s1 + $0x1298] sm:$0xff] }
 0xc6d   : > { %12831 = vmatmul.bf16.vlgmr.msrb.gmra.mxu2 %v10540_v11  ;;  %12909 = vmatpush.bf16.msrb.mxu1 %v17189_v4  ;;  %v10565_v1 = vor.u32 %v10564_v33, %v10561_v61  ;;  %v10595_v52 = vrot.slane %v10593_v28, 3  ;;  %v10598_v59 = vrot.slane %v10596_v5, 4  ;;  %v17186_v4 = vld [vmem:[%s22745_s1 + $0x11d0] sm:$0xff]  ;;  %v17212_v11 = vld [vmem:[%s22745_s1 + $0x12a0] sm:$0xff]  ;;  %v9809_v50 = vrot.slane %v21609_v47, 5 }
 0xc6e   : > { %12883 = vmatpush.bf16.msra.mxu2 %v17171_v3  ;;  %v9370_v36 = vor.u32 %v9369_v23, %v9366_v9  ;;  %v10607_v2 = vor.u32 %v10606_v63, %v10603_v20  ;;  %v17227_v9 = vld [vmem:[%s22745_s1 + $0x1318] sm:$0xff]  ;;  %v17210_v23 = vld [vmem:[%s22745_s1 + $0x1290] sm:$0xff]  ;;  %v9773_v20 = vrot.slane %v21989_v39, 5 }
 0xc6f   : > { %12899 = vmatpush.bf16.msrb.mxu0 %v17177_v48  ;;  %v10574_v48 = vsel %vm22835_vm4, %v10565_v1, %v10573_v12  ;;  %v17226_v39 = vld [vmem:[%s22745_s1 + $0x1310] sm:$0xff]  ;;  %vm22847_vm4 = vmmov %vm22836_vm0 }
 0xc70   : > { %12927 = vmatpush.bf16.msrb.mxu3 %v17193_v27  ;;  %v9416_v27 = vunpack.c.l.b16 %v9094_v43  ;;  %v10622_v60 = vshll.u32 %v9370_v36, 16  ;;  %v17209_v43 = vld [vmem:[%s22745_s1 + $0x1288] sm:$0xff] }
 0xc71   : > { %12910 = vmatpush.bf16.msrb.mxu1 %v17188_v57  ;;  %v10619_v57 = vshrl.u32 %v9370_v36, 16  ;;  %v17203_v36 = vld [vmem:[%s22745_s1 + $0x1258] sm:$0xff] }
 0xc72   : > { %12884 = vmatpush.bf16.msra.mxu2 %v17170_v40  ;;  %9726 = vrot.lane.b32.xlu1 %v9723_v15, %s22798_s13  ;;  %v9417_v12 = vpack.c.b16 %v9416_v27, %v9416_v27  ;;  %v17184_v15 = vld [vmem:[%s22745_s1 + $0x11c0] sm:$0xff]  ;;  %v10624_v5 = vrot.slane %v10622_v60, 4 }
 0xc73   : > { %12900 = vmatpush.bf16.msrb.mxu0 %v17176_v37  ;;  %v10599_v37 = vor.u32 %v10598_v59, %v10595_v52  ;;  %v9586_v30 = vpop.permute.xlu2 %9585  ;;  %v10621_v28 = vrot.slane %v10619_v57, 3 }
 0xc74   : > { %12928 = vmatpush.bf16.msrb.mxu3 %v17192_v56  ;;  %v22041_v26 = vpop.permute.xlu1 %9411  ;;  %v9390_v13 = vpop.permute.xlu0 %9389  ;;  %12859 = vmatmul.bf16.vlgmr.msra.gmra.mxu1 %v10574_v48  ;;  %v17228_v56 = vld [vmem:[%s22745_s1 + $0x1320] sm:$0xff]  ;;  %v9789_v63 = vrot.slane %v9417_v12, 5  ;;  %v17246_v12 = vld [vmem:[%s22745_s1 + $0x13b0] sm:$0xff] }
 0xc75   : > { %v9393_v18 = vsel %vm2779_vm3, %v9390_v13, %v21966_v10  ;;  %12911 = vmatpush.bf16.msrb.mxu1 %v17187_v58  ;;  %v17207_v10 = vld [vmem:[%s22745_s1 + $0x1278] sm:$0xff]  ;;  %v10608_v61 = vsel %vm22836_vm0, %v10599_v37, %v10607_v2  ;;  %v17204_v48 = vld [vmem:[%s22745_s1 + $0x1260] sm:$0xff]  ;;  %v17221_v2 = vld [vmem:[%s22745_s1 + $0x12e8] sm:$0xff] }
 0xc76   : > { %12885 = vmatpush.bf16.msra.mxu2 %v17169_v42  ;;  %v10628_v7 = vshrl.u32 %v9393_v18, 16  ;;  %v10631_v3 = vshll.u32 %v9393_v18, 16  ;;  %v17205_v42 = vld [vmem:[%s22745_s1 + $0x1268] sm:$0xff]  ;;  %v17222_v18 = vld [vmem:[%s22745_s1 + $0x12f0] sm:$0xff]  ;;  %v9790_v59 = vsel %vm22838_vm12, %v9773_v20, %v9789_v63  ;;  %vm22849_vm12 = vmmov %vm22844_vm2 }
 0xc77   : > { %12949 = vmatpush.bf16.msra.mxu0 %v17215_v32  ;;  %v17206_v32 = vld [vmem:[%s22745_s1 + $0x1270] sm:$0xff]  ;;  %v10662_v27 = vshrl.u32 %v9790_v59, 16  ;;  %v10665_v37 = vshll.u32 %v9790_v59, 16 }
 0xc78   : > { %12977 = vmatpush.bf16.msra.mxu3 %v17231_v51  ;;  %v10630_v45 = vrot.slane %v10628_v7, 3  ;;  %v10633_v24 = vrot.slane %v10631_v3, 4  ;;  %v17262_v63 = vld [vmem:[%s22745_s1 + $0x1430] sm:$0xff] }
 0xc79   : > { %12912 = vmatpush.bf16.msrb.mxu1 %v17186_v4 }
 0xc7a   : > { %12886 = vmatpush.bf16.msra.mxu2 %v17168_v44  ;;  %v10634_v31 = vor.u32 %v10633_v24, %v10630_v45  ;;  %v10654_v45 = vshrl.u32 %v9773_v20, 16  ;;  %v10657_v24 = vshll.u32 %v9773_v20, 16 }
 0xc7b   : > { %12950 = vmatpush.bf16.msra.mxu0 %v17214_v62  ;;  %v22117_v52 = vpop.permute.xlu2 %9456 }
 0xc7c   : > { %12978 = vmatpush.bf16.msra.mxu3 %v17230_v22  ;;  %v9588_v40 = vpop.permute.xlu1 %9587  ;;  %v9358_v41 = vpop.permute.xlu0 %9357  ;;  %v10625_v22 = vor.u32 %v10624_v5, %v10621_v28  ;;  %v17219_v28 = vld [vmem:[%s22745_s1 + $0x12d8] sm:$0xff] }
 0xc7d   : > { %v9593_v33 = vsel %vm2779_vm3, %v9586_v30, %v9588_v40  ;;  %v9361_v21 = vsel %vm840_vm1, %v9358_v41, %v22029_v55  ;;  %12887 = vmatmul.bf16.vlgmr.msra.gmra.mxu2 %v10608_v61  ;;  %12929 = vmatmul.bf16.vlgmr.msrb.gmra.mxu3 %v10634_v31  ;;  %v17223_v55 = vld [vmem:[%s22745_s1 + $0x12f8] sm:$0xff]  ;;  %v9431_v31 = vsel %vm2779_vm3, %v21949_v6, %v21843_v54  ;;  %v17202_v41 = vld [vmem:[%s22745_s1 + $0x1250] sm:$0xff]  ;;  %v10659_v61 = vrot.slane %v10657_v24, 4 }
 0xc7e   : > { %12935 = vmatpush.bf16.msrb.mxu2 %v17207_v10  ;;  %v9783_v14 = vrot.slane %v9593_v33, 5  ;;  %v10610_v51 = vshrl.u32 %v9361_v21, 16  ;;  %v10613_v62 = vshll.u32 %v9361_v21, 16  ;;  %12913 = vmatpush.bf16.msrb.mxu1 %v17185_v34  ;;  %v9414_v34 = vsel %vm840_vm1, %v21910_v8, %v22041_v26  ;;  %v17220_v8 = vld [vmem:[%s22745_s1 + $0x12e0] sm:$0xff] }
 0xc7f   : > { %12951 = vmatpush.bf16.msra.mxu0 %v17213_v29  ;;  %v9413_v54 = vsel %vm840_vm1, %v21993_v53, %v22002_v17  ;;  %v10656_v26 = vrot.slane %v10654_v45, 3  ;;  %v10645_v33 = vshrl.u32 %v9414_v34, 16  ;;  %v10664_v21 = vrot.slane %v10662_v27, 3  ;;  %v17261_v27 = vld [vmem:[%s22745_s1 + $0x1428] sm:$0xff] }
 0xc80   : > { %12979 = vmatpush.bf16.msra.mxu3 %v17229_v46  ;;  %v9810_v47 = vsel %vm22837_vm7, %v9783_v14, %v9809_v50  ;;  %v10612_v1 = vrot.slane %v10610_v51, 3  ;;  %v10615_v58 = vrot.slane %v10613_v62, 4  ;;  %v10824_v7 = vshrl.u32 %v9783_v14, 16  ;;  %v17225_v46 = vld [vmem:[%s22745_s1 + $0x1308] sm:$0xff]  ;;  %v17224_v50 = vld [vmem:[%s22745_s1 + $0x1300] sm:$0xff]  ;;  %vm22848_vm7 = vmmov %vm22836_vm0 }
 0xc81   : > { %v10827_v3 = vshll.u32 %v9783_v14, 16  ;;  %v10832_v4 = vshrl.u32 %v9810_v47, 16  ;;  %v10835_v10 = vshll.u32 %v9810_v47, 16  ;;  %v10667_v53 = vrot.slane %v10665_v37, 4  ;;  %v17263_v14 = vld [vmem:[%s22745_s1 + $0x1438] sm:$0xff]  ;;  %v17201_v47 = vld [vmem:[%s22745_s1 + $0x1248] sm:$0xff] }
 0xc82   : > { %12936 = vmatpush.bf16.msrb.mxu2 %v17206_v32  ;;  %v10616_v13 = vor.u32 %v10615_v58, %v10612_v1  ;;  %12914 = vmatpush.bf16.msrb.mxu1 %v17184_v15  ;;  %v17247_v32 = vld [vmem:[%s22745_s1 + $0x13b8] sm:$0xff]  ;;  %v10826_v30 = vrot.slane %v10824_v7, 3  ;;  %v9774_v17 = vrot.slane %v9431_v31, 5  ;;  %v10637_v51 = vshrl.u32 %v9413_v54, 16 }
 0xc83   : > { %12952 = vmatpush.bf16.msra.mxu0 %v17212_v11  ;;  %v17208_v11 = vld [vmem:[%s22745_s1 + $0x1280] sm:$0xff]  ;;  %v10829_v40 = vrot.slane %v10827_v3, 4  ;;  %v10834_v57 = vrot.slane %v10832_v4, 3  ;;  %v10837_v60 = vrot.slane %v10835_v10, 4  ;;  %v10640_v62 = vshll.u32 %v9413_v54, 16  ;;  %v17218_v4 = vld [vmem:[%s22745_s1 + $0x12d0] sm:$0xff] }
 0xc84   : > { %12980 = vmatpush.bf16.msra.mxu3 %v17228_v56  ;;  %v22104_v29 = vpop.permute.xlu1 %9567  ;;  %v22109_v44 = vpop.permute.xlu0 %9569  ;;  %12901 = vmatmul.bf16.vlgmr.msrb.gmra.mxu0 %v10616_v13  ;;  %v10648_v56 = vshll.u32 %v9414_v34, 16  ;;  %v10660_v5 = vor.u32 %v10659_v61, %v10656_v26  ;;  %v9530_v1 = vshrl.u32 %v21309_v38, 16  ;;  %v9791_v58 = vrot.slane %v21576_v49, 5  ;;  %v17200_v49 = vld [vmem:[%s22745_s1 + $0x1240] sm:$0xff]  ;;  %v17239_v10 = vld [vmem:[%s22745_s1 + $0x1378] sm:$0xff] }
 0xc85   : > { %12915 = vmatmul.bf16.vlgmr.msrb.gmra.mxu1 %v10625_v22  ;;  %v10830_v15 = vor.u32 %v10829_v40, %v10826_v30  ;;  %v10668_v20 = vor.u32 %v10667_v53, %v10664_v21  ;;  %v10642_v22 = vrot.slane %v10640_v62, 4  ;;  %v10674_v59 = vshll.u32 %v9774_v17, 16  ;;  %v17244_v30 = vld [vmem:[%s22745_s1 + $0x13a0] sm:$0xff]  ;;  %v17243_v62 = vld [vmem:[%s22745_s1 + $0x1398] sm:$0xff] }
 0xc86   : > { %12937 = vmatpush.bf16.msrb.mxu2 %v17205_v42  ;;  %12963 = vmatpush.bf16.msra.mxu1 %v17223_v55  ;;  %v10838_v42 = vor.u32 %v10837_v60, %v10834_v57  ;;  %v22164_v55 = vpop.permute.xlu2 %9498  ;;  %v9792_v13 = vsel %vm22839_vm13, %v9774_v17, %v9791_v58  ;;  %v9533_v37 = vshll.u32 %v21309_v38, 16  ;;  %v17217_v60 = vld [vmem:[%s22745_s1 + $0x12c8] sm:$0xff]  ;;  %vm22850_vm13 = vmmov %vm22844_vm2 }
 0xc87   : > { %12953 = vmatpush.bf16.msra.mxu0 %v17211_v35  ;;  %v10669_v45 = vsel %vm22841_vm8, %v10660_v5, %v10668_v20  ;;  %v10676_v57 = vrot.slane %v10674_v59, 4  ;;  %vm22852_vm8 = vmmov %vm22844_vm2 }
 0xc88   : > { %12981 = vmatpush.bf16.msra.mxu3 %v17227_v9  ;;  %v10647_v9 = vrot.slane %v10645_v33, 3 }
 0xc8a   : > { %12938 = vmatpush.bf16.msrb.mxu2 %v17204_v48  ;;  %12964 = vmatpush.bf16.msra.mxu1 %v17222_v18  ;;  %v10639_v48 = vrot.slane %v10637_v51, 3  ;;  %v17245_v18 = vld [vmem:[%s22745_s1 + $0x13a8] sm:$0xff] }
 0xc8b   : > { %12954 = vmatpush.bf16.msra.mxu0 %v17210_v23  ;;  %v10650_v23 = vrot.slane %v10648_v56, 4 }
 0xc8c   : > { %12982 = vmatpush.bf16.msra.mxu3 %v17226_v39  ;;  %v9459_v6 = vpop.permute.xlu1 %9458  ;;  %v22150_v35 = vpop.permute.xlu0 %9496  ;;  %v22182_v39 = vsel %vm22840_vm5, %v10830_v15, %v10838_v42  ;;  %v10643_v31 = vor.u32 %v10642_v22, %v10639_v48  ;;  %vm22851_vm5 = vmmov %vm22836_vm0 }
 0xc8d   : > { %v9461_v7 = vsel %vm840_vm1, %v22117_v52, %v9459_v6 }
 0xc8e   : > { %12939 = vmatpush.bf16.msrb.mxu2 %v17203_v36  ;;  %12965 = vmatpush.bf16.msra.mxu1 %v17221_v2  ;;  %v22192_v36 = vrot.slane %v9530_v1, 7  ;;  %v10651_v2 = vor.u32 %v10650_v23, %v10647_v9  ;;  %v9793_v34 = vrot.slane %v9461_v7, 5  ;;  %v17255_v23 = vld [vmem:[%s22745_s1 + $0x13f8] sm:$0xff]  ;;  %v17236_v7 = vld [vmem:[%s22745_s1 + $0x1360] sm:$0xff] }
 0xc8f   : > { %12955 = vmatpush.bf16.msra.mxu0 %v17209_v43  ;;  %v10671_v43 = vshrl.u32 %v9774_v17, 16  ;;  %v17260_v17 = vld [vmem:[%s22745_s1 + $0x1420] sm:$0xff] }
 0xc90   : > { %12983 = vmatpush.bf16.msra.mxu3 %v17225_v46  ;;  %v10679_v46 = vshrl.u32 %v9792_v13, 16  ;;  %v9535_v54 = vor.u32 %v9533_v37, %v22192_v36  ;;  %v10652_v61 = vsel %vm22843_vm11, %v10643_v31, %v10651_v2  ;;  %v9801_v20 = vrot.slane %v22192_v36, 5  ;;  %v17235_v37 = vld [vmem:[%s22745_s1 + $0x1358] sm:$0xff]  ;;  %vm22854_vm11 = vmmov %vm22844_vm2 }
 0xc91   : > { %v10673_v40 = vrot.slane %v10671_v43, 3 }
 0xc92   : > { %12940 = vmatpush.bf16.msrb.mxu2 %v17202_v41  ;;  %12966 = vmatpush.bf16.msra.mxu1 %v17220_v8  ;;  %v17238_v41 = vld [vmem:[%s22745_s1 + $0x1370] sm:$0xff]  ;;  %v10681_v33 = vrot.slane %v10679_v46, 3 }
 0xc93   : > { %12956 = vmatpush.bf16.msra.mxu0 %v17208_v11  ;;  %v10682_v11 = vshll.u32 %v9792_v13, 16  ;;  %v10677_v5 = vor.u32 %v10676_v57, %v10673_v40  ;;  %v17258_v46 = vld [vmem:[%s22745_s1 + $0x1410] sm:$0xff] }
 0xc94   : > { %12984 = vmatpush.bf16.msra.mxu3 %v17224_v50  ;;  %v9453_v3 = vpop.permute.xlu1 %9452  ;;  %v9455_v24 = vpop.permute.xlu0 %9454 }
 0xc95   : > { %v9460_v52 = vsel %vm840_vm1, %v9453_v3, %v9455_v24  ;;  %v10684_v56 = vrot.slane %v10682_v11, 4  ;;  %v9493_v50 = vpop.permute.xlu2 %9492  ;;  %v17241_v11 = vld [vmem:[%s22745_s1 + $0x1388] sm:$0xff] }
 0xc96   : > { %12941 = vmatpush.bf16.msrb.mxu2 %v17201_v47  ;;  %12967 = vmatpush.bf16.msra.mxu1 %v17219_v28  ;;  %v17216_v28 = vld [vmem:[%s22745_s1 + $0x12c0] sm:$0xff] }
 0xc97   : > { %13005 = vmatpush.bf16.msrb.mxu0 %v17247_v32  ;;  %v9775_v32 = vrot.slane %v9460_v52, 5 }
 0xc98   : > { %13033 = vmatpush.bf16.msrb.mxu3 %v17263_v14  ;;  %12957 = vmatmul.bf16.vlgmr.msra.gmra.mxu0 %v10669_v45  ;;  %v9501_v14 = vsel %vm2779_vm3, %v22150_v35, %v22164_v55  ;;  %v17237_v35 = vld [vmem:[%s22745_s1 + $0x1368] sm:$0xff]  ;;  %v9779_v55 = vrot.slane %v9535_v54, 5  ;;  %v17254_v45 = vld [vmem:[%s22745_s1 + $0x13f0] sm:$0xff] }
 0xc99   : > { %v9794_v6 = vsel %vm22842_vm14, %v9775_v32, %v9793_v34  ;;  %v10688_v8 = vshrl.u32 %v9775_v32, 16  ;;  %v10691_v26 = vshll.u32 %v9775_v32, 16  ;;  %v9797_v13 = vrot.slane %v9501_v14, 5  ;;  %vm22853_vm14 = vmmov %vm22836_vm0 }
 0xc9a   : > { %12942 = vmatpush.bf16.msrb.mxu2 %v17200_v49  ;;  %12968 = vmatpush.bf16.msra.mxu1 %v17218_v4  ;;  %v10696_v21 = vshrl.u32 %v9794_v6, 16  ;;  %v10699_v53 = vshll.u32 %v9794_v6, 16  ;;  %v17242_v49 = vld [vmem:[%s22745_s1 + $0x1390] sm:$0xff]  ;;  %v9802_v3 = vsel %vm22846_vm15, %v9779_v55, %v9801_v20  ;;  %v10756_v31 = vshrl.u32 %v9779_v55, 16  ;;  %v17253_v6 = vld [vmem:[%s22745_s1 + $0x13e8] sm:$0xff]  ;;  %vm22858_vm15 = vmmov %vm22836_vm0 }
 0xc9b   : > { %13006 = vmatpush.bf16.msrb.mxu0 %v17246_v12  ;;  %v10690_v12 = vrot.slane %v10688_v8, 3  ;;  %v10693_v51 = vrot.slane %v10691_v26, 4  ;;  %v10759_v34 = vshll.u32 %v9779_v55, 16  ;;  %v10764_v32 = vshrl.u32 %v9802_v3, 16  ;;  %v17257_v8 = vld [vmem:[%s22745_s1 + $0x1408] sm:$0xff]  ;;  %v17240_v26 = vld [vmem:[%s22745_s1 + $0x1380] sm:$0xff] }
 0xc9c   : > { %13034 = vmatpush.bf16.msrb.mxu3 %v17262_v63  ;;  %v10698_v15 = vrot.slane %v10696_v21, 3  ;;  %v10701_v42 = vrot.slane %v10699_v53, 4  ;;  %v9495_v47 = vpop.permute.xlu1 %9494  ;;  %v22227_v58 = vpop.permute.xlu0 %9524  ;;  %v10685_v63 = vor.u32 %v10684_v56, %v10681_v33  ;;  %v17234_v33 = vld [vmem:[%s22745_s1 + $0x1350] sm:$0xff]  ;;  %v10758_v56 = vrot.slane %v10756_v31, 3 }
 0xc9d   : > { %12943 = vmatmul.bf16.vlgmr.msrb.gmra.mxu2 %v10652_v61  ;;  %v10694_v1 = vor.u32 %v10693_v51, %v10690_v12  ;;  %v9500_v9 = vsel %vm2779_vm3, %v9493_v50, %v9495_v47  ;;  %v22256_v52 = vpop.permute.xlu2 %9556  ;;  %v17279_v61 = vld [vmem:[%s22745_s1 + $0x14b8] sm:$0xff]  ;;  %v10761_v50 = vrot.slane %v10759_v34, 4  ;;  %v10766_v21 = vrot.slane %v10764_v32, 3  ;;  %v17252_v12 = vld [vmem:[%s22745_s1 + $0x13e0] sm:$0xff]  ;;  %v17233_v47 = vld [vmem:[%s22745_s1 + $0x1348] sm:$0xff] }
 0xc9e   : > { %12991 = vmatpush.bf16.msra.mxu2 %v17239_v10  ;;  %12969 = vmatpush.bf16.msra.mxu1 %v17217_v60  ;;  %v10702_v48 = vor.u32 %v10701_v42, %v10698_v15  ;;  %v9777_v22 = vrot.slane %v9500_v9, 5  ;;  %v10686_v24 = vsel %vm22847_vm4, %v10677_v5, %v10685_v63  ;;  %v17256_v51 = vld [vmem:[%s22745_s1 + $0x1400] sm:$0xff]  ;;  %v17278_v42 = vld [vmem:[%s22745_s1 + $0x14b0] sm:$0xff] }
 0xc9f   : > { %13007 = vmatpush.bf16.msrb.mxu0 %v17245_v18  ;;  %v17259_v18 = vld [vmem:[%s22745_s1 + $0x1418] sm:$0xff] }
 0xca0   : > { %13035 = vmatpush.bf16.msrb.mxu3 %v17261_v27  ;;  %v9798_v43 = vsel %vm22844_vm2, %v9777_v22, %v9797_v13  ;;  %v10703_v59 = vsel %vm22845_vm10, %v10694_v1, %v10702_v48  ;;  %v10722_v4 = vshrl.u32 %v9777_v22, 16  ;;  %v10725_v10 = vshll.u32 %v9777_v22, 16  ;;  %v17251_v1 = vld [vmem:[%s22745_s1 + $0x13d8] sm:$0xff]  ;;  %v17294_v13 = vld [vmem:[%s22745_s1 + $0x1530] sm:$0xff]  ;;  %v17277_v22 = vld [vmem:[%s22745_s1 + $0x14a8] sm:$0xff] }
 0xca1   : > { %v10730_v36 = vshrl.u32 %v9798_v43, 16  ;;  %v10733_v2 = vshll.u32 %v9798_v43, 16  ;;  %12985 = vmatmul.bf16.vlgmr.msra.gmra.mxu3 %v10703_v59  ;;  %v17250_v43 = vld [vmem:[%s22745_s1 + $0x13d0] sm:$0xff]  ;;  %v17271_v59 = vld [vmem:[%s22745_s1 + $0x1478] sm:$0xff]  ;;  %vm22855_vm2 = vmmov %vm22836_vm0 }
 0xca2   : > { %12992 = vmatpush.bf16.msra.mxu2 %v17238_v41  ;;  %12970 = vmatpush.bf16.msra.mxu1 %v17216_v28  ;;  %v10724_v40 = vrot.slane %v10722_v4, 3  ;;  %v10727_v57 = vrot.slane %v10725_v10, 4  ;;  %v10762_v28 = vor.u32 %v10761_v50, %v10758_v56 }
 0xca3   : > { %13008 = vmatpush.bf16.msrb.mxu0 %v17244_v30  ;;  %v10767_v30 = vshll.u32 %v9802_v3, 16  ;;  %v10732_v60 = vrot.slane %v10730_v36, 3  ;;  %v10735_v41 = vrot.slane %v10733_v2, 4 }
 0xca4   : > { %13036 = vmatpush.bf16.msrb.mxu3 %v17260_v17  ;;  %v22258_v27 = vpop.permute.xlu1 %9558  ;;  %v10728_v17 = vor.u32 %v10727_v57, %v10724_v40 }
 0xca5   : > { %12971 = vmatmul.bf16.vlgmr.msra.gmra.mxu1 %v10686_v24  ;;  %v22263_v54 = vpop.permute.xlu0 %9554  ;;  %v10769_v53 = vrot.slane %v10767_v30, 4  ;;  %v10736_v14 = vor.u32 %v10735_v41, %v10732_v60  ;;  %v9521_v9 = vpop.permute.xlu2 %9520  ;;  %v17293_v24 = vld [vmem:[%s22745_s1 + $0x1528] sm:$0xff]  ;;  %v17292_v60 = vld [vmem:[%s22745_s1 + $0x1520] sm:$0xff]  ;;  %v17275_v41 = vld [vmem:[%s22745_s1 + $0x1498] sm:$0xff] }
 0xca6   : > { %12993 = vmatpush.bf16.msra.mxu2 %v17237_v35  ;;  %13019 = vmatpush.bf16.msrb.mxu1 %v17255_v23 }
 0xca7   : > { %13009 = vmatpush.bf16.msrb.mxu0 %v17243_v62  ;;  %v17295_v62 = vld [vmem:[%s22745_s1 + $0x1538] sm:$0xff]  ;;  %v10770_v35 = vor.u32 %v10769_v53, %v10766_v21  ;;  %v10737_v55 = vsel %vm22836_vm0, %v10728_v17, %v10736_v14  ;;  %v17274_v14 = vld [vmem:[%s22745_s1 + $0x1490] sm:$0xff] }
 0xca8   : > { %13037 = vmatpush.bf16.msrb.mxu3 %v17259_v18  ;;  %v17232_v18 = vld [vmem:[%s22745_s1 + $0x1340] sm:$0xff]  ;;  %v17291_v53 = vld [vmem:[%s22745_s1 + $0x1518] sm:$0xff] }
 0xcaa   : > { %12994 = vmatpush.bf16.msra.mxu2 %v17236_v7  ;;  %13020 = vmatpush.bf16.msrb.mxu1 %v17254_v45  ;;  %v9575_v7 = vsel %vm840_vm1, %v22104_v29, %v22109_v44  ;;  %v17276_v29 = vld [vmem:[%s22745_s1 + $0x14a0] sm:$0xff]  ;;  %v17249_v44 = vld [vmem:[%s22745_s1 + $0x13c8] sm:$0xff] }
 0xcab   : > { %13010 = vmatpush.bf16.msrb.mxu0 %v17242_v49  ;;  %v12748_v49 = vpop.f32.mrf.mxu1  ;;  %v9781_v31 = vrot.slane %v9575_v7, 5  ;;  %v17289_v7 = vld [vmem:[%s22745_s1 + $0x1508] sm:$0xff] }
 0xcac   : > { %13038 = vmatpush.bf16.msrb.mxu3 %v17258_v46  ;;  %v9523_v15 = vpop.permute.xlu1 %9522 }
 0xcad   : > { %v9527_v5 = vsel %vm840_vm1, %v9523_v15, %v22227_v58  ;;  %v10771_v58 = vsel %vm22848_vm7, %v10762_v28, %v10770_v35  ;;  %v17268_v15 = vld [vmem:[%s22745_s1 + $0x1460] sm:$0xff] }
 0xcae   : > { %12995 = vmatpush.bf16.msra.mxu2 %v17235_v37  ;;  %13021 = vmatpush.bf16.msrb.mxu1 %v17253_v6  ;;  %v9519_v23 = vpop.permute.xlu0 %9518  ;;  %v9799_v20 = vrot.slane %v9527_v5, 5  ;;  %v17270_v37 = vld [vmem:[%s22745_s1 + $0x1470] sm:$0xff]  ;;  %v9805_v6 = vrot.slane %v21562_v0, 5 }
 0xcaf   : > { %13011 = vmatpush.bf16.msrb.mxu0 %v17241_v11  ;;  %v9526_v63 = vsel %vm840_vm1, %v9519_v23, %v9521_v9  ;;  %v17286_v5 = vld [vmem:[%s22745_s1 + $0x14f0] sm:$0xff] }
 0xcb0   : > { %13039 = vmatpush.bf16.msrb.mxu3 %v17257_v8  ;;  %v9778_v48 = vrot.slane %v9526_v63, 5  ;;  %v17248_v8 = vld [vmem:[%s22745_s1 + $0x13c0] sm:$0xff]  ;;  %v9806_v56 = vsel %vm22850_vm13, %v9781_v31, %v9805_v6  ;;  %v17290_v23 = vld [vmem:[%s22745_s1 + $0x1510] sm:$0xff]  ;;  %v17273_v63 = vld [vmem:[%s22745_s1 + $0x1488] sm:$0xff] }
 0xcb1   : > { %v10798_v28 = vshrl.u32 %v9806_v56, 16  ;;  %v10801_v35 = vshll.u32 %v9806_v56, 16  ;;  %v17265_v56 = vld [vmem:[%s22745_s1 + $0x1448] sm:$0xff]  ;;  %vm22862_vm13 = vmmov %vm22836_vm0 }
 0xcb2   : > { %12996 = vmatpush.bf16.msra.mxu2 %v17234_v33  ;;  %13022 = vmatpush.bf16.msrb.mxu1 %v17252_v12  ;;  %v9800_v3 = vsel %vm22849_vm12, %v9778_v48, %v9799_v20  ;;  %v10739_v4 = vshrl.u32 %v9778_v48, 16  ;;  %v10742_v10 = vshll.u32 %v9778_v48, 16  ;;  %v12734_v45 = vpop.f32.mrf.mxu0  ;;  %v10790_v12 = vshrl.u32 %v9781_v31, 16  ;;  %v9119_v48 = vld [vmem:[#allocation2 + $0x10] sm:$0x8]  ;;  %vm22861_vm12 = vmmov %vm22836_vm0 }
 0xcb3   : > { %13012 = vmatpush.bf16.msrb.mxu0 %v17240_v26  ;;  %v10747_v36 = vshrl.u32 %v9800_v3, 16  ;;  %v10750_v2 = vshll.u32 %v9800_v3, 16  ;;  %v22325_v46 = vadd.f32 %v12748_v49, %v12734_v45  ;;  %v17287_v26 = vld [vmem:[%s22745_s1 + $0x14f8] sm:$0xff]  ;;  %v12750_v33 = vpop.f32.mrf.mxu1  ;;  %v10803_v49 = vrot.slane %v10801_v35, 4  ;;  %v17266_v45 = vld [vmem:[%s22745_s1 + $0x1450] sm:$0xff] }
 0xcb4   : > { %13040 = vmatpush.bf16.msrb.mxu3 %v17256_v51  ;;  %v9553_v11 = vpop.permute.xlu1 %9552  ;;  %v10741_v32 = vrot.slane %v10739_v4, 3  ;;  %v10744_v30 = vrot.slane %v10742_v10, 4  ;;  %v22397_v3 = vld [vmem:[#allocation2 + $0x1c] sm:$0xf]  ;;  %v12762_v4 = vpop.f32.mrf.mxu3 }
 0xcb5   : > { %v10749_v40 = vrot.slane %v10747_v36, 3  ;;  %v10752_v57 = vrot.slane %v10750_v2, 4  ;;  %v9560_v51 = vsel %vm2779_vm3, %v9553_v11, %v22263_v54  ;;  %v22376_v54 = vpop.permute.xlu2 %9616  ;;  %v17272_v36 = vld [vmem:[%s22745_s1 + $0x1480] sm:$0xff]  ;;  %v17311_v2 = vld [vmem:[%s22745_s1 + $0x15b8] sm:$0xff] }
 0xcb6   : > { %13013 = vmatmul.bf16.vlgmr.msrb.gmra.mxu0 %v10737_v55  ;;  %12997 = vmatpush.bf16.msra.mxu2 %v17233_v47  ;;  %v22336_v34 = vpop.permute.xlu0 %9620  ;;  %v10745_v50 = vor.u32 %v10744_v30, %v10741_v32  ;;  %v10793_v47 = vshll.u32 %v9781_v31, 16  ;;  %v9780_v20 = vrot.slane %v9560_v51, 5  ;;  %v17284_v30 = vld [vmem:[%s22745_s1 + $0x14e0] sm:$0xff] }
 0xcb7   : > { %13061 = vmatpush.bf16.msra.mxu0 %v17279_v61  ;;  %13023 = vmatpush.bf16.msrb.mxu1 %v17251_v1  ;;  %v9110_v61 = vld [vmem:[#allocation2 + $0x34] sm:$0x1]  ;;  %v10753_v0 = vor.u32 %v10752_v57, %v10749_v40  ;;  %v9561_v1 = vsel %vm2779_vm3, %v22256_v52, %v22258_v27  ;;  %v17267_v52 = vld [vmem:[%s22745_s1 + $0x1458] sm:$0xff]  ;;  %v9628_v40 = vunpack.c.l.b16 %v22397_v3 }
 0xcb8   : > { %13089 = vmatpush.bf16.msra.mxu3 %v17295_v62  ;;  %v10773_v32 = vshrl.u32 %v9780_v20, 16  ;;  %v10776_v57 = vshll.u32 %v9780_v20, 16 }
 0xcb9   : > { %13041 = vmatmul.bf16.vlgmr.msrb.gmra.mxu3 %v10771_v58  ;;  %v10754_v9 = vsel %vm22851_vm5, %v10745_v50, %v10753_v0  ;;  %v9121_v58 = vld [vmem:[#allocation2 + $0x28] sm:$0xf]  ;;  %v17283_v0 = vld [vmem:[%s22745_s1 + $0x14d8] sm:$0xff] }
 0xcba   : > { %12998 = vmatpush.bf16.msra.mxu2 %v17232_v18  ;;  %v12736_v21 = vpop.f32.mrf.mxu0  ;;  %v10800_v18 = vrot.slane %v10798_v28, 3  ;;  %v17264_v28 = vld [vmem:[%s22745_s1 + $0x1440] sm:$0xff] }
 0xcbb   : > { %13062 = vmatpush.bf16.msra.mxu0 %v17278_v42  ;;  %13024 = vmatpush.bf16.msrb.mxu1 %v17250_v43  ;;  %v22359_v17 = vadd.f32 %v12750_v33, %v12736_v21  ;;  %v9578_v42 = vunpack.c.l.b16 %v9110_v61  ;;  %v9803_v43 = vrot.slane %v9561_v1, 5  ;;  %v17310_v33 = vld [vmem:[%s22745_s1 + $0x15b0] sm:$0xff] }
 0xcbc   : > { %13090 = vmatpush.bf16.msra.mxu3 %v17294_v13  ;;  %v22366_v62 = vpop.permute.xlu1 %9618  ;;  %v10792_v13 = vrot.slane %v10790_v12, 3  ;;  %v10804_v31 = vor.u32 %v10803_v49, %v10800_v18  ;;  %v10778_v12 = vrot.slane %v10776_v57, 4  ;;  %v17282_v1 = vld [vmem:[%s22745_s1 + $0x14d0] sm:$0xff]  ;;  %v17308_v49 = vld [vmem:[%s22745_s1 + $0x15a0] sm:$0xff]  ;;  %v17301_v57 = vld [vmem:[%s22745_s1 + $0x1568] sm:$0xff] }
 0xcbd   : > { %12999 = vmatmul.bf16.vlgmr.msra.gmra.mxu2 %v21336_v16  ;;  %v17269_v16 = vld [vmem:[%s22745_s1 + $0x1468] sm:$0xff]  ;;  %v9579_v27 = vpack.c.b16 %v9578_v42, %v9578_v42  ;;  %v9804_v10 = vsel %vm22852_vm8, %v9780_v20, %v9803_v43  ;;  %v9687_v61 = vpop.permute.xlu2 %9686  ;;  %v17326_v42 = vld [vmem:[%s22745_s1 + $0x1630] sm:$0xff] }
 0xcbe   : > { %13047 = vmatpush.bf16.msrb.mxu2 %v17271_v59  ;;  %v22371_v55 = vpop.permute.xlu0 %9614  ;;  %v17285_v59 = vld [vmem:[%s22745_s1 + $0x14e8] sm:$0xff] }
 0xcbf   : > { %13063 = vmatpush.bf16.msra.mxu0 %v17277_v22  ;;  %13025 = vmatpush.bf16.msrb.mxu1 %v17249_v44  ;;  %v10795_v22 = vrot.slane %v10793_v47, 4  ;;  %v9807_v11 = vrot.slane %v9579_v27, 5  ;;  %v22412_v44 = vunpack.c.l.b16 %v9121_v58  ;;  %v17309_v47 = vld [vmem:[%s22745_s1 + $0x15a8] sm:$0xff] }
 0xcc0   : > { %13091 = vmatpush.bf16.msra.mxu3 %v17293_v24  ;;  %v22410_v24 = vrot.slane %v21309_v38, 5 }
 0xcc2   : > { %13048 = vmatpush.bf16.msrb.mxu2 %v17270_v37  ;;  %v10796_v37 = vor.u32 %v10795_v22, %v10792_v13  ;;  %v9808_v21 = vsel %vm22854_vm11, %v22410_v24, %v9807_v11  ;;  %v10810_v20 = vshll.u32 %v22410_v24, 16 }
 0xcc3   : > { %13064 = vmatpush.bf16.msra.mxu0 %v17276_v29  ;;  %13026 = vmatpush.bf16.msrb.mxu1 %v17248_v8  ;;  %v9627_v29 = vunpack.c.l.b16 %v9119_v48  ;;  %v17288_v8 = vld [vmem:[%s22745_s1 + $0x1500] sm:$0xff]  ;;  %v10818_v13 = vshll.u32 %v9808_v21, 16 }
 0xcc4   : > { %13092 = vmatpush.bf16.msra.mxu3 %v17292_v60  ;;  %v10781_v60 = vshrl.u32 %v9804_v10, 16  ;;  %v22418_v38 = vpop.permute.xlu1 %9654  ;;  %v10805_v50 = vsel %vm22853_vm14, %v10796_v37, %v10804_v31 }
 0xcc6   : > { %13049 = vmatpush.bf16.msrb.mxu2 %v17269_v16  ;;  %13027 = vmatmul.bf16.vlgmr.msrb.gmra.mxu1 %v10754_v9  ;;  %v22420_v6 = vpop.permute.xlu0 %9656  ;;  %v22426_v16 = vadd.f32 %v12762_v4, %v22325_v46  ;;  %v9631_v46 = vpack.c.b16 %v22412_v44, %v22412_v44  ;;  %v10783_v51 = vrot.slane %v10781_v60, 3  ;;  %v17303_v9 = vld [vmem:[%s22745_s1 + $0x1578] sm:$0xff]  ;;  %v9681_v4 = vpop.permute.xlu2 %9680 }
 0xcc7   : > { %13065 = vmatpush.bf16.msra.mxu0 %v17275_v41  ;;  %13075 = vmatpush.bf16.msra.mxu1 %v17287_v26  ;;  %v10784_v41 = vshll.u32 %v9804_v10, 16  ;;  %v17327_v26 = vld [vmem:[%s22745_s1 + $0x1638] sm:$0xff] }
 0xcc8   : > { %13093 = vmatpush.bf16.msra.mxu3 %v17291_v53  ;;  %v9630_v53 = vpack.c.b16 %v9628_v40, %v9627_v29  ;;  %v9633_v35 = vrot.slane %v9631_v46, 3  ;;  %v17324_v29 = vld [vmem:[%s22745_s1 + $0x1620] sm:$0xff]  ;;  %v17306_v46 = vld [vmem:[%s22745_s1 + $0x1590] sm:$0xff] }
 0xcca   : > { %13050 = vmatpush.bf16.msrb.mxu2 %v17268_v15  ;;  %v10786_v15 = vrot.slane %v10784_v41, 4  ;;  %v9632_v48 = vrot.slane %v9630_v53, 3  ;;  %v9813_v31 = vrot.slane %v9633_v35, 5 }
 0xccb   : > { %13066 = vmatpush.bf16.msra.mxu0 %v17274_v14  ;;  %13076 = vmatpush.bf16.msra.mxu1 %v17286_v5  ;;  %v10775_v14 = vrot.slane %v10773_v32, 3  ;;  %v12764_v5 = vpop.f32.mrf.mxu3  ;;  %v17307_v32 = vld [vmem:[%s22745_s1 + $0x1598] sm:$0xff] }
 0xccc   : > { %13094 = vmatpush.bf16.msra.mxu3 %v17290_v23  ;;  %v10807_v23 = vshrl.u32 %v22410_v24, 16  ;;  %v10787_v27 = vor.u32 %v10786_v15, %v10783_v51  ;;  %v22466_v58 = vadd.f32 %v12764_v5, %v22359_v17  ;;  %v9683_v22 = vpop.permute.xlu1 %9682  ;;  %v9634_v43 = vsel %vm1537_vm6, %v9632_v48, %v9633_v35  ;;  %v17281_v17 = vld [vmem:[%s22745_s1 + $0x14c8] sm:$0xff]  ;;  %vm22856_vm6 = vmmov %vm22852_vm8  ;;  %v17318_v51 = vld [vmem:[%s22745_s1 + $0x15f0] sm:$0xff] }
 0xccd   : > { %v9688_v24 = vsel %vm840_vm1, %v9681_v4, %v9683_v22  ;;  %v9785_v37 = vrot.slane %v9634_v43, 5  ;;  %vm22857_vm10 = vmmov %vm22856_vm6  ;;  %v22531_v35 = vpack.c.b16 %v22412_v44, %v9628_v40  ;;  %v17304_v43 = vld [vmem:[%s22745_s1 + $0x1580] sm:$0xff] }
 0xcce   : > { %13051 = vmatpush.bf16.msrb.mxu2 %v17267_v52  ;;  %v10779_v52 = vor.u32 %v10778_v12, %v10775_v14  ;;  %v9685_v18 = vpop.permute.xlu0 %9684  ;;  %v9787_v60 = vrot.slane %v9688_v24, 5  ;;  %v9126_v14 = vld [vmem:[#allocation2 + $0x34] sm:$0x1]  ;;  %v9659_v22 = vpop.permute.xlu2 %9658  ;;  %vm22859_vm4 = vmmov %vm22856_vm6 }
 0xccf   : > { %13067 = vmatpush.bf16.msra.mxu0 %v17273_v63  ;;  %13077 = vmatpush.bf16.msra.mxu1 %v17285_v59  ;;  %v10815_v63 = vshrl.u32 %v9808_v21, 16  ;;  %v17302_v59 = vld [vmem:[%s22745_s1 + $0x1570] sm:$0xff]  ;;  %v9689_v11 = vsel %vm840_vm1, %v9685_v18, %v9687_v61  ;;  %v17300_v21 = vld [vmem:[%s22745_s1 + $0x1560] sm:$0xff]  ;;  %v10858_v53 = vshrl.u32 %v9785_v37, 16  ;;  %v9730_v5 = vunpack.c.l.b16 %v9126_v14  ;;  %vm22860_vm7 = vmmov %vm22859_vm4 }
 0xcd0   : > { %13095 = vmatpush.bf16.msra.mxu3 %v17289_v7  ;;  %v10809_v7 = vrot.slane %v10807_v23, 3  ;;  %v10788_v10 = vsel %vm22855_vm2, %v10779_v52, %v10787_v27  ;;  %v9817_v41 = vrot.slane %v9689_v11, 5  ;;  %v17316_v11 = vld [vmem:[%s22745_s1 + $0x15e0] sm:$0xff]  ;;  %vm22864_vm5 = vmmov %vm22859_vm4 }
 0xcd1   : > { %v10860_v52 = vrot.slane %v10858_v53, 3 }
 0xcd2   : > { %13052 = vmatpush.bf16.msrb.mxu2 %v17266_v45  ;;  %v10820_v45 = vrot.slane %v10818_v13, 4  ;;  %v9818_v12 = vsel %vm22857_vm10, %v9787_v60, %v9817_v41  ;;  %v17317_v13 = vld [vmem:[%s22745_s1 + $0x15e8] sm:$0xff]  ;;  %v17359_v41 = vld [vmem:[%s22745_s1 + $0x1738] sm:$0xff] }
 0xcd3   : > { %13068 = vmatpush.bf16.msra.mxu0 %v17272_v36  ;;  %13078 = vmatpush.bf16.msra.mxu1 %v17284_v30  ;;  %v10812_v36 = vrot.slane %v10810_v20, 4  ;;  %v17280_v30 = vld [vmem:[%s22745_s1 + $0x14c0] sm:$0xff]  ;;  %v10900_v23 = vshrl.u32 %v9818_v12, 16  ;;  %v10903_v20 = vshll.u32 %v9818_v12, 16 }
 0xcd4   : > { %13096 = vmatpush.bf16.msra.mxu3 %v17288_v8  ;;  %v17319_v8 = vld [vmem:[%s22745_s1 + $0x15f8] sm:$0xff]  ;;  %v9661_v40 = vpop.permute.xlu1 %9660 }
 0xcd5   : > { %v10813_v61 = vor.u32 %v10812_v36, %v10809_v7  ;;  %v10905_v36 = vrot.slane %v10903_v20, 4  ;;  %v9663_v24 = vsel %vm2779_vm3, %v9659_v22, %v9661_v40 }
 0xcd6   : > { %13069 = vmatmul.bf16.vlgmr.msra.gmra.mxu0 %v10805_v50  ;;  %13053 = vmatpush.bf16.msrb.mxu2 %v17265_v56  ;;  %v9814_v56 = vsel %vm22856_vm6, %v9785_v37, %v9813_v31  ;;  %v9623_v50 = vsel %vm840_vm1, %v22366_v62, %v22336_v34  ;;  %v10861_v34 = vshll.u32 %v9785_v37, 16 }
 0xcd7   : > { %13117 = vmatpush.bf16.msrb.mxu0 %v17311_v2  ;;  %13079 = vmatpush.bf16.msra.mxu1 %v17283_v0  ;;  %v10817_v2 = vrot.slane %v10815_v63, 3  ;;  %v9622_v0 = vsel %vm840_vm1, %v22371_v55, %v22376_v54  ;;  %v10866_v62 = vshrl.u32 %v9814_v56, 16  ;;  %v10869_v15 = vshll.u32 %v9814_v56, 16  ;;  %v17322_v54 = vld [vmem:[%s22745_s1 + $0x1610] sm:$0xff]  ;;  %v17299_v63 = vld [vmem:[%s22745_s1 + $0x1558] sm:$0xff] }
 0xcd8   : > { %13145 = vmatpush.bf16.msrb.mxu3 %v17327_v26  ;;  %v17323_v26 = vld [vmem:[%s22745_s1 + $0x1618] sm:$0xff]  ;;  %v10863_v3 = vrot.slane %v10861_v34, 4  ;;  %v17342_v56 = vld [vmem:[%s22745_s1 + $0x16b0] sm:$0xff] }
 0xcd9   : > { %13097 = vmatmul.bf16.vlgmr.msra.gmra.mxu3 %v22182_v39  ;;  %v17325_v39 = vld [vmem:[%s22745_s1 + $0x1628] sm:$0xff]  ;;  %v10868_v27 = vrot.slane %v10866_v62, 3  ;;  %v10871_v44 = vrot.slane %v10869_v15, 4  ;;  %v9701_v62 = vpop.permute.xlu0 %9700  ;;  %v17358_v15 = vld [vmem:[%s22745_s1 + $0x1730] sm:$0xff] }
 0xcda   : > { %13054 = vmatpush.bf16.msrb.mxu2 %v17264_v28  ;;  %v17305_v28 = vld [vmem:[%s22745_s1 + $0x1588] sm:$0xff] }
 0xcdb   : > { %13118 = vmatpush.bf16.msrb.mxu0 %v17310_v33  ;;  %13080 = vmatpush.bf16.msra.mxu1 %v17282_v1  ;;  %v10821_v33 = vor.u32 %v10820_v45, %v10817_v2  ;;  %v10892_v1 = vshrl.u32 %v9787_v60, 16  ;;  %v17343_v2 = vld [vmem:[%s22745_s1 + $0x16b8] sm:$0xff]  ;;  %v10872_v37 = vor.u32 %v10871_v44, %v10868_v27  ;;  %v17357_v27 = vld [vmem:[%s22745_s1 + $0x1728] sm:$0xff]  ;;  %v17340_v44 = vld [vmem:[%s22745_s1 + $0x16a0] sm:$0xff] }
 0xcdc   : > { %13146 = vmatpush.bf16.msrb.mxu3 %v17326_v42  ;;  %v9811_v42 = vrot.slane %v9623_v50, 5 }
 0xcdd   : > { %13055 = vmatmul.bf16.vlgmr.msrb.gmra.mxu2 %v10788_v10  ;;  %v10822_v55 = vsel %vm22858_vm15, %v10813_v61, %v10821_v33  ;;  %v10894_v7 = vrot.slane %v10892_v1, 3  ;;  %v10902_v10 = vrot.slane %v10900_v23, 3  ;;  %v9815_v33 = vrot.slane %v9663_v24, 5  ;;  %v17335_v23 = vld [vmem:[%s22745_s1 + $0x1678] sm:$0xff] }
 0xcde   : > { %13103 = vmatpush.bf16.msra.mxu2 %v17303_v9  ;;  %v10895_v9 = vshll.u32 %v9787_v60, 16  ;;  %v9662_v60 = vsel %vm2779_vm3, %v22418_v38, %v22420_v6  ;;  %v17297_v38 = vld [vmem:[%s22745_s1 + $0x1548] sm:$0xff] }
 0xcdf   : > { %13119 = vmatpush.bf16.msrb.mxu0 %v17309_v47  ;;  %13081 = vmatpush.bf16.msra.mxu1 %v17281_v17  ;;  %v22523_v47 = vrot.slane %v9622_v0, 5  ;;  %v12776_v48 = vpop.f32.mrf.mxu2  ;;  %v9695_v17 = vshll.u32 %v22531_v35, 16  ;;  %v10906_v61 = vor.u32 %v10905_v36, %v10902_v10  ;;  %v17315_v0 = vld [vmem:[%s22745_s1 + $0x15d8] sm:$0xff]  ;;  %v22620_v36 = vpop.permute.xlu1 %9768 }
 0xce0   : > { %13147 = vmatpush.bf16.msrb.mxu3 %v17325_v39  ;;  %v17321_v39 = vld [vmem:[%s22745_s1 + $0x1608] sm:$0xff]  ;;  %v10897_v4 = vrot.slane %v10895_v9, 4  ;;  %v9703_v9 = vpop.permute.xlu2 %9702 }
 0xce1   : > { %v9812_v18 = vsel %vm22859_vm4, %v22523_v47, %v9811_v42  ;;  %v10841_v45 = vshrl.u32 %v22523_v47, 16  ;;  %v10844_v31 = vshll.u32 %v22523_v47, 16 }
 0xce2   : > { %13104 = vmatpush.bf16.msra.mxu2 %v17302_v59  ;;  %v9731_v59 = vpack.c.b16 %v9730_v5, %v9730_v5  ;;  %v17296_v5 = vld [vmem:[%s22745_s1 + $0x1540] sm:$0xff] }
 0xce3   : > { %13120 = vmatpush.bf16.msrb.mxu0 %v17308_v49  ;;  %13082 = vmatpush.bf16.msra.mxu1 %v17280_v30  ;;  %v22545_v49 = vadd.f32 %v12776_v48, %v22426_v16  ;;  %v17298_v16 = vld [vmem:[%s22745_s1 + $0x1550] sm:$0xff]  ;;  %v10852_v30 = vshll.u32 %v9812_v18, 16  ;;  %v10846_v53 = vrot.slane %v10844_v31, 4 }
 0xce4   : > { %13148 = vmatpush.bf16.msrb.mxu3 %v17324_v29  ;;  %v10864_v29 = vor.u32 %v10863_v3, %v10860_v52  ;;  %v9735_v6 = vshll.u32 %v9731_v59, 16  ;;  %v17334_v59 = vld [vmem:[%s22745_s1 + $0x1670] sm:$0xff] }
 0xce5   : > { %v10854_v12 = vrot.slane %v10852_v30, 4  ;;  %v17312_v30 = vld [vmem:[%s22745_s1 + $0x15c0] sm:$0xff] }
 0xce6   : > { %13105 = vmatpush.bf16.msra.mxu2 %v17301_v57  ;;  %13083 = vmatmul.bf16.vlgmr.msra.gmra.mxu1 %v10822_v55  ;;  %v17320_v57 = vld [vmem:[%s22745_s1 + $0x1600] sm:$0xff]  ;;  %v10873_v50 = vsel %vm22836_vm0, %v10864_v29, %v10872_v37  ;;  %v9737_v1 = vrot.slane %v9735_v6, 1 }
 0xce7   : > { %13121 = vmatpush.bf16.msrb.mxu0 %v17307_v32  ;;  %13131 = vmatpush.bf16.msrb.mxu1 %v17319_v8  ;;  %v10849_v32 = vshrl.u32 %v9812_v18, 16  ;;  %v9732_v8 = vrot.slane %v9695_v17, 1  ;;  %v12778_v34 = vpop.f32.mrf.mxu2 }
 0xce8   : > { %13149 = vmatpush.bf16.msrb.mxu3 %v17323_v26  ;;  %v10898_v26 = vor.u32 %v10897_v4, %v10894_v7  ;;  %v22590_v42 = vadd.f32 %v12778_v34, %v22466_v58  ;;  %v17314_v58 = vld [vmem:[%s22745_s1 + $0x15d0] sm:$0xff]  ;;  %v17331_v34 = vld [vmem:[%s22745_s1 + $0x1658] sm:$0xff] }
 0xce9   : > { %v10851_v14 = vrot.slane %v10849_v32, 3 }
 0xcea   : > { %13106 = vmatpush.bf16.msra.mxu2 %v17300_v21  ;;  %v9692_v21 = vshrl.u32 %v22531_v35, 16  ;;  %v10907_v47 = vsel %vm22861_vm12, %v10898_v26, %v10906_v61  ;;  %v17338_v26 = vld [vmem:[%s22745_s1 + $0x1690] sm:$0xff] }
 0xceb   : > { %13122 = vmatpush.bf16.msrb.mxu0 %v17306_v46  ;;  %13132 = vmatpush.bf16.msrb.mxu1 %v17318_v51  ;;  %v10843_v46 = vrot.slane %v10841_v45, 3  ;;  %v9786_v51 = vrot.slane %v9662_v60, 5  ;;  %v17351_v60 = vld [vmem:[%s22745_s1 + $0x16f8] sm:$0xff]  ;;  %v17354_v35 = vld [vmem:[%s22745_s1 + $0x1710] sm:$0xff] }
 0xcec   : > { %13150 = vmatpush.bf16.msrb.mxu3 %v17322_v54  ;;  %v9733_v55 = vor.u32 %v9732_v8, %v9692_v21  ;;  %v17355_v8 = vld [vmem:[%s22745_s1 + $0x1718] sm:$0xff] }
 0xced   : > { %v9816_v54 = vsel %vm22860_vm7, %v9786_v51, %v9815_v33  ;;  %v10847_v20 = vor.u32 %v10846_v53, %v10843_v46  ;;  %v10875_v48 = vshrl.u32 %v9786_v51, 16  ;;  %v17332_v46 = vld [vmem:[%s22745_s1 + $0x1660] sm:$0xff] }
 0xcee   : > { %13107 = vmatpush.bf16.msra.mxu2 %v17299_v63  ;;  %v10855_v63 = vor.u32 %v10854_v12, %v10851_v14  ;;  %v10883_v52 = vshrl.u32 %v9816_v54, 16  ;;  %v10886_v3 = vshll.u32 %v9816_v54, 16  ;;  %v9738_v40 = vsel %vm1455_vm9, %v9733_v55, %v9737_v1  ;;  %vm22863_vm9 = vmmov %vm22836_vm0  ;;  %v9725_v55 = vpop.permute.xlu2 %9724  ;;  %v17353_v54 = vld [vmem:[%s22745_s1 + $0x1708] sm:$0xff] }
 0xcef   : > { %13123 = vmatpush.bf16.msrb.mxu0 %v17305_v28  ;;  %13133 = vmatpush.bf16.msrb.mxu1 %v17317_v13  ;;  %v17341_v28 = vld [vmem:[%s22745_s1 + $0x16a8] sm:$0xff]  ;;  %v9704_v13 = vsel %vm2779_vm3, %v9701_v62, %v9703_v9  ;;  %v9838_v45 = vshrl.u32 %v9738_v40, 16  ;;  %v9841_v24 = vshll.u32 %v9738_v40, 16  ;;  %v10877_v29 = vrot.slane %v10875_v48, 3 }
 0xcf0   : > { %13151 = vmatpush.bf16.msrb.mxu3 %v17321_v39  ;;  %v10878_v39 = vshll.u32 %v9786_v51, 16  ;;  %v9822_v22 = vshrl.u32 %v9704_v13, 16  ;;  %v9825_v18 = vshll.u32 %v9704_v13, 16  ;;  %v10856_v7 = vsel %vm22862_vm13, %v10847_v20, %v10855_v63  ;;  %v9727_v51 = vpop.permute.xlu1 %9726  ;;  %v17349_v62 = vld [vmem:[%s22745_s1 + $0x16e8] sm:$0xff]  ;;  %v17330_v20 = vld [vmem:[%s22745_s1 + $0x1650] sm:$0xff]  ;;  %v17348_v63 = vld [vmem:[%s22745_s1 + $0x16e0] sm:$0xff] }
 0xcf1   : > { %v10885_v4 = vrot.slane %v10883_v52, 3  ;;  %v10888_v10 = vrot.slane %v10886_v3, 4  ;;  %v9840_v61 = vrot.slane %v9838_v45, 4  ;;  %v9843_v33 = vrot.slane %v9841_v24, 5 }
 0xcf2   : > { %13108 = vmatpush.bf16.msra.mxu2 %v17298_v16  ;;  %v17339_v16 = vld [vmem:[%s22745_s1 + $0x1698] sm:$0xff]  ;;  %v10880_v37 = vrot.slane %v10878_v39, 4  ;;  %v9824_v31 = vrot.slane %v9822_v22, 4  ;;  %v9827_v32 = vrot.slane %v9825_v18, 5 }
 0xcf3   : > { %13124 = vmatpush.bf16.msrb.mxu0 %v17304_v43  ;;  %13134 = vmatpush.bf16.msrb.mxu1 %v17316_v11  ;;  %v17313_v43 = vld [vmem:[%s22745_s1 + $0x15c8] sm:$0xff]  ;;  %v9694_v11 = vrot.slane %v9692_v21, 7  ;;  %v9844_v21 = vor.u32 %v9843_v33, %v9840_v61  ;;  %v9771_v61 = vpop.permute.xlu0 %9770  ;;  %v17344_v33 = vld [vmem:[%s22745_s1 + $0x16c0] sm:$0xff] }
 0xcf4   : > { %13152 = vmatpush.bf16.msrb.mxu3 %v17320_v57  ;;  %v17333_v57 = vld [vmem:[%s22745_s1 + $0x1668] sm:$0xff]  ;;  %v9828_v6 = vor.u32 %v9827_v32, %v9824_v31 }
 0xcf5   : > { %v10947_v1 = vshll.u32 %v9844_v21, 16 }
 0xcf6   : > { %13125 = vmatmul.bf16.vlgmr.msrb.gmra.mxu0 %v10873_v50  ;;  %13109 = vmatpush.bf16.msra.mxu2 %v17297_v38  ;;  %v10881_v38 = vor.u32 %v10880_v37, %v10877_v29  ;;  %v17350_v50 = vld [vmem:[%s22745_s1 + $0x16f0] sm:$0xff]  ;;  %v10926_v14 = vshrl.u32 %v9828_v6, 16  ;;  %v10929_v12 = vshll.u32 %v9828_v6, 16  ;;  %v17367_v37 = vld [vmem:[%s22745_s1 + $0x1778] sm:$0xff] }
 0xcf7   : > { %13173 = vmatpush.bf16.msra.mxu0 %v17343_v2  ;;  %13135 = vmatpush.bf16.msrb.mxu1 %v17315_v0  ;;  %v17356_v2 = vld [vmem:[%s22745_s1 + $0x1720] sm:$0xff]  ;;  %v10949_v22 = vrot.slane %v10947_v1, 4  ;;  %v17346_v29 = vld [vmem:[%s22745_s1 + $0x16d0] sm:$0xff] }
 0xcf8   : > { %13201 = vmatpush.bf16.msra.mxu3 %v17359_v41  ;;  %v10889_v41 = vor.u32 %v10888_v10, %v10885_v4 }
 0xcf9   : > { %13153 = vmatmul.bf16.vlgmr.msrb.gmra.mxu3 %v10907_v47  ;;  %v9728_v47 = vsel %vm840_vm1, %v9725_v55, %v9727_v51  ;;  %vm22865_vm1 = vmmov %vm22836_vm0  ;;  %v17361_v51 = vld [vmem:[%s22745_s1 + $0x1748] sm:$0xff]  ;;  %v12804_v55 = vpop.f32.mrf.mxu1 }
 0xcfa   : > { %13110 = vmatpush.bf16.msra.mxu2 %v17296_v5  ;;  %v10890_v0 = vsel %vm22863_vm9, %v10881_v38, %v10889_v41  ;;  %v10944_v5 = vshrl.u32 %v9844_v21, 16  ;;  %v9830_v3 = vshrl.u32 %v9728_v47, 16  ;;  %v17363_v21 = vld [vmem:[%s22745_s1 + $0x1758] sm:$0xff] }
 0xcfb   : > { %13174 = vmatpush.bf16.msra.mxu0 %v17342_v56  ;;  %13136 = vmatpush.bf16.msrb.mxu1 %v17314_v58  ;;  %v9697_v56 = vor.u32 %v9695_v17, %v9694_v11  ;;  %v17337_v17 = vld [vmem:[%s22745_s1 + $0x1688] sm:$0xff]  ;;  %v10928_v58 = vrot.slane %v10926_v14, 3 }
 0xcfc   : > { %13202 = vmatpush.bf16.msra.mxu3 %v17358_v15  ;;  %v9819_v15 = vrot.slane %v9694_v11, 5  ;;  %v10946_v39 = vrot.slane %v10944_v5, 3  ;;  %v9832_v10 = vrot.slane %v9830_v3, 4  ;;  %v17328_v11 = vld [vmem:[%s22745_s1 + $0x1640] sm:$0xff]  ;;  %v12818_v5 = vpop.f32.mrf.mxu3 }
 0xcfd   : > { %13111 = vmatmul.bf16.vlgmr.msra.gmra.mxu2 %v10856_v7  ;;  %v9788_v53 = vrot.slane %v9697_v56, 5  ;;  %v17365_v56 = vld [vmem:[%s22745_s1 + $0x1768] sm:$0xff] }
 0xcfe   : > { %13159 = vmatpush.bf16.msrb.mxu2 %v17335_v23  ;;  %v10931_v23 = vrot.slane %v10929_v12, 4  ;;  %v10950_v24 = vor.u32 %v10949_v22, %v10946_v39 }
 0xcff   : > { %13175 = vmatpush.bf16.msra.mxu0 %v17341_v28  ;;  %13137 = vmatpush.bf16.msrb.mxu1 %v17313_v43  ;;  %v17336_v28 = vld [vmem:[%s22745_s1 + $0x1680] sm:$0xff]  ;;  %v9820_v9 = vsel %vm22864_vm5, %v9788_v53, %v9819_v15  ;;  %v10909_v13 = vshrl.u32 %v9788_v53, 16  ;;  %v10912_v52 = vshll.u32 %v9788_v53, 16  ;;  %v17329_v43 = vld [vmem:[%s22745_s1 + $0x1648] sm:$0xff]  ;;  %v12790_v15 = vpop.f32.mrf.mxu0 }
 0xd00   : > { %13203 = vmatpush.bf16.msra.mxu3 %v17357_v27  ;;  %v9833_v27 = vshll.u32 %v9728_v47, 16  ;;  %v10917_v40 = vshrl.u32 %v9820_v9, 16  ;;  %v10920_v48 = vshll.u32 %v9820_v9, 16  ;;  %v10932_v18 = vor.u32 %v10931_v23, %v10928_v58  ;;  %v12832_v23 = vpop.f32.mrf.mxu2 }
 0xd01   : > { %v10911_v7 = vrot.slane %v10909_v13, 3  ;;  %v10914_v4 = vrot.slane %v10912_v52, 4  ;;  %v12806_v58 = vpop.f32.mrf.mxu1 }
 0xd02   : > { %13160 = vmatpush.bf16.msrb.mxu2 %v17334_v59  ;;  %v17347_v59 = vld [vmem:[%s22745_s1 + $0x16d8] sm:$0xff]  ;;  %v10922_v45 = vrot.slane %v10920_v48, 4  ;;  %v12791_v48 = vadd.f32 %v12790_v15, %v22545_v49 }
 0xd03   : > { %13176 = vmatpush.bf16.msra.mxu0 %v17340_v44  ;;  %13138 = vmatpush.bf16.msrb.mxu1 %v17312_v30  ;;  %v17352_v44 = vld [vmem:[%s22745_s1 + $0x1700] sm:$0xff]  ;;  %v10915_v32 = vor.u32 %v10914_v4, %v10911_v7 }
 0xd04   : > { %13204 = vmatpush.bf16.msra.mxu3 %v17356_v2  ;;  %v9835_v2 = vrot.slane %v9833_v27, 5 }
 0xd06   : > { %13161 = vmatpush.bf16.msrb.mxu2 %v17333_v57  ;;  %13139 = vmatmul.bf16.vlgmr.msrb.gmra.mxu1 %v10890_v0  ;;  %v9836_v31 = vor.u32 %v9835_v2, %v9832_v10  ;;  %v17345_v57 = vld [vmem:[%s22745_s1 + $0x16c8] sm:$0xff] }
 0xd07   : > { %13177 = vmatpush.bf16.msra.mxu0 %v17339_v16  ;;  %13187 = vmatpush.bf16.msra.mxu1 %v17351_v60  ;;  %v10919_v16 = vrot.slane %v10917_v40, 3  ;;  %v17366_v60 = vld [vmem:[%s22745_s1 + $0x1770] sm:$0xff]  ;;  %v12792_v9 = vpop.f32.mrf.mxu0 }
 0xd08   : > { %13205 = vmatpush.bf16.msra.mxu3 %v17355_v8  ;;  %v10935_v41 = vshrl.u32 %v9836_v31, 16  ;;  %v10938_v8 = vshll.u32 %v9836_v31, 16  ;;  %v12834_v52 = vpop.f32.mrf.mxu2  ;;  %v12793_v7 = vadd.f32 %v12792_v9, %v22590_v42 }
 0xd09   : > { %v10923_v30 = vor.u32 %v10922_v45, %v10919_v16  ;;  %v12860_v13 = vpop.f32.mrf.mxu1 }
 0xd0a   : > { %13162 = vmatpush.bf16.msrb.mxu2 %v17332_v46  ;;  %v10937_v38 = vrot.slane %v10935_v41, 3  ;;  %v10940_v6 = vrot.slane %v10938_v8, 4  ;;  %v9772_v46 = vsel %vm2779_vm3, %v22620_v36, %v9771_v61  ;;  %v17362_v36 = vld [vmem:[%s22745_s1 + $0x1750] sm:$0xff]  ;;  %v12807_v45 = vadd.f32 %v12806_v58, %v12793_v7 }
 0xd0b   : > { %13178 = vmatpush.bf16.msra.mxu0 %v17338_v26  ;;  %13188 = vmatpush.bf16.msra.mxu1 %v17350_v50  ;;  %v10924_v26 = vsel %vm22865_vm1, %v10915_v32, %v10923_v30  ;;  %v17364_v50 = vld [vmem:[%s22745_s1 + $0x1760] sm:$0xff]  ;;  %v9846_v0 = vshrl.u32 %v9772_v46, 16 }
 0xd0c   : > { %13206 = vmatpush.bf16.msra.mxu3 %v17354_v35  ;;  %v9849_v35 = vshll.u32 %v9772_v46, 16 }
 0xd0d   : > { %v9848_v53 = vrot.slane %v9846_v0, 4 }
 0xd0e   : > { %13163 = vmatpush.bf16.msrb.mxu2 %v17331_v34  ;;  %v9851_v14 = vrot.slane %v9849_v35, 5 }
 0xd0f   : > { %13179 = vmatpush.bf16.msra.mxu0 %v17337_v17  ;;  %13189 = vmatpush.bf16.msra.mxu1 %v17349_v62  ;;  %v10941_v17 = vor.u32 %v10940_v6, %v10937_v38 }
 0xd10   : > { %13207 = vmatpush.bf16.msra.mxu3 %v17353_v54  ;;  %v9852_v12 = vor.u32 %v9851_v14, %v9848_v53  ;;  %v17360_v54 = vld [vmem:[%s22745_s1 + $0x1740] sm:$0xff]  ;;  %v12888_v40 = vpop.f32.mrf.mxu2 }
 0xd12   : > { %13164 = vmatpush.bf16.msrb.mxu2 %v17330_v20  ;;  %v10953_v34 = vshrl.u32 %v9852_v12, 16  ;;  %v10956_v62 = vshll.u32 %v9852_v12, 16  ;;  %v12820_v20 = vpop.f32.mrf.mxu3 }
 0xd13   : > { %13180 = vmatpush.bf16.msra.mxu0 %v17336_v28  ;;  %13190 = vmatpush.bf16.msra.mxu1 %v17348_v63  ;;  %v12846_v63 = vpop.f32.mrf.mxu0 }
 0xd14   : > { %13208 = vmatpush.bf16.msra.mxu3 %v17352_v44  ;;  %v10955_v47 = vrot.slane %v10953_v34, 3  ;;  %v10958_v28 = vrot.slane %v10956_v62, 4  ;;  %v12862_v44 = vpop.f32.mrf.mxu1 }
 0xd16   : > { %13181 = vmatmul.bf16.vlgmr.msra.gmra.mxu0 %v10932_v18  ;;  %13165 = vmatpush.bf16.msrb.mxu2 %v17329_v43  ;;  %v10959_v1 = vor.u32 %v10958_v28, %v10955_v47  ;;  %v12805_v18 = vadd.f32 %v12804_v55, %v12791_v48 }
 0xd17   : > { %13191 = vmatpush.bf16.msra.mxu1 %v17347_v59  ;;  %13209 = vmatmul.bf16.vlgmr.msra.gmra.mxu3 %v10950_v24 }
 0xd18   : > { %v12890_v59 = vpop.f32.mrf.mxu2  ;;  %v12819_v4 = vadd.f32 %v12818_v5, %v12805_v18 }
 0xd1a   : > { %13166 = vmatpush.bf16.msrb.mxu2 %v17328_v11  ;;  %v12874_v3 = vpop.f32.mrf.mxu3  ;;  %v12833_v2 = vadd.f32 %v12832_v23, %v12819_v4 }
 0xd1b   : > { %13192 = vmatpush.bf16.msra.mxu1 %v17346_v29  ;;  %v12848_v27 = vpop.f32.mrf.mxu0  ;;  %v12821_v29 = vadd.f32 %v12820_v20, %v12807_v45 }
 0xd1c   : > { %v12916_v43 = vpop.f32.mrf.mxu1  ;;  %v12847_v24 = vadd.f32 %v12846_v63, %v12833_v2 }
 0xd1d   : > { %13167 = vmatmul.bf16.vlgmr.msrb.gmra.mxu2 %v10924_v26  ;;  %v12835_v32 = vadd.f32 %v12834_v52, %v12821_v29 }
 0xd1e   : > { %13215 = vmatpush.bf16.msra.mxu2 %v17367_v37  ;;  %v12861_v31 = vadd.f32 %v12860_v13, %v12847_v24 }
 0xd1f   : > { %13193 = vmatpush.bf16.msra.mxu1 %v17345_v57  ;;  %v12849_v57 = vadd.f32 %v12848_v27, %v12835_v32 }
 0xd20   : > { %v12944_v11 = vpop.f32.mrf.mxu2 }
 0xd21   : > { %v12863_v61 = vadd.f32 %v12862_v44, %v12849_v57 }
 0xd22   : > { %13216 = vmatpush.bf16.msra.mxu2 %v17366_v60  ;;  %v12876_v39 = vpop.f32.mrf.mxu3  ;;  %v12875_v60 = vadd.f32 %v12874_v3, %v12861_v31 }
 0xd23   : > { %13194 = vmatpush.bf16.msra.mxu1 %v17344_v33  ;;  %v12902_v22 = vpop.f32.mrf.mxu0 }
 0xd24   : > { %v12918_v37 = vpop.f32.mrf.mxu1  ;;  %v12889_v41 = vadd.f32 %v12888_v40, %v12875_v60 }
 0xd26   : > { %13217 = vmatpush.bf16.msra.mxu2 %v17365_v56  ;;  %13195 = vmatmul.bf16.vlgmr.msra.gmra.mxu1 %v10941_v17  ;;  %v12903_v33 = vadd.f32 %v12902_v22, %v12889_v41  ;;  %v12877_v56 = vadd.f32 %v12876_v39, %v12863_v61 }
 0xd28   : > { %v12946_v26 = vpop.f32.mrf.mxu2  ;;  %v12917_v6 = vadd.f32 %v12916_v43, %v12903_v33  ;;  %v12891_v46 = vadd.f32 %v12890_v59, %v12877_v56 }
 0xd2a   : > { %13218 = vmatpush.bf16.msra.mxu2 %v17364_v50  ;;  %v12930_v10 = vpop.f32.mrf.mxu3 }
 0xd2b   : > { %v12904_v16 = vpop.f32.mrf.mxu0  ;;  %v12931_v17 = vadd.f32 %v12930_v10, %v12917_v6 }
 0xd2c   : > { %v12972_v8 = vpop.f32.mrf.mxu1  ;;  %v12905_v35 = vadd.f32 %v12904_v16, %v12891_v46 }
 0xd2d   : > { %v12945_v53 = vadd.f32 %v12944_v11, %v12931_v17 }
 0xd2e   : > { %13219 = vmatpush.bf16.msra.mxu2 %v17363_v21 }
 0xd32   : > { %13220 = vmatpush.bf16.msra.mxu2 %v17362_v36  ;;  %v12932_v30 = vpop.f32.mrf.mxu3  ;;  %v12919_v36 = vadd.f32 %v12918_v37, %v12905_v35 }
 0xd33   : > { %v12958_v49 = vpop.f32.mrf.mxu0 }
 0xd34   : > { %v12974_v0 = vpop.f32.mrf.mxu1  ;;  %v12959_v12 = vadd.f32 %v12958_v49, %v12945_v53  ;;  %v12933_v62 = vadd.f32 %v12932_v30, %v12919_v36 }
 0xd36   : > { %13221 = vmatpush.bf16.msra.mxu2 %v17361_v51  ;;  %v12973_v15 = vadd.f32 %v12972_v8, %v12959_v12  ;;  %v12947_v55 = vadd.f32 %v12946_v26, %v12933_v62 }
 0xd3a   : > { %13222 = vmatpush.bf16.msra.mxu2 %v17360_v54  ;;  %v12986_v42 = vpop.f32.mrf.mxu3 }
 0xd3b   : > { %v12960_v38 = vpop.f32.mrf.mxu0  ;;  %v12987_v47 = vadd.f32 %v12986_v42, %v12973_v15  ;;  %v17429_v15 = vld [vmem:[%s22747_s3 + $0xd] ss:$0 sm:$0xff] }
 0xd3c   : > { %v12961_v5 = vadd.f32 %v12960_v38, %v12947_v55 }
 0xd3d   : > { %13223 = vmatmul.bf16.vlgmr.msra.gmra.mxu2 %v10959_v1 }
 0xd3e   : > { %v12975_v23 = vadd.f32 %v12974_v0, %v12961_v5 }
 0xd40   : > { %v13000_v50 = vpop.f32.mrf.mxu2 }
 0xd41   : > { %v13001_v1 = vadd.f32 %v13000_v50, %v12987_v47  ;;  %v17430_v47 = vld [vmem:[%s22748_s4 + $0xd] ss:$0 sm:$0xff] }
 0xd42   : > { %v12988_v21 = vpop.f32.mrf.mxu3 }
 0xd43   : > { %v13014_v14 = vpop.f32.mrf.mxu0  ;;  %v13028_v51 = vpop.f32.mrf.mxu1  ;;  %v12989_v63 = vadd.f32 %v12988_v21, %v12975_v23 }
 0xd44   : > { %v13015_v20 = vadd.f32 %v13014_v14, %v13001_v1 }
 0xd46   : > { %v13029_v3 = vadd.f32 %v13028_v51, %v13015_v20 }
 0xd48   : > { %v13002_v34 = vpop.f32.mrf.mxu2 }
 0xd49   : > { %v13003_v27 = vadd.f32 %v13002_v34, %v12989_v63 }
 0xd4a   : > { %v13042_v54 = vpop.f32.mrf.mxu3 }
 0xd4b   : > { %v13016_v28 = vpop.f32.mrf.mxu0  ;;  %v13030_v58 = vpop.f32.mrf.mxu1  ;;  %v13043_v39 = vadd.f32 %v13042_v54, %v13029_v3 }
 0xd4c   : > { %v13017_v48 = vadd.f32 %v13016_v28, %v13003_v27 }
 0xd4e   : > { %v13031_v43 = vadd.f32 %v13030_v58, %v13017_v48 }
 0xd52   : > { %v13044_v13 = vpop.f32.mrf.mxu3 }
 0xd53   : > { %v13070_v52 = vpop.f32.mrf.mxu0  ;;  %v13045_v10 = vadd.f32 %v13044_v13, %v13031_v43 }
 0xd5b   : > { %v13072_v59 = vpop.f32.mrf.mxu0 }
 0xd5c   : > { %v13098_v18 = vpop.f32.mrf.mxu3 }
 0xd60   : > { %v13056_v9 = vpop.f32.mrf.mxu2 }
 0xd61   : > { %v13057_v22 = vadd.f32 %v13056_v9, %v13043_v39 }
 0xd63   : > { %v13084_v44 = vpop.f32.mrf.mxu1  ;;  %v13071_v7 = vadd.f32 %v13070_v52, %v13057_v22 }
 0xd64   : > { %v13100_v24 = vpop.f32.mrf.mxu3 }
 0xd65   : > { %v13085_v16 = vadd.f32 %v13084_v44, %v13071_v7 }
 0xd67   : > { %v13099_v37 = vadd.f32 %v13098_v18, %v13085_v16 }
 0xd68   : > { %v13058_v40 = vpop.f32.mrf.mxu2 }
 0xd69   : > { %v13059_v45 = vadd.f32 %v13058_v40, %v13045_v10 }
 0xd6b   : > { %v13086_v2 = vpop.f32.mrf.mxu1  ;;  %v13073_v29 = vadd.f32 %v13072_v59, %v13059_v45 }
 0xd6d   : > { %v13087_v49 = vadd.f32 %v13086_v2, %v13073_v29 }
 0xd6f   : > { %v13101_v41 = vadd.f32 %v13100_v24, %v13087_v49 }
 0xd73   : > { %v13126_v11 = vpop.f32.mrf.mxu0 }
 0xd7b   : > { %v13128_v8 = vpop.f32.mrf.mxu0 }
 0xd7c   : > { %v13154_v60 = vpop.f32.mrf.mxu3 }
 0xd80   : > { %v13112_v4 = vpop.f32.mrf.mxu2 }
 0xd81   : > { %v13113_v31 = vadd.f32 %v13112_v4, %v13099_v37 }
 0xd83   : > { %v13140_v32 = vpop.f32.mrf.mxu1  ;;  %v13127_v57 = vadd.f32 %v13126_v11, %v13113_v31 }
 0xd84   : > { %v13156_v46 = vpop.f32.mrf.mxu3 }
 0xd85   : > { %v13141_v26 = vadd.f32 %v13140_v32, %v13127_v57 }
 0xd87   : > { %v13155_v38 = vadd.f32 %v13154_v60, %v13141_v26 }
 0xd88   : > { %v13114_v30 = vpop.f32.mrf.mxu2 }
 0xd89   : > { %v13115_v61 = vadd.f32 %v13114_v30, %v13101_v41 }
 0xd8b   : > { %v13142_v33 = vpop.f32.mrf.mxu1  ;;  %v13129_v56 = vadd.f32 %v13128_v8, %v13115_v61 }
 0xd8d   : > { %v13143_v0 = vadd.f32 %v13142_v33, %v13129_v56 }
 0xd8f   : > { %v13157_v53 = vadd.f32 %v13156_v46, %v13143_v0 }
 0xd93   : > { %v13182_v50 = vpop.f32.mrf.mxu0 }
 0xd9a   : > { %v13210_v12 = vpop.f32.mrf.mxu3 }
 0xd9b   : > { %v13184_v51 = vpop.f32.mrf.mxu0 }
 0xda0   : > { %v13168_v42 = vpop.f32.mrf.mxu2 }
 0xda1   : > { %v13169_v6 = vadd.f32 %v13168_v42, %v13155_v38 }
 0xda2   : > { %v13212_v58 = vpop.f32.mrf.mxu3 }
 0xda3   : > { %v13183_v35 = vadd.f32 %v13182_v50, %v13169_v6  ;;  %v13196_v17 = vpop.f32.mrf.mxu1 }
 0xda5   : > { %v13197_v14 = vadd.f32 %v13196_v17, %v13183_v35 }
 0xda7   : > { %v13211_v62 = vadd.f32 %v13210_v12, %v13197_v14 }
 0xda8   : > { %v13170_v21 = vpop.f32.mrf.mxu2 }
 0xda9   : > { %v13171_v36 = vadd.f32 %v13170_v21, %v13157_v53 }
 0xdab   : > { %v13185_v34 = vadd.f32 %v13184_v51, %v13171_v36  ;;  %v13198_v28 = vpop.f32.mrf.mxu1 }
 0xdad   : > { %v13199_v5 = vadd.f32 %v13198_v28, %v13185_v34 }
 0xdaf   : > { %v13213_v20 = vadd.f32 %v13212_v58, %v13199_v5 }
 0xdc0   : > { %v13224_v55 = vpop.f32.mrf.mxu2 }
 0xdc1   : > { %v13225_v54 = vadd.f32 %v13224_v55, %v13211_v62 }
 0xdc3   : > { %v13231_v1 = vmul.f32 %v17429_v15, %v13225_v54 }
 0xdc5   : > { %v13235_v9 = vadd.f32 %v17430_v47, %v13231_v1 }
 0xdc7   : > { %v13237_v23 = vadd.f32 %v13235_v9, %v21195_v19 }
 0xdc8   : > { %v13226_v63 = vpop.f32.mrf.mxu2 }
 0xdc9   : > { %v13239_v13 = vmax.f32 %v13237_v23, 0.0  ;;  %v13227_v52 = vadd.f32 %v13226_v63, %v13213_v20 }
 0xdcb   : > { %13241 = vst [vmem:[%s278_s19] sm:$0xff] %v13239_v13  ;;  %v13232_v3 = vmul.f32 %v17429_v15, %v13227_v52 }
 0xdcd   : > { %v13236_v27 = vadd.f32 %v17430_v47, %v13232_v3 }
 0xdcf   : > { %v13238_v44 = vadd.f32 %v13236_v27, %v21198_v25 }
 0xdd1   : > { %v13240_v40 = vmax.f32 %v13238_v44, 0.0 }
 0xdd3   : > { %13242 = vst [vmem:[%s278_s19 + $0x8] sm:$0xff] %v13240_v40 }
 0xdd4 PF: > { %s17_s24 = sadd.s32 1, %s17456_s24  }
 0xdd5   : > { %p14_p4 = scmp.ge.s32.totalorder %s17_s24, 4  }
 0xdd7   :  { %16 = sbr.rel (!%p14_p4) target bundleno = 1 (0x1), region = 78 }

</bundles_post_ra>
